<compile_context>
chip_gen: v7x
topology: tpu7x:2x2x1
jax: 0.10.0
libtpu: 0.0.40
codegen_flags: <defaults>
</compile_context>

<pallas_src>
import functools

import jax
import jax.numpy as jnp
from jax.experimental import pallas as pl
from jax.experimental.pallas import tpu as pltpu


# ----------------------------------------------------------------------------
# Pallas kernels
# ----------------------------------------------------------------------------
def _conv_row_kernel(x_ref, w_ref, b_ref, o_ref, acc_ref, *,
                     kw, wo, stride, apply_tanh):
    """Direct convolution of one output row.

    grid = (N, Ho, kh).  x_ref block: (1, P, Wq, Cin) — one padded input row,
    split into P column-parity phases (P == stride).  w_ref holds ALL taps
    (kh*kw, Cin, Cout) resident in VMEM.  acc_ref: (Wo, Cout) f32 scratch.
    """
    di = pl.program_id(2)
    kh = pl.num_programs(2)

    @pl.when(di == 0)
    def _():
        acc_ref[...] = jnp.zeros_like(acc_ref)

    for dj in range(kw):
        phase = dj % stride                       # column-parity plane
        off = dj // stride                        # offset inside that plane
        xs = x_ref[0, phase, pl.ds(off, wo), :]   # (Wo, Cin)  bf16
        wt = w_ref[di * kw + dj]                  # (Cin, Cout) bf16
        acc_ref[...] += jnp.dot(xs, wt, preferred_element_type=jnp.float32)

    @pl.when(di == kh - 1)
    def _():
        r = acc_ref[...] + b_ref[...]             # (Wo, Cout) f32, fused bias
        if apply_tanh:                            # fused activation epilogue
            r = jnp.tanh(r)
        o_ref[0] = r.astype(o_ref.dtype)


def _inorm_lrelu_kernel(x_ref, o_ref, *, slope):
    # x_ref: (1, HW, TC).  InstanceNorm2d (affine=False, eps=1e-5) + LeakyReLU.
    x = x_ref[...].astype(jnp.float32)
    mean = jnp.mean(x, axis=1, keepdims=True)
    xc = x - mean
    var = jnp.mean(xc * xc, axis=1, keepdims=True)
    y = xc * jax.lax.rsqrt(var + 1e-5)
    o_ref[...] = jnp.where(y >= 0, y, slope * y).astype(o_ref.dtype)


def _inorm_residual_kernel(x_ref, r_ref, o_ref):
    # out = residual + InstanceNorm(x)   (tail of ResidualBlock)
    x = x_ref[...].astype(jnp.float32)
    mean = jnp.mean(x, axis=1, keepdims=True)
    xc = x - mean
    var = jnp.mean(xc * xc, axis=1, keepdims=True)
    y = xc * jax.lax.rsqrt(var + 1e-5)
    o_ref[...] = (r_ref[...].astype(jnp.float32) + y).astype(o_ref.dtype)


# ----------------------------------------------------------------------------
# Pallas wrappers
# ----------------------------------------------------------------------------
def conv2d_taps(x_pad, w_taps, b_row, *, kh, kw, stride, ho, wo,
                apply_tanh=False, out_dtype=jnp.bfloat16):
    """Direct conv of a pre-padded NHWC tensor with tap-major weights.

    x_pad:  (N, Hp, Wp, Cin)  (already spatially padded), any float dtype.
    w_taps: (kh*kw, Cin, Cout) bf16, row-major over (di, dj).
    b_row:  (1, Cout) f32.
    """
    assert stride in (1, 2)
    N, Hp, Wp, cin = x_pad.shape
    cout = w_taps.shape[-1]
    assert (ho - 1) * stride + kh <= Hp
    assert (wo - 1) * stride + kw <= Wp

    x_pad = x_pad.astype(jnp.bfloat16)
    if stride == 1:
        xs = x_pad[:, :, None, :, :]                       # (N, Hp, 1, Wp, C)
    else:
        xe = x_pad[:, :, 0::2, :]                          # even columns
        xo = x_pad[:, :, 1::2, :]                          # odd  columns
        wq = xe.shape[2]
        if xo.shape[2] < wq:                               # zero-pad odd phase
            xo = jnp.pad(xo, ((0, 0), (0, 0), (0, wq - xo.shape[2]), (0, 0)))
        xs = jnp.stack([xe, xo], axis=2)                   # (N, Hp, 2, Wq, C)
    P, Wq = xs.shape[2], xs.shape[3]
    assert (kw - 1) // stride + wo <= Wq
    xs = xs.reshape(N * Hp, P, Wq, cin)

    kernel = functools.partial(_conv_row_kernel, kw=kw, wo=wo,
                               stride=stride, apply_tanh=apply_tanh)
    out = pl.pallas_call(
        kernel,
        out_shape=jax.ShapeDtypeStruct((N * ho, wo, cout), out_dtype),
        grid_spec=pltpu.PrefetchScalarGridSpec(
            num_scalar_prefetch=0,
            grid=(N, ho, kh),
            in_specs=[
                # one padded input row (all column phases) per step
                pl.BlockSpec((1, P, Wq, cin),
                             lambda n, r, di: (n * Hp + r * stride + di, 0, 0, 0)),
                # full weight, resident in VMEM (constant index map -> one DMA)
                pl.BlockSpec((kh * kw, cin, cout), lambda n, r, di: (0, 0, 0)),
                # bias, resident
                pl.BlockSpec((1, cout), lambda n, r, di: (0, 0)),
            ],
            out_specs=pl.BlockSpec((1, wo, cout),
                                   lambda n, r, di: (n * ho + r, 0, 0)),
            scratch_shapes=[pltpu.VMEM((wo, cout), jnp.float32)],
        ),
        compiler_params=pltpu.CompilerParams(
            dimension_semantics=("parallel", "parallel", "arbitrary")),
    )(xs, w_taps, b_row)
    return out.reshape(N, ho, wo, cout)


def _channel_tile(c):
    return c if c <= 128 else 128


def instance_norm_lrelu(x, slope=0.2):
    N, H, W, C = x.shape
    tc = _channel_tile(C)
    assert C % tc == 0
    xr = x.reshape(N, H * W, C)
    out = pl.pallas_call(
        functools.partial(_inorm_lrelu_kernel, slope=slope),
        out_shape=jax.ShapeDtypeStruct((N, H * W, C), x.dtype),
        grid=(N, C // tc),
        in_specs=[pl.BlockSpec((1, H * W, tc), lambda n, c: (n, 0, c))],
        out_specs=pl.BlockSpec((1, H * W, tc), lambda n, c: (n, 0, c)),
        compiler_params=pltpu.CompilerParams(
            dimension_semantics=("parallel", "parallel")),
    )(xr)
    return out.reshape(N, H, W, C)


def instance_norm_residual(x, res):
    N, H, W, C = x.shape
    tc = _channel_tile(C)
    assert C % tc == 0
    xr = x.reshape(N, H * W, C)
    rr = res.reshape(N, H * W, C)
    out = pl.pallas_call(
        _inorm_residual_kernel,
        out_shape=jax.ShapeDtypeStruct((N, H * W, C), x.dtype),
        grid=(N, C // tc),
        in_specs=[pl.BlockSpec((1, H * W, tc), lambda n, c: (n, 0, c)),
                  pl.BlockSpec((1, H * W, tc), lambda n, c: (n, 0, c))],
        out_specs=pl.BlockSpec((1, H * W, tc), lambda n, c: (n, 0, c)),
        compiler_params=pltpu.CompilerParams(
            dimension_semantics=("parallel", "parallel")),
    )(xr, rr)
    return out.reshape(N, H, W, C)


# ----------------------------------------------------------------------------
# Padding / up-sampling glue (pure data movement, done in XLA)
# ----------------------------------------------------------------------------
def reflect_pad(x, p):
    return jnp.pad(x, ((0, 0), (p, p), (p, p), (0, 0)), mode="reflect")


def zero_pad(x, p):
    return jnp.pad(x, ((0, 0), (p, p), (p, p), (0, 0)))


def conv_transpose2d_subpixel(x, up):
    """ConvTranspose2d(k=3, s=2, p=1, output_padding=1) via sub-pixel
    decomposition: 4 small stride-1 convs on the un-dilated input, results
    interleaved into the 2x-resolution output."""
    N, H, W, _ = x.shape
    xp = jnp.pad(x, ((0, 0), (0, 1), (0, 1), (0, 0)))      # zero halo (bottom/right)
    conv = functools.partial(conv2d_taps, xp, b_row=up["b"],
                             stride=1, ho=H, wo=W)
    p00 = conv(up["w00"], kh=1, kw=1)    # even rows, even cols
    p01 = conv(up["w01"], kh=1, kw=2)    # even rows, odd  cols
    p10 = conv(up["w10"], kh=2, kw=1)    # odd  rows, even cols
    p11 = conv(up["w11"], kh=2, kw=2)    # odd  rows, odd  cols
    cout = p00.shape[-1]
    top = jnp.stack([p00, p01], axis=3)                    # (N, H, W, 2, C)
    bot = jnp.stack([p10, p11], axis=3)
    out = jnp.stack([top, bot], axis=2)                    # (N, H, 2, W, 2, C)
    return out.reshape(N, 2 * H, 2 * W, cout)


# ----------------------------------------------------------------------------
# Generator forward (matches the PyTorch nn.Sequential)
# ----------------------------------------------------------------------------
def generator_forward(prep, x_nchw, num_res=9):
    x = jnp.transpose(x_nchw, (0, 2, 3, 1)).astype(jnp.bfloat16)   # NCHW -> NHWC
    N, H, W, _ = x.shape

    # initial block: ReflectionPad(3) -> Conv7x7 -> InstanceNorm -> LeakyReLU
    h = conv2d_taps(reflect_pad(x, 3), prep["init"]["w"], prep["init"]["b"],
                    kh=7, kw=7, stride=1, ho=H, wo=W)
    h = instance_norm_lrelu(h, 0.2)

    # downsampling: Conv3x3 s2 p1 -> InstanceNorm -> LeakyReLU
    for i in range(2):
        Hi, Wi = h.shape[1], h.shape[2]
        ho, wo = (Hi - 1) // 2 + 1, (Wi - 1) // 2 + 1
        h = conv2d_taps(zero_pad(h, 1),
                        prep[f"down{i}"]["w"], prep[f"down{i}"]["b"],
                        kh=3, kw=3, stride=2, ho=ho, wo=wo)
        h = instance_norm_lrelu(h, 0.2)

    # residual blocks
    for i in range(num_res):
        r = h
        Hi, Wi = h.shape[1], h.shape[2]
        t = conv2d_taps(reflect_pad(h, 1),
                        prep[f"res{i}_1"]["w"], prep[f"res{i}_1"]["b"],
                        kh=3, kw=3, stride=1, ho=Hi, wo=Wi)
        t = instance_norm_lrelu(t, 0.2)
        t = conv2d_taps(reflect_pad(t, 1),
                        prep[f"res{i}_2"]["w"], prep[f"res{i}_2"]["b"],
                        kh=3, kw=3, stride=1, ho=Hi, wo=Wi)
        h = instance_norm_residual(t, r)                   # x + block(x)

    # upsampling: ConvTranspose3x3 s2 p1 op1 -> InstanceNorm -> LeakyReLU
    for i in range(2):
        h = conv_transpose2d_subpixel(h, prep[f"up{i}"])
        h = instance_norm_lrelu(h, 0.2)

    # output block: ReflectionPad(3) -> Conv7x7 -> Tanh (fused in conv epilogue)
    Hi, Wi = h.shape[1], h.shape[2]
    h = conv2d_taps(reflect_pad(h, 3), prep["out"]["w"], prep["out"]["b"],
                    kh=7, kw=7, stride=1, ho=Hi, wo=Wi,
                    apply_tanh=True, out_dtype=jnp.float32)
    return jnp.transpose(h, (0, 3, 1, 2))                  # back to NCHW


# ----------------------------------------------------------------------------
# Parameters: PyTorch-layout init + one-time kernel-layout preparation
# ----------------------------------------------------------------------------
def init_params(key, in_ch=3, out_ch=3, num_res=9):
    """PyTorch layouts: Conv2d (Cout,Cin,kh,kw); ConvTranspose2d (Cin,Cout,kh,kw)."""
    params = {}

    def nxt():
        nonlocal key
        key, sub = jax.random.split(key)
        return sub

    def conv_init(cout, cin, k):
        scale = 1.0 / float(cin * k * k) ** 0.5
        w = jax.random.normal(nxt(), (cout, cin, k, k), jnp.float32) * scale
        b = jax.random.normal(nxt(), (cout,), jnp.float32) * scale
        return w, b

    params["init_w"], params["init_b"] = conv_init(64, in_ch, 7)
    c = 64
    for i in range(2):
        params[f"down{i}_w"], params[f"down{i}_b"] = conv_init(c * 2, c, 3)
        c *= 2
    for i in range(num_res):
        params[f"res{i}_w1"], params[f"res{i}_b1"] = conv_init(c, c, 3)
        params[f"res{i}_w2"], params[f"res{i}_b2"] = conv_init(c, c, 3)
    for i in range(2):
        scale = 1.0 / float(c * 9) ** 0.5
        params[f"up{i}_w"] = jax.random.normal(
            nxt(), (c, c // 2, 3, 3), jnp.float32) * scale
        params[f"up{i}_b"] = jax.random.normal(nxt(), (c // 2,), jnp.float32) * scale
        c //= 2
    params["out_w"], params["out_b"] = conv_init(out_ch, c, 7)
    return params


def prepare_params(params, num_res=9):
    """One-time conversion to kernel-ready layout (hoisted out of the forward):
    bf16 tap-major (kh*kw, Cin, Cout) weights and (1, Cout) f32 bias rows."""
    def conv_prep(w, b):
        cout, cin, kh, kw = w.shape
        taps = jnp.transpose(w, (2, 3, 1, 0)).reshape(kh * kw, cin, cout)
        return {"w": taps.astype(jnp.bfloat16),
                "b": b.reshape(1, cout).astype(jnp.float32)}

    prep = {"init": conv_prep(params["init_w"], params["init_b"]),
            "out": conv_prep(params["out_w"], params["out_b"])}
    for i in range(2):
        prep[f"down{i}"] = conv_prep(params[f"down{i}_w"], params[f"down{i}_b"])
    for i in range(num_res):
        prep[f"res{i}_1"] = conv_prep(params[f"res{i}_w1"], params[f"res{i}_b1"])
        prep[f"res{i}_2"] = conv_prep(params[f"res{i}_w2"], params[f"res{i}_b2"])
    for i in range(2):
        w = params[f"up{i}_w"].astype(jnp.bfloat16)        # (Cin, Cout, 3, 3)
        b = params[f"up{i}_b"].reshape(1, -1).astype(jnp.float32)

        def t(a, bb, _w=w):
            return _w[:, :, a, bb]                         # (Cin, Cout)

        # sub-pixel decomposition of ConvTranspose(k=3, s=2, p=1, op=1)
        prep[f"up{i}"] = {
            "w00": jnp.stack([t(1, 1)], axis=0),
            "w01": jnp.stack([t(1, 2), t(1, 0)], axis=0),
            "w10": jnp.stack([t(2, 1), t(0, 1)], axis=0),
            "w11": jnp.stack([t(2, 2), t(2, 0), t(0, 2), t(0, 0)], axis=0),
            "b": b,
        }
    return prep


if __name__ == "__main__":
    NUM_RES = 9  # Generator default num_res_blocks
    key = jax.random.PRNGKey(0)
    pkey, xkey = jax.random.split(key)
    params = init_params(pkey, in_ch=3, out_ch=3, num_res=NUM_RES)
    prep = prepare_params(params, num_res=NUM_RES)
    x = jax.random.normal(xkey, (2, 3, 16, 16), jnp.float32)  # NCHW, like PyTorch

    fwd = jax.jit(functools.partial(generator_forward, num_res=NUM_RES))
    y = fwd(prep, x)
    jax.block_until_ready(y)
    assert y.shape == (2, 3, 16, 16), y.shape
    assert bool(jnp.all(jnp.isfinite(y)))
    print("KERNEL_OK")
</pallas_src>

<mosaic_0001>
module attributes {stable_mosaic.version = 11 : i64} {
  func.func @_conv_row_kernel(%arg0: i32, %arg1: i32, %arg2: i32, %arg3: memref<1x1x22x3xbf16, #tpu.memory_space<vmem>>, %arg4: memref<49x3x64xbf16, #tpu.memory_space<vmem>>, %arg5: memref<1x64xf32, #tpu.memory_space<vmem>>, %arg6: memref<1x16x64xbf16, #tpu.memory_space<vmem>>, %arg7: memref<16x64xf32, #tpu.memory_space<vmem>>) attributes {dimension_semantics = [#tpu.dimension_semantics<parallel>, #tpu.dimension_semantics<parallel>, #tpu.dimension_semantics<arbitrary>], iteration_bounds = array<i64: 2, 16, 7>, scalar_prefetch = 0 : i64, scratch_operands = 1 : i64, tpu.core_type = #tpu.core_type<tc>, window_params = [{transform_indices = @transform_0, window_bounds = array<i64: 1, 1, 22, 3>}, {pipeline_mode = #tpu.pipeline_mode<synchronous>, transform_indices = @transform_1, window_bounds = array<i64: 49, 3, 64>}, {pipeline_mode = #tpu.pipeline_mode<synchronous>, transform_indices = @transform_2, window_bounds = array<i64: 1, 64>}, {transform_indices = @transform_3, window_bounds = array<i64: 1, 16, 64>}]} {
    %c0_i32 = arith.constant 0 : i32
    %0 = arith.cmpi eq, %arg2, %c0_i32 : i32
    %1 = arith.extui %0 : i1 to i32
    %c0_i32_0 = arith.constant 0 : i32
    %2 = arith.cmpi ne, %1, %c0_i32_0 : i32
    scf.if %2 {
      %cst_79 = arith.constant 0.000000e+00 : f32
      %83 = vector.broadcast %cst_79 : f32 to vector<16x64xf32>
      %c0_80 = arith.constant 0 : index
      %c0_81 = arith.constant 0 : index
      %84 = vector.load %arg7[%c0_80, %c0_81] : memref<16x64xf32, #tpu.memory_space<vmem>>, vector<16x64xf32>
      tpu.vector_store %arg7[%c0_80, %c0_81], %83 {strides = array<i32>} : memref<16x64xf32, #tpu.memory_space<vmem>>, vector<16x64xf32>,
    } else {
    }
    %c0 = arith.constant 0 : index
    %c0_1 = arith.constant 0 : index
    %c0_2 = arith.constant 0 : index
    %c0_3 = arith.constant 0 : index
    %3 = vector.load %arg3[%c0, %c0_1, %c0_2, %c0_3] : memref<1x1x22x3xbf16, #tpu.memory_space<vmem>>, vector<1x1x16x3xbf16>
    %4 = vector.shape_cast %3 : vector<1x1x16x3xbf16> to vector<16x3xbf16>
    %c7_i32 = arith.constant 7 : i32
    %5 = arith.muli %arg2, %c7_i32 : i32
    %c0_i32_4 = arith.constant 0 : i32
    %6 = arith.addi %5, %c0_i32_4 : i32
    %7 = arith.index_cast %6 : i32 to index
    %c0_5 = arith.constant 0 : index
    %c0_6 = arith.constant 0 : index
    %8 = vector.load %arg4[%7, %c0_5, %c0_6] : memref<49x3x64xbf16, #tpu.memory_space<vmem>>, vector<1x3x64xbf16>
    %9 = vector.shape_cast %8 : vector<1x3x64xbf16> to vector<3x64xbf16>
    %c0_7 = arith.constant 0 : index
    %c0_8 = arith.constant 0 : index
    %10 = vector.load %arg7[%c0_7, %c0_8] : memref<16x64xf32, #tpu.memory_space<vmem>>, vector<16x64xf32>
    %cst = arith.constant dense<0.000000e+00> : vector<16x64xf32>
    %11 = tpu.matmul %4, %9, %cst {dimension_numbers = #tpu.dot_dimension_numbers<[1], [0], [0], [1], [0, 0, 1, 1], [], []>} : vector<16x3xbf16>, vector<3x64xbf16>, vector<16x64xf32> -> vector<16x64xf32>
    %12 = arith.addf %10, %11 : vector<16x64xf32>
    %c0_9 = arith.constant 0 : index
    %c0_10 = arith.constant 0 : index
    %13 = vector.load %arg7[%c0_9, %c0_10] : memref<16x64xf32, #tpu.memory_space<vmem>>, vector<16x64xf32>
    tpu.vector_store %arg7[%c0_9, %c0_10], %12 {strides = array<i32>} : memref<16x64xf32, #tpu.memory_space<vmem>>, vector<16x64xf32>,
    %c0_11 = arith.constant 0 : index
    %c0_12 = arith.constant 0 : index
    %c1 = arith.constant 1 : index
    %c0_13 = arith.constant 0 : index
    %14 = vector.load %arg3[%c0_11, %c0_12, %c1, %c0_13] : memref<1x1x22x3xbf16, #tpu.memory_space<vmem>>, vector<1x1x16x3xbf16>
    %15 = vector.shape_cast %14 : vector<1x1x16x3xbf16> to vector<16x3xbf16>
    %c7_i32_14 = arith.constant 7 : i32
    %16 = arith.muli %arg2, %c7_i32_14 : i32
    %c1_i32 = arith.constant 1 : i32
    %17 = arith.addi %16, %c1_i32 : i32
    %18 = arith.index_cast %17 : i32 to index
    %c0_15 = arith.constant 0 : index
    %c0_16 = arith.constant 0 : index
    %19 = vector.load %arg4[%18, %c0_15, %c0_16] : memref<49x3x64xbf16, #tpu.memory_space<vmem>>, vector<1x3x64xbf16>
    %20 = vector.shape_cast %19 : vector<1x3x64xbf16> to vector<3x64xbf16>
    %c0_17 = arith.constant 0 : index
    %c0_18 = arith.constant 0 : index
    %21 = vector.load %arg7[%c0_17, %c0_18] : memref<16x64xf32, #tpu.memory_space<vmem>>, vector<16x64xf32>
    %cst_19 = arith.constant dense<0.000000e+00> : vector<16x64xf32>
    %22 = tpu.matmul %15, %20, %cst_19 {dimension_numbers = #tpu.dot_dimension_numbers<[1], [0], [0], [1], [0, 0, 1, 1], [], []>} : vector<16x3xbf16>, vector<3x64xbf16>, vector<16x64xf32> -> vector<16x64xf32>
    %23 = arith.addf %21, %22 : vector<16x64xf32>
    %c0_20 = arith.constant 0 : index
    %c0_21 = arith.constant 0 : index
    %24 = vector.load %arg7[%c0_20, %c0_21] : memref<16x64xf32, #tpu.memory_space<vmem>>, vector<16x64xf32>
    tpu.vector_store %arg7[%c0_20, %c0_21], %23 {strides = array<i32>} : memref<16x64xf32, #tpu.memory_space<vmem>>, vector<16x64xf32>,
    %c0_22 = arith.constant 0 : index
    %c0_23 = arith.constant 0 : index
    %c2 = arith.constant 2 : index
    %c0_24 = arith.constant 0 : index
    %25 = vector.load %arg3[%c0_22, %c0_23, %c2, %c0_24] : memref<1x1x22x3xbf16, #tpu.memory_space<vmem>>, vector<1x1x16x3xbf16>
    %26 = vector.shape_cast %25 : vector<1x1x16x3xbf16> to vector<16x3xbf16>
    %c7_i32_25 = arith.constant 7 : i32
    %27 = arith.muli %arg2, %c7_i32_25 : i32
    %c2_i32 = arith.constant 2 : i32
    %28 = arith.addi %27, %c2_i32 : i32
    %29 = arith.index_cast %28 : i32 to index
    %c0_26 = arith.constant 0 : index
    %c0_27 = arith.constant 0 : index
    %30 = vector.load %arg4[%29, %c0_26, %c0_27] : memref<49x3x64xbf16, #tpu.memory_space<vmem>>, vector<1x3x64xbf16>
    %31 = vector.shape_cast %30 : vector<1x3x64xbf16> to vector<3x64xbf16>
    %c0_28 = arith.constant 0 : index
    %c0_29 = arith.constant 0 : index
    %32 = vector.load %arg7[%c0_28, %c0_29] : memref<16x64xf32, #tpu.memory_space<vmem>>, vector<16x64xf32>
    %cst_30 = arith.constant dense<0.000000e+00> : vector<16x64xf32>
    %33 = tpu.matmul %26, %31, %cst_30 {dimension_numbers = #tpu.dot_dimension_numbers<[1], [0], [0], [1], [0, 0, 1, 1], [], []>} : vector<16x3xbf16>, vector<3x64xbf16>, vector<16x64xf32> -> vector<16x64xf32>
    %34 = arith.addf %32, %33 : vector<16x64xf32>
    %c0_31 = arith.constant 0 : index
    %c0_32 = arith.constant 0 : index
    %35 = vector.load %arg7[%c0_31, %c0_32] : memref<16x64xf32, #tpu.memory_space<vmem>>, vector<16x64xf32>
    tpu.vector_store %arg7[%c0_31, %c0_32], %34 {strides = array<i32>} : memref<16x64xf32, #tpu.memory_space<vmem>>, vector<16x64xf32>,
    %c0_33 = arith.constant 0 : index
    %c0_34 = arith.constant 0 : index
    %c3 = arith.constant 3 : index
    %c0_35 = arith.constant 0 : index
    %36 = vector.load %arg3[%c0_33, %c0_34, %c3, %c0_35] : memref<1x1x22x3xbf16, #tpu.memory_space<vmem>>, vector<1x1x16x3xbf16>
    %37 = vector.shape_cast %36 : vector<1x1x16x3xbf16> to vector<16x3xbf16>
    %c7_i32_36 = arith.constant 7 : i32
    %38 = arith.muli %arg2, %c7_i32_36 : i32
    %c3_i32 = arith.constant 3 : i32
    %39 = arith.addi %38, %c3_i32 : i32
    %40 = arith.index_cast %39 : i32 to index
    %c0_37 = arith.constant 0 : index
    %c0_38 = arith.constant 0 : index
    %41 = vector.load %arg4[%40, %c0_37, %c0_38] : memref<49x3x64xbf16, #tpu.memory_space<vmem>>, vector<1x3x64xbf16>
    %42 = vector.shape_cast %41 : vector<1x3x64xbf16> to vector<3x64xbf16>
    %c0_39 = arith.constant 0 : index
    %c0_40 = arith.constant 0 : index
    %43 = vector.load %arg7[%c0_39, %c0_40] : memref<16x64xf32, #tpu.memory_space<vmem>>, vector<16x64xf32>
    %cst_41 = arith.constant dense<0.000000e+00> : vector<16x64xf32>
    %44 = tpu.matmul %37, %42, %cst_41 {dimension_numbers = #tpu.dot_dimension_numbers<[1], [0], [0], [1], [0, 0, 1, 1], [], []>} : vector<16x3xbf16>, vector<3x64xbf16>, vector<16x64xf32> -> vector<16x64xf32>
    %45 = arith.addf %43, %44 : vector<16x64xf32>
    %c0_42 = arith.constant 0 : index
    %c0_43 = arith.constant 0 : index
    %46 = vector.load %arg7[%c0_42, %c0_43] : memref<16x64xf32, #tpu.memory_space<vmem>>, vector<16x64xf32>
    tpu.vector_store %arg7[%c0_42, %c0_43], %45 {strides = array<i32>} : memref<16x64xf32, #tpu.memory_space<vmem>>, vector<16x64xf32>,
    %c0_44 = arith.constant 0 : index
    %c0_45 = arith.constant 0 : index
    %c4 = arith.constant 4 : index
    %c0_46 = arith.constant 0 : index
    %47 = vector.load %arg3[%c0_44, %c0_45, %c4, %c0_46] : memref<1x1x22x3xbf16, #tpu.memory_space<vmem>>, vector<1x1x16x3xbf16>
    %48 = vector.shape_cast %47 : vector<1x1x16x3xbf16> to vector<16x3xbf16>
    %c7_i32_47 = arith.constant 7 : i32
    %49 = arith.muli %arg2, %c7_i32_47 : i32
    %c4_i32 = arith.constant 4 : i32
    %50 = arith.addi %49, %c4_i32 : i32
    %51 = arith.index_cast %50 : i32 to index
    %c0_48 = arith.constant 0 : index
    %c0_49 = arith.constant 0 : index
    %52 = vector.load %arg4[%51, %c0_48, %c0_49] : memref<49x3x64xbf16, #tpu.memory_space<vmem>>, vector<1x3x64xbf16>
    %53 = vector.shape_cast %52 : vector<1x3x64xbf16> to vector<3x64xbf16>
    %c0_50 = arith.constant 0 : index
    %c0_51 = arith.constant 0 : index
    %54 = vector.load %arg7[%c0_50, %c0_51] : memref<16x64xf32, #tpu.memory_space<vmem>>, vector<16x64xf32>
    %cst_52 = arith.constant dense<0.000000e+00> : vector<16x64xf32>
    %55 = tpu.matmul %48, %53, %cst_52 {dimension_numbers = #tpu.dot_dimension_numbers<[1], [0], [0], [1], [0, 0, 1, 1], [], []>} : vector<16x3xbf16>, vector<3x64xbf16>, vector<16x64xf32> -> vector<16x64xf32>
    %56 = arith.addf %54, %55 : vector<16x64xf32>
    %c0_53 = arith.constant 0 : index
    %c0_54 = arith.constant 0 : index
    %57 = vector.load %arg7[%c0_53, %c0_54] : memref<16x64xf32, #tpu.memory_space<vmem>>, vector<16x64xf32>
    tpu.vector_store %arg7[%c0_53, %c0_54], %56 {strides = array<i32>} : memref<16x64xf32, #tpu.memory_space<vmem>>, vector<16x64xf32>,
    %c0_55 = arith.constant 0 : index
    %c0_56 = arith.constant 0 : index
    %c5 = arith.constant 5 : index
    %c0_57 = arith.constant 0 : index
    %58 = vector.load %arg3[%c0_55, %c0_56, %c5, %c0_57] : memref<1x1x22x3xbf16, #tpu.memory_space<vmem>>, vector<1x1x16x3xbf16>
    %59 = vector.shape_cast %58 : vector<1x1x16x3xbf16> to vector<16x3xbf16>
    %c7_i32_58 = arith.constant 7 : i32
    %60 = arith.muli %arg2, %c7_i32_58 : i32
    %c5_i32 = arith.constant 5 : i32
    %61 = arith.addi %60, %c5_i32 : i32
    %62 = arith.index_cast %61 : i32 to index
    %c0_59 = arith.constant 0 : index
    %c0_60 = arith.constant 0 : index
    %63 = vector.load %arg4[%62, %c0_59, %c0_60] : memref<49x3x64xbf16, #tpu.memory_space<vmem>>, vector<1x3x64xbf16>
    %64 = vector.shape_cast %63 : vector<1x3x64xbf16> to vector<3x64xbf16>
    %c0_61 = arith.constant 0 : index
    %c0_62 = arith.constant 0 : index
    %65 = vector.load %arg7[%c0_61, %c0_62] : memref<16x64xf32, #tpu.memory_space<vmem>>, vector<16x64xf32>
    %cst_63 = arith.constant dense<0.000000e+00> : vector<16x64xf32>
    %66 = tpu.matmul %59, %64, %cst_63 {dimension_numbers = #tpu.dot_dimension_numbers<[1], [0], [0], [1], [0, 0, 1, 1], [], []>} : vector<16x3xbf16>, vector<3x64xbf16>, vector<16x64xf32> -> vector<16x64xf32>
    %67 = arith.addf %65, %66 : vector<16x64xf32>
    %c0_64 = arith.constant 0 : index
    %c0_65 = arith.constant 0 : index
    %68 = vector.load %arg7[%c0_64, %c0_65] : memref<16x64xf32, #tpu.memory_space<vmem>>, vector<16x64xf32>
    tpu.vector_store %arg7[%c0_64, %c0_65], %67 {strides = array<i32>} : memref<16x64xf32, #tpu.memory_space<vmem>>, vector<16x64xf32>,
    %c0_66 = arith.constant 0 : index
    %c0_67 = arith.constant 0 : index
    %c6 = arith.constant 6 : index
    %c0_68 = arith.constant 0 : index
    %69 = vector.load %arg3[%c0_66, %c0_67, %c6, %c0_68] : memref<1x1x22x3xbf16, #tpu.memory_space<vmem>>, vector<1x1x16x3xbf16>
    %70 = vector.shape_cast %69 : vector<1x1x16x3xbf16> to vector<16x3xbf16>
    %c7_i32_69 = arith.constant 7 : i32
    %71 = arith.muli %arg2, %c7_i32_69 : i32
    %c6_i32 = arith.constant 6 : i32
    %72 = arith.addi %71, %c6_i32 : i32
    %73 = arith.index_cast %72 : i32 to index
    %c0_70 = arith.constant 0 : index
    %c0_71 = arith.constant 0 : index
    %74 = vector.load %arg4[%73, %c0_70, %c0_71] : memref<49x3x64xbf16, #tpu.memory_space<vmem>>, vector<1x3x64xbf16>
    %75 = vector.shape_cast %74 : vector<1x3x64xbf16> to vector<3x64xbf16>
    %c0_72 = arith.constant 0 : index
    %c0_73 = arith.constant 0 : index
    %76 = vector.load %arg7[%c0_72, %c0_73] : memref<16x64xf32, #tpu.memory_space<vmem>>, vector<16x64xf32>
    %cst_74 = arith.constant dense<0.000000e+00> : vector<16x64xf32>
    %77 = tpu.matmul %70, %75, %cst_74 {dimension_numbers = #tpu.dot_dimension_numbers<[1], [0], [0], [1], [0, 0, 1, 1], [], []>} : vector<16x3xbf16>, vector<3x64xbf16>, vector<16x64xf32> -> vector<16x64xf32>
    %78 = arith.addf %76, %77 : vector<16x64xf32>
    %c0_75 = arith.constant 0 : index
    %c0_76 = arith.constant 0 : index
    %79 = vector.load %arg7[%c0_75, %c0_76] : memref<16x64xf32, #tpu.memory_space<vmem>>, vector<16x64xf32>
    tpu.vector_store %arg7[%c0_75, %c0_76], %78 {strides = array<i32>} : memref<16x64xf32, #tpu.memory_space<vmem>>, vector<16x64xf32>,
    %c6_i32_77 = arith.constant 6 : i32
    %80 = arith.cmpi eq, %arg2, %c6_i32_77 : i32
    %81 = arith.extui %80 : i1 to i32
    %c0_i32_78 = arith.constant 0 : i32
    %82 = arith.cmpi ne, %81, %c0_i32_78 : i32
    scf.if %82 {
      %c0_79 = arith.constant 0 : index
      %c0_80 = arith.constant 0 : index
      %83 = vector.load %arg7[%c0_79, %c0_80] : memref<16x64xf32, #tpu.memory_space<vmem>>, vector<16x64xf32>
      %c0_81 = arith.constant 0 : index
      %c0_82 = arith.constant 0 : index
      %84 = vector.load %arg5[%c0_81, %c0_82] : memref<1x64xf32, #tpu.memory_space<vmem>>, vector<1x64xf32>
      %85 = vector.broadcast %84 : vector<1x64xf32> to vector<16x64xf32>
      %86 = arith.addf %83, %85 : vector<16x64xf32>
      %87 = arith.truncf %86 : vector<16x64xf32> to vector<16x64xbf16>
      %c0_83 = arith.constant 0 : index
      %c0_84 = arith.constant 0 : index
      %c0_85 = arith.constant 0 : index
      %88 = vector.load %arg6[%c0_83, %c0_84, %c0_85] : memref<1x16x64xbf16, #tpu.memory_space<vmem>>, vector<1x16x64xbf16>
      %89 = vector.shape_cast %88 : vector<1x16x64xbf16> to vector<16x64xbf16>
      %90 = vector.shape_cast %87 : vector<16x64xbf16> to vector<1x16x64xbf16>
      tpu.vector_store %arg6[%c0_83, %c0_84, %c0_85], %90 {strides = array<i32>} : memref<1x16x64xbf16, #tpu.memory_space<vmem>>, vector<1x16x64xbf16>,
    } else {
    }
    return
  }
  func.func @transform_0(%arg0: i32, %arg1: i32, %arg2: i32) -> (i32, i32, i32, i32) {
    %c22_i32 = arith.constant 22 : i32
    %0 = arith.muli %arg0, %c22_i32 : i32
    %c1_i32 = arith.constant 1 : i32
    %1 = arith.muli %arg1, %c1_i32 : i32
    %2 = arith.addi %0, %1 : i32
    %3 = arith.addi %2, %arg2 : i32
    %c0_i32 = arith.constant 0 : i32
    %c0_i32_0 = arith.constant 0 : i32
    %c0_i32_1 = arith.constant 0 : i32
    %c0_i32_2 = arith.constant 0 : i32
    return %3, %c0_i32, %c0_i32_0, %c0_i32_1 : i32, i32, i32, i32
  }
  func.func @transform_1(%arg0: i32, %arg1: i32, %arg2: i32) -> (i32, i32, i32) {
    %c0_i32 = arith.constant 0 : i32
    %c0_i32_0 = arith.constant 0 : i32
    %c0_i32_1 = arith.constant 0 : i32
    %c0_i32_2 = arith.constant 0 : i32
    return %c0_i32, %c0_i32_0, %c0_i32_1 : i32, i32, i32
  }
  func.func @transform_2(%arg0: i32, %arg1: i32, %arg2: i32) -> (i32, i32) {
    %c0_i32 = arith.constant 0 : i32
    %c0_i32_0 = arith.constant 0 : i32
    %c0_i32_1 = arith.constant 0 : i32
    return %c0_i32, %c0_i32_0 : i32, i32
  }
  func.func @transform_3(%arg0: i32, %arg1: i32, %arg2: i32) -> (i32, i32, i32) {
    %c16_i32 = arith.constant 16 : i32
    %0 = arith.muli %arg0, %c16_i32 : i32
    %1 = arith.addi %0, %arg1 : i32
    %c0_i32 = arith.constant 0 : i32
    %c0_i32_0 = arith.constant 0 : i32
    %c0_i32_1 = arith.constant 0 : i32
    return %1, %c0_i32, %c0_i32_0 : i32, i32, i32
  }
}

module attributes {stable_mosaic.version = 11 : i64} {
  func.func @_inorm_lrelu_kernel(%arg0: i32, %arg1: i32, %arg2: memref<1x256x64xbf16, #tpu.memory_space<vmem>>, %arg3: memref<1x256x64xbf16, #tpu.memory_space<vmem>>) attributes {dimension_semantics = [#tpu.dimension_semantics<parallel>, #tpu.dimension_semantics<parallel>], iteration_bounds = array<i64: 2, 1>, scalar_prefetch = 0 : i64, scratch_operands = 0 : i64, tpu.core_type = #tpu.core_type<tc>, window_params = [{transform_indices = @transform_0, window_bounds = array<i64: 1, 256, 64>}, {transform_indices = @transform_1, window_bounds = array<i64: 1, 256, 64>}]} {
    %c0 = arith.constant 0 : index
    %c0_0 = arith.constant 0 : index
    %c0_1 = arith.constant 0 : index
    %0 = vector.load %arg2[%c0, %c0_0, %c0_1] : memref<1x256x64xbf16, #tpu.memory_space<vmem>>, vector<1x256x64xbf16>
    %1 = arith.extf %0 : vector<1x256x64xbf16> to vector<1x256x64xf32>
    %cst = arith.constant dense<0.000000e+00> : vector<1x64xf32>
    %2 = vector.multi_reduction <add>, %1, %cst [1] : vector<1x256x64xf32> to vector<1x64xf32>
    %3 = vector.shape_cast %2 : vector<1x64xf32> to vector<1x1x64xf32>
    %cst_2 = arith.constant 2.560000e+02 : f32
    %4 = vector.broadcast %cst_2 : f32 to vector<1x1x64xf32>
    %5 = arith.divf %3, %4 : vector<1x1x64xf32>
    %6 = vector.broadcast %5 : vector<1x1x64xf32> to vector<1x256x64xf32>
    %7 = arith.subf %1, %6 : vector<1x256x64xf32>
    %8 = arith.mulf %7, %7 : vector<1x256x64xf32>
    %cst_3 = arith.constant dense<0.000000e+00> : vector<1x64xf32>
    %9 = vector.multi_reduction <add>, %8, %cst_3 [1] : vector<1x256x64xf32> to vector<1x64xf32>
    %10 = vector.shape_cast %9 : vector<1x64xf32> to vector<1x1x64xf32>
    %cst_4 = arith.constant 2.560000e+02 : f32
    %11 = vector.broadcast %cst_4 : f32 to vector<1x1x64xf32>
    %12 = arith.divf %10, %11 : vector<1x1x64xf32>
    %cst_5 = arith.constant 9.99999974E-6 : f32
    %13 = vector.broadcast %cst_5 : f32 to vector<1x1x64xf32>
    %14 = arith.addf %12, %13 : vector<1x1x64xf32>
    %15 = math.rsqrt %14 : vector<1x1x64xf32>
    %16 = vector.broadcast %15 : vector<1x1x64xf32> to vector<1x256x64xf32>
    %17 = arith.mulf %7, %16 : vector<1x256x64xf32>
    %cst_6 = arith.constant 0.000000e+00 : f32
    %18 = vector.broadcast %cst_6 : f32 to vector<1x256x64xf32>
    %19 = arith.cmpf oge, %17, %18 : vector<1x256x64xf32>
    %cst_7 = arith.constant 2.000000e-01 : f32
    %20 = vector.broadcast %cst_7 : f32 to vector<1x256x64xf32>
    %21 = arith.mulf %20, %17 : vector<1x256x64xf32>
    %22 = arith.select %19, %17, %21 : vector<1x256x64xi1>, vector<1x256x64xf32>
    %23 = arith.truncf %22 : vector<1x256x64xf32> to vector<1x256x64xbf16>
    %c0_8 = arith.constant 0 : index
    %c0_9 = arith.constant 0 : index
    %c0_10 = arith.constant 0 : index
    %24 = vector.load %arg3[%c0_8, %c0_9, %c0_10] : memref<1x256x64xbf16, #tpu.memory_space<vmem>>, vector<1x256x64xbf16>
    tpu.vector_store %arg3[%c0_8, %c0_9, %c0_10], %23 {strides = array<i32>} : memref<1x256x64xbf16, #tpu.memory_space<vmem>>, vector<1x256x64xbf16>,
    return
  }
  func.func @transform_0(%arg0: i32, %arg1: i32) -> (i32, i32, i32) {
    %c0_i32 = arith.constant 0 : i32
    %c0_i32_0 = arith.constant 0 : i32
    return %arg0, %c0_i32, %arg1 : i32, i32, i32
  }
  func.func @transform_1(%arg0: i32, %arg1: i32) -> (i32, i32, i32) {
    %c0_i32 = arith.constant 0 : i32
    %c0_i32_0 = arith.constant 0 : i32
    return %arg0, %c0_i32, %arg1 : i32, i32, i32
  }
}

module attributes {stable_mosaic.version = 11 : i64} {
  func.func @_conv_row_kernel(%arg0: i32, %arg1: i32, %arg2: i32, %arg3: memref<1x2x9x64xbf16, #tpu.memory_space<vmem>>, %arg4: memref<9x64x128xbf16, #tpu.memory_space<vmem>>, %arg5: memref<1x128xf32, #tpu.memory_space<vmem>>, %arg6: memref<1x8x128xbf16, #tpu.memory_space<vmem>>, %arg7: memref<8x128xf32, #tpu.memory_space<vmem>>) attributes {dimension_semantics = [#tpu.dimension_semantics<parallel>, #tpu.dimension_semantics<parallel>, #tpu.dimension_semantics<arbitrary>], iteration_bounds = array<i64: 2, 8, 3>, scalar_prefetch = 0 : i64, scratch_operands = 1 : i64, tpu.core_type = #tpu.core_type<tc>, window_params = [{transform_indices = @transform_0, window_bounds = array<i64: 1, 2, 9, 64>}, {pipeline_mode = #tpu.pipeline_mode<synchronous>, transform_indices = @transform_1, window_bounds = array<i64: 9, 64, 128>}, {pipeline_mode = #tpu.pipeline_mode<synchronous>, transform_indices = @transform_2, window_bounds = array<i64: 1, 128>}, {transform_indices = @transform_3, window_bounds = array<i64: 1, 8, 128>}]} {
    %c0_i32 = arith.constant 0 : i32
    %0 = arith.cmpi eq, %arg2, %c0_i32 : i32
    %1 = arith.extui %0 : i1 to i32
    %c0_i32_0 = arith.constant 0 : i32
    %2 = arith.cmpi ne, %1, %c0_i32_0 : i32
    scf.if %2 {
      %cst_36 = arith.constant 0.000000e+00 : f32
      %39 = vector.broadcast %cst_36 : f32 to vector<8x128xf32>
      %c0_37 = arith.constant 0 : index
      %c0_38 = arith.constant 0 : index
      %40 = vector.load %arg7[%c0_37, %c0_38] : memref<8x128xf32, #tpu.memory_space<vmem>>, vector<8x128xf32>
      tpu.vector_store %arg7[%c0_37, %c0_38], %39 {strides = array<i32>} : memref<8x128xf32, #tpu.memory_space<vmem>>, vector<8x128xf32>,
    } else {
    }
    %c0 = arith.constant 0 : index
    %c0_1 = arith.constant 0 : index
    %c0_2 = arith.constant 0 : index
    %c0_3 = arith.constant 0 : index
    %3 = vector.load %arg3[%c0, %c0_1, %c0_2, %c0_3] : memref<1x2x9x64xbf16, #tpu.memory_space<vmem>>, vector<1x1x8x64xbf16>
    %4 = vector.shape_cast %3 : vector<1x1x8x64xbf16> to vector<8x64xbf16>
    %c3_i32 = arith.constant 3 : i32
    %5 = arith.muli %arg2, %c3_i32 : i32
    %c0_i32_4 = arith.constant 0 : i32
    %6 = arith.addi %5, %c0_i32_4 : i32
    %7 = arith.index_cast %6 : i32 to index
    %c0_5 = arith.constant 0 : index
    %c0_6 = arith.constant 0 : index
    %8 = vector.load %arg4[%7, %c0_5, %c0_6] : memref<9x64x128xbf16, #tpu.memory_space<vmem>>, vector<1x64x128xbf16>
    %9 = vector.shape_cast %8 : vector<1x64x128xbf16> to vector<64x128xbf16>
    %c0_7 = arith.constant 0 : index
    %c0_8 = arith.constant 0 : index
    %10 = vector.load %arg7[%c0_7, %c0_8] : memref<8x128xf32, #tpu.memory_space<vmem>>, vector<8x128xf32>
    %cst = arith.constant dense<0.000000e+00> : vector<8x128xf32>
    %11 = tpu.matmul %4, %9, %cst {dimension_numbers = #tpu.dot_dimension_numbers<[1], [0], [0], [1], [0, 0, 1, 1], [], []>} : vector<8x64xbf16>, vector<64x128xbf16>, vector<8x128xf32> -> vector<8x128xf32>
    %12 = arith.addf %10, %11 : vector<8x128xf32>
    %c0_9 = arith.constant 0 : index
    %c0_10 = arith.constant 0 : index
    %13 = vector.load %arg7[%c0_9, %c0_10] : memref<8x128xf32, #tpu.memory_space<vmem>>, vector<8x128xf32>
    tpu.vector_store %arg7[%c0_9, %c0_10], %12 {strides = array<i32>} : memref<8x128xf32, #tpu.memory_space<vmem>>, vector<8x128xf32>,
    %c0_11 = arith.constant 0 : index
    %c1 = arith.constant 1 : index
    %c0_12 = arith.constant 0 : index
    %c0_13 = arith.constant 0 : index
    %14 = vector.load %arg3[%c0_11, %c1, %c0_12, %c0_13] : memref<1x2x9x64xbf16, #tpu.memory_space<vmem>>, vector<1x1x8x64xbf16>
    %15 = vector.shape_cast %14 : vector<1x1x8x64xbf16> to vector<8x64xbf16>
    %c3_i32_14 = arith.constant 3 : i32
    %16 = arith.muli %arg2, %c3_i32_14 : i32
    %c1_i32 = arith.constant 1 : i32
    %17 = arith.addi %16, %c1_i32 : i32
    %18 = arith.index_cast %17 : i32 to index
    %c0_15 = arith.constant 0 : index
    %c0_16 = arith.constant 0 : index
    %19 = vector.load %arg4[%18, %c0_15, %c0_16] : memref<9x64x128xbf16, #tpu.memory_space<vmem>>, vector<1x64x128xbf16>
    %20 = vector.shape_cast %19 : vector<1x64x128xbf16> to vector<64x128xbf16>
    %c0_17 = arith.constant 0 : index
    %c0_18 = arith.constant 0 : index
    %21 = vector.load %arg7[%c0_17, %c0_18] : memref<8x128xf32, #tpu.memory_space<vmem>>, vector<8x128xf32>
    %cst_19 = arith.constant dense<0.000000e+00> : vector<8x128xf32>
    %22 = tpu.matmul %15, %20, %cst_19 {dimension_numbers = #tpu.dot_dimension_numbers<[1], [0], [0], [1], [0, 0, 1, 1], [], []>} : vector<8x64xbf16>, vector<64x128xbf16>, vector<8x128xf32> -> vector<8x128xf32>
    %23 = arith.addf %21, %22 : vector<8x128xf32>
    %c0_20 = arith.constant 0 : index
    %c0_21 = arith.constant 0 : index
    %24 = vector.load %arg7[%c0_20, %c0_21] : memref<8x128xf32, #tpu.memory_space<vmem>>, vector<8x128xf32>
    tpu.vector_store %arg7[%c0_20, %c0_21], %23 {strides = array<i32>} : memref<8x128xf32, #tpu.memory_space<vmem>>, vector<8x128xf32>,
    %c0_22 = arith.constant 0 : index
    %c0_23 = arith.constant 0 : index
    %c1_24 = arith.constant 1 : index
    %c0_25 = arith.constant 0 : index
    %25 = vector.load %arg3[%c0_22, %c0_23, %c1_24, %c0_25] : memref<1x2x9x64xbf16, #tpu.memory_space<vmem>>, vector<1x1x8x64xbf16>
    %26 = vector.shape_cast %25 : vector<1x1x8x64xbf16> to vector<8x64xbf16>
    %c3_i32_26 = arith.constant 3 : i32
    %27 = arith.muli %arg2, %c3_i32_26 : i32
    %c2_i32 = arith.constant 2 : i32
    %28 = arith.addi %27, %c2_i32 : i32
    %29 = arith.index_cast %28 : i32 to index
    %c0_27 = arith.constant 0 : index
    %c0_28 = arith.constant 0 : index
    %30 = vector.load %arg4[%29, %c0_27, %c0_28] : memref<9x64x128xbf16, #tpu.memory_space<vmem>>, vector<1x64x128xbf16>
    %31 = vector.shape_cast %30 : vector<1x64x128xbf16> to vector<64x128xbf16>
    %c0_29 = arith.constant 0 : index
    %c0_30 = arith.constant 0 : index
    %32 = vector.load %arg7[%c0_29, %c0_30] : memref<8x128xf32, #tpu.memory_space<vmem>>, vector<8x128xf32>
    %cst_31 = arith.constant dense<0.000000e+00> : vector<8x128xf32>
    %33 = tpu.matmul %26, %31, %cst_31 {dimension_numbers = #tpu.dot_dimension_numbers<[1], [0], [0], [1], [0, 0, 1, 1], [], []>} : vector<8x64xbf16>, vector<64x128xbf16>, vector<8x128xf32> -> vector<8x128xf32>
    %34 = arith.addf %32, %33 : vector<8x128xf32>
    %c0_32 = arith.constant 0 : index
    %c0_33 = arith.constant 0 : index
    %35 = vector.load %arg7[%c0_32, %c0_33] : memref<8x128xf32, #tpu.memory_space<vmem>>, vector<8x128xf32>
    tpu.vector_store %arg7[%c0_32, %c0_33], %34 {strides = array<i32>} : memref<8x128xf32, #tpu.memory_space<vmem>>, vector<8x128xf32>,
    %c2_i32_34 = arith.constant 2 : i32
    %36 = arith.cmpi eq, %arg2, %c2_i32_34 : i32
    %37 = arith.extui %36 : i1 to i32
    %c0_i32_35 = arith.constant 0 : i32
    %38 = arith.cmpi ne, %37, %c0_i32_35 : i32
    scf.if %38 {
      %c0_36 = arith.constant 0 : index
      %c0_37 = arith.constant 0 : index
      %39 = vector.load %arg7[%c0_36, %c0_37] : memref<8x128xf32, #tpu.memory_space<vmem>>, vector<8x128xf32>
      %c0_38 = arith.constant 0 : index
      %c0_39 = arith.constant 0 : index
      %40 = vector.load %arg5[%c0_38, %c0_39] : memref<1x128xf32, #tpu.memory_space<vmem>>, vector<1x128xf32>
      %41 = vector.broadcast %40 : vector<1x128xf32> to vector<8x128xf32>
      %42 = arith.addf %39, %41 : vector<8x128xf32>
      %43 = arith.truncf %42 : vector<8x128xf32> to vector<8x128xbf16>
      %c0_40 = arith.constant 0 : index
      %c0_41 = arith.constant 0 : index
      %c0_42 = arith.constant 0 : index
      %44 = vector.load %arg6[%c0_40, %c0_41, %c0_42] : memref<1x8x128xbf16, #tpu.memory_space<vmem>>, vector<1x8x128xbf16>
      %45 = vector.shape_cast %44 : vector<1x8x128xbf16> to vector<8x128xbf16>
      %46 = vector.shape_cast %43 : vector<8x128xbf16> to vector<1x8x128xbf16>
      tpu.vector_store %arg6[%c0_40, %c0_41, %c0_42], %46 {strides = array<i32>} : memref<1x8x128xbf16, #tpu.memory_space<vmem>>, vector<1x8x128xbf16>,
    } else {
    }
    return
  }
  func.func @transform_0(%arg0: i32, %arg1: i32, %arg2: i32) -> (i32, i32, i32, i32) {
    %c18_i32 = arith.constant 18 : i32
    %0 = arith.muli %arg0, %c18_i32 : i32
    %c2_i32 = arith.constant 2 : i32
    %1 = arith.muli %arg1, %c2_i32 : i32
    %2 = arith.addi %0, %1 : i32
    %3 = arith.addi %2, %arg2 : i32
    %c0_i32 = arith.constant 0 : i32
    %c0_i32_0 = arith.constant 0 : i32
    %c0_i32_1 = arith.constant 0 : i32
    %c0_i32_2 = arith.constant 0 : i32
    return %3, %c0_i32, %c0_i32_0, %c0_i32_1 : i32, i32, i32, i32
  }
  func.func @transform_1(%arg0: i32, %arg1: i32, %arg2: i32) -> (i32, i32, i32) {
    %c0_i32 = arith.constant 0 : i32
    %c0_i32_0 = arith.constant 0 : i32
    %c0_i32_1 = arith.constant 0 : i32
    %c0_i32_2 = arith.constant 0 : i32
    return %c0_i32, %c0_i32_0, %c0_i32_1 : i32, i32, i32
  }
  func.func @transform_2(%arg0: i32, %arg1: i32, %arg2: i32) -> (i32, i32) {
    %c0_i32 = arith.constant 0 : i32
    %c0_i32_0 = arith.constant 0 : i32
    %c0_i32_1 = arith.constant 0 : i32
    return %c0_i32, %c0_i32_0 : i32, i32
  }
  func.func @transform_3(%arg0: i32, %arg1: i32, %arg2: i32) -> (i32, i32, i32) {
    %c8_i32 = arith.constant 8 : i32
    %0 = arith.muli %arg0, %c8_i32 : i32
    %1 = arith.addi %0, %arg1 : i32
    %c0_i32 = arith.constant 0 : i32
    %c0_i32_0 = arith.constant 0 : i32
    %c0_i32_1 = arith.constant 0 : i32
    return %1, %c0_i32, %c0_i32_0 : i32, i32, i32
  }
}

module attributes {stable_mosaic.version = 11 : i64} {
  func.func @_inorm_lrelu_kernel(%arg0: i32, %arg1: i32, %arg2: memref<1x64x128xbf16, #tpu.memory_space<vmem>>, %arg3: memref<1x64x128xbf16, #tpu.memory_space<vmem>>) attributes {dimension_semantics = [#tpu.dimension_semantics<parallel>, #tpu.dimension_semantics<parallel>], iteration_bounds = array<i64: 2, 1>, scalar_prefetch = 0 : i64, scratch_operands = 0 : i64, tpu.core_type = #tpu.core_type<tc>, window_params = [{transform_indices = @transform_0, window_bounds = array<i64: 1, 64, 128>}, {transform_indices = @transform_1, window_bounds = array<i64: 1, 64, 128>}]} {
    %c0 = arith.constant 0 : index
    %c0_0 = arith.constant 0 : index
    %c0_1 = arith.constant 0 : index
    %0 = vector.load %arg2[%c0, %c0_0, %c0_1] : memref<1x64x128xbf16, #tpu.memory_space<vmem>>, vector<1x64x128xbf16>
    %1 = arith.extf %0 : vector<1x64x128xbf16> to vector<1x64x128xf32>
    %cst = arith.constant dense<0.000000e+00> : vector<1x128xf32>
    %2 = vector.multi_reduction <add>, %1, %cst [1] : vector<1x64x128xf32> to vector<1x128xf32>
    %3 = vector.shape_cast %2 : vector<1x128xf32> to vector<1x1x128xf32>
    %cst_2 = arith.constant 6.400000e+01 : f32
    %4 = vector.broadcast %cst_2 : f32 to vector<1x1x128xf32>
    %5 = arith.divf %3, %4 : vector<1x1x128xf32>
    %6 = vector.broadcast %5 : vector<1x1x128xf32> to vector<1x64x128xf32>
    %7 = arith.subf %1, %6 : vector<1x64x128xf32>
    %8 = arith.mulf %7, %7 : vector<1x64x128xf32>
    %cst_3 = arith.constant dense<0.000000e+00> : vector<1x128xf32>
    %9 = vector.multi_reduction <add>, %8, %cst_3 [1] : vector<1x64x128xf32> to vector<1x128xf32>
    %10 = vector.shape_cast %9 : vector<1x128xf32> to vector<1x1x128xf32>
    %cst_4 = arith.constant 6.400000e+01 : f32
    %11 = vector.broadcast %cst_4 : f32 to vector<1x1x128xf32>
    %12 = arith.divf %10, %11 : vector<1x1x128xf32>
    %cst_5 = arith.constant 9.99999974E-6 : f32
    %13 = vector.broadcast %cst_5 : f32 to vector<1x1x128xf32>
    %14 = arith.addf %12, %13 : vector<1x1x128xf32>
    %15 = math.rsqrt %14 : vector<1x1x128xf32>
    %16 = vector.broadcast %15 : vector<1x1x128xf32> to vector<1x64x128xf32>
    %17 = arith.mulf %7, %16 : vector<1x64x128xf32>
    %cst_6 = arith.constant 0.000000e+00 : f32
    %18 = vector.broadcast %cst_6 : f32 to vector<1x64x128xf32>
    %19 = arith.cmpf oge, %17, %18 : vector<1x64x128xf32>
    %cst_7 = arith.constant 2.000000e-01 : f32
    %20 = vector.broadcast %cst_7 : f32 to vector<1x64x128xf32>
    %21 = arith.mulf %20, %17 : vector<1x64x128xf32>
    %22 = arith.select %19, %17, %21 : vector<1x64x128xi1>, vector<1x64x128xf32>
    %23 = arith.truncf %22 : vector<1x64x128xf32> to vector<1x64x128xbf16>
    %c0_8 = arith.constant 0 : index
    %c0_9 = arith.constant 0 : index
    %c0_10 = arith.constant 0 : index
    %24 = vector.load %arg3[%c0_8, %c0_9, %c0_10] : memref<1x64x128xbf16, #tpu.memory_space<vmem>>, vector<1x64x128xbf16>
    tpu.vector_store %arg3[%c0_8, %c0_9, %c0_10], %23 {strides = array<i32>} : memref<1x64x128xbf16, #tpu.memory_space<vmem>>, vector<1x64x128xbf16>,
    return
  }
  func.func @transform_0(%arg0: i32, %arg1: i32) -> (i32, i32, i32) {
    %c0_i32 = arith.constant 0 : i32
    %c0_i32_0 = arith.constant 0 : i32
    return %arg0, %c0_i32, %arg1 : i32, i32, i32
  }
  func.func @transform_1(%arg0: i32, %arg1: i32) -> (i32, i32, i32) {
    %c0_i32 = arith.constant 0 : i32
    %c0_i32_0 = arith.constant 0 : i32
    return %arg0, %c0_i32, %arg1 : i32, i32, i32
  }
}

module attributes {stable_mosaic.version = 11 : i64} {
  func.func @_inorm_lrelu_kernel(%arg0: i32, %arg1: i32, %arg2: memref<1x16x128xbf16, #tpu.memory_space<vmem>>, %arg3: memref<1x16x128xbf16, #tpu.memory_space<vmem>>) attributes {dimension_semantics = [#tpu.dimension_semantics<parallel>, #tpu.dimension_semantics<parallel>], iteration_bounds = array<i64: 2, 2>, scalar_prefetch = 0 : i64, scratch_operands = 0 : i64, tpu.core_type = #tpu.core_type<tc>, window_params = [{transform_indices = @transform_0, window_bounds = array<i64: 1, 16, 128>}, {transform_indices = @transform_1, window_bounds = array<i64: 1, 16, 128>}]} {
    %c0 = arith.constant 0 : index
    %c0_0 = arith.constant 0 : index
    %c0_1 = arith.constant 0 : index
    %0 = vector.load %arg2[%c0, %c0_0, %c0_1] : memref<1x16x128xbf16, #tpu.memory_space<vmem>>, vector<1x16x128xbf16>
    %1 = arith.extf %0 : vector<1x16x128xbf16> to vector<1x16x128xf32>
    %cst = arith.constant dense<0.000000e+00> : vector<1x128xf32>
    %2 = vector.multi_reduction <add>, %1, %cst [1] : vector<1x16x128xf32> to vector<1x128xf32>
    %3 = vector.shape_cast %2 : vector<1x128xf32> to vector<1x1x128xf32>
    %cst_2 = arith.constant 1.600000e+01 : f32
    %4 = vector.broadcast %cst_2 : f32 to vector<1x1x128xf32>
    %5 = arith.divf %3, %4 : vector<1x1x128xf32>
    %6 = vector.broadcast %5 : vector<1x1x128xf32> to vector<1x16x128xf32>
    %7 = arith.subf %1, %6 : vector<1x16x128xf32>
    %8 = arith.mulf %7, %7 : vector<1x16x128xf32>
    %cst_3 = arith.constant dense<0.000000e+00> : vector<1x128xf32>
    %9 = vector.multi_reduction <add>, %8, %cst_3 [1] : vector<1x16x128xf32> to vector<1x128xf32>
    %10 = vector.shape_cast %9 : vector<1x128xf32> to vector<1x1x128xf32>
    %cst_4 = arith.constant 1.600000e+01 : f32
    %11 = vector.broadcast %cst_4 : f32 to vector<1x1x128xf32>
    %12 = arith.divf %10, %11 : vector<1x1x128xf32>
    %cst_5 = arith.constant 9.99999974E-6 : f32
    %13 = vector.broadcast %cst_5 : f32 to vector<1x1x128xf32>
    %14 = arith.addf %12, %13 : vector<1x1x128xf32>
    %15 = math.rsqrt %14 : vector<1x1x128xf32>
    %16 = vector.broadcast %15 : vector<1x1x128xf32> to vector<1x16x128xf32>
    %17 = arith.mulf %7, %16 : vector<1x16x128xf32>
    %cst_6 = arith.constant 0.000000e+00 : f32
    %18 = vector.broadcast %cst_6 : f32 to vector<1x16x128xf32>
    %19 = arith.cmpf oge, %17, %18 : vector<1x16x128xf32>
    %cst_7 = arith.constant 2.000000e-01 : f32
    %20 = vector.broadcast %cst_7 : f32 to vector<1x16x128xf32>
    %21 = arith.mulf %20, %17 : vector<1x16x128xf32>
    %22 = arith.select %19, %17, %21 : vector<1x16x128xi1>, vector<1x16x128xf32>
    %23 = arith.truncf %22 : vector<1x16x128xf32> to vector<1x16x128xbf16>
    %c0_8 = arith.constant 0 : index
    %c0_9 = arith.constant 0 : index
    %c0_10 = arith.constant 0 : index
    %24 = vector.load %arg3[%c0_8, %c0_9, %c0_10] : memref<1x16x128xbf16, #tpu.memory_space<vmem>>, vector<1x16x128xbf16>
    tpu.vector_store %arg3[%c0_8, %c0_9, %c0_10], %23 {strides = array<i32>} : memref<1x16x128xbf16, #tpu.memory_space<vmem>>, vector<1x16x128xbf16>,
    return
  }
  func.func @transform_0(%arg0: i32, %arg1: i32) -> (i32, i32, i32) {
    %c0_i32 = arith.constant 0 : i32
    %c0_i32_0 = arith.constant 0 : i32
    return %arg0, %c0_i32, %arg1 : i32, i32, i32
  }
  func.func @transform_1(%arg0: i32, %arg1: i32) -> (i32, i32, i32) {
    %c0_i32 = arith.constant 0 : i32
    %c0_i32_0 = arith.constant 0 : i32
    return %arg0, %c0_i32, %arg1 : i32, i32, i32
  }
}

module attributes {stable_mosaic.version = 11 : i64} {
  func.func @_conv_row_kernel(%arg0: i32, %arg1: i32, %arg2: i32, %arg3: memref<1x2x5x128xbf16, #tpu.memory_space<vmem>>, %arg4: memref<9x128x256xbf16, #tpu.memory_space<vmem>>, %arg5: memref<1x256xf32, #tpu.memory_space<vmem>>, %arg6: memref<1x4x256xbf16, #tpu.memory_space<vmem>>, %arg7: memref<4x256xf32, #tpu.memory_space<vmem>>) attributes {dimension_semantics = [#tpu.dimension_semantics<parallel>, #tpu.dimension_semantics<parallel>, #tpu.dimension_semantics<arbitrary>], iteration_bounds = array<i64: 2, 4, 3>, scalar_prefetch = 0 : i64, scratch_operands = 1 : i64, tpu.core_type = #tpu.core_type<tc>, window_params = [{transform_indices = @transform_0, window_bounds = array<i64: 1, 2, 5, 128>}, {pipeline_mode = #tpu.pipeline_mode<synchronous>, transform_indices = @transform_1, window_bounds = array<i64: 9, 128, 256>}, {pipeline_mode = #tpu.pipeline_mode<synchronous>, transform_indices = @transform_2, window_bounds = array<i64: 1, 256>}, {transform_indices = @transform_3, window_bounds = array<i64: 1, 4, 256>}]} {
    %c0_i32 = arith.constant 0 : i32
    %0 = arith.cmpi eq, %arg2, %c0_i32 : i32
    %1 = arith.extui %0 : i1 to i32
    %c0_i32_0 = arith.constant 0 : i32
    %2 = arith.cmpi ne, %1, %c0_i32_0 : i32
    scf.if %2 {
      %cst_36 = arith.constant 0.000000e+00 : f32
      %39 = vector.broadcast %cst_36 : f32 to vector<4x256xf32>
      %c0_37 = arith.constant 0 : index
      %c0_38 = arith.constant 0 : index
      %40 = vector.load %arg7[%c0_37, %c0_38] : memref<4x256xf32, #tpu.memory_space<vmem>>, vector<4x256xf32>
      tpu.vector_store %arg7[%c0_37, %c0_38], %39 {strides = array<i32>} : memref<4x256xf32, #tpu.memory_space<vmem>>, vector<4x256xf32>,
    } else {
    }
    %c0 = arith.constant 0 : index
    %c0_1 = arith.constant 0 : index
    %c0_2 = arith.constant 0 : index
    %c0_3 = arith.constant 0 : index
    %3 = vector.load %arg3[%c0, %c0_1, %c0_2, %c0_3] : memref<1x2x5x128xbf16, #tpu.memory_space<vmem>>, vector<1x1x4x128xbf16>
    %4 = vector.shape_cast %3 : vector<1x1x4x128xbf16> to vector<4x128xbf16>
    %c3_i32 = arith.constant 3 : i32
    %5 = arith.muli %arg2, %c3_i32 : i32
    %c0_i32_4 = arith.constant 0 : i32
    %6 = arith.addi %5, %c0_i32_4 : i32
    %7 = arith.index_cast %6 : i32 to index
    %c0_5 = arith.constant 0 : index
    %c0_6 = arith.constant 0 : index
    %8 = vector.load %arg4[%7, %c0_5, %c0_6] : memref<9x128x256xbf16, #tpu.memory_space<vmem>>, vector<1x128x256xbf16>
    %9 = vector.shape_cast %8 : vector<1x128x256xbf16> to vector<128x256xbf16>
    %c0_7 = arith.constant 0 : index
    %c0_8 = arith.constant 0 : index
    %10 = vector.load %arg7[%c0_7, %c0_8] : memref<4x256xf32, #tpu.memory_space<vmem>>, vector<4x256xf32>
    %cst = arith.constant dense<0.000000e+00> : vector<4x256xf32>
    %11 = tpu.matmul %4, %9, %cst {dimension_numbers = #tpu.dot_dimension_numbers<[1], [0], [0], [1], [0, 0, 1, 1], [], []>} : vector<4x128xbf16>, vector<128x256xbf16>, vector<4x256xf32> -> vector<4x256xf32>
    %12 = arith.addf %10, %11 : vector<4x256xf32>
    %c0_9 = arith.constant 0 : index
    %c0_10 = arith.constant 0 : index
    %13 = vector.load %arg7[%c0_9, %c0_10] : memref<4x256xf32, #tpu.memory_space<vmem>>, vector<4x256xf32>
    tpu.vector_store %arg7[%c0_9, %c0_10], %12 {strides = array<i32>} : memref<4x256xf32, #tpu.memory_space<vmem>>, vector<4x256xf32>,
    %c0_11 = arith.constant 0 : index
    %c1 = arith.constant 1 : index
    %c0_12 = arith.constant 0 : index
    %c0_13 = arith.constant 0 : index
    %14 = vector.load %arg3[%c0_11, %c1, %c0_12, %c0_13] : memref<1x2x5x128xbf16, #tpu.memory_space<vmem>>, vector<1x1x4x128xbf16>
    %15 = vector.shape_cast %14 : vector<1x1x4x128xbf16> to vector<4x128xbf16>
    %c3_i32_14 = arith.constant 3 : i32
    %16 = arith.muli %arg2, %c3_i32_14 : i32
    %c1_i32 = arith.constant 1 : i32
    %17 = arith.addi %16, %c1_i32 : i32
    %18 = arith.index_cast %17 : i32 to index
    %c0_15 = arith.constant 0 : index
    %c0_16 = arith.constant 0 : index
    %19 = vector.load %arg4[%18, %c0_15, %c0_16] : memref<9x128x256xbf16, #tpu.memory_space<vmem>>, vector<1x128x256xbf16>
    %20 = vector.shape_cast %19 : vector<1x128x256xbf16> to vector<128x256xbf16>
    %c0_17 = arith.constant 0 : index
    %c0_18 = arith.constant 0 : index
    %21 = vector.load %arg7[%c0_17, %c0_18] : memref<4x256xf32, #tpu.memory_space<vmem>>, vector<4x256xf32>
    %cst_19 = arith.constant dense<0.000000e+00> : vector<4x256xf32>
    %22 = tpu.matmul %15, %20, %cst_19 {dimension_numbers = #tpu.dot_dimension_numbers<[1], [0], [0], [1], [0, 0, 1, 1], [], []>} : vector<4x128xbf16>, vector<128x256xbf16>, vector<4x256xf32> -> vector<4x256xf32>
    %23 = arith.addf %21, %22 : vector<4x256xf32>
    %c0_20 = arith.constant 0 : index
    %c0_21 = arith.constant 0 : index
    %24 = vector.load %arg7[%c0_20, %c0_21] : memref<4x256xf32, #tpu.memory_space<vmem>>, vector<4x256xf32>
    tpu.vector_store %arg7[%c0_20, %c0_21], %23 {strides = array<i32>} : memref<4x256xf32, #tpu.memory_space<vmem>>, vector<4x256xf32>,
    %c0_22 = arith.constant 0 : index
    %c0_23 = arith.constant 0 : index
    %c1_24 = arith.constant 1 : index
    %c0_25 = arith.constant 0 : index
    %25 = vector.load %arg3[%c0_22, %c0_23, %c1_24, %c0_25] : memref<1x2x5x128xbf16, #tpu.memory_space<vmem>>, vector<1x1x4x128xbf16>
    %26 = vector.shape_cast %25 : vector<1x1x4x128xbf16> to vector<4x128xbf16>
    %c3_i32_26 = arith.constant 3 : i32
    %27 = arith.muli %arg2, %c3_i32_26 : i32
    %c2_i32 = arith.constant 2 : i32
    %28 = arith.addi %27, %c2_i32 : i32
    %29 = arith.index_cast %28 : i32 to index
    %c0_27 = arith.constant 0 : index
    %c0_28 = arith.constant 0 : index
    %30 = vector.load %arg4[%29, %c0_27, %c0_28] : memref<9x128x256xbf16, #tpu.memory_space<vmem>>, vector<1x128x256xbf16>
    %31 = vector.shape_cast %30 : vector<1x128x256xbf16> to vector<128x256xbf16>
    %c0_29 = arith.constant 0 : index
    %c0_30 = arith.constant 0 : index
    %32 = vector.load %arg7[%c0_29, %c0_30] : memref<4x256xf32, #tpu.memory_space<vmem>>, vector<4x256xf32>
    %cst_31 = arith.constant dense<0.000000e+00> : vector<4x256xf32>
    %33 = tpu.matmul %26, %31, %cst_31 {dimension_numbers = #tpu.dot_dimension_numbers<[1], [0], [0], [1], [0, 0, 1, 1], [], []>} : vector<4x128xbf16>, vector<128x256xbf16>, vector<4x256xf32> -> vector<4x256xf32>
    %34 = arith.addf %32, %33 : vector<4x256xf32>
    %c0_32 = arith.constant 0 : index
    %c0_33 = arith.constant 0 : index
    %35 = vector.load %arg7[%c0_32, %c0_33] : memref<4x256xf32, #tpu.memory_space<vmem>>, vector<4x256xf32>
    tpu.vector_store %arg7[%c0_32, %c0_33], %34 {strides = array<i32>} : memref<4x256xf32, #tpu.memory_space<vmem>>, vector<4x256xf32>,
    %c2_i32_34 = arith.constant 2 : i32
    %36 = arith.cmpi eq, %arg2, %c2_i32_34 : i32
    %37 = arith.extui %36 : i1 to i32
    %c0_i32_35 = arith.constant 0 : i32
    %38 = arith.cmpi ne, %37, %c0_i32_35 : i32
    scf.if %38 {
      %c0_36 = arith.constant 0 : index
      %c0_37 = arith.constant 0 : index
      %39 = vector.load %arg7[%c0_36, %c0_37] : memref<4x256xf32, #tpu.memory_space<vmem>>, vector<4x256xf32>
      %c0_38 = arith.constant 0 : index
      %c0_39 = arith.constant 0 : index
      %40 = vector.load %arg5[%c0_38, %c0_39] : memref<1x256xf32, #tpu.memory_space<vmem>>, vector<1x256xf32>
      %41 = vector.broadcast %40 : vector<1x256xf32> to vector<4x256xf32>
      %42 = arith.addf %39, %41 : vector<4x256xf32>
      %43 = arith.truncf %42 : vector<4x256xf32> to vector<4x256xbf16>
      %c0_40 = arith.constant 0 : index
      %c0_41 = arith.constant 0 : index
      %c0_42 = arith.constant 0 : index
      %44 = vector.load %arg6[%c0_40, %c0_41, %c0_42] : memref<1x4x256xbf16, #tpu.memory_space<vmem>>, vector<1x4x256xbf16>
      %45 = vector.shape_cast %44 : vector<1x4x256xbf16> to vector<4x256xbf16>
      %46 = vector.shape_cast %43 : vector<4x256xbf16> to vector<1x4x256xbf16>
      tpu.vector_store %arg6[%c0_40, %c0_41, %c0_42], %46 {strides = array<i32>} : memref<1x4x256xbf16, #tpu.memory_space<vmem>>, vector<1x4x256xbf16>,
    } else {
    }
    return
  }
  func.func @transform_0(%arg0: i32, %arg1: i32, %arg2: i32) -> (i32, i32, i32, i32) {
    %c10_i32 = arith.constant 10 : i32
    %0 = arith.muli %arg0, %c10_i32 : i32
    %c2_i32 = arith.constant 2 : i32
    %1 = arith.muli %arg1, %c2_i32 : i32
    %2 = arith.addi %0, %1 : i32
    %3 = arith.addi %2, %arg2 : i32
    %c0_i32 = arith.constant 0 : i32
    %c0_i32_0 = arith.constant 0 : i32
    %c0_i32_1 = arith.constant 0 : i32
    %c0_i32_2 = arith.constant 0 : i32
    return %3, %c0_i32, %c0_i32_0, %c0_i32_1 : i32, i32, i32, i32
  }
  func.func @transform_1(%arg0: i32, %arg1: i32, %arg2: i32) -> (i32, i32, i32) {
    %c0_i32 = arith.constant 0 : i32
    %c0_i32_0 = arith.constant 0 : i32
    %c0_i32_1 = arith.constant 0 : i32
    %c0_i32_2 = arith.constant 0 : i32
    return %c0_i32, %c0_i32_0, %c0_i32_1 : i32, i32, i32
  }
  func.func @transform_2(%arg0: i32, %arg1: i32, %arg2: i32) -> (i32, i32) {
    %c0_i32 = arith.constant 0 : i32
    %c0_i32_0 = arith.constant 0 : i32
    %c0_i32_1 = arith.constant 0 : i32
    return %c0_i32, %c0_i32_0 : i32, i32
  }
  func.func @transform_3(%arg0: i32, %arg1: i32, %arg2: i32) -> (i32, i32, i32) {
    %c4_i32 = arith.constant 4 : i32
    %0 = arith.muli %arg0, %c4_i32 : i32
    %1 = arith.addi %0, %arg1 : i32
    %c0_i32 = arith.constant 0 : i32
    %c0_i32_0 = arith.constant 0 : i32
    %c0_i32_1 = arith.constant 0 : i32
    return %1, %c0_i32, %c0_i32_0 : i32, i32, i32
  }
}

module attributes {stable_mosaic.version = 11 : i64} {
  func.func @_inorm_residual_kernel(%arg0: i32, %arg1: i32, %arg2: memref<1x16x128xbf16, #tpu.memory_space<vmem>>, %arg3: memref<1x16x128xbf16, #tpu.memory_space<vmem>>, %arg4: memref<1x16x128xbf16, #tpu.memory_space<vmem>>) attributes {dimension_semantics = [#tpu.dimension_semantics<parallel>, #tpu.dimension_semantics<parallel>], iteration_bounds = array<i64: 2, 2>, scalar_prefetch = 0 : i64, scratch_operands = 0 : i64, tpu.core_type = #tpu.core_type<tc>, window_params = [{transform_indices = @transform_0, window_bounds = array<i64: 1, 16, 128>}, {transform_indices = @transform_1, window_bounds = array<i64: 1, 16, 128>}, {transform_indices = @transform_2, window_bounds = array<i64: 1, 16, 128>}]} {
    %c0 = arith.constant 0 : index
    %c0_0 = arith.constant 0 : index
    %c0_1 = arith.constant 0 : index
    %0 = vector.load %arg2[%c0, %c0_0, %c0_1] : memref<1x16x128xbf16, #tpu.memory_space<vmem>>, vector<1x16x128xbf16>
    %1 = arith.extf %0 : vector<1x16x128xbf16> to vector<1x16x128xf32>
    %cst = arith.constant dense<0.000000e+00> : vector<1x128xf32>
    %2 = vector.multi_reduction <add>, %1, %cst [1] : vector<1x16x128xf32> to vector<1x128xf32>
    %3 = vector.shape_cast %2 : vector<1x128xf32> to vector<1x1x128xf32>
    %cst_2 = arith.constant 1.600000e+01 : f32
    %4 = vector.broadcast %cst_2 : f32 to vector<1x1x128xf32>
    %5 = arith.divf %3, %4 : vector<1x1x128xf32>
    %6 = vector.broadcast %5 : vector<1x1x128xf32> to vector<1x16x128xf32>
    %7 = arith.subf %1, %6 : vector<1x16x128xf32>
    %8 = arith.mulf %7, %7 : vector<1x16x128xf32>
    %cst_3 = arith.constant dense<0.000000e+00> : vector<1x128xf32>
    %9 = vector.multi_reduction <add>, %8, %cst_3 [1] : vector<1x16x128xf32> to vector<1x128xf32>
    %10 = vector.shape_cast %9 : vector<1x128xf32> to vector<1x1x128xf32>
    %cst_4 = arith.constant 1.600000e+01 : f32
    %11 = vector.broadcast %cst_4 : f32 to vector<1x1x128xf32>
    %12 = arith.divf %10, %11 : vector<1x1x128xf32>
    %cst_5 = arith.constant 9.99999974E-6 : f32
    %13 = vector.broadcast %cst_5 : f32 to vector<1x1x128xf32>
    %14 = arith.addf %12, %13 : vector<1x1x128xf32>
    %15 = math.rsqrt %14 : vector<1x1x128xf32>
    %16 = vector.broadcast %15 : vector<1x1x128xf32> to vector<1x16x128xf32>
    %17 = arith.mulf %7, %16 : vector<1x16x128xf32>
    %c0_6 = arith.constant 0 : index
    %c0_7 = arith.constant 0 : index
    %c0_8 = arith.constant 0 : index
    %18 = vector.load %arg3[%c0_6, %c0_7, %c0_8] : memref<1x16x128xbf16, #tpu.memory_space<vmem>>, vector<1x16x128xbf16>
    %19 = arith.extf %18 : vector<1x16x128xbf16> to vector<1x16x128xf32>
    %20 = arith.addf %19, %17 : vector<1x16x128xf32>
    %21 = arith.truncf %20 : vector<1x16x128xf32> to vector<1x16x128xbf16>
    %c0_9 = arith.constant 0 : index
    %c0_10 = arith.constant 0 : index
    %c0_11 = arith.constant 0 : index
    %22 = vector.load %arg4[%c0_9, %c0_10, %c0_11] : memref<1x16x128xbf16, #tpu.memory_space<vmem>>, vector<1x16x128xbf16>
    tpu.vector_store %arg4[%c0_9, %c0_10, %c0_11], %21 {strides = array<i32>} : memref<1x16x128xbf16, #tpu.memory_space<vmem>>, vector<1x16x128xbf16>,
    return
  }
  func.func @transform_0(%arg0: i32, %arg1: i32) -> (i32, i32, i32) {
    %c0_i32 = arith.constant 0 : i32
    %c0_i32_0 = arith.constant 0 : i32
    return %arg0, %c0_i32, %arg1 : i32, i32, i32
  }
  func.func @transform_1(%arg0: i32, %arg1: i32) -> (i32, i32, i32) {
    %c0_i32 = arith.constant 0 : i32
    %c0_i32_0 = arith.constant 0 : i32
    return %arg0, %c0_i32, %arg1 : i32, i32, i32
  }
  func.func @transform_2(%arg0: i32, %arg1: i32) -> (i32, i32, i32) {
    %c0_i32 = arith.constant 0 : i32
    %c0_i32_0 = arith.constant 0 : i32
    return %arg0, %c0_i32, %arg1 : i32, i32, i32
  }
}

module attributes {stable_mosaic.version = 11 : i64} {
  func.func @_conv_row_kernel(%arg0: i32, %arg1: i32, %arg2: i32, %arg3: memref<1x1x6x256xbf16, #tpu.memory_space<vmem>>, %arg4: memref<9x256x256xbf16, #tpu.memory_space<vmem>>, %arg5: memref<1x256xf32, #tpu.memory_space<vmem>>, %arg6: memref<1x4x256xbf16, #tpu.memory_space<vmem>>, %arg7: memref<4x256xf32, #tpu.memory_space<vmem>>) attributes {dimension_semantics = [#tpu.dimension_semantics<parallel>, #tpu.dimension_semantics<parallel>, #tpu.dimension_semantics<arbitrary>], iteration_bounds = array<i64: 2, 4, 3>, scalar_prefetch = 0 : i64, scratch_operands = 1 : i64, tpu.core_type = #tpu.core_type<tc>, window_params = [{transform_indices = @transform_0, window_bounds = array<i64: 1, 1, 6, 256>}, {pipeline_mode = #tpu.pipeline_mode<synchronous>, transform_indices = @transform_1, window_bounds = array<i64: 9, 256, 256>}, {pipeline_mode = #tpu.pipeline_mode<synchronous>, transform_indices = @transform_2, window_bounds = array<i64: 1, 256>}, {transform_indices = @transform_3, window_bounds = array<i64: 1, 4, 256>}]} {
    %c0_i32 = arith.constant 0 : i32
    %0 = arith.cmpi eq, %arg2, %c0_i32 : i32
    %1 = arith.extui %0 : i1 to i32
    %c0_i32_0 = arith.constant 0 : i32
    %2 = arith.cmpi ne, %1, %c0_i32_0 : i32
    scf.if %2 {
      %cst_35 = arith.constant 0.000000e+00 : f32
      %39 = vector.broadcast %cst_35 : f32 to vector<4x256xf32>
      %c0_36 = arith.constant 0 : index
      %c0_37 = arith.constant 0 : index
      %40 = vector.load %arg7[%c0_36, %c0_37] : memref<4x256xf32, #tpu.memory_space<vmem>>, vector<4x256xf32>
      tpu.vector_store %arg7[%c0_36, %c0_37], %39 {strides = array<i32>} : memref<4x256xf32, #tpu.memory_space<vmem>>, vector<4x256xf32>,
    } else {
    }
    %c0 = arith.constant 0 : index
    %c0_1 = arith.constant 0 : index
    %c0_2 = arith.constant 0 : index
    %c0_3 = arith.constant 0 : index
    %3 = vector.load %arg3[%c0, %c0_1, %c0_2, %c0_3] : memref<1x1x6x256xbf16, #tpu.memory_space<vmem>>, vector<1x1x4x256xbf16>
    %4 = vector.shape_cast %3 : vector<1x1x4x256xbf16> to vector<4x256xbf16>
    %c3_i32 = arith.constant 3 : i32
    %5 = arith.muli %arg2, %c3_i32 : i32
    %c0_i32_4 = arith.constant 0 : i32
    %6 = arith.addi %5, %c0_i32_4 : i32
    %7 = arith.index_cast %6 : i32 to index
    %c0_5 = arith.constant 0 : index
    %c0_6 = arith.constant 0 : index
    %8 = vector.load %arg4[%7, %c0_5, %c0_6] : memref<9x256x256xbf16, #tpu.memory_space<vmem>>, vector<1x256x256xbf16>
    %9 = vector.shape_cast %8 : vector<1x256x256xbf16> to vector<256x256xbf16>
    %c0_7 = arith.constant 0 : index
    %c0_8 = arith.constant 0 : index
    %10 = vector.load %arg7[%c0_7, %c0_8] : memref<4x256xf32, #tpu.memory_space<vmem>>, vector<4x256xf32>
    %cst = arith.constant dense<0.000000e+00> : vector<4x256xf32>
    %11 = tpu.matmul %4, %9, %cst {dimension_numbers = #tpu.dot_dimension_numbers<[1], [0], [0], [1], [0, 0, 1, 1], [], []>} : vector<4x256xbf16>, vector<256x256xbf16>, vector<4x256xf32> -> vector<4x256xf32>
    %12 = arith.addf %10, %11 : vector<4x256xf32>
    %c0_9 = arith.constant 0 : index
    %c0_10 = arith.constant 0 : index
    %13 = vector.load %arg7[%c0_9, %c0_10] : memref<4x256xf32, #tpu.memory_space<vmem>>, vector<4x256xf32>
    tpu.vector_store %arg7[%c0_9, %c0_10], %12 {strides = array<i32>} : memref<4x256xf32, #tpu.memory_space<vmem>>, vector<4x256xf32>,
    %c0_11 = arith.constant 0 : index
    %c0_12 = arith.constant 0 : index
    %c1 = arith.constant 1 : index
    %c0_13 = arith.constant 0 : index
    %14 = vector.load %arg3[%c0_11, %c0_12, %c1, %c0_13] : memref<1x1x6x256xbf16, #tpu.memory_space<vmem>>, vector<1x1x4x256xbf16>
    %15 = vector.shape_cast %14 : vector<1x1x4x256xbf16> to vector<4x256xbf16>
    %c3_i32_14 = arith.constant 3 : i32
    %16 = arith.muli %arg2, %c3_i32_14 : i32
    %c1_i32 = arith.constant 1 : i32
    %17 = arith.addi %16, %c1_i32 : i32
    %18 = arith.index_cast %17 : i32 to index
    %c0_15 = arith.constant 0 : index
    %c0_16 = arith.constant 0 : index
    %19 = vector.load %arg4[%18, %c0_15, %c0_16] : memref<9x256x256xbf16, #tpu.memory_space<vmem>>, vector<1x256x256xbf16>
    %20 = vector.shape_cast %19 : vector<1x256x256xbf16> to vector<256x256xbf16>
    %c0_17 = arith.constant 0 : index
    %c0_18 = arith.constant 0 : index
    %21 = vector.load %arg7[%c0_17, %c0_18] : memref<4x256xf32, #tpu.memory_space<vmem>>, vector<4x256xf32>
    %cst_19 = arith.constant dense<0.000000e+00> : vector<4x256xf32>
    %22 = tpu.matmul %15, %20, %cst_19 {dimension_numbers = #tpu.dot_dimension_numbers<[1], [0], [0], [1], [0, 0, 1, 1], [], []>} : vector<4x256xbf16>, vector<256x256xbf16>, vector<4x256xf32> -> vector<4x256xf32>
    %23 = arith.addf %21, %22 : vector<4x256xf32>
    %c0_20 = arith.constant 0 : index
    %c0_21 = arith.constant 0 : index
    %24 = vector.load %arg7[%c0_20, %c0_21] : memref<4x256xf32, #tpu.memory_space<vmem>>, vector<4x256xf32>
    tpu.vector_store %arg7[%c0_20, %c0_21], %23 {strides = array<i32>} : memref<4x256xf32, #tpu.memory_space<vmem>>, vector<4x256xf32>,
    %c0_22 = arith.constant 0 : index
    %c0_23 = arith.constant 0 : index
    %c2 = arith.constant 2 : index
    %c0_24 = arith.constant 0 : index
    %25 = vector.load %arg3[%c0_22, %c0_23, %c2, %c0_24] : memref<1x1x6x256xbf16, #tpu.memory_space<vmem>>, vector<1x1x4x256xbf16>
    %26 = vector.shape_cast %25 : vector<1x1x4x256xbf16> to vector<4x256xbf16>
    %c3_i32_25 = arith.constant 3 : i32
    %27 = arith.muli %arg2, %c3_i32_25 : i32
    %c2_i32 = arith.constant 2 : i32
    %28 = arith.addi %27, %c2_i32 : i32
    %29 = arith.index_cast %28 : i32 to index
    %c0_26 = arith.constant 0 : index
    %c0_27 = arith.constant 0 : index
    %30 = vector.load %arg4[%29, %c0_26, %c0_27] : memref<9x256x256xbf16, #tpu.memory_space<vmem>>, vector<1x256x256xbf16>
    %31 = vector.shape_cast %30 : vector<1x256x256xbf16> to vector<256x256xbf16>
    %c0_28 = arith.constant 0 : index
    %c0_29 = arith.constant 0 : index
    %32 = vector.load %arg7[%c0_28, %c0_29] : memref<4x256xf32, #tpu.memory_space<vmem>>, vector<4x256xf32>
    %cst_30 = arith.constant dense<0.000000e+00> : vector<4x256xf32>
    %33 = tpu.matmul %26, %31, %cst_30 {dimension_numbers = #tpu.dot_dimension_numbers<[1], [0], [0], [1], [0, 0, 1, 1], [], []>} : vector<4x256xbf16>, vector<256x256xbf16>, vector<4x256xf32> -> vector<4x256xf32>
    %34 = arith.addf %32, %33 : vector<4x256xf32>
    %c0_31 = arith.constant 0 : index
    %c0_32 = arith.constant 0 : index
    %35 = vector.load %arg7[%c0_31, %c0_32] : memref<4x256xf32, #tpu.memory_space<vmem>>, vector<4x256xf32>
    tpu.vector_store %arg7[%c0_31, %c0_32], %34 {strides = array<i32>} : memref<4x256xf32, #tpu.memory_space<vmem>>, vector<4x256xf32>,
    %c2_i32_33 = arith.constant 2 : i32
    %36 = arith.cmpi eq, %arg2, %c2_i32_33 : i32
    %37 = arith.extui %36 : i1 to i32
    %c0_i32_34 = arith.constant 0 : i32
    %38 = arith.cmpi ne, %37, %c0_i32_34 : i32
    scf.if %38 {
      %c0_35 = arith.constant 0 : index
      %c0_36 = arith.constant 0 : index
      %39 = vector.load %arg7[%c0_35, %c0_36] : memref<4x256xf32, #tpu.memory_space<vmem>>, vector<4x256xf32>
      %c0_37 = arith.constant 0 : index
      %c0_38 = arith.constant 0 : index
      %40 = vector.load %arg5[%c0_37, %c0_38] : memref<1x256xf32, #tpu.memory_space<vmem>>, vector<1x256xf32>
      %41 = vector.broadcast %40 : vector<1x256xf32> to vector<4x256xf32>
      %42 = arith.addf %39, %41 : vector<4x256xf32>
      %43 = arith.truncf %42 : vector<4x256xf32> to vector<4x256xbf16>
      %c0_39 = arith.constant 0 : index
      %c0_40 = arith.constant 0 : index
      %c0_41 = arith.constant 0 : index
      %44 = vector.load %arg6[%c0_39, %c0_40, %c0_41] : memref<1x4x256xbf16, #tpu.memory_space<vmem>>, vector<1x4x256xbf16>
      %45 = vector.shape_cast %44 : vector<1x4x256xbf16> to vector<4x256xbf16>
      %46 = vector.shape_cast %43 : vector<4x256xbf16> to vector<1x4x256xbf16>
      tpu.vector_store %arg6[%c0_39, %c0_40, %c0_41], %46 {strides = array<i32>} : memref<1x4x256xbf16, #tpu.memory_space<vmem>>, vector<1x4x256xbf16>,
    } else {
    }
    return
  }
  func.func @transform_0(%arg0: i32, %arg1: i32, %arg2: i32) -> (i32, i32, i32, i32) {
    %c6_i32 = arith.constant 6 : i32
    %0 = arith.muli %arg0, %c6_i32 : i32
    %c1_i32 = arith.constant 1 : i32
    %1 = arith.muli %arg1, %c1_i32 : i32
    %2 = arith.addi %0, %1 : i32
    %3 = arith.addi %2, %arg2 : i32
    %c0_i32 = arith.constant 0 : i32
    %c0_i32_0 = arith.constant 0 : i32
    %c0_i32_1 = arith.constant 0 : i32
    %c0_i32_2 = arith.constant 0 : i32
    return %3, %c0_i32, %c0_i32_0, %c0_i32_1 : i32, i32, i32, i32
  }
  func.func @transform_1(%arg0: i32, %arg1: i32, %arg2: i32) -> (i32, i32, i32) {
    %c0_i32 = arith.constant 0 : i32
    %c0_i32_0 = arith.constant 0 : i32
    %c0_i32_1 = arith.constant 0 : i32
    %c0_i32_2 = arith.constant 0 : i32
    return %c0_i32, %c0_i32_0, %c0_i32_1 : i32, i32, i32
  }
  func.func @transform_2(%arg0: i32, %arg1: i32, %arg2: i32) -> (i32, i32) {
    %c0_i32 = arith.constant 0 : i32
    %c0_i32_0 = arith.constant 0 : i32
    %c0_i32_1 = arith.constant 0 : i32
    return %c0_i32, %c0_i32_0 : i32, i32
  }
  func.func @transform_3(%arg0: i32, %arg1: i32, %arg2: i32) -> (i32, i32, i32) {
    %c4_i32 = arith.constant 4 : i32
    %0 = arith.muli %arg0, %c4_i32 : i32
    %1 = arith.addi %0, %arg1 : i32
    %c0_i32 = arith.constant 0 : i32
    %c0_i32_0 = arith.constant 0 : i32
    %c0_i32_1 = arith.constant 0 : i32
    return %1, %c0_i32, %c0_i32_0 : i32, i32, i32
  }
}

module attributes {stable_mosaic.version = 11 : i64} {
  func.func @_conv_row_kernel(%arg0: i32, %arg1: i32, %arg2: i32, %arg3: memref<1x1x5x256xbf16, #tpu.memory_space<vmem>>, %arg4: memref<4x256x128xbf16, #tpu.memory_space<vmem>>, %arg5: memref<1x128xf32, #tpu.memory_space<vmem>>, %arg6: memref<1x4x128xbf16, #tpu.memory_space<vmem>>, %arg7: memref<4x128xf32, #tpu.memory_space<vmem>>) attributes {dimension_semantics = [#tpu.dimension_semantics<parallel>, #tpu.dimension_semantics<parallel>, #tpu.dimension_semantics<arbitrary>], iteration_bounds = array<i64: 2, 4, 2>, scalar_prefetch = 0 : i64, scratch_operands = 1 : i64, tpu.core_type = #tpu.core_type<tc>, window_params = [{transform_indices = @transform_0, window_bounds = array<i64: 1, 1, 5, 256>}, {pipeline_mode = #tpu.pipeline_mode<synchronous>, transform_indices = @transform_1, window_bounds = array<i64: 4, 256, 128>}, {pipeline_mode = #tpu.pipeline_mode<synchronous>, transform_indices = @transform_2, window_bounds = array<i64: 1, 128>}, {transform_indices = @transform_3, window_bounds = array<i64: 1, 4, 128>}]} {
    %c0_i32 = arith.constant 0 : i32
    %0 = arith.cmpi eq, %arg2, %c0_i32 : i32
    %1 = arith.extui %0 : i1 to i32
    %c0_i32_0 = arith.constant 0 : i32
    %2 = arith.cmpi ne, %1, %c0_i32_0 : i32
    scf.if %2 {
      %cst_24 = arith.constant 0.000000e+00 : f32
      %28 = vector.broadcast %cst_24 : f32 to vector<4x128xf32>
      %c0_25 = arith.constant 0 : index
      %c0_26 = arith.constant 0 : index
      %29 = vector.load %arg7[%c0_25, %c0_26] : memref<4x128xf32, #tpu.memory_space<vmem>>, vector<4x128xf32>
      tpu.vector_store %arg7[%c0_25, %c0_26], %28 {strides = array<i32>} : memref<4x128xf32, #tpu.memory_space<vmem>>, vector<4x128xf32>,
    } else {
    }
    %c0 = arith.constant 0 : index
    %c0_1 = arith.constant 0 : index
    %c0_2 = arith.constant 0 : index
    %c0_3 = arith.constant 0 : index
    %3 = vector.load %arg3[%c0, %c0_1, %c0_2, %c0_3] : memref<1x1x5x256xbf16, #tpu.memory_space<vmem>>, vector<1x1x4x256xbf16>
    %4 = vector.shape_cast %3 : vector<1x1x4x256xbf16> to vector<4x256xbf16>
    %c2_i32 = arith.constant 2 : i32
    %5 = arith.muli %arg2, %c2_i32 : i32
    %c0_i32_4 = arith.constant 0 : i32
    %6 = arith.addi %5, %c0_i32_4 : i32
    %7 = arith.index_cast %6 : i32 to index
    %c0_5 = arith.constant 0 : index
    %c0_6 = arith.constant 0 : index
    %8 = vector.load %arg4[%7, %c0_5, %c0_6] : memref<4x256x128xbf16, #tpu.memory_space<vmem>>, vector<1x256x128xbf16>
    %9 = vector.shape_cast %8 : vector<1x256x128xbf16> to vector<256x128xbf16>
    %c0_7 = arith.constant 0 : index
    %c0_8 = arith.constant 0 : index
    %10 = vector.load %arg7[%c0_7, %c0_8] : memref<4x128xf32, #tpu.memory_space<vmem>>, vector<4x128xf32>
    %cst = arith.constant dense<0.000000e+00> : vector<4x128xf32>
    %11 = tpu.matmul %4, %9, %cst {dimension_numbers = #tpu.dot_dimension_numbers<[1], [0], [0], [1], [0, 0, 1, 1], [], []>} : vector<4x256xbf16>, vector<256x128xbf16>, vector<4x128xf32> -> vector<4x128xf32>
    %12 = arith.addf %10, %11 : vector<4x128xf32>
    %c0_9 = arith.constant 0 : index
    %c0_10 = arith.constant 0 : index
    %13 = vector.load %arg7[%c0_9, %c0_10] : memref<4x128xf32, #tpu.memory_space<vmem>>, vector<4x128xf32>
    tpu.vector_store %arg7[%c0_9, %c0_10], %12 {strides = array<i32>} : memref<4x128xf32, #tpu.memory_space<vmem>>, vector<4x128xf32>,
    %c0_11 = arith.constant 0 : index
    %c0_12 = arith.constant 0 : index
    %c1 = arith.constant 1 : index
    %c0_13 = arith.constant 0 : index
    %14 = vector.load %arg3[%c0_11, %c0_12, %c1, %c0_13] : memref<1x1x5x256xbf16, #tpu.memory_space<vmem>>, vector<1x1x4x256xbf16>
    %15 = vector.shape_cast %14 : vector<1x1x4x256xbf16> to vector<4x256xbf16>
    %c2_i32_14 = arith.constant 2 : i32
    %16 = arith.muli %arg2, %c2_i32_14 : i32
    %c1_i32 = arith.constant 1 : i32
    %17 = arith.addi %16, %c1_i32 : i32
    %18 = arith.index_cast %17 : i32 to index
    %c0_15 = arith.constant 0 : index
    %c0_16 = arith.constant 0 : index
    %19 = vector.load %arg4[%18, %c0_15, %c0_16] : memref<4x256x128xbf16, #tpu.memory_space<vmem>>, vector<1x256x128xbf16>
    %20 = vector.shape_cast %19 : vector<1x256x128xbf16> to vector<256x128xbf16>
    %c0_17 = arith.constant 0 : index
    %c0_18 = arith.constant 0 : index
    %21 = vector.load %arg7[%c0_17, %c0_18] : memref<4x128xf32, #tpu.memory_space<vmem>>, vector<4x128xf32>
    %cst_19 = arith.constant dense<0.000000e+00> : vector<4x128xf32>
    %22 = tpu.matmul %15, %20, %cst_19 {dimension_numbers = #tpu.dot_dimension_numbers<[1], [0], [0], [1], [0, 0, 1, 1], [], []>} : vector<4x256xbf16>, vector<256x128xbf16>, vector<4x128xf32> -> vector<4x128xf32>
    %23 = arith.addf %21, %22 : vector<4x128xf32>
    %c0_20 = arith.constant 0 : index
    %c0_21 = arith.constant 0 : index
    %24 = vector.load %arg7[%c0_20, %c0_21] : memref<4x128xf32, #tpu.memory_space<vmem>>, vector<4x128xf32>
    tpu.vector_store %arg7[%c0_20, %c0_21], %23 {strides = array<i32>} : memref<4x128xf32, #tpu.memory_space<vmem>>, vector<4x128xf32>,
    %c1_i32_22 = arith.constant 1 : i32
    %25 = arith.cmpi eq, %arg2, %c1_i32_22 : i32
    %26 = arith.extui %25 : i1 to i32
    %c0_i32_23 = arith.constant 0 : i32
    %27 = arith.cmpi ne, %26, %c0_i32_23 : i32
    scf.if %27 {
      %c0_24 = arith.constant 0 : index
      %c0_25 = arith.constant 0 : index
      %28 = vector.load %arg7[%c0_24, %c0_25] : memref<4x128xf32, #tpu.memory_space<vmem>>, vector<4x128xf32>
      %c0_26 = arith.constant 0 : index
      %c0_27 = arith.constant 0 : index
      %29 = vector.load %arg5[%c0_26, %c0_27] : memref<1x128xf32, #tpu.memory_space<vmem>>, vector<1x128xf32>
      %30 = vector.broadcast %29 : vector<1x128xf32> to vector<4x128xf32>
      %31 = arith.addf %28, %30 : vector<4x128xf32>
      %32 = arith.truncf %31 : vector<4x128xf32> to vector<4x128xbf16>
      %c0_28 = arith.constant 0 : index
      %c0_29 = arith.constant 0 : index
      %c0_30 = arith.constant 0 : index
      %33 = vector.load %arg6[%c0_28, %c0_29, %c0_30] : memref<1x4x128xbf16, #tpu.memory_space<vmem>>, vector<1x4x128xbf16>
      %34 = vector.shape_cast %33 : vector<1x4x128xbf16> to vector<4x128xbf16>
      %35 = vector.shape_cast %32 : vector<4x128xbf16> to vector<1x4x128xbf16>
      tpu.vector_store %arg6[%c0_28, %c0_29, %c0_30], %35 {strides = array<i32>} : memref<1x4x128xbf16, #tpu.memory_space<vmem>>, vector<1x4x128xbf16>,
    } else {
    }
    return
  }
  func.func @transform_0(%arg0: i32, %arg1: i32, %arg2: i32) -> (i32, i32, i32, i32) {
    %c5_i32 = arith.constant 5 : i32
    %0 = arith.muli %arg0, %c5_i32 : i32
    %c1_i32 = arith.constant 1 : i32
    %1 = arith.muli %arg1, %c1_i32 : i32
    %2 = arith.addi %0, %1 : i32
    %3 = arith.addi %2, %arg2 : i32
    %c0_i32 = arith.constant 0 : i32
    %c0_i32_0 = arith.constant 0 : i32
    %c0_i32_1 = arith.constant 0 : i32
    %c0_i32_2 = arith.constant 0 : i32
    return %3, %c0_i32, %c0_i32_0, %c0_i32_1 : i32, i32, i32, i32
  }
  func.func @transform_1(%arg0: i32, %arg1: i32, %arg2: i32) -> (i32, i32, i32) {
    %c0_i32 = arith.constant 0 : i32
    %c0_i32_0 = arith.constant 0 : i32
    %c0_i32_1 = arith.constant 0 : i32
    %c0_i32_2 = arith.constant 0 : i32
    return %c0_i32, %c0_i32_0, %c0_i32_1 : i32, i32, i32
  }
  func.func @transform_2(%arg0: i32, %arg1: i32, %arg2: i32) -> (i32, i32) {
    %c0_i32 = arith.constant 0 : i32
    %c0_i32_0 = arith.constant 0 : i32
    %c0_i32_1 = arith.constant 0 : i32
    return %c0_i32, %c0_i32_0 : i32, i32
  }
  func.func @transform_3(%arg0: i32, %arg1: i32, %arg2: i32) -> (i32, i32, i32) {
    %c4_i32 = arith.constant 4 : i32
    %0 = arith.muli %arg0, %c4_i32 : i32
    %1 = arith.addi %0, %arg1 : i32
    %c0_i32 = arith.constant 0 : i32
    %c0_i32_0 = arith.constant 0 : i32
    %c0_i32_1 = arith.constant 0 : i32
    return %1, %c0_i32, %c0_i32_0 : i32, i32, i32
  }
}

module attributes {stable_mosaic.version = 11 : i64} {
  func.func @_conv_row_kernel(%arg0: i32, %arg1: i32, %arg2: i32, %arg3: memref<1x1x5x256xbf16, #tpu.memory_space<vmem>>, %arg4: memref<2x256x128xbf16, #tpu.memory_space<vmem>>, %arg5: memref<1x128xf32, #tpu.memory_space<vmem>>, %arg6: memref<1x4x128xbf16, #tpu.memory_space<vmem>>, %arg7: memref<4x128xf32, #tpu.memory_space<vmem>>) attributes {dimension_semantics = [#tpu.dimension_semantics<parallel>, #tpu.dimension_semantics<parallel>, #tpu.dimension_semantics<arbitrary>], iteration_bounds = array<i64: 2, 4, 2>, scalar_prefetch = 0 : i64, scratch_operands = 1 : i64, tpu.core_type = #tpu.core_type<tc>, window_params = [{transform_indices = @transform_0, window_bounds = array<i64: 1, 1, 5, 256>}, {pipeline_mode = #tpu.pipeline_mode<synchronous>, transform_indices = @transform_1, window_bounds = array<i64: 2, 256, 128>}, {pipeline_mode = #tpu.pipeline_mode<synchronous>, transform_indices = @transform_2, window_bounds = array<i64: 1, 128>}, {transform_indices = @transform_3, window_bounds = array<i64: 1, 4, 128>}]} {
    %c0_i32 = arith.constant 0 : i32
    %0 = arith.cmpi eq, %arg2, %c0_i32 : i32
    %1 = arith.extui %0 : i1 to i32
    %c0_i32_0 = arith.constant 0 : i32
    %2 = arith.cmpi ne, %1, %c0_i32_0 : i32
    scf.if %2 {
      %cst_13 = arith.constant 0.000000e+00 : f32
      %17 = vector.broadcast %cst_13 : f32 to vector<4x128xf32>
      %c0_14 = arith.constant 0 : index
      %c0_15 = arith.constant 0 : index
      %18 = vector.load %arg7[%c0_14, %c0_15] : memref<4x128xf32, #tpu.memory_space<vmem>>, vector<4x128xf32>
      tpu.vector_store %arg7[%c0_14, %c0_15], %17 {strides = array<i32>} : memref<4x128xf32, #tpu.memory_space<vmem>>, vector<4x128xf32>,
    } else {
    }
    %c0 = arith.constant 0 : index
    %c0_1 = arith.constant 0 : index
    %c0_2 = arith.constant 0 : index
    %c0_3 = arith.constant 0 : index
    %3 = vector.load %arg3[%c0, %c0_1, %c0_2, %c0_3] : memref<1x1x5x256xbf16, #tpu.memory_space<vmem>>, vector<1x1x4x256xbf16>
    %4 = vector.shape_cast %3 : vector<1x1x4x256xbf16> to vector<4x256xbf16>
    %c1_i32 = arith.constant 1 : i32
    %5 = arith.muli %arg2, %c1_i32 : i32
    %c0_i32_4 = arith.constant 0 : i32
    %6 = arith.addi %5, %c0_i32_4 : i32
    %7 = arith.index_cast %6 : i32 to index
    %c0_5 = arith.constant 0 : index
    %c0_6 = arith.constant 0 : index
    %8 = vector.load %arg4[%7, %c0_5, %c0_6] : memref<2x256x128xbf16, #tpu.memory_space<vmem>>, vector<1x256x128xbf16>
    %9 = vector.shape_cast %8 : vector<1x256x128xbf16> to vector<256x128xbf16>
    %c0_7 = arith.constant 0 : index
    %c0_8 = arith.constant 0 : index
    %10 = vector.load %arg7[%c0_7, %c0_8] : memref<4x128xf32, #tpu.memory_space<vmem>>, vector<4x128xf32>
    %cst = arith.constant dense<0.000000e+00> : vector<4x128xf32>
    %11 = tpu.matmul %4, %9, %cst {dimension_numbers = #tpu.dot_dimension_numbers<[1], [0], [0], [1], [0, 0, 1, 1], [], []>} : vector<4x256xbf16>, vector<256x128xbf16>, vector<4x128xf32> -> vector<4x128xf32>
    %12 = arith.addf %10, %11 : vector<4x128xf32>
    %c0_9 = arith.constant 0 : index
    %c0_10 = arith.constant 0 : index
    %13 = vector.load %arg7[%c0_9, %c0_10] : memref<4x128xf32, #tpu.memory_space<vmem>>, vector<4x128xf32>
    tpu.vector_store %arg7[%c0_9, %c0_10], %12 {strides = array<i32>} : memref<4x128xf32, #tpu.memory_space<vmem>>, vector<4x128xf32>,
    %c1_i32_11 = arith.constant 1 : i32
    %14 = arith.cmpi eq, %arg2, %c1_i32_11 : i32
    %15 = arith.extui %14 : i1 to i32
    %c0_i32_12 = arith.constant 0 : i32
    %16 = arith.cmpi ne, %15, %c0_i32_12 : i32
    scf.if %16 {
      %c0_13 = arith.constant 0 : index
      %c0_14 = arith.constant 0 : index
      %17 = vector.load %arg7[%c0_13, %c0_14] : memref<4x128xf32, #tpu.memory_space<vmem>>, vector<4x128xf32>
      %c0_15 = arith.constant 0 : index
      %c0_16 = arith.constant 0 : index
      %18 = vector.load %arg5[%c0_15, %c0_16] : memref<1x128xf32, #tpu.memory_space<vmem>>, vector<1x128xf32>
      %19 = vector.broadcast %18 : vector<1x128xf32> to vector<4x128xf32>
      %20 = arith.addf %17, %19 : vector<4x128xf32>
      %21 = arith.truncf %20 : vector<4x128xf32> to vector<4x128xbf16>
      %c0_17 = arith.constant 0 : index
      %c0_18 = arith.constant 0 : index
      %c0_19 = arith.constant 0 : index
      %22 = vector.load %arg6[%c0_17, %c0_18, %c0_19] : memref<1x4x128xbf16, #tpu.memory_space<vmem>>, vector<1x4x128xbf16>
      %23 = vector.shape_cast %22 : vector<1x4x128xbf16> to vector<4x128xbf16>
      %24 = vector.shape_cast %21 : vector<4x128xbf16> to vector<1x4x128xbf16>
      tpu.vector_store %arg6[%c0_17, %c0_18, %c0_19], %24 {strides = array<i32>} : memref<1x4x128xbf16, #tpu.memory_space<vmem>>, vector<1x4x128xbf16>,
    } else {
    }
    return
  }
  func.func @transform_0(%arg0: i32, %arg1: i32, %arg2: i32) -> (i32, i32, i32, i32) {
    %c5_i32 = arith.constant 5 : i32
    %0 = arith.muli %arg0, %c5_i32 : i32
    %c1_i32 = arith.constant 1 : i32
    %1 = arith.muli %arg1, %c1_i32 : i32
    %2 = arith.addi %0, %1 : i32
    %3 = arith.addi %2, %arg2 : i32
    %c0_i32 = arith.constant 0 : i32
    %c0_i32_0 = arith.constant 0 : i32
    %c0_i32_1 = arith.constant 0 : i32
    %c0_i32_2 = arith.constant 0 : i32
    return %3, %c0_i32, %c0_i32_0, %c0_i32_1 : i32, i32, i32, i32
  }
  func.func @transform_1(%arg0: i32, %arg1: i32, %arg2: i32) -> (i32, i32, i32) {
    %c0_i32 = arith.constant 0 : i32
    %c0_i32_0 = arith.constant 0 : i32
    %c0_i32_1 = arith.constant 0 : i32
    %c0_i32_2 = arith.constant 0 : i32
    return %c0_i32, %c0_i32_0, %c0_i32_1 : i32, i32, i32
  }
  func.func @transform_2(%arg0: i32, %arg1: i32, %arg2: i32) -> (i32, i32) {
    %c0_i32 = arith.constant 0 : i32
    %c0_i32_0 = arith.constant 0 : i32
    %c0_i32_1 = arith.constant 0 : i32
    return %c0_i32, %c0_i32_0 : i32, i32
  }
  func.func @transform_3(%arg0: i32, %arg1: i32, %arg2: i32) -> (i32, i32, i32) {
    %c4_i32 = arith.constant 4 : i32
    %0 = arith.muli %arg0, %c4_i32 : i32
    %1 = arith.addi %0, %arg1 : i32
    %c0_i32 = arith.constant 0 : i32
    %c0_i32_0 = arith.constant 0 : i32
    %c0_i32_1 = arith.constant 0 : i32
    return %1, %c0_i32, %c0_i32_0 : i32, i32, i32
  }
}

module attributes {stable_mosaic.version = 11 : i64} {
  func.func @_conv_row_kernel(%arg0: i32, %arg1: i32, %arg2: i32, %arg3: memref<1x1x5x256xbf16, #tpu.memory_space<vmem>>, %arg4: memref<2x256x128xbf16, #tpu.memory_space<vmem>>, %arg5: memref<1x128xf32, #tpu.memory_space<vmem>>, %arg6: memref<1x4x128xbf16, #tpu.memory_space<vmem>>, %arg7: memref<4x128xf32, #tpu.memory_space<vmem>>) attributes {dimension_semantics = [#tpu.dimension_semantics<parallel>, #tpu.dimension_semantics<parallel>, #tpu.dimension_semantics<arbitrary>], iteration_bounds = array<i64: 2, 4, 1>, scalar_prefetch = 0 : i64, scratch_operands = 1 : i64, tpu.core_type = #tpu.core_type<tc>, window_params = [{transform_indices = @transform_0, window_bounds = array<i64: 1, 1, 5, 256>}, {pipeline_mode = #tpu.pipeline_mode<synchronous>, transform_indices = @transform_1, window_bounds = array<i64: 2, 256, 128>}, {pipeline_mode = #tpu.pipeline_mode<synchronous>, transform_indices = @transform_2, window_bounds = array<i64: 1, 128>}, {transform_indices = @transform_3, window_bounds = array<i64: 1, 4, 128>}]} {
    %c0_i32 = arith.constant 0 : i32
    %0 = arith.cmpi eq, %arg2, %c0_i32 : i32
    %1 = arith.extui %0 : i1 to i32
    %c0_i32_0 = arith.constant 0 : i32
    %2 = arith.cmpi ne, %1, %c0_i32_0 : i32
    scf.if %2 {
      %cst_24 = arith.constant 0.000000e+00 : f32
      %28 = vector.broadcast %cst_24 : f32 to vector<4x128xf32>
      %c0_25 = arith.constant 0 : index
      %c0_26 = arith.constant 0 : index
      %29 = vector.load %arg7[%c0_25, %c0_26] : memref<4x128xf32, #tpu.memory_space<vmem>>, vector<4x128xf32>
      tpu.vector_store %arg7[%c0_25, %c0_26], %28 {strides = array<i32>} : memref<4x128xf32, #tpu.memory_space<vmem>>, vector<4x128xf32>,
    } else {
    }
    %c0 = arith.constant 0 : index
    %c0_1 = arith.constant 0 : index
    %c0_2 = arith.constant 0 : index
    %c0_3 = arith.constant 0 : index
    %3 = vector.load %arg3[%c0, %c0_1, %c0_2, %c0_3] : memref<1x1x5x256xbf16, #tpu.memory_space<vmem>>, vector<1x1x4x256xbf16>
    %4 = vector.shape_cast %3 : vector<1x1x4x256xbf16> to vector<4x256xbf16>
    %c2_i32 = arith.constant 2 : i32
    %5 = arith.muli %arg2, %c2_i32 : i32
    %c0_i32_4 = arith.constant 0 : i32
    %6 = arith.addi %5, %c0_i32_4 : i32
    %7 = arith.index_cast %6 : i32 to index
    %c0_5 = arith.constant 0 : index
    %c0_6 = arith.constant 0 : index
    %8 = vector.load %arg4[%7, %c0_5, %c0_6] : memref<2x256x128xbf16, #tpu.memory_space<vmem>>, vector<1x256x128xbf16>
    %9 = vector.shape_cast %8 : vector<1x256x128xbf16> to vector<256x128xbf16>
    %c0_7 = arith.constant 0 : index
    %c0_8 = arith.constant 0 : index
    %10 = vector.load %arg7[%c0_7, %c0_8] : memref<4x128xf32, #tpu.memory_space<vmem>>, vector<4x128xf32>
    %cst = arith.constant dense<0.000000e+00> : vector<4x128xf32>
    %11 = tpu.matmul %4, %9, %cst {dimension_numbers = #tpu.dot_dimension_numbers<[1], [0], [0], [1], [0, 0, 1, 1], [], []>} : vector<4x256xbf16>, vector<256x128xbf16>, vector<4x128xf32> -> vector<4x128xf32>
    %12 = arith.addf %10, %11 : vector<4x128xf32>
    %c0_9 = arith.constant 0 : index
    %c0_10 = arith.constant 0 : index
    %13 = vector.load %arg7[%c0_9, %c0_10] : memref<4x128xf32, #tpu.memory_space<vmem>>, vector<4x128xf32>
    tpu.vector_store %arg7[%c0_9, %c0_10], %12 {strides = array<i32>} : memref<4x128xf32, #tpu.memory_space<vmem>>, vector<4x128xf32>,
    %c0_11 = arith.constant 0 : index
    %c0_12 = arith.constant 0 : index
    %c1 = arith.constant 1 : index
    %c0_13 = arith.constant 0 : index
    %14 = vector.load %arg3[%c0_11, %c0_12, %c1, %c0_13] : memref<1x1x5x256xbf16, #tpu.memory_space<vmem>>, vector<1x1x4x256xbf16>
    %15 = vector.shape_cast %14 : vector<1x1x4x256xbf16> to vector<4x256xbf16>
    %c2_i32_14 = arith.constant 2 : i32
    %16 = arith.muli %arg2, %c2_i32_14 : i32
    %c1_i32 = arith.constant 1 : i32
    %17 = arith.addi %16, %c1_i32 : i32
    %18 = arith.index_cast %17 : i32 to index
    %c0_15 = arith.constant 0 : index
    %c0_16 = arith.constant 0 : index
    %19 = vector.load %arg4[%18, %c0_15, %c0_16] : memref<2x256x128xbf16, #tpu.memory_space<vmem>>, vector<1x256x128xbf16>
    %20 = vector.shape_cast %19 : vector<1x256x128xbf16> to vector<256x128xbf16>
    %c0_17 = arith.constant 0 : index
    %c0_18 = arith.constant 0 : index
    %21 = vector.load %arg7[%c0_17, %c0_18] : memref<4x128xf32, #tpu.memory_space<vmem>>, vector<4x128xf32>
    %cst_19 = arith.constant dense<0.000000e+00> : vector<4x128xf32>
    %22 = tpu.matmul %15, %20, %cst_19 {dimension_numbers = #tpu.dot_dimension_numbers<[1], [0], [0], [1], [0, 0, 1, 1], [], []>} : vector<4x256xbf16>, vector<256x128xbf16>, vector<4x128xf32> -> vector<4x128xf32>
    %23 = arith.addf %21, %22 : vector<4x128xf32>
    %c0_20 = arith.constant 0 : index
    %c0_21 = arith.constant 0 : index
    %24 = vector.load %arg7[%c0_20, %c0_21] : memref<4x128xf32, #tpu.memory_space<vmem>>, vector<4x128xf32>
    tpu.vector_store %arg7[%c0_20, %c0_21], %23 {strides = array<i32>} : memref<4x128xf32, #tpu.memory_space<vmem>>, vector<4x128xf32>,
    %c0_i32_22 = arith.constant 0 : i32
    %25 = arith.cmpi eq, %arg2, %c0_i32_22 : i32
    %26 = arith.extui %25 : i1 to i32
    %c0_i32_23 = arith.constant 0 : i32
    %27 = arith.cmpi ne, %26, %c0_i32_23 : i32
    scf.if %27 {
      %c0_24 = arith.constant 0 : index
      %c0_25 = arith.constant 0 : index
      %28 = vector.load %arg7[%c0_24, %c0_25] : memref<4x128xf32, #tpu.memory_space<vmem>>, vector<4x128xf32>
      %c0_26 = arith.constant 0 : index
      %c0_27 = arith.constant 0 : index
      %29 = vector.load %arg5[%c0_26, %c0_27] : memref<1x128xf32, #tpu.memory_space<vmem>>, vector<1x128xf32>
      %30 = vector.broadcast %29 : vector<1x128xf32> to vector<4x128xf32>
      %31 = arith.addf %28, %30 : vector<4x128xf32>
      %32 = arith.truncf %31 : vector<4x128xf32> to vector<4x128xbf16>
      %c0_28 = arith.constant 0 : index
      %c0_29 = arith.constant 0 : index
      %c0_30 = arith.constant 0 : index
      %33 = vector.load %arg6[%c0_28, %c0_29, %c0_30] : memref<1x4x128xbf16, #tpu.memory_space<vmem>>, vector<1x4x128xbf16>
      %34 = vector.shape_cast %33 : vector<1x4x128xbf16> to vector<4x128xbf16>
      %35 = vector.shape_cast %32 : vector<4x128xbf16> to vector<1x4x128xbf16>
      tpu.vector_store %arg6[%c0_28, %c0_29, %c0_30], %35 {strides = array<i32>} : memref<1x4x128xbf16, #tpu.memory_space<vmem>>, vector<1x4x128xbf16>,
    } else {
    }
    return
  }
  func.func @transform_0(%arg0: i32, %arg1: i32, %arg2: i32) -> (i32, i32, i32, i32) {
    %c5_i32 = arith.constant 5 : i32
    %0 = arith.muli %arg0, %c5_i32 : i32
    %c1_i32 = arith.constant 1 : i32
    %1 = arith.muli %arg1, %c1_i32 : i32
    %2 = arith.addi %0, %1 : i32
    %3 = arith.addi %2, %arg2 : i32
    %c0_i32 = arith.constant 0 : i32
    %c0_i32_0 = arith.constant 0 : i32
    %c0_i32_1 = arith.constant 0 : i32
    %c0_i32_2 = arith.constant 0 : i32
    return %3, %c0_i32, %c0_i32_0, %c0_i32_1 : i32, i32, i32, i32
  }
  func.func @transform_1(%arg0: i32, %arg1: i32, %arg2: i32) -> (i32, i32, i32) {
    %c0_i32 = arith.constant 0 : i32
    %c0_i32_0 = arith.constant 0 : i32
    %c0_i32_1 = arith.constant 0 : i32
    %c0_i32_2 = arith.constant 0 : i32
    return %c0_i32, %c0_i32_0, %c0_i32_1 : i32, i32, i32
  }
  func.func @transform_2(%arg0: i32, %arg1: i32, %arg2: i32) -> (i32, i32) {
    %c0_i32 = arith.constant 0 : i32
    %c0_i32_0 = arith.constant 0 : i32
    %c0_i32_1 = arith.constant 0 : i32
    return %c0_i32, %c0_i32_0 : i32, i32
  }
  func.func @transform_3(%arg0: i32, %arg1: i32, %arg2: i32) -> (i32, i32, i32) {
    %c4_i32 = arith.constant 4 : i32
    %0 = arith.muli %arg0, %c4_i32 : i32
    %1 = arith.addi %0, %arg1 : i32
    %c0_i32 = arith.constant 0 : i32
    %c0_i32_0 = arith.constant 0 : i32
    %c0_i32_1 = arith.constant 0 : i32
    return %1, %c0_i32, %c0_i32_0 : i32, i32, i32
  }
}

module attributes {stable_mosaic.version = 11 : i64} {
  func.func @_conv_row_kernel(%arg0: i32, %arg1: i32, %arg2: i32, %arg3: memref<1x1x5x256xbf16, #tpu.memory_space<vmem>>, %arg4: memref<1x256x128xbf16, #tpu.memory_space<vmem>>, %arg5: memref<1x128xf32, #tpu.memory_space<vmem>>, %arg6: memref<1x4x128xbf16, #tpu.memory_space<vmem>>, %arg7: memref<4x128xf32, #tpu.memory_space<vmem>>) attributes {dimension_semantics = [#tpu.dimension_semantics<parallel>, #tpu.dimension_semantics<parallel>, #tpu.dimension_semantics<arbitrary>], iteration_bounds = array<i64: 2, 4, 1>, scalar_prefetch = 0 : i64, scratch_operands = 1 : i64, tpu.core_type = #tpu.core_type<tc>, window_params = [{transform_indices = @transform_0, window_bounds = array<i64: 1, 1, 5, 256>}, {pipeline_mode = #tpu.pipeline_mode<synchronous>, transform_indices = @transform_1, window_bounds = array<i64: 1, 256, 128>}, {pipeline_mode = #tpu.pipeline_mode<synchronous>, transform_indices = @transform_2, window_bounds = array<i64: 1, 128>}, {transform_indices = @transform_3, window_bounds = array<i64: 1, 4, 128>}]} {
    %c0_i32 = arith.constant 0 : i32
    %0 = arith.cmpi eq, %arg2, %c0_i32 : i32
    %1 = arith.extui %0 : i1 to i32
    %c0_i32_0 = arith.constant 0 : i32
    %2 = arith.cmpi ne, %1, %c0_i32_0 : i32
    scf.if %2 {
      %cst_13 = arith.constant 0.000000e+00 : f32
      %17 = vector.broadcast %cst_13 : f32 to vector<4x128xf32>
      %c0_14 = arith.constant 0 : index
      %c0_15 = arith.constant 0 : index
      %18 = vector.load %arg7[%c0_14, %c0_15] : memref<4x128xf32, #tpu.memory_space<vmem>>, vector<4x128xf32>
      tpu.vector_store %arg7[%c0_14, %c0_15], %17 {strides = array<i32>} : memref<4x128xf32, #tpu.memory_space<vmem>>, vector<4x128xf32>,
    } else {
    }
    %c0 = arith.constant 0 : index
    %c0_1 = arith.constant 0 : index
    %c0_2 = arith.constant 0 : index
    %c0_3 = arith.constant 0 : index
    %3 = vector.load %arg3[%c0, %c0_1, %c0_2, %c0_3] : memref<1x1x5x256xbf16, #tpu.memory_space<vmem>>, vector<1x1x4x256xbf16>
    %4 = vector.shape_cast %3 : vector<1x1x4x256xbf16> to vector<4x256xbf16>
    %c1_i32 = arith.constant 1 : i32
    %5 = arith.muli %arg2, %c1_i32 : i32
    %c0_i32_4 = arith.constant 0 : i32
    %6 = arith.addi %5, %c0_i32_4 : i32
    %7 = arith.index_cast %6 : i32 to index
    %c0_5 = arith.constant 0 : index
    %c0_6 = arith.constant 0 : index
    %8 = vector.load %arg4[%7, %c0_5, %c0_6] : memref<1x256x128xbf16, #tpu.memory_space<vmem>>, vector<1x256x128xbf16>
    %9 = vector.shape_cast %8 : vector<1x256x128xbf16> to vector<256x128xbf16>
    %c0_7 = arith.constant 0 : index
    %c0_8 = arith.constant 0 : index
    %10 = vector.load %arg7[%c0_7, %c0_8] : memref<4x128xf32, #tpu.memory_space<vmem>>, vector<4x128xf32>
    %cst = arith.constant dense<0.000000e+00> : vector<4x128xf32>
    %11 = tpu.matmul %4, %9, %cst {dimension_numbers = #tpu.dot_dimension_numbers<[1], [0], [0], [1], [0, 0, 1, 1], [], []>} : vector<4x256xbf16>, vector<256x128xbf16>, vector<4x128xf32> -> vector<4x128xf32>
    %12 = arith.addf %10, %11 : vector<4x128xf32>
    %c0_9 = arith.constant 0 : index
    %c0_10 = arith.constant 0 : index
    %13 = vector.load %arg7[%c0_9, %c0_10] : memref<4x128xf32, #tpu.memory_space<vmem>>, vector<4x128xf32>
    tpu.vector_store %arg7[%c0_9, %c0_10], %12 {strides = array<i32>} : memref<4x128xf32, #tpu.memory_space<vmem>>, vector<4x128xf32>,
    %c0_i32_11 = arith.constant 0 : i32
    %14 = arith.cmpi eq, %arg2, %c0_i32_11 : i32
    %15 = arith.extui %14 : i1 to i32
    %c0_i32_12 = arith.constant 0 : i32
    %16 = arith.cmpi ne, %15, %c0_i32_12 : i32
    scf.if %16 {
      %c0_13 = arith.constant 0 : index
      %c0_14 = arith.constant 0 : index
      %17 = vector.load %arg7[%c0_13, %c0_14] : memref<4x128xf32, #tpu.memory_space<vmem>>, vector<4x128xf32>
      %c0_15 = arith.constant 0 : index
      %c0_16 = arith.constant 0 : index
      %18 = vector.load %arg5[%c0_15, %c0_16] : memref<1x128xf32, #tpu.memory_space<vmem>>, vector<1x128xf32>
      %19 = vector.broadcast %18 : vector<1x128xf32> to vector<4x128xf32>
      %20 = arith.addf %17, %19 : vector<4x128xf32>
      %21 = arith.truncf %20 : vector<4x128xf32> to vector<4x128xbf16>
      %c0_17 = arith.constant 0 : index
      %c0_18 = arith.constant 0 : index
      %c0_19 = arith.constant 0 : index
      %22 = vector.load %arg6[%c0_17, %c0_18, %c0_19] : memref<1x4x128xbf16, #tpu.memory_space<vmem>>, vector<1x4x128xbf16>
      %23 = vector.shape_cast %22 : vector<1x4x128xbf16> to vector<4x128xbf16>
      %24 = vector.shape_cast %21 : vector<4x128xbf16> to vector<1x4x128xbf16>
      tpu.vector_store %arg6[%c0_17, %c0_18, %c0_19], %24 {strides = array<i32>} : memref<1x4x128xbf16, #tpu.memory_space<vmem>>, vector<1x4x128xbf16>,
    } else {
    }
    return
  }
  func.func @transform_0(%arg0: i32, %arg1: i32, %arg2: i32) -> (i32, i32, i32, i32) {
    %c5_i32 = arith.constant 5 : i32
    %0 = arith.muli %arg0, %c5_i32 : i32
    %c1_i32 = arith.constant 1 : i32
    %1 = arith.muli %arg1, %c1_i32 : i32
    %2 = arith.addi %0, %1 : i32
    %3 = arith.addi %2, %arg2 : i32
    %c0_i32 = arith.constant 0 : i32
    %c0_i32_0 = arith.constant 0 : i32
    %c0_i32_1 = arith.constant 0 : i32
    %c0_i32_2 = arith.constant 0 : i32
    return %3, %c0_i32, %c0_i32_0, %c0_i32_1 : i32, i32, i32, i32
  }
  func.func @transform_1(%arg0: i32, %arg1: i32, %arg2: i32) -> (i32, i32, i32) {
    %c0_i32 = arith.constant 0 : i32
    %c0_i32_0 = arith.constant 0 : i32
    %c0_i32_1 = arith.constant 0 : i32
    %c0_i32_2 = arith.constant 0 : i32
    return %c0_i32, %c0_i32_0, %c0_i32_1 : i32, i32, i32
  }
  func.func @transform_2(%arg0: i32, %arg1: i32, %arg2: i32) -> (i32, i32) {
    %c0_i32 = arith.constant 0 : i32
    %c0_i32_0 = arith.constant 0 : i32
    %c0_i32_1 = arith.constant 0 : i32
    return %c0_i32, %c0_i32_0 : i32, i32
  }
  func.func @transform_3(%arg0: i32, %arg1: i32, %arg2: i32) -> (i32, i32, i32) {
    %c4_i32 = arith.constant 4 : i32
    %0 = arith.muli %arg0, %c4_i32 : i32
    %1 = arith.addi %0, %arg1 : i32
    %c0_i32 = arith.constant 0 : i32
    %c0_i32_0 = arith.constant 0 : i32
    %c0_i32_1 = arith.constant 0 : i32
    return %1, %c0_i32, %c0_i32_0 : i32, i32, i32
  }
}

module attributes {stable_mosaic.version = 11 : i64} {
  func.func @_conv_row_kernel(%arg0: i32, %arg1: i32, %arg2: i32, %arg3: memref<1x1x9x128xbf16, #tpu.memory_space<vmem>>, %arg4: memref<4x128x64xbf16, #tpu.memory_space<vmem>>, %arg5: memref<1x64xf32, #tpu.memory_space<vmem>>, %arg6: memref<1x8x64xbf16, #tpu.memory_space<vmem>>, %arg7: memref<8x64xf32, #tpu.memory_space<vmem>>) attributes {dimension_semantics = [#tpu.dimension_semantics<parallel>, #tpu.dimension_semantics<parallel>, #tpu.dimension_semantics<arbitrary>], iteration_bounds = array<i64: 2, 8, 2>, scalar_prefetch = 0 : i64, scratch_operands = 1 : i64, tpu.core_type = #tpu.core_type<tc>, window_params = [{transform_indices = @transform_0, window_bounds = array<i64: 1, 1, 9, 128>}, {pipeline_mode = #tpu.pipeline_mode<synchronous>, transform_indices = @transform_1, window_bounds = array<i64: 4, 128, 64>}, {pipeline_mode = #tpu.pipeline_mode<synchronous>, transform_indices = @transform_2, window_bounds = array<i64: 1, 64>}, {transform_indices = @transform_3, window_bounds = array<i64: 1, 8, 64>}]} {
    %c0_i32 = arith.constant 0 : i32
    %0 = arith.cmpi eq, %arg2, %c0_i32 : i32
    %1 = arith.extui %0 : i1 to i32
    %c0_i32_0 = arith.constant 0 : i32
    %2 = arith.cmpi ne, %1, %c0_i32_0 : i32
    scf.if %2 {
      %cst_24 = arith.constant 0.000000e+00 : f32
      %28 = vector.broadcast %cst_24 : f32 to vector<8x64xf32>
      %c0_25 = arith.constant 0 : index
      %c0_26 = arith.constant 0 : index
      %29 = vector.load %arg7[%c0_25, %c0_26] : memref<8x64xf32, #tpu.memory_space<vmem>>, vector<8x64xf32>
      tpu.vector_store %arg7[%c0_25, %c0_26], %28 {strides = array<i32>} : memref<8x64xf32, #tpu.memory_space<vmem>>, vector<8x64xf32>,
    } else {
    }
    %c0 = arith.constant 0 : index
    %c0_1 = arith.constant 0 : index
    %c0_2 = arith.constant 0 : index
    %c0_3 = arith.constant 0 : index
    %3 = vector.load %arg3[%c0, %c0_1, %c0_2, %c0_3] : memref<1x1x9x128xbf16, #tpu.memory_space<vmem>>, vector<1x1x8x128xbf16>
    %4 = vector.shape_cast %3 : vector<1x1x8x128xbf16> to vector<8x128xbf16>
    %c2_i32 = arith.constant 2 : i32
    %5 = arith.muli %arg2, %c2_i32 : i32
    %c0_i32_4 = arith.constant 0 : i32
    %6 = arith.addi %5, %c0_i32_4 : i32
    %7 = arith.index_cast %6 : i32 to index
    %c0_5 = arith.constant 0 : index
    %c0_6 = arith.constant 0 : index
    %8 = vector.load %arg4[%7, %c0_5, %c0_6] : memref<4x128x64xbf16, #tpu.memory_space<vmem>>, vector<1x128x64xbf16>
    %9 = vector.shape_cast %8 : vector<1x128x64xbf16> to vector<128x64xbf16>
    %c0_7 = arith.constant 0 : index
    %c0_8 = arith.constant 0 : index
    %10 = vector.load %arg7[%c0_7, %c0_8] : memref<8x64xf32, #tpu.memory_space<vmem>>, vector<8x64xf32>
    %cst = arith.constant dense<0.000000e+00> : vector<8x64xf32>
    %11 = tpu.matmul %4, %9, %cst {dimension_numbers = #tpu.dot_dimension_numbers<[1], [0], [0], [1], [0, 0, 1, 1], [], []>} : vector<8x128xbf16>, vector<128x64xbf16>, vector<8x64xf32> -> vector<8x64xf32>
    %12 = arith.addf %10, %11 : vector<8x64xf32>
    %c0_9 = arith.constant 0 : index
    %c0_10 = arith.constant 0 : index
    %13 = vector.load %arg7[%c0_9, %c0_10] : memref<8x64xf32, #tpu.memory_space<vmem>>, vector<8x64xf32>
    tpu.vector_store %arg7[%c0_9, %c0_10], %12 {strides = array<i32>} : memref<8x64xf32, #tpu.memory_space<vmem>>, vector<8x64xf32>,
    %c0_11 = arith.constant 0 : index
    %c0_12 = arith.constant 0 : index
    %c1 = arith.constant 1 : index
    %c0_13 = arith.constant 0 : index
    %14 = vector.load %arg3[%c0_11, %c0_12, %c1, %c0_13] : memref<1x1x9x128xbf16, #tpu.memory_space<vmem>>, vector<1x1x8x128xbf16>
    %15 = vector.shape_cast %14 : vector<1x1x8x128xbf16> to vector<8x128xbf16>
    %c2_i32_14 = arith.constant 2 : i32
    %16 = arith.muli %arg2, %c2_i32_14 : i32
    %c1_i32 = arith.constant 1 : i32
    %17 = arith.addi %16, %c1_i32 : i32
    %18 = arith.index_cast %17 : i32 to index
    %c0_15 = arith.constant 0 : index
    %c0_16 = arith.constant 0 : index
    %19 = vector.load %arg4[%18, %c0_15, %c0_16] : memref<4x128x64xbf16, #tpu.memory_space<vmem>>, vector<1x128x64xbf16>
    %20 = vector.shape_cast %19 : vector<1x128x64xbf16> to vector<128x64xbf16>
    %c0_17 = arith.constant 0 : index
    %c0_18 = arith.constant 0 : index
    %21 = vector.load %arg7[%c0_17, %c0_18] : memref<8x64xf32, #tpu.memory_space<vmem>>, vector<8x64xf32>
    %cst_19 = arith.constant dense<0.000000e+00> : vector<8x64xf32>
    %22 = tpu.matmul %15, %20, %cst_19 {dimension_numbers = #tpu.dot_dimension_numbers<[1], [0], [0], [1], [0, 0, 1, 1], [], []>} : vector<8x128xbf16>, vector<128x64xbf16>, vector<8x64xf32> -> vector<8x64xf32>
    %23 = arith.addf %21, %22 : vector<8x64xf32>
    %c0_20 = arith.constant 0 : index
    %c0_21 = arith.constant 0 : index
    %24 = vector.load %arg7[%c0_20, %c0_21] : memref<8x64xf32, #tpu.memory_space<vmem>>, vector<8x64xf32>
    tpu.vector_store %arg7[%c0_20, %c0_21], %23 {strides = array<i32>} : memref<8x64xf32, #tpu.memory_space<vmem>>, vector<8x64xf32>,
    %c1_i32_22 = arith.constant 1 : i32
    %25 = arith.cmpi eq, %arg2, %c1_i32_22 : i32
    %26 = arith.extui %25 : i1 to i32
    %c0_i32_23 = arith.constant 0 : i32
    %27 = arith.cmpi ne, %26, %c0_i32_23 : i32
    scf.if %27 {
      %c0_24 = arith.constant 0 : index
      %c0_25 = arith.constant 0 : index
      %28 = vector.load %arg7[%c0_24, %c0_25] : memref<8x64xf32, #tpu.memory_space<vmem>>, vector<8x64xf32>
      %c0_26 = arith.constant 0 : index
      %c0_27 = arith.constant 0 : index
      %29 = vector.load %arg5[%c0_26, %c0_27] : memref<1x64xf32, #tpu.memory_space<vmem>>, vector<1x64xf32>
      %30 = vector.broadcast %29 : vector<1x64xf32> to vector<8x64xf32>
      %31 = arith.addf %28, %30 : vector<8x64xf32>
      %32 = arith.truncf %31 : vector<8x64xf32> to vector<8x64xbf16>
      %c0_28 = arith.constant 0 : index
      %c0_29 = arith.constant 0 : index
      %c0_30 = arith.constant 0 : index
      %33 = vector.load %arg6[%c0_28, %c0_29, %c0_30] : memref<1x8x64xbf16, #tpu.memory_space<vmem>>, vector<1x8x64xbf16>
      %34 = vector.shape_cast %33 : vector<1x8x64xbf16> to vector<8x64xbf16>
      %35 = vector.shape_cast %32 : vector<8x64xbf16> to vector<1x8x64xbf16>
      tpu.vector_store %arg6[%c0_28, %c0_29, %c0_30], %35 {strides = array<i32>} : memref<1x8x64xbf16, #tpu.memory_space<vmem>>, vector<1x8x64xbf16>,
    } else {
    }
    return
  }
  func.func @transform_0(%arg0: i32, %arg1: i32, %arg2: i32) -> (i32, i32, i32, i32) {
    %c9_i32 = arith.constant 9 : i32
    %0 = arith.muli %arg0, %c9_i32 : i32
    %c1_i32 = arith.constant 1 : i32
    %1 = arith.muli %arg1, %c1_i32 : i32
    %2 = arith.addi %0, %1 : i32
    %3 = arith.addi %2, %arg2 : i32
    %c0_i32 = arith.constant 0 : i32
    %c0_i32_0 = arith.constant 0 : i32
    %c0_i32_1 = arith.constant 0 : i32
    %c0_i32_2 = arith.constant 0 : i32
    return %3, %c0_i32, %c0_i32_0, %c0_i32_1 : i32, i32, i32, i32
  }
  func.func @transform_1(%arg0: i32, %arg1: i32, %arg2: i32) -> (i32, i32, i32) {
    %c0_i32 = arith.constant 0 : i32
    %c0_i32_0 = arith.constant 0 : i32
    %c0_i32_1 = arith.constant 0 : i32
    %c0_i32_2 = arith.constant 0 : i32
    return %c0_i32, %c0_i32_0, %c0_i32_1 : i32, i32, i32
  }
  func.func @transform_2(%arg0: i32, %arg1: i32, %arg2: i32) -> (i32, i32) {
    %c0_i32 = arith.constant 0 : i32
    %c0_i32_0 = arith.constant 0 : i32
    %c0_i32_1 = arith.constant 0 : i32
    return %c0_i32, %c0_i32_0 : i32, i32
  }
  func.func @transform_3(%arg0: i32, %arg1: i32, %arg2: i32) -> (i32, i32, i32) {
    %c8_i32 = arith.constant 8 : i32
    %0 = arith.muli %arg0, %c8_i32 : i32
    %1 = arith.addi %0, %arg1 : i32
    %c0_i32 = arith.constant 0 : i32
    %c0_i32_0 = arith.constant 0 : i32
    %c0_i32_1 = arith.constant 0 : i32
    return %1, %c0_i32, %c0_i32_0 : i32, i32, i32
  }
}

module attributes {stable_mosaic.version = 11 : i64} {
  func.func @_conv_row_kernel(%arg0: i32, %arg1: i32, %arg2: i32, %arg3: memref<1x1x9x128xbf16, #tpu.memory_space<vmem>>, %arg4: memref<2x128x64xbf16, #tpu.memory_space<vmem>>, %arg5: memref<1x64xf32, #tpu.memory_space<vmem>>, %arg6: memref<1x8x64xbf16, #tpu.memory_space<vmem>>, %arg7: memref<8x64xf32, #tpu.memory_space<vmem>>) attributes {dimension_semantics = [#tpu.dimension_semantics<parallel>, #tpu.dimension_semantics<parallel>, #tpu.dimension_semantics<arbitrary>], iteration_bounds = array<i64: 2, 8, 2>, scalar_prefetch = 0 : i64, scratch_operands = 1 : i64, tpu.core_type = #tpu.core_type<tc>, window_params = [{transform_indices = @transform_0, window_bounds = array<i64: 1, 1, 9, 128>}, {pipeline_mode = #tpu.pipeline_mode<synchronous>, transform_indices = @transform_1, window_bounds = array<i64: 2, 128, 64>}, {pipeline_mode = #tpu.pipeline_mode<synchronous>, transform_indices = @transform_2, window_bounds = array<i64: 1, 64>}, {transform_indices = @transform_3, window_bounds = array<i64: 1, 8, 64>}]} {
    %c0_i32 = arith.constant 0 : i32
    %0 = arith.cmpi eq, %arg2, %c0_i32 : i32
    %1 = arith.extui %0 : i1 to i32
    %c0_i32_0 = arith.constant 0 : i32
    %2 = arith.cmpi ne, %1, %c0_i32_0 : i32
    scf.if %2 {
      %cst_13 = arith.constant 0.000000e+00 : f32
      %17 = vector.broadcast %cst_13 : f32 to vector<8x64xf32>
      %c0_14 = arith.constant 0 : index
      %c0_15 = arith.constant 0 : index
      %18 = vector.load %arg7[%c0_14, %c0_15] : memref<8x64xf32, #tpu.memory_space<vmem>>, vector<8x64xf32>
      tpu.vector_store %arg7[%c0_14, %c0_15], %17 {strides = array<i32>} : memref<8x64xf32, #tpu.memory_space<vmem>>, vector<8x64xf32>,
    } else {
    }
    %c0 = arith.constant 0 : index
    %c0_1 = arith.constant 0 : index
    %c0_2 = arith.constant 0 : index
    %c0_3 = arith.constant 0 : index
    %3 = vector.load %arg3[%c0, %c0_1, %c0_2, %c0_3] : memref<1x1x9x128xbf16, #tpu.memory_space<vmem>>, vector<1x1x8x128xbf16>
    %4 = vector.shape_cast %3 : vector<1x1x8x128xbf16> to vector<8x128xbf16>
    %c1_i32 = arith.constant 1 : i32
    %5 = arith.muli %arg2, %c1_i32 : i32
    %c0_i32_4 = arith.constant 0 : i32
    %6 = arith.addi %5, %c0_i32_4 : i32
    %7 = arith.index_cast %6 : i32 to index
    %c0_5 = arith.constant 0 : index
    %c0_6 = arith.constant 0 : index
    %8 = vector.load %arg4[%7, %c0_5, %c0_6] : memref<2x128x64xbf16, #tpu.memory_space<vmem>>, vector<1x128x64xbf16>
    %9 = vector.shape_cast %8 : vector<1x128x64xbf16> to vector<128x64xbf16>
    %c0_7 = arith.constant 0 : index
    %c0_8 = arith.constant 0 : index
    %10 = vector.load %arg7[%c0_7, %c0_8] : memref<8x64xf32, #tpu.memory_space<vmem>>, vector<8x64xf32>
    %cst = arith.constant dense<0.000000e+00> : vector<8x64xf32>
    %11 = tpu.matmul %4, %9, %cst {dimension_numbers = #tpu.dot_dimension_numbers<[1], [0], [0], [1], [0, 0, 1, 1], [], []>} : vector<8x128xbf16>, vector<128x64xbf16>, vector<8x64xf32> -> vector<8x64xf32>
    %12 = arith.addf %10, %11 : vector<8x64xf32>
    %c0_9 = arith.constant 0 : index
    %c0_10 = arith.constant 0 : index
    %13 = vector.load %arg7[%c0_9, %c0_10] : memref<8x64xf32, #tpu.memory_space<vmem>>, vector<8x64xf32>
    tpu.vector_store %arg7[%c0_9, %c0_10], %12 {strides = array<i32>} : memref<8x64xf32, #tpu.memory_space<vmem>>, vector<8x64xf32>,
    %c1_i32_11 = arith.constant 1 : i32
    %14 = arith.cmpi eq, %arg2, %c1_i32_11 : i32
    %15 = arith.extui %14 : i1 to i32
    %c0_i32_12 = arith.constant 0 : i32
    %16 = arith.cmpi ne, %15, %c0_i32_12 : i32
    scf.if %16 {
      %c0_13 = arith.constant 0 : index
      %c0_14 = arith.constant 0 : index
      %17 = vector.load %arg7[%c0_13, %c0_14] : memref<8x64xf32, #tpu.memory_space<vmem>>, vector<8x64xf32>
      %c0_15 = arith.constant 0 : index
      %c0_16 = arith.constant 0 : index
      %18 = vector.load %arg5[%c0_15, %c0_16] : memref<1x64xf32, #tpu.memory_space<vmem>>, vector<1x64xf32>
      %19 = vector.broadcast %18 : vector<1x64xf32> to vector<8x64xf32>
      %20 = arith.addf %17, %19 : vector<8x64xf32>
      %21 = arith.truncf %20 : vector<8x64xf32> to vector<8x64xbf16>
      %c0_17 = arith.constant 0 : index
      %c0_18 = arith.constant 0 : index
      %c0_19 = arith.constant 0 : index
      %22 = vector.load %arg6[%c0_17, %c0_18, %c0_19] : memref<1x8x64xbf16, #tpu.memory_space<vmem>>, vector<1x8x64xbf16>
      %23 = vector.shape_cast %22 : vector<1x8x64xbf16> to vector<8x64xbf16>
      %24 = vector.shape_cast %21 : vector<8x64xbf16> to vector<1x8x64xbf16>
      tpu.vector_store %arg6[%c0_17, %c0_18, %c0_19], %24 {strides = array<i32>} : memref<1x8x64xbf16, #tpu.memory_space<vmem>>, vector<1x8x64xbf16>,
    } else {
    }
    return
  }
  func.func @transform_0(%arg0: i32, %arg1: i32, %arg2: i32) -> (i32, i32, i32, i32) {
    %c9_i32 = arith.constant 9 : i32
    %0 = arith.muli %arg0, %c9_i32 : i32
    %c1_i32 = arith.constant 1 : i32
    %1 = arith.muli %arg1, %c1_i32 : i32
    %2 = arith.addi %0, %1 : i32
    %3 = arith.addi %2, %arg2 : i32
    %c0_i32 = arith.constant 0 : i32
    %c0_i32_0 = arith.constant 0 : i32
    %c0_i32_1 = arith.constant 0 : i32
    %c0_i32_2 = arith.constant 0 : i32
    return %3, %c0_i32, %c0_i32_0, %c0_i32_1 : i32, i32, i32, i32
  }
  func.func @transform_1(%arg0: i32, %arg1: i32, %arg2: i32) -> (i32, i32, i32) {
    %c0_i32 = arith.constant 0 : i32
    %c0_i32_0 = arith.constant 0 : i32
    %c0_i32_1 = arith.constant 0 : i32
    %c0_i32_2 = arith.constant 0 : i32
    return %c0_i32, %c0_i32_0, %c0_i32_1 : i32, i32, i32
  }
  func.func @transform_2(%arg0: i32, %arg1: i32, %arg2: i32) -> (i32, i32) {
    %c0_i32 = arith.constant 0 : i32
    %c0_i32_0 = arith.constant 0 : i32
    %c0_i32_1 = arith.constant 0 : i32
    return %c0_i32, %c0_i32_0 : i32, i32
  }
  func.func @transform_3(%arg0: i32, %arg1: i32, %arg2: i32) -> (i32, i32, i32) {
    %c8_i32 = arith.constant 8 : i32
    %0 = arith.muli %arg0, %c8_i32 : i32
    %1 = arith.addi %0, %arg1 : i32
    %c0_i32 = arith.constant 0 : i32
    %c0_i32_0 = arith.constant 0 : i32
    %c0_i32_1 = arith.constant 0 : i32
    return %1, %c0_i32, %c0_i32_0 : i32, i32, i32
  }
}

module attributes {stable_mosaic.version = 11 : i64} {
  func.func @_conv_row_kernel(%arg0: i32, %arg1: i32, %arg2: i32, %arg3: memref<1x1x9x128xbf16, #tpu.memory_space<vmem>>, %arg4: memref<2x128x64xbf16, #tpu.memory_space<vmem>>, %arg5: memref<1x64xf32, #tpu.memory_space<vmem>>, %arg6: memref<1x8x64xbf16, #tpu.memory_space<vmem>>, %arg7: memref<8x64xf32, #tpu.memory_space<vmem>>) attributes {dimension_semantics = [#tpu.dimension_semantics<parallel>, #tpu.dimension_semantics<parallel>, #tpu.dimension_semantics<arbitrary>], iteration_bounds = array<i64: 2, 8, 1>, scalar_prefetch = 0 : i64, scratch_operands = 1 : i64, tpu.core_type = #tpu.core_type<tc>, window_params = [{transform_indices = @transform_0, window_bounds = array<i64: 1, 1, 9, 128>}, {pipeline_mode = #tpu.pipeline_mode<synchronous>, transform_indices = @transform_1, window_bounds = array<i64: 2, 128, 64>}, {pipeline_mode = #tpu.pipeline_mode<synchronous>, transform_indices = @transform_2, window_bounds = array<i64: 1, 64>}, {transform_indices = @transform_3, window_bounds = array<i64: 1, 8, 64>}]} {
    %c0_i32 = arith.constant 0 : i32
    %0 = arith.cmpi eq, %arg2, %c0_i32 : i32
    %1 = arith.extui %0 : i1 to i32
    %c0_i32_0 = arith.constant 0 : i32
    %2 = arith.cmpi ne, %1, %c0_i32_0 : i32
    scf.if %2 {
      %cst_24 = arith.constant 0.000000e+00 : f32
      %28 = vector.broadcast %cst_24 : f32 to vector<8x64xf32>
      %c0_25 = arith.constant 0 : index
      %c0_26 = arith.constant 0 : index
      %29 = vector.load %arg7[%c0_25, %c0_26] : memref<8x64xf32, #tpu.memory_space<vmem>>, vector<8x64xf32>
      tpu.vector_store %arg7[%c0_25, %c0_26], %28 {strides = array<i32>} : memref<8x64xf32, #tpu.memory_space<vmem>>, vector<8x64xf32>,
    } else {
    }
    %c0 = arith.constant 0 : index
    %c0_1 = arith.constant 0 : index
    %c0_2 = arith.constant 0 : index
    %c0_3 = arith.constant 0 : index
    %3 = vector.load %arg3[%c0, %c0_1, %c0_2, %c0_3] : memref<1x1x9x128xbf16, #tpu.memory_space<vmem>>, vector<1x1x8x128xbf16>
    %4 = vector.shape_cast %3 : vector<1x1x8x128xbf16> to vector<8x128xbf16>
    %c2_i32 = arith.constant 2 : i32
    %5 = arith.muli %arg2, %c2_i32 : i32
    %c0_i32_4 = arith.constant 0 : i32
    %6 = arith.addi %5, %c0_i32_4 : i32
    %7 = arith.index_cast %6 : i32 to index
    %c0_5 = arith.constant 0 : index
    %c0_6 = arith.constant 0 : index
    %8 = vector.load %arg4[%7, %c0_5, %c0_6] : memref<2x128x64xbf16, #tpu.memory_space<vmem>>, vector<1x128x64xbf16>
    %9 = vector.shape_cast %8 : vector<1x128x64xbf16> to vector<128x64xbf16>
    %c0_7 = arith.constant 0 : index
    %c0_8 = arith.constant 0 : index
    %10 = vector.load %arg7[%c0_7, %c0_8] : memref<8x64xf32, #tpu.memory_space<vmem>>, vector<8x64xf32>
    %cst = arith.constant dense<0.000000e+00> : vector<8x64xf32>
    %11 = tpu.matmul %4, %9, %cst {dimension_numbers = #tpu.dot_dimension_numbers<[1], [0], [0], [1], [0, 0, 1, 1], [], []>} : vector<8x128xbf16>, vector<128x64xbf16>, vector<8x64xf32> -> vector<8x64xf32>
    %12 = arith.addf %10, %11 : vector<8x64xf32>
    %c0_9 = arith.constant 0 : index
    %c0_10 = arith.constant 0 : index
    %13 = vector.load %arg7[%c0_9, %c0_10] : memref<8x64xf32, #tpu.memory_space<vmem>>, vector<8x64xf32>
    tpu.vector_store %arg7[%c0_9, %c0_10], %12 {strides = array<i32>} : memref<8x64xf32, #tpu.memory_space<vmem>>, vector<8x64xf32>,
    %c0_11 = arith.constant 0 : index
    %c0_12 = arith.constant 0 : index
    %c1 = arith.constant 1 : index
    %c0_13 = arith.constant 0 : index
    %14 = vector.load %arg3[%c0_11, %c0_12, %c1, %c0_13] : memref<1x1x9x128xbf16, #tpu.memory_space<vmem>>, vector<1x1x8x128xbf16>
    %15 = vector.shape_cast %14 : vector<1x1x8x128xbf16> to vector<8x128xbf16>
    %c2_i32_14 = arith.constant 2 : i32
    %16 = arith.muli %arg2, %c2_i32_14 : i32
    %c1_i32 = arith.constant 1 : i32
    %17 = arith.addi %16, %c1_i32 : i32
    %18 = arith.index_cast %17 : i32 to index
    %c0_15 = arith.constant 0 : index
    %c0_16 = arith.constant 0 : index
    %19 = vector.load %arg4[%18, %c0_15, %c0_16] : memref<2x128x64xbf16, #tpu.memory_space<vmem>>, vector<1x128x64xbf16>
    %20 = vector.shape_cast %19 : vector<1x128x64xbf16> to vector<128x64xbf16>
    %c0_17 = arith.constant 0 : index
    %c0_18 = arith.constant 0 : index
    %21 = vector.load %arg7[%c0_17, %c0_18] : memref<8x64xf32, #tpu.memory_space<vmem>>, vector<8x64xf32>
    %cst_19 = arith.constant dense<0.000000e+00> : vector<8x64xf32>
    %22 = tpu.matmul %15, %20, %cst_19 {dimension_numbers = #tpu.dot_dimension_numbers<[1], [0], [0], [1], [0, 0, 1, 1], [], []>} : vector<8x128xbf16>, vector<128x64xbf16>, vector<8x64xf32> -> vector<8x64xf32>
    %23 = arith.addf %21, %22 : vector<8x64xf32>
    %c0_20 = arith.constant 0 : index
    %c0_21 = arith.constant 0 : index
    %24 = vector.load %arg7[%c0_20, %c0_21] : memref<8x64xf32, #tpu.memory_space<vmem>>, vector<8x64xf32>
    tpu.vector_store %arg7[%c0_20, %c0_21], %23 {strides = array<i32>} : memref<8x64xf32, #tpu.memory_space<vmem>>, vector<8x64xf32>,
    %c0_i32_22 = arith.constant 0 : i32
    %25 = arith.cmpi eq, %arg2, %c0_i32_22 : i32
    %26 = arith.extui %25 : i1 to i32
    %c0_i32_23 = arith.constant 0 : i32
    %27 = arith.cmpi ne, %26, %c0_i32_23 : i32
    scf.if %27 {
      %c0_24 = arith.constant 0 : index
      %c0_25 = arith.constant 0 : index
      %28 = vector.load %arg7[%c0_24, %c0_25] : memref<8x64xf32, #tpu.memory_space<vmem>>, vector<8x64xf32>
      %c0_26 = arith.constant 0 : index
      %c0_27 = arith.constant 0 : index
      %29 = vector.load %arg5[%c0_26, %c0_27] : memref<1x64xf32, #tpu.memory_space<vmem>>, vector<1x64xf32>
      %30 = vector.broadcast %29 : vector<1x64xf32> to vector<8x64xf32>
      %31 = arith.addf %28, %30 : vector<8x64xf32>
      %32 = arith.truncf %31 : vector<8x64xf32> to vector<8x64xbf16>
      %c0_28 = arith.constant 0 : index
      %c0_29 = arith.constant 0 : index
      %c0_30 = arith.constant 0 : index
      %33 = vector.load %arg6[%c0_28, %c0_29, %c0_30] : memref<1x8x64xbf16, #tpu.memory_space<vmem>>, vector<1x8x64xbf16>
      %34 = vector.shape_cast %33 : vector<1x8x64xbf16> to vector<8x64xbf16>
      %35 = vector.shape_cast %32 : vector<8x64xbf16> to vector<1x8x64xbf16>
      tpu.vector_store %arg6[%c0_28, %c0_29, %c0_30], %35 {strides = array<i32>} : memref<1x8x64xbf16, #tpu.memory_space<vmem>>, vector<1x8x64xbf16>,
    } else {
    }
    return
  }
  func.func @transform_0(%arg0: i32, %arg1: i32, %arg2: i32) -> (i32, i32, i32, i32) {
    %c9_i32 = arith.constant 9 : i32
    %0 = arith.muli %arg0, %c9_i32 : i32
    %c1_i32 = arith.constant 1 : i32
    %1 = arith.muli %arg1, %c1_i32 : i32
    %2 = arith.addi %0, %1 : i32
    %3 = arith.addi %2, %arg2 : i32
    %c0_i32 = arith.constant 0 : i32
    %c0_i32_0 = arith.constant 0 : i32
    %c0_i32_1 = arith.constant 0 : i32
    %c0_i32_2 = arith.constant 0 : i32
    return %3, %c0_i32, %c0_i32_0, %c0_i32_1 : i32, i32, i32, i32
  }
  func.func @transform_1(%arg0: i32, %arg1: i32, %arg2: i32) -> (i32, i32, i32) {
    %c0_i32 = arith.constant 0 : i32
    %c0_i32_0 = arith.constant 0 : i32
    %c0_i32_1 = arith.constant 0 : i32
    %c0_i32_2 = arith.constant 0 : i32
    return %c0_i32, %c0_i32_0, %c0_i32_1 : i32, i32, i32
  }
  func.func @transform_2(%arg0: i32, %arg1: i32, %arg2: i32) -> (i32, i32) {
    %c0_i32 = arith.constant 0 : i32
    %c0_i32_0 = arith.constant 0 : i32
    %c0_i32_1 = arith.constant 0 : i32
    return %c0_i32, %c0_i32_0 : i32, i32
  }
  func.func @transform_3(%arg0: i32, %arg1: i32, %arg2: i32) -> (i32, i32, i32) {
    %c8_i32 = arith.constant 8 : i32
    %0 = arith.muli %arg0, %c8_i32 : i32
    %1 = arith.addi %0, %arg1 : i32
    %c0_i32 = arith.constant 0 : i32
    %c0_i32_0 = arith.constant 0 : i32
    %c0_i32_1 = arith.constant 0 : i32
    return %1, %c0_i32, %c0_i32_0 : i32, i32, i32
  }
}

module attributes {stable_mosaic.version = 11 : i64} {
  func.func @_conv_row_kernel(%arg0: i32, %arg1: i32, %arg2: i32, %arg3: memref<1x1x9x128xbf16, #tpu.memory_space<vmem>>, %arg4: memref<1x128x64xbf16, #tpu.memory_space<vmem>>, %arg5: memref<1x64xf32, #tpu.memory_space<vmem>>, %arg6: memref<1x8x64xbf16, #tpu.memory_space<vmem>>, %arg7: memref<8x64xf32, #tpu.memory_space<vmem>>) attributes {dimension_semantics = [#tpu.dimension_semantics<parallel>, #tpu.dimension_semantics<parallel>, #tpu.dimension_semantics<arbitrary>], iteration_bounds = array<i64: 2, 8, 1>, scalar_prefetch = 0 : i64, scratch_operands = 1 : i64, tpu.core_type = #tpu.core_type<tc>, window_params = [{transform_indices = @transform_0, window_bounds = array<i64: 1, 1, 9, 128>}, {pipeline_mode = #tpu.pipeline_mode<synchronous>, transform_indices = @transform_1, window_bounds = array<i64: 1, 128, 64>}, {pipeline_mode = #tpu.pipeline_mode<synchronous>, transform_indices = @transform_2, window_bounds = array<i64: 1, 64>}, {transform_indices = @transform_3, window_bounds = array<i64: 1, 8, 64>}]} {
    %c0_i32 = arith.constant 0 : i32
    %0 = arith.cmpi eq, %arg2, %c0_i32 : i32
    %1 = arith.extui %0 : i1 to i32
    %c0_i32_0 = arith.constant 0 : i32
    %2 = arith.cmpi ne, %1, %c0_i32_0 : i32
    scf.if %2 {
      %cst_13 = arith.constant 0.000000e+00 : f32
      %17 = vector.broadcast %cst_13 : f32 to vector<8x64xf32>
      %c0_14 = arith.constant 0 : index
      %c0_15 = arith.constant 0 : index
      %18 = vector.load %arg7[%c0_14, %c0_15] : memref<8x64xf32, #tpu.memory_space<vmem>>, vector<8x64xf32>
      tpu.vector_store %arg7[%c0_14, %c0_15], %17 {strides = array<i32>} : memref<8x64xf32, #tpu.memory_space<vmem>>, vector<8x64xf32>,
    } else {
    }
    %c0 = arith.constant 0 : index
    %c0_1 = arith.constant 0 : index
    %c0_2 = arith.constant 0 : index
    %c0_3 = arith.constant 0 : index
    %3 = vector.load %arg3[%c0, %c0_1, %c0_2, %c0_3] : memref<1x1x9x128xbf16, #tpu.memory_space<vmem>>, vector<1x1x8x128xbf16>
    %4 = vector.shape_cast %3 : vector<1x1x8x128xbf16> to vector<8x128xbf16>
    %c1_i32 = arith.constant 1 : i32
    %5 = arith.muli %arg2, %c1_i32 : i32
    %c0_i32_4 = arith.constant 0 : i32
    %6 = arith.addi %5, %c0_i32_4 : i32
    %7 = arith.index_cast %6 : i32 to index
    %c0_5 = arith.constant 0 : index
    %c0_6 = arith.constant 0 : index
    %8 = vector.load %arg4[%7, %c0_5, %c0_6] : memref<1x128x64xbf16, #tpu.memory_space<vmem>>, vector<1x128x64xbf16>
    %9 = vector.shape_cast %8 : vector<1x128x64xbf16> to vector<128x64xbf16>
    %c0_7 = arith.constant 0 : index
    %c0_8 = arith.constant 0 : index
    %10 = vector.load %arg7[%c0_7, %c0_8] : memref<8x64xf32, #tpu.memory_space<vmem>>, vector<8x64xf32>
    %cst = arith.constant dense<0.000000e+00> : vector<8x64xf32>
    %11 = tpu.matmul %4, %9, %cst {dimension_numbers = #tpu.dot_dimension_numbers<[1], [0], [0], [1], [0, 0, 1, 1], [], []>} : vector<8x128xbf16>, vector<128x64xbf16>, vector<8x64xf32> -> vector<8x64xf32>
    %12 = arith.addf %10, %11 : vector<8x64xf32>
    %c0_9 = arith.constant 0 : index
    %c0_10 = arith.constant 0 : index
    %13 = vector.load %arg7[%c0_9, %c0_10] : memref<8x64xf32, #tpu.memory_space<vmem>>, vector<8x64xf32>
    tpu.vector_store %arg7[%c0_9, %c0_10], %12 {strides = array<i32>} : memref<8x64xf32, #tpu.memory_space<vmem>>, vector<8x64xf32>,
    %c0_i32_11 = arith.constant 0 : i32
    %14 = arith.cmpi eq, %arg2, %c0_i32_11 : i32
    %15 = arith.extui %14 : i1 to i32
    %c0_i32_12 = arith.constant 0 : i32
    %16 = arith.cmpi ne, %15, %c0_i32_12 : i32
    scf.if %16 {
      %c0_13 = arith.constant 0 : index
      %c0_14 = arith.constant 0 : index
      %17 = vector.load %arg7[%c0_13, %c0_14] : memref<8x64xf32, #tpu.memory_space<vmem>>, vector<8x64xf32>
      %c0_15 = arith.constant 0 : index
      %c0_16 = arith.constant 0 : index
      %18 = vector.load %arg5[%c0_15, %c0_16] : memref<1x64xf32, #tpu.memory_space<vmem>>, vector<1x64xf32>
      %19 = vector.broadcast %18 : vector<1x64xf32> to vector<8x64xf32>
      %20 = arith.addf %17, %19 : vector<8x64xf32>
      %21 = arith.truncf %20 : vector<8x64xf32> to vector<8x64xbf16>
      %c0_17 = arith.constant 0 : index
      %c0_18 = arith.constant 0 : index
      %c0_19 = arith.constant 0 : index
      %22 = vector.load %arg6[%c0_17, %c0_18, %c0_19] : memref<1x8x64xbf16, #tpu.memory_space<vmem>>, vector<1x8x64xbf16>
      %23 = vector.shape_cast %22 : vector<1x8x64xbf16> to vector<8x64xbf16>
      %24 = vector.shape_cast %21 : vector<8x64xbf16> to vector<1x8x64xbf16>
      tpu.vector_store %arg6[%c0_17, %c0_18, %c0_19], %24 {strides = array<i32>} : memref<1x8x64xbf16, #tpu.memory_space<vmem>>, vector<1x8x64xbf16>,
    } else {
    }
    return
  }
  func.func @transform_0(%arg0: i32, %arg1: i32, %arg2: i32) -> (i32, i32, i32, i32) {
    %c9_i32 = arith.constant 9 : i32
    %0 = arith.muli %arg0, %c9_i32 : i32
    %c1_i32 = arith.constant 1 : i32
    %1 = arith.muli %arg1, %c1_i32 : i32
    %2 = arith.addi %0, %1 : i32
    %3 = arith.addi %2, %arg2 : i32
    %c0_i32 = arith.constant 0 : i32
    %c0_i32_0 = arith.constant 0 : i32
    %c0_i32_1 = arith.constant 0 : i32
    %c0_i32_2 = arith.constant 0 : i32
    return %3, %c0_i32, %c0_i32_0, %c0_i32_1 : i32, i32, i32, i32
  }
  func.func @transform_1(%arg0: i32, %arg1: i32, %arg2: i32) -> (i32, i32, i32) {
    %c0_i32 = arith.constant 0 : i32
    %c0_i32_0 = arith.constant 0 : i32
    %c0_i32_1 = arith.constant 0 : i32
    %c0_i32_2 = arith.constant 0 : i32
    return %c0_i32, %c0_i32_0, %c0_i32_1 : i32, i32, i32
  }
  func.func @transform_2(%arg0: i32, %arg1: i32, %arg2: i32) -> (i32, i32) {
    %c0_i32 = arith.constant 0 : i32
    %c0_i32_0 = arith.constant 0 : i32
    %c0_i32_1 = arith.constant 0 : i32
    return %c0_i32, %c0_i32_0 : i32, i32
  }
  func.func @transform_3(%arg0: i32, %arg1: i32, %arg2: i32) -> (i32, i32, i32) {
    %c8_i32 = arith.constant 8 : i32
    %0 = arith.muli %arg0, %c8_i32 : i32
    %1 = arith.addi %0, %arg1 : i32
    %c0_i32 = arith.constant 0 : i32
    %c0_i32_0 = arith.constant 0 : i32
    %c0_i32_1 = arith.constant 0 : i32
    return %1, %c0_i32, %c0_i32_0 : i32, i32, i32
  }
}

module attributes {stable_mosaic.version = 11 : i64} {
  func.func @_conv_row_kernel(%arg0: i32, %arg1: i32, %arg2: i32, %arg3: memref<1x1x22x64xbf16, #tpu.memory_space<vmem>>, %arg4: memref<49x64x3xbf16, #tpu.memory_space<vmem>>, %arg5: memref<1x3xf32, #tpu.memory_space<vmem>>, %arg6: memref<1x16x3xf32, #tpu.memory_space<vmem>>, %arg7: memref<16x3xf32, #tpu.memory_space<vmem>>) attributes {dimension_semantics = [#tpu.dimension_semantics<parallel>, #tpu.dimension_semantics<parallel>, #tpu.dimension_semantics<arbitrary>], iteration_bounds = array<i64: 2, 16, 7>, scalar_prefetch = 0 : i64, scratch_operands = 1 : i64, tpu.core_type = #tpu.core_type<tc>, window_params = [{transform_indices = @transform_0, window_bounds = array<i64: 1, 1, 22, 64>}, {pipeline_mode = #tpu.pipeline_mode<synchronous>, transform_indices = @transform_1, window_bounds = array<i64: 49, 64, 3>}, {pipeline_mode = #tpu.pipeline_mode<synchronous>, transform_indices = @transform_2, window_bounds = array<i64: 1, 3>}, {transform_indices = @transform_3, window_bounds = array<i64: 1, 16, 3>}]} {
    %c0_i32 = arith.constant 0 : i32
    %0 = arith.cmpi eq, %arg2, %c0_i32 : i32
    %1 = arith.extui %0 : i1 to i32
    %c0_i32_0 = arith.constant 0 : i32
    %2 = arith.cmpi ne, %1, %c0_i32_0 : i32
    scf.if %2 {
      %cst_79 = arith.constant 0.000000e+00 : f32
      %83 = vector.broadcast %cst_79 : f32 to vector<16x3xf32>
      %c0_80 = arith.constant 0 : index
      %c0_81 = arith.constant 0 : index
      %84 = vector.load %arg7[%c0_80, %c0_81] : memref<16x3xf32, #tpu.memory_space<vmem>>, vector<16x3xf32>
      tpu.vector_store %arg7[%c0_80, %c0_81], %83 {strides = array<i32>} : memref<16x3xf32, #tpu.memory_space<vmem>>, vector<16x3xf32>,
    } else {
    }
    %c0 = arith.constant 0 : index
    %c0_1 = arith.constant 0 : index
    %c0_2 = arith.constant 0 : index
    %c0_3 = arith.constant 0 : index
    %3 = vector.load %arg3[%c0, %c0_1, %c0_2, %c0_3] : memref<1x1x22x64xbf16, #tpu.memory_space<vmem>>, vector<1x1x16x64xbf16>
    %4 = vector.shape_cast %3 : vector<1x1x16x64xbf16> to vector<16x64xbf16>
    %c7_i32 = arith.constant 7 : i32
    %5 = arith.muli %arg2, %c7_i32 : i32
    %c0_i32_4 = arith.constant 0 : i32
    %6 = arith.addi %5, %c0_i32_4 : i32
    %7 = arith.index_cast %6 : i32 to index
    %c0_5 = arith.constant 0 : index
    %c0_6 = arith.constant 0 : index
    %8 = vector.load %arg4[%7, %c0_5, %c0_6] : memref<49x64x3xbf16, #tpu.memory_space<vmem>>, vector<1x64x3xbf16>
    %9 = vector.shape_cast %8 : vector<1x64x3xbf16> to vector<64x3xbf16>
    %c0_7 = arith.constant 0 : index
    %c0_8 = arith.constant 0 : index
    %10 = vector.load %arg7[%c0_7, %c0_8] : memref<16x3xf32, #tpu.memory_space<vmem>>, vector<16x3xf32>
    %cst = arith.constant dense<0.000000e+00> : vector<16x3xf32>
    %11 = tpu.matmul %4, %9, %cst {dimension_numbers = #tpu.dot_dimension_numbers<[1], [0], [0], [1], [0, 0, 1, 1], [], []>} : vector<16x64xbf16>, vector<64x3xbf16>, vector<16x3xf32> -> vector<16x3xf32>
    %12 = arith.addf %10, %11 : vector<16x3xf32>
    %c0_9 = arith.constant 0 : index
    %c0_10 = arith.constant 0 : index
    %13 = vector.load %arg7[%c0_9, %c0_10] : memref<16x3xf32, #tpu.memory_space<vmem>>, vector<16x3xf32>
    tpu.vector_store %arg7[%c0_9, %c0_10], %12 {strides = array<i32>} : memref<16x3xf32, #tpu.memory_space<vmem>>, vector<16x3xf32>,
    %c0_11 = arith.constant 0 : index
    %c0_12 = arith.constant 0 : index
    %c1 = arith.constant 1 : index
    %c0_13 = arith.constant 0 : index
    %14 = vector.load %arg3[%c0_11, %c0_12, %c1, %c0_13] : memref<1x1x22x64xbf16, #tpu.memory_space<vmem>>, vector<1x1x16x64xbf16>
    %15 = vector.shape_cast %14 : vector<1x1x16x64xbf16> to vector<16x64xbf16>
    %c7_i32_14 = arith.constant 7 : i32
    %16 = arith.muli %arg2, %c7_i32_14 : i32
    %c1_i32 = arith.constant 1 : i32
    %17 = arith.addi %16, %c1_i32 : i32
    %18 = arith.index_cast %17 : i32 to index
    %c0_15 = arith.constant 0 : index
    %c0_16 = arith.constant 0 : index
    %19 = vector.load %arg4[%18, %c0_15, %c0_16] : memref<49x64x3xbf16, #tpu.memory_space<vmem>>, vector<1x64x3xbf16>
    %20 = vector.shape_cast %19 : vector<1x64x3xbf16> to vector<64x3xbf16>
    %c0_17 = arith.constant 0 : index
    %c0_18 = arith.constant 0 : index
    %21 = vector.load %arg7[%c0_17, %c0_18] : memref<16x3xf32, #tpu.memory_space<vmem>>, vector<16x3xf32>
    %cst_19 = arith.constant dense<0.000000e+00> : vector<16x3xf32>
    %22 = tpu.matmul %15, %20, %cst_19 {dimension_numbers = #tpu.dot_dimension_numbers<[1], [0], [0], [1], [0, 0, 1, 1], [], []>} : vector<16x64xbf16>, vector<64x3xbf16>, vector<16x3xf32> -> vector<16x3xf32>
    %23 = arith.addf %21, %22 : vector<16x3xf32>
    %c0_20 = arith.constant 0 : index
    %c0_21 = arith.constant 0 : index
    %24 = vector.load %arg7[%c0_20, %c0_21] : memref<16x3xf32, #tpu.memory_space<vmem>>, vector<16x3xf32>
    tpu.vector_store %arg7[%c0_20, %c0_21], %23 {strides = array<i32>} : memref<16x3xf32, #tpu.memory_space<vmem>>, vector<16x3xf32>,
    %c0_22 = arith.constant 0 : index
    %c0_23 = arith.constant 0 : index
    %c2 = arith.constant 2 : index
    %c0_24 = arith.constant 0 : index
    %25 = vector.load %arg3[%c0_22, %c0_23, %c2, %c0_24] : memref<1x1x22x64xbf16, #tpu.memory_space<vmem>>, vector<1x1x16x64xbf16>
    %26 = vector.shape_cast %25 : vector<1x1x16x64xbf16> to vector<16x64xbf16>
    %c7_i32_25 = arith.constant 7 : i32
    %27 = arith.muli %arg2, %c7_i32_25 : i32
    %c2_i32 = arith.constant 2 : i32
    %28 = arith.addi %27, %c2_i32 : i32
    %29 = arith.index_cast %28 : i32 to index
    %c0_26 = arith.constant 0 : index
    %c0_27 = arith.constant 0 : index
    %30 = vector.load %arg4[%29, %c0_26, %c0_27] : memref<49x64x3xbf16, #tpu.memory_space<vmem>>, vector<1x64x3xbf16>
    %31 = vector.shape_cast %30 : vector<1x64x3xbf16> to vector<64x3xbf16>
    %c0_28 = arith.constant 0 : index
    %c0_29 = arith.constant 0 : index
    %32 = vector.load %arg7[%c0_28, %c0_29] : memref<16x3xf32, #tpu.memory_space<vmem>>, vector<16x3xf32>
    %cst_30 = arith.constant dense<0.000000e+00> : vector<16x3xf32>
    %33 = tpu.matmul %26, %31, %cst_30 {dimension_numbers = #tpu.dot_dimension_numbers<[1], [0], [0], [1], [0, 0, 1, 1], [], []>} : vector<16x64xbf16>, vector<64x3xbf16>, vector<16x3xf32> -> vector<16x3xf32>
    %34 = arith.addf %32, %33 : vector<16x3xf32>
    %c0_31 = arith.constant 0 : index
    %c0_32 = arith.constant 0 : index
    %35 = vector.load %arg7[%c0_31, %c0_32] : memref<16x3xf32, #tpu.memory_space<vmem>>, vector<16x3xf32>
    tpu.vector_store %arg7[%c0_31, %c0_32], %34 {strides = array<i32>} : memref<16x3xf32, #tpu.memory_space<vmem>>, vector<16x3xf32>,
    %c0_33 = arith.constant 0 : index
    %c0_34 = arith.constant 0 : index
    %c3 = arith.constant 3 : index
    %c0_35 = arith.constant 0 : index
    %36 = vector.load %arg3[%c0_33, %c0_34, %c3, %c0_35] : memref<1x1x22x64xbf16, #tpu.memory_space<vmem>>, vector<1x1x16x64xbf16>
    %37 = vector.shape_cast %36 : vector<1x1x16x64xbf16> to vector<16x64xbf16>
    %c7_i32_36 = arith.constant 7 : i32
    %38 = arith.muli %arg2, %c7_i32_36 : i32
    %c3_i32 = arith.constant 3 : i32
    %39 = arith.addi %38, %c3_i32 : i32
    %40 = arith.index_cast %39 : i32 to index
    %c0_37 = arith.constant 0 : index
    %c0_38 = arith.constant 0 : index
    %41 = vector.load %arg4[%40, %c0_37, %c0_38] : memref<49x64x3xbf16, #tpu.memory_space<vmem>>, vector<1x64x3xbf16>
    %42 = vector.shape_cast %41 : vector<1x64x3xbf16> to vector<64x3xbf16>
    %c0_39 = arith.constant 0 : index
    %c0_40 = arith.constant 0 : index
    %43 = vector.load %arg7[%c0_39, %c0_40] : memref<16x3xf32, #tpu.memory_space<vmem>>, vector<16x3xf32>
    %cst_41 = arith.constant dense<0.000000e+00> : vector<16x3xf32>
    %44 = tpu.matmul %37, %42, %cst_41 {dimension_numbers = #tpu.dot_dimension_numbers<[1], [0], [0], [1], [0, 0, 1, 1], [], []>} : vector<16x64xbf16>, vector<64x3xbf16>, vector<16x3xf32> -> vector<16x3xf32>
    %45 = arith.addf %43, %44 : vector<16x3xf32>
    %c0_42 = arith.constant 0 : index
    %c0_43 = arith.constant 0 : index
    %46 = vector.load %arg7[%c0_42, %c0_43] : memref<16x3xf32, #tpu.memory_space<vmem>>, vector<16x3xf32>
    tpu.vector_store %arg7[%c0_42, %c0_43], %45 {strides = array<i32>} : memref<16x3xf32, #tpu.memory_space<vmem>>, vector<16x3xf32>,
    %c0_44 = arith.constant 0 : index
    %c0_45 = arith.constant 0 : index
    %c4 = arith.constant 4 : index
    %c0_46 = arith.constant 0 : index
    %47 = vector.load %arg3[%c0_44, %c0_45, %c4, %c0_46] : memref<1x1x22x64xbf16, #tpu.memory_space<vmem>>, vector<1x1x16x64xbf16>
    %48 = vector.shape_cast %47 : vector<1x1x16x64xbf16> to vector<16x64xbf16>
    %c7_i32_47 = arith.constant 7 : i32
    %49 = arith.muli %arg2, %c7_i32_47 : i32
    %c4_i32 = arith.constant 4 : i32
    %50 = arith.addi %49, %c4_i32 : i32
    %51 = arith.index_cast %50 : i32 to index
    %c0_48 = arith.constant 0 : index
    %c0_49 = arith.constant 0 : index
    %52 = vector.load %arg4[%51, %c0_48, %c0_49] : memref<49x64x3xbf16, #tpu.memory_space<vmem>>, vector<1x64x3xbf16>
    %53 = vector.shape_cast %52 : vector<1x64x3xbf16> to vector<64x3xbf16>
    %c0_50 = arith.constant 0 : index
    %c0_51 = arith.constant 0 : index
    %54 = vector.load %arg7[%c0_50, %c0_51] : memref<16x3xf32, #tpu.memory_space<vmem>>, vector<16x3xf32>
    %cst_52 = arith.constant dense<0.000000e+00> : vector<16x3xf32>
    %55 = tpu.matmul %48, %53, %cst_52 {dimension_numbers = #tpu.dot_dimension_numbers<[1], [0], [0], [1], [0, 0, 1, 1], [], []>} : vector<16x64xbf16>, vector<64x3xbf16>, vector<16x3xf32> -> vector<16x3xf32>
    %56 = arith.addf %54, %55 : vector<16x3xf32>
    %c0_53 = arith.constant 0 : index
    %c0_54 = arith.constant 0 : index
    %57 = vector.load %arg7[%c0_53, %c0_54] : memref<16x3xf32, #tpu.memory_space<vmem>>, vector<16x3xf32>
    tpu.vector_store %arg7[%c0_53, %c0_54], %56 {strides = array<i32>} : memref<16x3xf32, #tpu.memory_space<vmem>>, vector<16x3xf32>,
    %c0_55 = arith.constant 0 : index
    %c0_56 = arith.constant 0 : index
    %c5 = arith.constant 5 : index
    %c0_57 = arith.constant 0 : index
    %58 = vector.load %arg3[%c0_55, %c0_56, %c5, %c0_57] : memref<1x1x22x64xbf16, #tpu.memory_space<vmem>>, vector<1x1x16x64xbf16>
    %59 = vector.shape_cast %58 : vector<1x1x16x64xbf16> to vector<16x64xbf16>
    %c7_i32_58 = arith.constant 7 : i32
    %60 = arith.muli %arg2, %c7_i32_58 : i32
    %c5_i32 = arith.constant 5 : i32
    %61 = arith.addi %60, %c5_i32 : i32
    %62 = arith.index_cast %61 : i32 to index
    %c0_59 = arith.constant 0 : index
    %c0_60 = arith.constant 0 : index
    %63 = vector.load %arg4[%62, %c0_59, %c0_60] : memref<49x64x3xbf16, #tpu.memory_space<vmem>>, vector<1x64x3xbf16>
    %64 = vector.shape_cast %63 : vector<1x64x3xbf16> to vector<64x3xbf16>
    %c0_61 = arith.constant 0 : index
    %c0_62 = arith.constant 0 : index
    %65 = vector.load %arg7[%c0_61, %c0_62] : memref<16x3xf32, #tpu.memory_space<vmem>>, vector<16x3xf32>
    %cst_63 = arith.constant dense<0.000000e+00> : vector<16x3xf32>
    %66 = tpu.matmul %59, %64, %cst_63 {dimension_numbers = #tpu.dot_dimension_numbers<[1], [0], [0], [1], [0, 0, 1, 1], [], []>} : vector<16x64xbf16>, vector<64x3xbf16>, vector<16x3xf32> -> vector<16x3xf32>
    %67 = arith.addf %65, %66 : vector<16x3xf32>
    %c0_64 = arith.constant 0 : index
    %c0_65 = arith.constant 0 : index
    %68 = vector.load %arg7[%c0_64, %c0_65] : memref<16x3xf32, #tpu.memory_space<vmem>>, vector<16x3xf32>
    tpu.vector_store %arg7[%c0_64, %c0_65], %67 {strides = array<i32>} : memref<16x3xf32, #tpu.memory_space<vmem>>, vector<16x3xf32>,
    %c0_66 = arith.constant 0 : index
    %c0_67 = arith.constant 0 : index
    %c6 = arith.constant 6 : index
    %c0_68 = arith.constant 0 : index
    %69 = vector.load %arg3[%c0_66, %c0_67, %c6, %c0_68] : memref<1x1x22x64xbf16, #tpu.memory_space<vmem>>, vector<1x1x16x64xbf16>
    %70 = vector.shape_cast %69 : vector<1x1x16x64xbf16> to vector<16x64xbf16>
    %c7_i32_69 = arith.constant 7 : i32
    %71 = arith.muli %arg2, %c7_i32_69 : i32
    %c6_i32 = arith.constant 6 : i32
    %72 = arith.addi %71, %c6_i32 : i32
    %73 = arith.index_cast %72 : i32 to index
    %c0_70 = arith.constant 0 : index
    %c0_71 = arith.constant 0 : index
    %74 = vector.load %arg4[%73, %c0_70, %c0_71] : memref<49x64x3xbf16, #tpu.memory_space<vmem>>, vector<1x64x3xbf16>
    %75 = vector.shape_cast %74 : vector<1x64x3xbf16> to vector<64x3xbf16>
    %c0_72 = arith.constant 0 : index
    %c0_73 = arith.constant 0 : index
    %76 = vector.load %arg7[%c0_72, %c0_73] : memref<16x3xf32, #tpu.memory_space<vmem>>, vector<16x3xf32>
    %cst_74 = arith.constant dense<0.000000e+00> : vector<16x3xf32>
    %77 = tpu.matmul %70, %75, %cst_74 {dimension_numbers = #tpu.dot_dimension_numbers<[1], [0], [0], [1], [0, 0, 1, 1], [], []>} : vector<16x64xbf16>, vector<64x3xbf16>, vector<16x3xf32> -> vector<16x3xf32>
    %78 = arith.addf %76, %77 : vector<16x3xf32>
    %c0_75 = arith.constant 0 : index
    %c0_76 = arith.constant 0 : index
    %79 = vector.load %arg7[%c0_75, %c0_76] : memref<16x3xf32, #tpu.memory_space<vmem>>, vector<16x3xf32>
    tpu.vector_store %arg7[%c0_75, %c0_76], %78 {strides = array<i32>} : memref<16x3xf32, #tpu.memory_space<vmem>>, vector<16x3xf32>,
    %c6_i32_77 = arith.constant 6 : i32
    %80 = arith.cmpi eq, %arg2, %c6_i32_77 : i32
    %81 = arith.extui %80 : i1 to i32
    %c0_i32_78 = arith.constant 0 : i32
    %82 = arith.cmpi ne, %81, %c0_i32_78 : i32
    scf.if %82 {
      %c0_79 = arith.constant 0 : index
      %c0_80 = arith.constant 0 : index
      %83 = vector.load %arg7[%c0_79, %c0_80] : memref<16x3xf32, #tpu.memory_space<vmem>>, vector<16x3xf32>
      %c0_81 = arith.constant 0 : index
      %c0_82 = arith.constant 0 : index
      %84 = vector.load %arg5[%c0_81, %c0_82] : memref<1x3xf32, #tpu.memory_space<vmem>>, vector<1x3xf32>
      %85 = vector.broadcast %84 : vector<1x3xf32> to vector<16x3xf32>
      %86 = arith.addf %83, %85 : vector<16x3xf32>
      %87 = math.tanh %86 : vector<16x3xf32>
      %c0_83 = arith.constant 0 : index
      %c0_84 = arith.constant 0 : index
      %c0_85 = arith.constant 0 : index
      %88 = vector.load %arg6[%c0_83, %c0_84, %c0_85] : memref<1x16x3xf32, #tpu.memory_space<vmem>>, vector<1x16x3xf32>
      %89 = vector.shape_cast %88 : vector<1x16x3xf32> to vector<16x3xf32>
      %90 = vector.shape_cast %87 : vector<16x3xf32> to vector<1x16x3xf32>
      tpu.vector_store %arg6[%c0_83, %c0_84, %c0_85], %90 {strides = array<i32>} : memref<1x16x3xf32, #tpu.memory_space<vmem>>, vector<1x16x3xf32>,
    } else {
    }
    return
  }
  func.func @transform_0(%arg0: i32, %arg1: i32, %arg2: i32) -> (i32, i32, i32, i32) {
    %c22_i32 = arith.constant 22 : i32
    %0 = arith.muli %arg0, %c22_i32 : i32
    %c1_i32 = arith.constant 1 : i32
    %1 = arith.muli %arg1, %c1_i32 : i32
    %2 = arith.addi %0, %1 : i32
    %3 = arith.addi %2, %arg2 : i32
    %c0_i32 = arith.constant 0 : i32
    %c0_i32_0 = arith.constant 0 : i32
    %c0_i32_1 = arith.constant 0 : i32
    %c0_i32_2 = arith.constant 0 : i32
    return %3, %c0_i32, %c0_i32_0, %c0_i32_1 : i32, i32, i32, i32
  }
  func.func @transform_1(%arg0: i32, %arg1: i32, %arg2: i32) -> (i32, i32, i32) {
    %c0_i32 = arith.constant 0 : i32
    %c0_i32_0 = arith.constant 0 : i32
    %c0_i32_1 = arith.constant 0 : i32
    %c0_i32_2 = arith.constant 0 : i32
    return %c0_i32, %c0_i32_0, %c0_i32_1 : i32, i32, i32
  }
  func.func @transform_2(%arg0: i32, %arg1: i32, %arg2: i32) -> (i32, i32) {
    %c0_i32 = arith.constant 0 : i32
    %c0_i32_0 = arith.constant 0 : i32
    %c0_i32_1 = arith.constant 0 : i32
    return %c0_i32, %c0_i32_0 : i32, i32
  }
  func.func @transform_3(%arg0: i32, %arg1: i32, %arg2: i32) -> (i32, i32, i32) {
    %c16_i32 = arith.constant 16 : i32
    %0 = arith.muli %arg0, %c16_i32 : i32
    %1 = arith.addi %0, %arg1 : i32
    %c0_i32 = arith.constant 0 : i32
    %c0_i32_0 = arith.constant 0 : i32
    %c0_i32_1 = arith.constant 0 : i32
    return %1, %c0_i32, %c0_i32_0 : i32, i32, i32
  }
}

</mosaic_0001>

<bundles_post_ra>
// kernel: generator_forward.53
= control target key start
LH: loop header
LB: loop body
LE: loop exit
PB: predicated region body
PF: predicated region fallthrough
CT: control target
= control target key end

     0   :  { %s1164_s12 = smov 0   ;;  %s1166_s13 = smov 0   ;;  %s1326_s0 = inlined_call_operand.vmem [shape: bf16[44,1,22,3], index: 0, kind: input, shape index: {}]   ;;  %s1327_s1 = inlined_call_operand.vmem [shape: bf16[49,3,64], index: 1, kind: input, shape index: {}]   ;;  %s1328_s2 = inlined_call_operand.vmem [shape: f32[1,64], index: 2, kind: input, shape index: {}]   ;;  %s1329_s3 = inlined_call_operand.vmem [shape: bf16[32,16,64], index: 3, kind: output, shape index: {}]  }
   0x1   :  { %s1168_s14 = smov 0   ;;  %s1170_s15 = smov 0  }
   0x2   :  { %s1172_s16 = smov 0   ;;  %s1174_s17 = smov 0  }
   0x3   :  { %s1176_s18 = smov 0  }
   0x4 LB: > { %s25_s19 = sadd.s32 1, %s1126_s15  ;;  %s28_s20 = sadd.s32 1, %s1130_s16  ;;  %s1138_s18 = sphi %s1176_s18, %s13_s18   ;;  %s1134_s17 = sphi %s1174_s17, %s1335_s17   ;;  %s1130_s16 = sphi %s1172_s16, %s1334_s16   ;;  %s1126_s15 = sphi %s1170_s15, %s1333_s15   ;;  %s1122_s14 = sphi %s1168_s14, %s1332_s14   ;;  %s1118_s13 = sphi %s1166_s13, %s1331_s13   ;;  %s1114_s12 = sphi %s1164_s12, %s1330_s12  }
   0x5   : > { %p26_p0 = scmp.ge.s32.totalorder %s25_s19, 7  ;;  %p905_p1 = scmp.ge.s32.totalorder %s1138_s18, 1 }
   0x6   : > { %p172_p2 = scmp.lt.s32.totalorder %s1138_s18, 225  ;;  %s32_s21 = sadd.s32 1, %s1134_s17 }
   0x7   : > { %s1337_s19 = smov (%p26_p0, %s25_s19), 0  ;;  %s1339_s20 = smov (!%p26_p0, %s28_s20), %s1130_s16 }
   0x8   : > { %p173_p3 = pnand %p905_p1, %p172_p2  ;;  %p30_p4 = scmp.ge.s32.totalorder %s1339_s20, 16 }
   0x9   : > { %s201_s22 = smul.u32 (!%p173_p3), 22, %s1122_s14  ;;  %s907_s23 = sshll.u32 (!%p173_p3), %s1122_s14, 4 }
   0xa   : > { %s1341_s20 = smov (%p30_p4, %s1339_s20), 0  ;;  %s1343_s21 = smov (!%p30_p4, %s32_s21), %s1134_s17 }
   0xb   : > { %p34_p5 = scmp.ge.s32.totalorder %s1343_s21, 2  ;;  %176 = sbr.rel (%p173_p3) target bundleno = 325 (0x145), region = 32 }
   0xc   : > { %s213_s24 = sadd.s32 (!%p173_p3), %s1118_s13, %s907_s23  ;;  %s202_s25 = sadd.s32 (!%p173_p3), %s1118_s13, %s201_s22 }
   0xd   : > { %s1345_s21 = smov (%p34_p5, %s1343_s21), 0  ;;  %p214_p6 = scmp.lt.s32.totalorder (!%p173_p3), %s213_s24, 31 }
   0xe   : > { %s203_s26 = sadd.s32 (!%p173_p3), %s1114_s12, %s202_s25  ;;  %p910_p8 = scmp.ne.s32.totalorder (!%p173_p3), %s1114_s12, 0 }
   0xf   : > { %p204_p7 = scmp.lt.s32.totalorder (!%p173_p3), %s203_s26, 43 }
  0x12   : > { %s1347_s24 = smov (!%p214_p6, %s213_s24), 31  ;;  %s1349_s26 = smov (!%p204_p7, %s203_s26), 43 }
  0x13   : > { %s950_s27 = sshll.u32 %s1347_s24, 3  ;;  %s1010_s28 = smul.u32 12, %s1349_s26  ;;  %vm226_vm0 = vcmask (!%p910_p8), 523264   ;;  %v1140_v0 = vmov (!%p910_p8), 0.0  }
  0x14   : > { %s1212_s4 = scalar_lea.vmem %s1329_s3, %s950_s27  ;;  %225 = sbr.rel (%p910_p8) target bundleno = 27 (0x1b), region = 36  ;;  %227 = vst.msk [vmem:[#allocation2] sm:$0xff] (!%p910_p8), %vm226_vm0, %v1140_v0  ;;  %228 = vst.msk [vmem:[#allocation2 + $0x8] sm:$0xff] (!%p910_p8), %vm226_vm0, %v1140_v0 }
  0x15   : > { %s1217_s7 = scalar_lea.vmem %s1326_s0, %s1010_s28 }
  0x1b PF: > { %s951_s8 = smul.u32 14, %s1114_s12  ;;  %vm246_vm1 = vcmask 1040384   ;;  %vm247_vm2 = vcmask 1041408   ;;  %v1141_v1 = vmov 0.0   ;;  %v1142_v2 = vmov 65535   ;;  %v1071_v6 = vld [vmem:[%s1217_s7] sm:$0xff]  }
  0x1c   : > { %968 = vmatprep.subr.bf16.mxu0 %v1141_v1  ;;  %v248_v3 = vsel %vm246_vm1, 4294967295, %v1142_v2  ;;  %974 = vmatprep.subr.bf16.mxu1 %v1141_v1  ;;  %vm1143_vm3 = vmmov 0   ;;  %vm242_vm4 = vcmask 23552   ;;  %v1072_v10 = vld [vmem:[%s1217_s7] sm:$0xff]   ;;  %vm316_vm5 = vsmask.f32 7424 }
  0x1d   : > { %s1226_s11 = scalar_lea.vmem %s1327_s1, %s951_s8  ;;  %v1228_v4 = vsel %vm247_vm2, %v248_v3, 0  ;;  %970 = vmatprep.mubr.msk.bf16.mxu0 %vm1143_vm3, %v1141_v1  ;;  %976 = vmatprep.mubr.msk.bf16.mxu1 %vm1143_vm3, %v1141_v1  ;;  %v1073_v11 = vld [vmem:[%s1217_s7 + $0x8] ss:$0 sps:$4 sm:$0x11]   ;;  %v318_v13 = vshrl.u32 %v1072_v10, 16  ;;  %v320_v14 = vshll.u32 %v1072_v10, 16 }
  0x1e   : > { %v234_v5 = vld [vmem:[%s1226_s11] sm:$0x3]  ;;  %v915_v7 = vld [vmem:[%s1226_s11 + $0x2] sm:$0x3]  ;;  %v920_v12 = vld [vmem:[%s1226_s11 + $0x4] sm:$0x3] }
  0x1f   : > { %v251_v8 = vand.u32 %v1228_v4, %v234_v5  ;;  %v333_v9 = vand.u32 %v915_v7, %v1228_v4  ;;  %v325_v15 = vshll.u32 %v1073_v11, 16  ;;  %v405_v16 = vand.u32 %v920_v12, %v1228_v4  ;;  %v1074_v17 = vld [vmem:[%s1217_s7] sm:$0xfe]   ;;  %v1075_v18 = vld [vmem:[%s1217_s7 + $0x8] ss:$0 sps:$4 sm:$0x11]  }
  0x20   : > { %v322_v19 = vrot.slane %v320_v14, 1  ;;  %v925_v21 = vld [vmem:[%s1226_s11 + $0x6] sm:$0x3]  ;;  %v398_v22 = vrot.slane %v1074_v17, 1  ;;  %v399_v23 = vrot.slane %v1075_v18, 1  ;;  %vm397_vm6 = vcmask 1046528  }
  0x21   : > { %969 = vmatpush3.bf16.msra.mxu0 %v251_v8  ;;  %975 = vmatpush3.bf16.msra.mxu1 %v333_v9  ;;  %v327_v20 = vrot.slane %v325_v15, 1  ;;  %v491_v25 = vand.u32 %v925_v21, %v1228_v4  ;;  %v1076_v26 = vld [vmem:[%s1217_s7] sm:$0xfe]   ;;  %v1077_v27 = vld [vmem:[%s1217_s7 + $0x8] ss:$0 sps:$4 sm:$0x33]  }
  0x22   : > { %980 = vmatprep.subr.bf16.mxu0 %v1141_v1  ;;  %986 = vmatprep.subr.bf16.mxu1 %v1141_v1  ;;  %v323_v24 = vor.u32 %v322_v19, %v318_v13  ;;  %v930_v28 = vld [vmem:[%s1226_s11 + $0x8] sm:$0x3]  ;;  %v471_v30 = vshrl.u32 %v1076_v26, 16  ;;  %v474_v31 = vshll.u32 %v1076_v26, 16  ;;  %v479_v32 = vshrl.u32 %v1077_v27, 16  ;;  %p944_p9 = scmp.ne.s32.totalorder %s1114_s12, 6 }
  0x23   : > { %v400_v33 = vsel %vm397_vm6, %v398_v22, %v399_v23  ;;  %v482_v34 = vshll.u32 %v1077_v27, 16  ;;  %v1078_v35 = vld [vmem:[%s1217_s7] sm:$0xfc]   ;;  %v563_v39 = vand.u32 %v930_v28, %v1228_v4  ;;  %v1079_v40 = vld [vmem:[%s1217_s7 + $0x8] ss:$0 sps:$4 sm:$0x33]  }
  0x24   : > { %971 = vmatmul.mubr.msk.bf16.vlgmr.msra.gmra.mrb[0].mxu0 %vm242_vm4, %v1071_v6  ;;  %v328_v29 = vsel %vm316_vm5, %v323_v24, %v327_v20  ;;  %v473_v36 = vrot.slane %v471_v30, 1  ;;  %v476_v37 = vrot.slane %v474_v31, 2  ;;  %v481_v38 = vrot.slane %v479_v32, 1  ;;  %v935_v42 = vld [vmem:[%s1226_s11 + $0xa] sm:$0x3] }
  0x25   : > { %981 = vmatpush3.bf16.msra.mxu0 %v405_v16  ;;  %982 = vmatprep.mubr.msk.bf16.mxu0 %vm1143_vm3, %v1141_v1  ;;  %v484_v41 = vrot.slane %v482_v34, 2  ;;  %vm469_vm7 = vsmask.f32 6400  ;;  %vm555_vm8 = vcmask 1045504   ;;  %v1080_v45 = vld [vmem:[%s1217_s7] sm:$0xfc]   ;;  %v649_v49 = vand.u32 %v935_v42, %v1228_v4 }
  0x26   : > { %992 = vmatprep.subr.bf16.mxu0 %v1141_v1  ;;  %977 = vmatmul.mubr.msk.bf16.vlgmr.msra.gmra.mrb[0].mxu1 %vm242_vm4, %v328_v29  ;;  %v477_v43 = vor.u32 %v476_v37, %v473_v36  ;;  %v1081_v46 = vld [vmem:[%s1217_s7 + $0x8] ss:$0 sps:$4 sm:$0x77]   ;;  %v556_v47 = vrot.slane %v1078_v35, 2  ;;  %v557_v48 = vrot.slane %v1079_v40, 2  ;;  %v629_v52 = vshrl.u32 %v1080_v45, 16 }
  0x27   : > { %987 = vmatpush3.bf16.msra.mxu1 %v491_v25  ;;  %988 = vmatprep.mubr.msk.bf16.mxu1 %vm1143_vm3, %v1141_v1  ;;  %v485_v44 = vor.u32 %v484_v41, %v481_v38  ;;  %v940_v50 = vld [vmem:[%s1226_s11 + $0xc] sm:$0x3]  ;;  %v632_v53 = vshll.u32 %v1080_v45, 16  ;;  %v637_v54 = vshrl.u32 %v1081_v46, 16  ;;  %v640_v55 = vshll.u32 %v1081_v46, 16 }
  0x28   : > { %998 = vmatprep.subr.bf16.mxu1 %v1141_v1  ;;  %v631_v56 = vrot.slane %v629_v52, 2  ;;  %v558_v59 = vsel %vm555_vm8, %v556_v47, %v557_v48  ;;  %v721_v61 = vand.u32 %v940_v50, %v1228_v4  ;;  %v1082_v62 = vld [vmem:[%s1217_s7] sm:$0xf8]   ;;  %v1083_v63 = vld [vmem:[%s1217_s7 + $0x8] ss:$0 sps:$4 sm:$0x77]  }
  0x29   : > { %v486_v51 = vsel %vm469_vm7, %v477_v43, %v485_v44  ;;  %v634_v57 = vrot.slane %v632_v53, 3  ;;  %v639_v58 = vrot.slane %v637_v54, 2  ;;  %v642_v60 = vrot.slane %v640_v55, 3  ;;  %v235_v4 = vld [vmem:[#allocation2] sm:$0xff]  ;;  %v236_v9 = vld [vmem:[#allocation2 + $0x8] sm:$0xff] }
  0x2a   : > { %vm627_vm9 = vsmask.f32 5376  ;;  %v714_v5 = vrot.slane %v1082_v62, 3  ;;  %v715_v6 = vrot.slane %v1083_v63, 3  ;;  %vm713_vm10 = vcmask 1044480  }
  0x2b   : > { %v635_v0 = vor.u32 %v634_v57, %v631_v56  ;;  %v643_v2 = vor.u32 %v642_v60, %v639_v58  ;;  %vm296_vm11 = vcmask 523264   ;;  %v945_v63 = vld [vmem:[%s1328_s2] ss:$0 sm:$0xff] (!%p944_p9)  ;;  %vm791_vm12 = vcmask (!%p944_p9), 519168  }
  0x2c   : > { %983 = vmatmul.mubr.msk.bf16.vlgmr.msra.gmra.mrb[4].mxu0 %vm242_vm4, %v400_v33  ;;  %v716_v7 = vsel %vm713_vm10, %v714_v5, %v715_v6 }
  0x2d   : > { %993 = vmatpush3.bf16.msra.mxu0 %v563_v39  ;;  %994 = vmatprep.mubr.msk.bf16.mxu0 %vm1143_vm3, %v1141_v1  ;;  %v644_v3 = vsel %vm627_vm9, %v635_v0, %v643_v2 }
  0x2e   : > { %1004 = vmatprep.subr.bf16.mxu0 %v1141_v1  ;;  %989 = vmatmul.mubr.msk.bf16.vlgmr.msra.gmra.mrb[4].mxu1 %vm242_vm4, %v486_v51 }
  0x2f   : > { %999 = vmatpush3.bf16.msra.mxu1 %v649_v49  ;;  %1000 = vmatprep.mubr.msk.bf16.mxu1 %vm1143_vm3, %v1141_v1 }
  0x34   : > { %995 = vmatmul.mubr.msk.bf16.vlgmr.msra.gmra.mrb[8].mxu0 %vm242_vm4, %v558_v59 }
  0x35   : > { %1005 = vmatpush3.bf16.msra.mxu0 %v721_v61  ;;  %1006 = vmatprep.mubr.msk.bf16.mxu0 %vm1143_vm3, %v1141_v1 }
  0x36   : > { %1001 = vmatmul.mubr.msk.bf16.vlgmr.msra.gmra.mrb[8].mxu1 %vm242_vm4, %v644_v3 }
  0x3c   : > { %1007 = vmatmul.mubr.msk.bf16.vlgmr.msra.gmra.mrb[12].mxu0 %vm242_vm4, %v716_v7 }
  0xf7   : > { %v287_v8 = vpop.f32.mrb[0].mxu0 }
  0xf8   : > { %v294_v10 = vadd.f32 %v287_v8, %v235_v4  ;;  %v972_v11 = vpop.f32.mrb[1].mxu0 }
  0xf9   : > { %v290_v12 = vpop.f32.mrb[2].mxu0  ;;  %v369_v1 = vpop.f32.mrb[0].mxu1 }
  0xfa   : > { %297 = vst.msk [vmem:[#allocation2] sm:$0xff] %vm296_vm11, %v294_v10  ;;  %v295_v13 = vadd.f32 %v290_v12, %v236_v9  ;;  %v973_v14 = vpop.f32.mrb[3].mxu0  ;;  %v978_v15 = vpop.f32.mrb[1].mxu1 }
  0xfb   : > { %v372_v16 = vpop.f32.mrb[2].mxu1 }
  0xfc   : > { %298 = vst.msk [vmem:[#allocation2 + $0x8] sm:$0xff] %vm296_vm11, %v295_v13  ;;  %v979_v17 = vpop.f32.mrb[3].mxu1 }
  0xff   : > { %v441_v18 = vpop.f32.mrb[4].mxu0 }
 0x100   : > { %v984_v19 = vpop.f32.mrb[5].mxu0 }
 0x101   : > { %v306_v20 = vld [vmem:[#allocation2] sm:$0xff]  ;;  %v444_v21 = vpop.f32.mrb[6].mxu0  ;;  %v527_v25 = vpop.f32.mrb[4].mxu1 }
 0x102   : > { %v376_v22 = vadd.f32 %v369_v1, %v306_v20  ;;  %v985_v23 = vpop.f32.mrb[7].mxu0  ;;  %v990_v27 = vpop.f32.mrb[5].mxu1 }
 0x103   : > { %v307_v24 = vld [vmem:[#allocation2 + $0x8] sm:$0xff]  ;;  %v530_v28 = vpop.f32.mrb[6].mxu1 }
 0x104   : > { %378 = vst.msk [vmem:[#allocation2] sm:$0xff] %vm296_vm11, %v376_v22  ;;  %v377_v26 = vadd.f32 %v372_v16, %v307_v24  ;;  %v991_v29 = vpop.f32.mrb[7].mxu1 }
 0x106   : > { %379 = vst.msk [vmem:[#allocation2 + $0x8] sm:$0xff] %vm296_vm11, %v377_v26 }
 0x107   : > { %v599_v30 = vpop.f32.mrb[8].mxu0 }
 0x108   : > { %v996_v31 = vpop.f32.mrb[9].mxu0 }
 0x109   : > { %v602_v32 = vpop.f32.mrb[10].mxu0  ;;  %v685_v35 = vpop.f32.mrb[8].mxu1 }
 0x10a   : > { %v997_v33 = vpop.f32.mrb[11].mxu0  ;;  %v1002_v37 = vpop.f32.mrb[9].mxu1 }
 0x10b   : > { %v387_v34 = vld [vmem:[#allocation2] sm:$0xff]  ;;  %v688_v39 = vpop.f32.mrb[10].mxu1 }
 0x10c   : > { %v448_v36 = vadd.f32 %v441_v18, %v387_v34  ;;  %v1003_v41 = vpop.f32.mrb[11].mxu1 }
 0x10d   : > { %v388_v38 = vld [vmem:[#allocation2 + $0x8] sm:$0xff] }
 0x10e   : > { %450 = vst.msk [vmem:[#allocation2] sm:$0xff] %vm296_vm11, %v448_v36  ;;  %v449_v40 = vadd.f32 %v444_v21, %v388_v38 }
 0x10f   : > { %v757_v42 = vpop.f32.mrb[12].mxu0 }
 0x110   : > { %451 = vst.msk [vmem:[#allocation2 + $0x8] sm:$0xff] %vm296_vm11, %v449_v40  ;;  %v1008_v43 = vpop.f32.mrb[13].mxu0 }
 0x111   : > { %v760_v44 = vpop.f32.mrb[14].mxu0 }
 0x112   : > { %v1009_v45 = vpop.f32.mrb[15].mxu0 }
 0x115   : > { %v459_v46 = vld [vmem:[#allocation2] sm:$0xff] }
 0x116   : > { %v534_v47 = vadd.f32 %v527_v25, %v459_v46 }
 0x117   : > { %v460_v48 = vld [vmem:[#allocation2 + $0x8] sm:$0xff] }
 0x118   : > { %536 = vst.msk [vmem:[#allocation2] sm:$0xff] %vm296_vm11, %v534_v47  ;;  %v535_v49 = vadd.f32 %v530_v28, %v460_v48 }
 0x11a   : > { %537 = vst.msk [vmem:[#allocation2 + $0x8] sm:$0xff] %vm296_vm11, %v535_v49 }
 0x11f   : > { %v545_v50 = vld [vmem:[#allocation2] sm:$0xff] }
 0x120   : > { %v606_v51 = vadd.f32 %v599_v30, %v545_v50 }
 0x121   : > { %v546_v52 = vld [vmem:[#allocation2 + $0x8] sm:$0xff] }
 0x122   : > { %608 = vst.msk [vmem:[#allocation2] sm:$0xff] %vm296_vm11, %v606_v51  ;;  %v607_v53 = vadd.f32 %v602_v32, %v546_v52 }
 0x124   : > { %609 = vst.msk [vmem:[#allocation2 + $0x8] sm:$0xff] %vm296_vm11, %v607_v53 }
 0x129   : > { %v617_v54 = vld [vmem:[#allocation2] sm:$0xff] }
 0x12a   : > { %v692_v55 = vadd.f32 %v685_v35, %v617_v54 }
 0x12b   : > { %v618_v56 = vld [vmem:[#allocation2 + $0x8] sm:$0xff] }
 0x12c   : > { %694 = vst.msk [vmem:[#allocation2] sm:$0xff] %vm296_vm11, %v692_v55  ;;  %v693_v57 = vadd.f32 %v688_v39, %v618_v56 }
 0x12e   : > { %695 = vst.msk [vmem:[#allocation2 + $0x8] sm:$0xff] %vm296_vm11, %v693_v57 }
 0x132   : > { %771 = sbr.rel (%p944_p9) target bundleno = 325 (0x145), region = 40 }
 0x133   : > { %v703_v58 = vld [vmem:[#allocation2] sm:$0xff] }
 0x134   : > { %v764_v59 = vadd.f32 %v757_v42, %v703_v58 }
 0x135   : > { %v704_v60 = vld [vmem:[#allocation2 + $0x8] sm:$0xff] }
 0x136   : > { %766 = vst.msk [vmem:[#allocation2] sm:$0xff] %vm296_vm11, %v764_v59  ;;  %v765_v61 = vadd.f32 %v760_v44, %v704_v60 }
 0x138   : > { %767 = vst.msk [vmem:[#allocation2 + $0x8] sm:$0xff] %vm296_vm11, %v765_v61 }
 0x13d   : > { %v772_v62 = vld [vmem:[#allocation2] sm:$0xff] }
 0x13e   : > { %v781_v2 = vadd.f32 %v945_v63, %v772_v62 }
 0x13f   : > { %v773_v0 = vld [vmem:[#allocation2 + $0x8] sm:$0xff] }
 0x140   : > { %v782_v3 = vadd.f32 %v945_v63, %v773_v0  ;;  %v952_v5 = vpack.c.bf16 %v781_v2, %v781_v2 }
 0x142   : > { %v953_v6 = vpack.c.bf16 %v782_v3, %v782_v3  ;;  %792 = vst.msk [vmem:[%s1212_s4] sm:$0xf] %vm791_vm12, %v952_v5 }
 0x144   : > { %793 = vst.msk [vmem:[%s1212_s4 + $0x4] sm:$0xf] %vm791_vm12, %v953_v6 }
 0x145 PF: > { %s13_s18 = sadd.s32 1, %s1138_s18   ;;  %s1330_s12 = smov %s1126_s15 }
 0x146   : > { %p10_p10 = scmp.ge.s32.totalorder %s13_s18, 226   ;;  %s1331_s13 = smov %s1130_s16 }
 0x147   : > { %s1332_s14 = smov %s1134_s17  ;;  %s1333_s15 = smov %s1337_s19 }
 0x148   : > { %s1334_s16 = smov %s1341_s20  ;;  %s1335_s17 = smov %s1345_s21 }
 0x149   :  { %12 = sbr.rel (!%p10_p10) target bundleno = 4 (0x4), region = 77 }

// kernel: generator_forward.54
= control target key start
LH: loop header
LB: loop body
LE: loop exit
PB: predicated region body
PF: predicated region fallthrough
CT: control target
= control target key end

     0   :  { %s1008_s6 = smov 0   ;;  %s1010_s7 = smov 0   ;;  %s1616_s0 = inlined_call_operand.vmem [shape: bf16[2,256,64], index: 0, kind: input, shape index: {}]   ;;  %s1617_s1 = inlined_call_operand.vmem [shape: bf16[2,256,64], index: 1, kind: output, shape index: {}]  }
   0x1   :  { %s1012_s8 = smov 0  }
   0x2 LB: > { %s23_s9 = sadd.s32 1, %s992_s7  ;;  %p796_p0 = scmp.ge.s32.totalorder %s996_s8, 1  ;;  %s996_s8 = sphi %s1012_s8, %s11_s8   ;;  %s992_s7 = sphi %s1010_s7, %s1619_s7   ;;  %s988_s6 = sphi %s1008_s6, %s1618_s6  }
   0x3   : > { %p25_p1 = scmp.ge.s32.totalorder %s23_s9, 2  ;;  %p106_p2 = scmp.lt.s32.totalorder %s996_s8, 3 }
   0x5   : > { %s1621_s9 = smov (%p25_p1, %s23_s9), 0  ;;  %p107_p3 = pnand %p796_p0, %p106_p2 }
   0x6   : > { %p132_p4 = scmp.lt.s32.totalorder (!%p107_p3), %s988_s6, 1  ;;  %vm212_vm0 = vcmask (!%p107_p3), 523264   ;;  %vm676_vm1 = vcmask (!%p107_p3), 519168  }
   0x7   : > { %110 = sbr.rel (%p107_p3) target bundleno = 235 (0xeb), region = 24 }
   0xe   : > { %s1623_s6 = smov (!%p132_p4, %s988_s6), 1 }
   0xf   : > { %s835_s10 = sshll.u32 %s1623_s6, 7 }
  0x10   : > { %s1034_s13 = scalar_lea.vmem %s1616_s0, %s835_s10  ;;  %s1493_s16 = scalar_lea.vmem %s1617_s1, %s835_s10 }
  0x11   : > { %v1037_v0 = vld [vmem:[%s1034_s13] sm:$0xff]   ;;  %v1040_v1 = vld [vmem:[%s1034_s13 + $0x8] sm:$0xff]   ;;  %v1046_v5 = vld [vmem:[%s1034_s13 + $0x10] sm:$0xff]  }
  0x12   : > { %v871_v2 = vunpack.c.l.bf16 %v1037_v0  ;;  %v872_v3 = vunpack.c.h.bf16 %v1037_v0  ;;  %v875_v4 = vunpack.c.l.bf16 %v1040_v1  ;;  %v876_v6 = vunpack.c.h.bf16 %v1040_v1  ;;  %v1060_v11 = vld [vmem:[%s1034_s13 + $0x18] sm:$0xff]   ;;  %v1071_v18 = vld [vmem:[%s1034_s13 + $0x20] sm:$0xff]   ;;  %v1082_v25 = vld [vmem:[%s1034_s13 + $0x28] sm:$0xff]  }
  0x13   : > { %v879_v7 = vunpack.c.l.bf16 %v1046_v5  ;;  %v880_v13 = vunpack.c.h.bf16 %v1046_v5  ;;  %v883_v16 = vunpack.c.l.bf16 %v1060_v11  ;;  %v884_v20 = vunpack.c.h.bf16 %v1060_v11  ;;  %v1093_v32 = vld [vmem:[%s1034_s13 + $0x30] sm:$0xff]   ;;  %v1104_v39 = vld [vmem:[%s1034_s13 + $0x38] sm:$0xff]   ;;  %v1115_v46 = vld [vmem:[%s1034_s13 + $0x40] sm:$0xff]  }
  0x14   : > { %v213_v8 = vsel %vm212_vm0, %v871_v2, 0.0  ;;  %v214_v9 = vsel %vm212_vm0, %v872_v3, 0.0  ;;  %v216_v10 = vsel %vm212_vm0, %v875_v4, 0.0  ;;  %v218_v14 = vsel %vm212_vm0, %v876_v6, 0.0  ;;  %v1126_v53 = vld [vmem:[%s1034_s13 + $0x48] sm:$0xff]   ;;  %v1137_v60 = vld [vmem:[%s1034_s13 + $0x50] sm:$0xff]  }
  0x15   : > { %v215_v12 = vadd.f32 %v214_v9, %v213_v8  ;;  %v220_v17 = vsel %vm212_vm0, %v879_v7, 0.0  ;;  %v222_v21 = vsel %vm212_vm0, %v880_v13, 0.0  ;;  %v887_v23 = vunpack.c.l.bf16 %v1071_v18 }
  0x16   : > { %v224_v24 = vsel %vm212_vm0, %v883_v16, 0.0  ;;  %v888_v27 = vunpack.c.h.bf16 %v1071_v18  ;;  %v226_v28 = vsel %vm212_vm0, %v884_v20, 0.0  ;;  %v891_v30 = vunpack.c.l.bf16 %v1082_v25 }
  0x17   : > { %v217_v15 = vadd.f32 %v216_v10, %v215_v12  ;;  %v228_v31 = vsel %vm212_vm0, %v887_v23, 0.0  ;;  %v892_v34 = vunpack.c.h.bf16 %v1082_v25  ;;  %v895_v37 = vunpack.c.l.bf16 %v1093_v32  ;;  %v1148_v12 = vld [vmem:[%s1034_s13 + $0x58] sm:$0xff]  }
  0x18   : > { %v230_v35 = vsel %vm212_vm0, %v888_v27, 0.0  ;;  %v232_v38 = vsel %vm212_vm0, %v891_v30, 0.0  ;;  %v896_v41 = vunpack.c.h.bf16 %v1093_v32  ;;  %v899_v44 = vunpack.c.l.bf16 %v1104_v39 }
  0x19   : > { %v219_v19 = vadd.f32 %v218_v14, %v217_v15  ;;  %v234_v42 = vsel %vm212_vm0, %v892_v34, 0.0  ;;  %v236_v45 = vsel %vm212_vm0, %v895_v37, 0.0  ;;  %v900_v48 = vunpack.c.h.bf16 %v1104_v39 }
  0x1a   : > { %v238_v49 = vsel %vm212_vm0, %v896_v41, 0.0  ;;  %v903_v51 = vunpack.c.l.bf16 %v1115_v46  ;;  %v240_v52 = vsel %vm212_vm0, %v899_v44, 0.0  ;;  %v904_v55 = vunpack.c.h.bf16 %v1115_v46 }
  0x1b   : > { %v221_v22 = vadd.f32 %v220_v17, %v219_v19  ;;  %v242_v56 = vsel %vm212_vm0, %v900_v48, 0.0  ;;  %v907_v58 = vunpack.c.l.bf16 %v1126_v53  ;;  %v908_v62 = vunpack.c.h.bf16 %v1126_v53 }
  0x1c   : > { %v244_v59 = vsel %vm212_vm0, %v903_v51, 0.0  ;;  %v246_v63 = vsel %vm212_vm0, %v904_v55, 0.0  ;;  %v911_v9 = vunpack.c.l.bf16 %v1137_v60  ;;  %v912_v15 = vunpack.c.h.bf16 %v1137_v60 }
  0x1d   : > { %v223_v26 = vadd.f32 %v222_v21, %v221_v22  ;;  %v248_v10 = vsel %vm212_vm0, %v907_v58, 0.0  ;;  %v250_v17 = vsel %vm212_vm0, %v908_v62, 0.0  ;;  %v915_v21 = vunpack.c.l.bf16 %v1148_v12 }
  0x1e   : > { %v252_v22 = vsel %vm212_vm0, %v911_v9, 0.0 }
  0x1f   : > { %v225_v29 = vadd.f32 %v224_v24, %v223_v26  ;;  %v1159_v24 = vld [vmem:[%s1034_s13 + $0x60] sm:$0xff]  }
  0x21   : > { %v227_v33 = vadd.f32 %v226_v28, %v225_v29  ;;  %v916_v28 = vunpack.c.h.bf16 %v1148_v12  ;;  %v254_v29 = vsel %vm212_vm0, %v912_v15, 0.0 }
  0x23   : > { %v229_v36 = vadd.f32 %v228_v31, %v227_v33  ;;  %v919_v33 = vunpack.c.l.bf16 %v1159_v24 }
  0x25   : > { %v231_v40 = vadd.f32 %v230_v35, %v229_v36  ;;  %v256_v35 = vsel %vm212_vm0, %v915_v21, 0.0  ;;  %v1170_v36 = vld [vmem:[%s1034_s13 + $0x68] sm:$0xff]  }
  0x27   : > { %v233_v43 = vadd.f32 %v232_v38, %v231_v40  ;;  %v920_v40 = vunpack.c.h.bf16 %v1159_v24 }
  0x29   : > { %v235_v47 = vadd.f32 %v234_v42, %v233_v43  ;;  %v258_v42 = vsel %vm212_vm0, %v916_v28, 0.0 }
  0x2b   : > { %v237_v50 = vadd.f32 %v236_v45, %v235_v47  ;;  %v923_v45 = vunpack.c.l.bf16 %v1170_v36  ;;  %v260_v47 = vsel %vm212_vm0, %v919_v33, 0.0 }
  0x2d   : > { %v239_v54 = vadd.f32 %v238_v49, %v237_v50  ;;  %v1181_v49 = vld [vmem:[%s1034_s13 + $0x70] sm:$0xff]  }
  0x2f   : > { %v241_v57 = vadd.f32 %v240_v52, %v239_v54  ;;  %v924_v52 = vunpack.c.h.bf16 %v1170_v36  ;;  %v262_v54 = vsel %vm212_vm0, %v920_v40, 0.0 }
  0x31   : > { %v243_v61 = vadd.f32 %v242_v56, %v241_v57  ;;  %v927_v57 = vunpack.c.l.bf16 %v1181_v49 }
  0x33   : > { %v245_v8 = vadd.f32 %v244_v59, %v243_v61  ;;  %v264_v59 = vsel %vm212_vm0, %v923_v45, 0.0  ;;  %v1192_v61 = vld [vmem:[%s1034_s13 + $0x78] sm:$0xff]  }
  0x35   : > { %v247_v14 = vadd.f32 %v246_v63, %v245_v8  ;;  %v928_v8 = vunpack.c.h.bf16 %v1181_v49 }
  0x37   : > { %v249_v19 = vadd.f32 %v248_v10, %v247_v14  ;;  %v266_v10 = vsel %vm212_vm0, %v924_v52, 0.0 }
  0x39   : > { %v251_v26 = vadd.f32 %v250_v17, %v249_v19  ;;  %v931_v17 = vunpack.c.l.bf16 %v1192_v61  ;;  %v268_v19 = vsel %vm212_vm0, %v927_v57, 0.0 }
  0x3b   : > { %v253_v31 = vadd.f32 %v252_v22, %v251_v26  ;;  %v932_v26 = vunpack.c.h.bf16 %v1192_v61 }
  0x3d   : > { %v255_v38 = vadd.f32 %v254_v29, %v253_v31  ;;  %v270_v29 = vsel %vm212_vm0, %v928_v8, 0.0 }
  0x3f   : > { %v257_v43 = vadd.f32 %v256_v35, %v255_v38  ;;  %v272_v35 = vsel %vm212_vm0, %v931_v17, 0.0 }
  0x41   : > { %v259_v50 = vadd.f32 %v258_v42, %v257_v43  ;;  %v274_v42 = vsel %vm212_vm0, %v932_v26, 0.0 }
  0x43   : > { %v261_v56 = vadd.f32 %v260_v47, %v259_v50 }
  0x45   : > { %v263_v63 = vadd.f32 %v262_v54, %v261_v56 }
  0x47   : > { %v265_v14 = vadd.f32 %v264_v59, %v263_v63 }
  0x49   : > { %v267_v22 = vadd.f32 %v266_v10, %v265_v14 }
  0x4b   : > { %v269_v31 = vadd.f32 %v268_v19, %v267_v22 }
  0x4d   : > { %v271_v38 = vadd.f32 %v270_v29, %v269_v31 }
  0x4f   : > { %v273_v43 = vadd.f32 %v272_v35, %v271_v38 }
  0x51   : > { %v275_v47 = vadd.f32 %v274_v42, %v273_v43 }
  0x53   : > { %v276_v50 = vrot.slane %v275_v47, 4 }
  0x55   : > { %v277_v54 = vadd.f32 %v276_v50, %v275_v47 }
  0x57   : > { %v278_v56 = vrot.slane %v277_v54, 2 }
  0x59   : > { %v279_v59 = vadd.f32 %v278_v56, %v277_v54 }
  0x5b   : > { %v280_v63 = vrot.slane %v279_v59, 1 }
  0x5d   : > { %v281_v10 = vadd.f32 %v280_v63, %v279_v59 }
  0x5f   : > { %v1212_v14 = vmul.f32 0.00390625, %v281_v10 }
  0x61   : > { %v1217_v19 = vsub.f32 %v871_v2, %v1212_v14  ;;  %v1222_v22 = vsub.f32 %v872_v3, %v1212_v14  ;;  %v1227_v29 = vsub.f32 %v875_v4, %v1212_v14  ;;  %v1232_v31 = vsub.f32 %v876_v6, %v1212_v14 }
  0x62   : > { %v1237_v2 = vsub.f32 %v879_v7, %v1212_v14  ;;  %v1248_v1 = vsub.f32 %v880_v13, %v1212_v14  ;;  %v1255_v7 = vsub.f32 %v883_v16, %v1212_v14  ;;  %v1265_v13 = vsub.f32 %v884_v20, %v1212_v14 }
  0x63   : > { %v316_v0 = vmul.f32 %v1217_v19, %v1217_v19  ;;  %v317_v3 = vmul.f32 %v1222_v22, %v1222_v22  ;;  %v318_v4 = vmul.f32 %v1227_v29, %v1227_v29  ;;  %v319_v6 = vmul.f32 %v1232_v31, %v1232_v31 }
  0x64   : > { %v320_v35 = vmul.f32 %v1237_v2, %v1237_v2  ;;  %v321_v47 = vmul.f32 %v1248_v1, %v1248_v1  ;;  %v1273_v54 = vsub.f32 %v887_v23, %v1212_v14  ;;  %v322_v56 = vmul.f32 %v1255_v7, %v1255_v7 }
  0x65   : > { %v348_v38 = vsel %vm212_vm0, %v316_v0, 0.0  ;;  %v349_v42 = vsel %vm212_vm0, %v317_v3, 0.0  ;;  %v351_v43 = vsel %vm212_vm0, %v318_v4, 0.0  ;;  %v353_v16 = vsel %vm212_vm0, %v319_v6, 0.0 }
  0x66   : > { %v350_v5 = vadd.f32 %v349_v42, %v348_v38  ;;  %v355_v59 = vsel %vm212_vm0, %v320_v35, 0.0  ;;  %v1281_v11 = vsub.f32 %v888_v27, %v1212_v14  ;;  %v323_v20 = vmul.f32 %v1265_v13, %v1265_v13 }
  0x67   : > { %v357_v10 = vsel %vm212_vm0, %v321_v47, 0.0  ;;  %v1289_v23 = vsub.f32 %v891_v30, %v1212_v14  ;;  %v324_v3 = vmul.f32 %v1273_v54, %v1273_v54  ;;  %v359_v4 = vsel %vm212_vm0, %v322_v56, 0.0 }
  0x68   : > { %v352_v50 = vadd.f32 %v351_v43, %v350_v5  ;;  %v1297_v18 = vsub.f32 %v892_v34, %v1212_v14  ;;  %v325_v27 = vmul.f32 %v1281_v11, %v1281_v11  ;;  %v361_v35 = vsel %vm212_vm0, %v323_v20, 0.0 }
  0x69   : > { %v1305_v30 = vsub.f32 %v895_v37, %v1212_v14  ;;  %v326_v42 = vmul.f32 %v1289_v23, %v1289_v23  ;;  %v363_v43 = vsel %vm212_vm0, %v324_v3, 0.0  ;;  %v1313_v25 = vsub.f32 %v896_v41, %v1212_v14 }
  0x6a   : > { %v354_v63 = vadd.f32 %v353_v16, %v352_v50  ;;  %v327_v34 = vmul.f32 %v1297_v18, %v1297_v18  ;;  %v365_v47 = vsel %vm212_vm0, %v325_v27, 0.0  ;;  %v1321_v37 = vsub.f32 %v899_v44, %v1212_v14 }
  0x6b   : > { %v328_v50 = vmul.f32 %v1305_v30, %v1305_v30  ;;  %v367_v56 = vsel %vm212_vm0, %v326_v42, 0.0  ;;  %v1329_v32 = vsub.f32 %v900_v48, %v1212_v14  ;;  %v329_v41 = vmul.f32 %v1313_v25, %v1313_v25 }
  0x6c   : > { %v356_v0 = vadd.f32 %v355_v59, %v354_v63  ;;  %v369_v63 = vsel %vm212_vm0, %v327_v34, 0.0  ;;  %v1337_v44 = vsub.f32 %v903_v51, %v1212_v14  ;;  %v1345_v39 = vsub.f32 %v904_v55, %v1212_v14 }
  0x6d   : > { %v331_v48 = vmul.f32 %v1329_v32, %v1329_v32  ;;  %v1353_v51 = vsub.f32 %v907_v58, %v1212_v14  ;;  %v1361_v46 = vsub.f32 %v908_v62, %v1212_v14  ;;  %v1369_v58 = vsub.f32 %v911_v9, %v1212_v14 }
  0x6e   : > { %v358_v6 = vadd.f32 %v357_v10, %v356_v0  ;;  %v330_v10 = vmul.f32 %v1321_v37, %v1321_v37  ;;  %v371_v0 = vsel %vm212_vm0, %v328_v50, 0.0  ;;  %v332_v27 = vmul.f32 %v1337_v44, %v1337_v44 }
  0x6f   : > { %v333_v55 = vmul.f32 %v1345_v39, %v1345_v39  ;;  %v377_v42 = vsel %vm212_vm0, %v331_v48, 0.0  ;;  %v1377_v53 = vsub.f32 %v912_v15, %v1212_v14  ;;  %v335_v62 = vmul.f32 %v1361_v46, %v1361_v46 }
  0x70   : > { %v360_v38 = vadd.f32 %v359_v4, %v358_v6  ;;  %v373_v4 = vsel %vm212_vm0, %v329_v41, 0.0  ;;  %v379_v34 = vsel %vm212_vm0, %v332_v27, 0.0  ;;  %v1385_v9 = vsub.f32 %v915_v21, %v1212_v14 }
  0x71   : > { %v1393_v60 = vsub.f32 %v916_v28, %v1212_v14  ;;  %v337_v15 = vmul.f32 %v1377_v53, %v1377_v53  ;;  %v1401_v21 = vsub.f32 %v919_v33, %v1212_v14  ;;  %v1409_v12 = vsub.f32 %v920_v40, %v1212_v14 }
  0x72   : > { %v362_v5 = vadd.f32 %v361_v35, %v360_v38  ;;  %v375_v35 = vsel %vm212_vm0, %v330_v10, 0.0  ;;  %v338_v10 = vmul.f32 %v1385_v9, %v1385_v9  ;;  %v1417_v33 = vsub.f32 %v923_v45, %v1212_v14 }
  0x73   : > { %v339_v28 = vmul.f32 %v1393_v60, %v1393_v60  ;;  %v389_v48 = vsel %vm212_vm0, %v337_v15, 0.0  ;;  %v1425_v24 = vsub.f32 %v924_v52, %v1212_v14  ;;  %v341_v40 = vmul.f32 %v1409_v12, %v1409_v12 }
  0x74   : > { %v364_v16 = vadd.f32 %v363_v43, %v362_v5  ;;  %v334_v5 = vmul.f32 %v1353_v51, %v1353_v51  ;;  %v391_v27 = vsel %vm212_vm0, %v338_v10, 0.0  ;;  %v1433_v45 = vsub.f32 %v927_v57, %v1212_v14 }
  0x75   : > { %v1441_v36 = vsub.f32 %v928_v8, %v1212_v14  ;;  %v343_v52 = vmul.f32 %v1425_v24, %v1425_v24  ;;  %v1449_v57 = vsub.f32 %v931_v17, %v1212_v14  ;;  %v1457_v49 = vsub.f32 %v932_v26, %v1212_v14 }
  0x76   : > { %v366_v59 = vadd.f32 %v365_v47, %v364_v16  ;;  %v381_v16 = vsel %vm212_vm0, %v333_v55, 0.0 }
  0x77   : > { %v345_v8 = vmul.f32 %v1441_v36, %v1441_v36  ;;  %v346_v17 = vmul.f32 %v1449_v57, %v1449_v57 }
  0x78   : > { %v368_v20 = vadd.f32 %v367_v56, %v366_v59  ;;  %v336_v56 = vmul.f32 %v1369_v58, %v1369_v58  ;;  %v383_v59 = vsel %vm212_vm0, %v334_v5, 0.0 }
  0x79   : > { %v407_v26 = vsel %vm212_vm0, %v346_v17, 0.0 }
  0x7a   : > { %v370_v3 = vadd.f32 %v369_v63, %v368_v20  ;;  %v385_v63 = vsel %vm212_vm0, %v335_v62, 0.0  ;;  %v344_v62 = vmul.f32 %v1433_v45, %v1433_v45 }
  0x7c   : > { %v372_v6 = vadd.f32 %v371_v0, %v370_v3  ;;  %v387_v0 = vsel %vm212_vm0, %v336_v56, 0.0  ;;  %v401_v56 = vsel %vm212_vm0, %v343_v52, 0.0 }
  0x7e   : > { %v374_v38 = vadd.f32 %v373_v4, %v372_v6  ;;  %v340_v6 = vmul.f32 %v1401_v21, %v1401_v21 }
  0x80   : > { %v376_v43 = vadd.f32 %v375_v35, %v374_v38  ;;  %v393_v38 = vsel %vm212_vm0, %v339_v28, 0.0 }
  0x82   : > { %v378_v47 = vadd.f32 %v377_v42, %v376_v43  ;;  %v342_v42 = vmul.f32 %v1417_v33, %v1417_v33  ;;  %v395_v43 = vsel %vm212_vm0, %v340_v6, 0.0 }
  0x84   : > { %v380_v50 = vadd.f32 %v379_v34, %v378_v47  ;;  %v397_v34 = vsel %vm212_vm0, %v341_v40, 0.0 }
  0x86   : > { %v382_v41 = vadd.f32 %v381_v16, %v380_v50  ;;  %v399_v16 = vsel %vm212_vm0, %v342_v42, 0.0 }
  0x88   : > { %v384_v20 = vadd.f32 %v383_v59, %v382_v41  ;;  %v403_v41 = vsel %vm212_vm0, %v344_v62, 0.0 }
  0x8a   : > { %v386_v3 = vadd.f32 %v385_v63, %v384_v20  ;;  %v347_v63 = vmul.f32 %v1457_v49, %v1457_v49  ;;  %v405_v20 = vsel %vm212_vm0, %v345_v8, 0.0 }
  0x8c   : > { %v388_v4 = vadd.f32 %v387_v0, %v386_v3  ;;  %v409_v10 = vsel %vm212_vm0, %v347_v63, 0.0 }
  0x8e   : > { %v390_v35 = vadd.f32 %v389_v48, %v388_v4 }
  0x90   : > { %v392_v55 = vadd.f32 %v391_v27, %v390_v35 }
  0x92   : > { %v394_v5 = vadd.f32 %v393_v38, %v392_v55 }
  0x94   : > { %v396_v47 = vadd.f32 %v395_v43, %v394_v5 }
  0x96   : > { %v398_v50 = vadd.f32 %v397_v34, %v396_v47 }
  0x98   : > { %v400_v59 = vadd.f32 %v399_v16, %v398_v50 }
  0x9a   : > { %v402_v15 = vadd.f32 %v401_v56, %v400_v59 }
  0x9c   : > { %v404_v61 = vadd.f32 %v403_v41, %v402_v15 }
  0x9e   : > { %v406_v14 = vadd.f32 %v405_v20, %v404_v61 }
  0xa0   : > { %v408_v0 = vadd.f32 %v407_v26, %v406_v14 }
  0xa2   : > { %v410_v3 = vadd.f32 %v409_v10, %v408_v0 }
  0xa4   : > { %v411_v28 = vrot.slane %v410_v3, 4 }
  0xa6   : > { %v412_v48 = vadd.f32 %v411_v28, %v410_v3 }
  0xa8   : > { %v413_v4 = vrot.slane %v412_v48, 2 }
  0xaa   : > { %v414_v6 = vadd.f32 %v413_v4, %v412_v48 }
  0xac   : > { %v415_v27 = vrot.slane %v414_v6, 1 }
  0xae   : > { %v416_v35 = vadd.f32 %v415_v27, %v414_v6 }
  0xb0   : > { %v417_v40 = vmul.f32 0.00390625, %v416_v35 }
  0xb2   : > { %v418_v38 = vadd.f32 1e-05, %v417_v40 }
  0xb4   : > { %972 = vrsqrt.f32 %v418_v38 }
  0xbe   : > { %v1470_v55 = vpop.eup %972 }
  0xbf   : > { %v420_v42 = vmul.f32 %v1470_v55, %v1217_v19  ;;  %v421_v43 = vmul.f32 %v1470_v55, %v1222_v22  ;;  %v422_v5 = vmul.f32 %v1470_v55, %v1227_v29  ;;  %v423_v52 = vmul.f32 %v1470_v55, %v1232_v31 }
  0xc0   : > { %v424_v34 = vmul.f32 %v1470_v55, %v1237_v2  ;;  %v425_v47 = vmul.f32 %v1470_v55, %v1248_v1  ;;  %v426_v62 = vmul.f32 %v1470_v55, %v1255_v7  ;;  %v427_v19 = vmul.f32 %v1470_v55, %v1265_v13 }
  0xc1   : > { %vm452_vm2 = vcmp.ge.f32.partialorder %v420_v42, 0.0  ;;  %v484_v22 = vmul.f32 0.2, %v420_v42  ;;  %vm453_vm3 = vcmp.ge.f32.partialorder %v421_v43, 0.0  ;;  %v485_v16 = vmul.f32 0.2, %v421_v43 }
  0xc2   : > { %vm454_vm4 = vcmp.ge.f32.partialorder %v422_v5, 0.0  ;;  %v486_v29 = vmul.f32 0.2, %v422_v5  ;;  %vm455_vm5 = vcmp.ge.f32.partialorder %v423_v52, 0.0  ;;  %v487_v31 = vmul.f32 0.2, %v423_v52 }
  0xc3   : > { %v516_v2 = vsel %vm452_vm2, %v420_v42, %v484_v22  ;;  %v517_v1 = vsel %vm453_vm3, %v421_v43, %v485_v16  ;;  %vm456_vm6 = vcmp.ge.f32.partialorder %v424_v34, 0.0  ;;  %v488_v7 = vmul.f32 0.2, %v424_v34 }
  0xc4   : > { %v837_v13 = vpack.c.bf16 %v516_v2, %v516_v2  ;;  %v838_v50 = vpack.c.bf16 %v517_v1, %v517_v1  ;;  %v518_v8 = vsel %vm454_vm4, %v422_v5, %v486_v29  ;;  %v519_v56 = vsel %vm455_vm5, %v423_v52, %v487_v31 }
  0xc5   : > { %v839_v59 = vpack.c.bf16 %v518_v8, %v518_v8  ;;  %v840_v17 = vpack.c.bf16 %v519_v56, %v519_v56  ;;  %v520_v41 = vsel %vm456_vm6, %v424_v34, %v488_v7  ;;  %vm457_vm7 = vcmp.ge.f32.partialorder %v425_v47, 0.0 }
  0xc6   : > { %677 = vst.msk [vmem:[%s1493_s16] sm:$0xf] %vm676_vm1, %v837_v13  ;;  %678 = vst.msk [vmem:[%s1493_s16 + $0x4] sm:$0xf] %vm676_vm1, %v838_v50  ;;  %v841_v15 = vpack.c.bf16 %v520_v41, %v520_v41  ;;  %v489_v63 = vmul.f32 0.2, %v425_v47  ;;  %v428_v26 = vmul.f32 %v1470_v55, %v1273_v54  ;;  %v429_v14 = vmul.f32 %v1470_v55, %v1281_v11 }
  0xc7   : > { %vm458_vm8 = vcmp.ge.f32.partialorder %v426_v62, 0.0  ;;  %v490_v20 = vmul.f32 0.2, %v426_v62  ;;  %679 = vst.msk [vmem:[%s1493_s16 + $0x8] sm:$0xf] %vm676_vm1, %v839_v59  ;;  %vm459_vm9 = vcmp.ge.f32.partialorder %v427_v19, 0.0  ;;  %v430_v3 = vmul.f32 %v1470_v55, %v1289_v23 }
  0xc8   : > { %680 = vst.msk [vmem:[%s1493_s16 + $0xc] sm:$0xf] %vm676_vm1, %v840_v17  ;;  %v491_v61 = vmul.f32 0.2, %v427_v19  ;;  %681 = vst.msk [vmem:[%s1493_s16 + $0x10] sm:$0xf] %vm676_vm1, %v841_v15  ;;  %v521_v10 = vsel %vm457_vm7, %v425_v47, %v489_v63  ;;  %v431_v28 = vmul.f32 %v1470_v55, %v1297_v18  ;;  %v432_v38 = vmul.f32 %v1470_v55, %v1305_v30 }
  0xc9   : > { %v522_v0 = vsel %vm458_vm8, %v426_v62, %v490_v20  ;;  %v842_v48 = vpack.c.bf16 %v521_v10, %v521_v10  ;;  %vm460_vm10 = vcmp.ge.f32.partialorder %v428_v26, 0.0  ;;  %v492_v27 = vmul.f32 0.2, %v428_v26 }
  0xca   : > { %v843_v4 = vpack.c.bf16 %v522_v0, %v522_v0  ;;  %v523_v6 = vsel %vm459_vm9, %v427_v19, %v491_v61  ;;  %vm461_vm11 = vcmp.ge.f32.partialorder %v429_v14, 0.0  ;;  %v493_v35 = vmul.f32 0.2, %v429_v14 }
  0xcb   : > { %v844_v54 = vpack.c.bf16 %v523_v6, %v523_v6  ;;  %682 = vst.msk [vmem:[%s1493_s16 + $0x14] sm:$0xf] %vm676_vm1, %v842_v48  ;;  %vm462_vm12 = vcmp.ge.f32.partialorder %v430_v3, 0.0  ;;  %v494_v11 = vmul.f32 0.2, %v430_v3  ;;  %vm463_vm13 = vcmp.ge.f32.partialorder %v431_v28, 0.0 }
  0xcc   : > { %683 = vst.msk [vmem:[%s1493_s16 + $0x18] sm:$0xf] %vm676_vm1, %v843_v4  ;;  %v495_v23 = vmul.f32 0.2, %v431_v28  ;;  %v524_v18 = vsel %vm460_vm10, %v428_v26, %v492_v27  ;;  %v525_v40 = vsel %vm461_vm11, %v429_v14, %v493_v35  ;;  %v433_v42 = vmul.f32 %v1470_v55, %v1313_v25 }
  0xcd   : > { %684 = vst.msk [vmem:[%s1493_s16 + $0x1c] sm:$0xf] %vm676_vm1, %v844_v54  ;;  %v845_v43 = vpack.c.bf16 %v524_v18, %v524_v18  ;;  %v846_v5 = vpack.c.bf16 %v525_v40, %v525_v40  ;;  %v526_v52 = vsel %vm462_vm12, %v430_v3, %v494_v11  ;;  %vm464_vm14 = vcmp.ge.f32.partialorder %v432_v38, 0.0 }
  0xce   : > { %v527_v34 = vsel %vm463_vm13, %v431_v28, %v495_v23  ;;  %v847_v47 = vpack.c.bf16 %v526_v52, %v526_v52  ;;  %v496_v19 = vmul.f32 0.2, %v432_v38  ;;  %vm465_vm15 = vcmp.ge.f32.partialorder %v433_v42, 0.0 }
  0xcf   : > { %v848_v62 = vpack.c.bf16 %v527_v34, %v527_v34  ;;  %685 = vst.msk [vmem:[%s1493_s16 + $0x20] sm:$0xf] %vm676_vm1, %v845_v43  ;;  %686 = vst.msk [vmem:[%s1493_s16 + $0x24] sm:$0xf] %vm676_vm1, %v846_v5  ;;  %v497_v22 = vmul.f32 0.2, %v433_v42  ;;  %v434_v30 = vmul.f32 %v1470_v55, %v1321_v37  ;;  %v435_v25 = vmul.f32 %v1470_v55, %v1329_v32 }
  0xd0   : > { %687 = vst.msk [vmem:[%s1493_s16 + $0x28] sm:$0xf] %vm676_vm1, %v847_v47  ;;  %v528_v16 = vsel %vm464_vm14, %v432_v38, %v496_v19  ;;  %v436_v29 = vmul.f32 %v1470_v55, %v1337_v44  ;;  %v437_v31 = vmul.f32 %v1470_v55, %v1345_v39  ;;  %v438_v2 = vmul.f32 %v1470_v55, %v1353_v51 }
  0xd1   : > { %688 = vst.msk [vmem:[%s1493_s16 + $0x2c] sm:$0xf] %vm676_vm1, %v848_v62  ;;  %v849_v37 = vpack.c.bf16 %v528_v16, %v528_v16  ;;  %v529_v1 = vsel %vm465_vm15, %v433_v42, %v497_v22  ;;  %vm466_vm0 = vcmp.ge.f32.partialorder %v434_v30, 0.0  ;;  %v498_v7 = vmul.f32 0.2, %v434_v30 }
  0xd2   : > { %v850_v32 = vpack.c.bf16 %v529_v1, %v529_v1  ;;  %vm467_vm2 = vcmp.ge.f32.partialorder %v435_v25, 0.0  ;;  %v499_v13 = vmul.f32 0.2, %v435_v25  ;;  %vm468_vm3 = vcmp.ge.f32.partialorder %v436_v29, 0.0 }
  0xd3   : > { %689 = vst.msk [vmem:[%s1493_s16 + $0x30] sm:$0xf] %vm676_vm1, %v849_v37  ;;  %v530_v50 = vsel %vm466_vm0, %v434_v30, %v498_v7  ;;  %v500_v44 = vmul.f32 0.2, %v436_v29  ;;  %vm469_vm4 = vcmp.ge.f32.partialorder %v437_v31, 0.0  ;;  %vm470_vm5 = vcmp.ge.f32.partialorder %v438_v2, 0.0 }
  0xd4   : > { %v501_v8 = vmul.f32 0.2, %v437_v31  ;;  %690 = vst.msk [vmem:[%s1493_s16 + $0x34] sm:$0xf] %vm676_vm1, %v850_v32  ;;  %v851_v39 = vpack.c.bf16 %v530_v50, %v530_v50  ;;  %v531_v51 = vsel %vm467_vm2, %v435_v25, %v499_v13  ;;  %v502_v56 = vmul.f32 0.2, %v438_v2 }
  0xd5   : > { %v852_v59 = vpack.c.bf16 %v531_v51, %v531_v51  ;;  %v532_v17 = vsel %vm468_vm3, %v436_v29, %v500_v44  ;;  %v439_v15 = vmul.f32 %v1470_v55, %v1361_v46  ;;  %v440_v26 = vmul.f32 %v1470_v55, %v1369_v58 }
  0xd6   : > { %v533_v41 = vsel %vm469_vm4, %v437_v31, %v501_v8  ;;  %691 = vst.msk [vmem:[%s1493_s16 + $0x38] sm:$0xf] %vm676_vm1, %v851_v39  ;;  %v853_v63 = vpack.c.bf16 %v532_v17, %v532_v17  ;;  %v534_v61 = vsel %vm470_vm5, %v438_v2, %v502_v56  ;;  %v441_v0 = vmul.f32 %v1470_v55, %v1377_v53 }
  0xd7   : > { %v854_v20 = vpack.c.bf16 %v533_v41, %v533_v41  ;;  %692 = vst.msk [vmem:[%s1493_s16 + $0x3c] sm:$0xf] %vm676_vm1, %v852_v59  ;;  %v855_v14 = vpack.c.bf16 %v534_v61, %v534_v61  ;;  %vm471_vm6 = vcmp.ge.f32.partialorder %v439_v15, 0.0  ;;  %v503_v10 = vmul.f32 0.2, %v439_v15 }
  0xd8   : > { %693 = vst.msk [vmem:[%s1493_s16 + $0x40] sm:$0xf] %vm676_vm1, %v853_v63  ;;  %vm472_vm7 = vcmp.ge.f32.partialorder %v440_v26, 0.0  ;;  %v504_v46 = vmul.f32 0.2, %v440_v26  ;;  %v442_v3 = vmul.f32 %v1470_v55, %v1385_v9  ;;  %v443_v58 = vmul.f32 %v1470_v55, %v1393_v60 }
  0xd9   : > { %694 = vst.msk [vmem:[%s1493_s16 + $0x44] sm:$0xf] %vm676_vm1, %v854_v20  ;;  %695 = vst.msk [vmem:[%s1493_s16 + $0x48] sm:$0xf] %vm676_vm1, %v855_v14  ;;  %v535_v28 = vsel %vm471_vm6, %v439_v15, %v503_v10  ;;  %vm473_vm8 = vcmp.ge.f32.partialorder %v441_v0, 0.0  ;;  %v444_v53 = vmul.f32 %v1470_v55, %v1401_v21  ;;  %v445_v40 = vmul.f32 %v1470_v55, %v1409_v12 }
  0xda   : > { %v505_v48 = vmul.f32 0.2, %v441_v0  ;;  %v856_v4 = vpack.c.bf16 %v535_v28, %v535_v28  ;;  %v536_v6 = vsel %vm472_vm7, %v440_v26, %v504_v46  ;;  %vm474_vm9 = vcmp.ge.f32.partialorder %v442_v3, 0.0 }
  0xdb   : > { %v506_v54 = vmul.f32 0.2, %v442_v3  ;;  %v857_v27 = vpack.c.bf16 %v536_v6, %v536_v6  ;;  %vm475_vm10 = vcmp.ge.f32.partialorder %v443_v58, 0.0  ;;  %v507_v9 = vmul.f32 0.2, %v443_v58 }
  0xdc   : > { %v537_v35 = vsel %vm473_vm8, %v441_v0, %v505_v48  ;;  %696 = vst.msk [vmem:[%s1493_s16 + $0x4c] sm:$0xf] %vm676_vm1, %v856_v4  ;;  %vm476_vm11 = vcmp.ge.f32.partialorder %v444_v53, 0.0  ;;  %v508_v23 = vmul.f32 0.2, %v444_v53  ;;  %v446_v38 = vmul.f32 %v1470_v55, %v1417_v33 }
  0xdd   : > { %v858_v60 = vpack.c.bf16 %v537_v35, %v537_v35  ;;  %v538_v11 = vsel %vm474_vm9, %v442_v3, %v506_v54  ;;  %697 = vst.msk [vmem:[%s1493_s16 + $0x50] sm:$0xf] %vm676_vm1, %v857_v27  ;;  %v539_v18 = vsel %vm475_vm10, %v443_v58, %v507_v9  ;;  %v447_v5 = vmul.f32 %v1470_v55, %v1425_v24 }
  0xde   : > { %v859_v21 = vpack.c.bf16 %v538_v11, %v538_v11  ;;  %v860_v42 = vpack.c.bf16 %v539_v18, %v539_v18  ;;  %v540_v43 = vsel %vm476_vm11, %v444_v53, %v508_v23  ;;  %v448_v52 = vmul.f32 %v1470_v55, %v1433_v45 }
  0xdf   : > { %698 = vst.msk [vmem:[%s1493_s16 + $0x54] sm:$0xf] %vm676_vm1, %v858_v60  ;;  %v861_v34 = vpack.c.bf16 %v540_v43, %v540_v43  ;;  %vm477_vm12 = vcmp.ge.f32.partialorder %v445_v40, 0.0  ;;  %v509_v47 = vmul.f32 0.2, %v445_v40  ;;  %vm478_vm13 = vcmp.ge.f32.partialorder %v446_v38, 0.0 }
  0xe0   : > { %699 = vst.msk [vmem:[%s1493_s16 + $0x58] sm:$0xf] %vm676_vm1, %v859_v21  ;;  %700 = vst.msk [vmem:[%s1493_s16 + $0x5c] sm:$0xf] %vm676_vm1, %v860_v42  ;;  %v510_v12 = vmul.f32 0.2, %v446_v38  ;;  %v449_v45 = vmul.f32 %v1470_v55, %v1441_v36  ;;  %v450_v19 = vmul.f32 %v1470_v55, %v1449_v57  ;;  %v451_v16 = vmul.f32 %v1470_v55, %v1457_v49 }
  0xe1   : > { %vm479_vm14 = vcmp.ge.f32.partialorder %v447_v5, 0.0  ;;  %v511_v33 = vmul.f32 0.2, %v447_v5  ;;  %vm480_vm15 = vcmp.ge.f32.partialorder %v448_v52, 0.0  ;;  %701 = vst.msk [vmem:[%s1493_s16 + $0x60] sm:$0xf] %vm676_vm1, %v861_v34  ;;  %v541_v62 = vsel %vm477_vm12, %v445_v40, %v509_v47 }
  0xe2   : > { %v512_v24 = vmul.f32 0.2, %v448_v52  ;;  %v862_v22 = vpack.c.bf16 %v541_v62, %v541_v62  ;;  %v542_v30 = vsel %vm478_vm13, %v446_v38, %v510_v12  ;;  %vm481_vm0 = vcmp.ge.f32.partialorder %v449_v45, 0.0 }
  0xe3   : > { %v543_v25 = vsel %vm479_vm14, %v447_v5, %v511_v33  ;;  %v863_v29 = vpack.c.bf16 %v542_v30, %v542_v30  ;;  %v513_v36 = vmul.f32 0.2, %v449_v45  ;;  %vm482_vm2 = vcmp.ge.f32.partialorder %v450_v19, 0.0 }
  0xe4   : > { %v864_v31 = vpack.c.bf16 %v543_v25, %v543_v25  ;;  %v544_v2 = vsel %vm480_vm15, %v448_v52, %v512_v24  ;;  %702 = vst.msk [vmem:[%s1493_s16 + $0x64] sm:$0xf] %vm676_vm1, %v862_v22  ;;  %v514_v57 = vmul.f32 0.2, %v450_v19  ;;  %vm483_vm3 = vcmp.ge.f32.partialorder %v451_v16, 0.0 }
  0xe5   : > { %v865_v37 = vpack.c.bf16 %v544_v2, %v544_v2  ;;  %703 = vst.msk [vmem:[%s1493_s16 + $0x68] sm:$0xf] %vm676_vm1, %v863_v29  ;;  %v515_v1 = vmul.f32 0.2, %v451_v16  ;;  %v545_v49 = vsel %vm481_vm0, %v449_v45, %v513_v36 }
  0xe6   : > { %704 = vst.msk [vmem:[%s1493_s16 + $0x6c] sm:$0xf] %vm676_vm1, %v864_v31  ;;  %v546_v55 = vsel %vm482_vm2, %v450_v19, %v514_v57  ;;  %v866_v7 = vpack.c.bf16 %v545_v49, %v545_v49 }
  0xe7   : > { %705 = vst.msk [vmem:[%s1493_s16 + $0x70] sm:$0xf] %vm676_vm1, %v865_v37  ;;  %v867_v32 = vpack.c.bf16 %v546_v55, %v546_v55  ;;  %v547_v13 = vsel %vm483_vm3, %v451_v16, %v515_v1 }
  0xe8   : > { %v868_v50 = vpack.c.bf16 %v547_v13, %v547_v13  ;;  %706 = vst.msk [vmem:[%s1493_s16 + $0x74] sm:$0xf] %vm676_vm1, %v866_v7 }
  0xe9   : > { %707 = vst.msk [vmem:[%s1493_s16 + $0x78] sm:$0xf] %vm676_vm1, %v867_v32 }
  0xea   : > { %708 = vst.msk [vmem:[%s1493_s16 + $0x7c] sm:$0xf] %vm676_vm1, %v868_v50 }
  0xeb PF: > { %s11_s8 = sadd.s32 1, %s996_s8   ;;  %s1618_s6 = smov %s992_s7 }
  0xec   : > { %p8_p5 = scmp.ge.s32.totalorder %s11_s8, 4   ;;  %s1619_s7 = smov %s1621_s9 }
  0xee   :  { %10 = sbr.rel (!%p8_p5) target bundleno = 2 (0x2), region = 54 }

// kernel: generator_forward.55
= control target key start
LH: loop header
LB: loop body
LE: loop exit
PB: predicated region body
PF: predicated region fallthrough
CT: control target
= control target key end

     0   :  { %s858_s12 = smov 0   ;;  %s860_s13 = smov 0   ;;  %s967_s0 = inlined_call_operand.vmem [shape: bf16[36,2,9,64], index: 0, kind: input, shape index: {}]   ;;  %s968_s1 = inlined_call_operand.vmem [shape: bf16[9,64,128], index: 1, kind: input, shape index: {}]   ;;  %s969_s2 = inlined_call_operand.vmem [shape: f32[1,128], index: 2, kind: input, shape index: {}]   ;;  %s970_s3 = inlined_call_operand.vmem [shape: bf16[16,8,128], index: 3, kind: output, shape index: {}]  }
   0x1   :  { %s862_s14 = smov 0   ;;  %s864_s15 = smov 0  }
   0x2   :  { %s866_s16 = smov 0   ;;  %s868_s17 = smov 0  }
   0x3   :  { %s870_s18 = smov 0  }
   0x4 LB: > { %s25_s19 = sadd.s32 1, %s821_s15  ;;  %s28_s20 = sadd.s32 1, %s825_s16  ;;  %s833_s18 = sphi %s870_s18, %s13_s18   ;;  %s829_s17 = sphi %s868_s17, %s976_s17   ;;  %s825_s16 = sphi %s866_s16, %s975_s16   ;;  %s821_s15 = sphi %s864_s15, %s974_s15   ;;  %s817_s14 = sphi %s862_s14, %s973_s14   ;;  %s813_s13 = sphi %s860_s13, %s972_s13   ;;  %s809_s12 = sphi %s858_s12, %s971_s12  }
   0x5   : > { %p26_p0 = scmp.ge.s32.totalorder %s25_s19, 3  ;;  %p606_p1 = scmp.ge.s32.totalorder %s833_s18, 1 }
   0x6   : > { %p176_p2 = scmp.lt.s32.totalorder %s833_s18, 49  ;;  %s32_s21 = sadd.s32 1, %s829_s17 }
   0x7   : > { %s978_s19 = smov (%p26_p0, %s25_s19), 0  ;;  %s980_s20 = smov (!%p26_p0, %s28_s20), %s825_s16 }
   0x8   : > { %p177_p3 = pnand %p606_p1, %p176_p2  ;;  %p30_p4 = scmp.ge.s32.totalorder %s980_s20, 8 }
   0x9   : > { %s205_s22 = smul.u32 (!%p177_p3), 18, %s817_s14  ;;  %s607_s23 = sshll.u32 (!%p177_p3), %s813_s13, 1 }
   0xa   : > { %s982_s20 = smov (%p30_p4, %s980_s20), 0  ;;  %s984_s21 = smov (!%p30_p4, %s32_s21), %s829_s17 }
   0xb   : > { %p34_p5 = scmp.ge.s32.totalorder %s984_s21, 2  ;;  %180 = sbr.rel (%p177_p3) target bundleno = 290 (0x122), region = 32 }
   0xc   : > { %s610_s24 = sshll.u32 (!%p177_p3), %s817_s14, 3  ;;  %s207_s25 = sadd.s32 (!%p177_p3), %s607_s23, %s205_s22 }
   0xd   : > { %s986_s21 = smov (%p34_p5, %s984_s21), 0  ;;  %s219_s26 = sadd.s32 (!%p177_p3), %s813_s13, %s610_s24 }
   0xe   : > { %s208_s27 = sadd.s32 (!%p177_p3), %s809_s12, %s207_s25  ;;  %p220_p6 = scmp.lt.s32.totalorder (!%p177_p3), %s219_s26, 15 }
   0xf   : > { %p209_p7 = scmp.lt.s32.totalorder (!%p177_p3), %s208_s27, 35  ;;  %p612_p8 = scmp.ne.s32.totalorder (!%p177_p3), %s809_s12, 0 }
  0x12   : > { %s988_s26 = smov (!%p220_p6, %s219_s26), 15  ;;  %s990_s27 = smov (!%p209_p7, %s208_s27), 35 }
  0x13   : > { %s611_s28 = sshll.u32 %s988_s26, 2  ;;  %s654_s29 = sshll.u32 %s990_s27, 4  ;;  %v835_v0 = vmov (!%p612_p8), 0.0  }
  0x14   : > { %s906_s5 = scalar_lea.vmem %s970_s3, %s611_s28  ;;  %s911_s8 = scalar_lea.vmem %s967_s0, %s654_s29  ;;  %231 = vst [vmem:[#allocation2] sm:$0xff] (!%p612_p8), %v835_v0 }
  0x15   : > { %230 = sbr.rel (%p612_p8) target bundleno = 28 (0x1c), region = 36 }
  0x1c PF: > { %s655_s9 = smul.u32 96, %s809_s12  ;;  %v836_v1 = vmov 0.0   ;;  %vm837_vm0 = vmmov 0   ;;  %v232_v10 = vld [vmem:[%s911_s8] sm:$0xf]  ;;  %vm270_vm1 = vcmask 523264  }
  0x1d   : > { %671 = vmatprep.subr.bf16.mxu0 %v836_v1  ;;  %683 = vmatprep.subr.bf16.mxu1 %v836_v1  ;;  %v620_v12 = vld [vmem:[%s911_s8 + $0x8] sm:$0xf]  ;;  %v778_v13 = vld [vmem:[%s911_s8] sm:$0x1f]   ;;  %p650_p9 = scmp.ne.s32.totalorder %s809_s12, 2 }
  0x1e   : > { %s918_s13 = scalar_lea.vmem %s968_s1, %s655_s9  ;;  %679 = vmatprep.mubr.msk.bf16.mxu0 %vm837_vm0, %v836_v1  ;;  %691 = vmatprep.mubr.msk.bf16.mxu1 %vm837_vm0, %v836_v1  ;;  %v423_v15 = vshll.u32 %v778_v13, 16  ;;  %v421_v17 = vshrl.u32 %v778_v13, 16  ;;  %v245_v21 = vld [vmem:[#allocation2] sm:$0xff] }
  0x1f   : > { %v766_v2 = vld [vmem:[%s918_s13] sm:$0xff]   ;;  %v767_v3 = vld [vmem:[%s918_s13 + $0x8] sm:$0xff]   ;;  %v769_v6 = vld [vmem:[%s918_s13 + $0x10] sm:$0xff]  }
  0x20   : > { %672 = vmatpush3.bf16.msra.mxu0 %v766_v2  ;;  %v768_v4 = vld [vmem:[%s918_s13 + $0x20] sm:$0xff]   ;;  %v770_v5 = vld [vmem:[%s918_s13 + $0x28] sm:$0xff]   ;;  %v772_v7 = vld [vmem:[%s918_s13 + $0x30] sm:$0xff]   ;;  %v425_v18 = vrot.slane %v423_v15, 1 }
  0x21   : > { %673 = vmatprep.subr.bf16.mxu0 %v836_v1  ;;  %684 = vmatpush3.bf16.msra.mxu1 %v768_v4  ;;  %v771_v8 = vld [vmem:[%s918_s13 + $0x18] sm:$0xff]   ;;  %v773_v11 = vld [vmem:[%s918_s13 + $0x40] sm:$0xff]   ;;  %v775_v14 = vld [vmem:[%s918_s13 + $0x48] sm:$0xff]  }
  0x22   : > { %685 = vmatprep.subr.bf16.mxu1 %v836_v1  ;;  %v774_v9 = vld [vmem:[%s918_s13 + $0x38] sm:$0xff]   ;;  %v776_v16 = vld [vmem:[%s918_s13 + $0x50] sm:$0xff]   ;;  %v426_v20 = vor.u32 %v425_v18, %v421_v17  ;;  %v651_v38 = vld [vmem:[%s969_s2] ss:$0 sm:$0xff] (!%p650_p9) }
  0x23   : > { %v777_v19 = vld [vmem:[%s918_s13 + $0x58] sm:$0xff]  }
  0x24   : > { %674 = vmatpush3.bf16.msra.mxu0 %v767_v3 }
  0x25   : > { %675 = vmatprep.subr.bf16.mxu0 %v836_v1  ;;  %686 = vmatpush3.bf16.msra.mxu1 %v770_v5 }
  0x26   : > { %687 = vmatprep.subr.bf16.mxu1 %v836_v1 }
  0x28   : > { %676 = vmatpush3.bf16.msra.mxu0 %v769_v6 }
  0x29   : > { %677 = vmatprep.subr.bf16.mxu0 %v836_v1  ;;  %688 = vmatpush3.bf16.msra.mxu1 %v772_v7 }
  0x2a   : > { %689 = vmatprep.subr.bf16.mxu1 %v836_v1 }
  0x2c   : > { %678 = vmatpush3.bf16.msra.mxu0 %v771_v8 }
  0x2d   : > { %695 = vmatprep.subr.bf16.mxu0 %v836_v1  ;;  %690 = vmatpush3.bf16.msra.mxu1 %v774_v9 }
  0x2f   : > { %680 = vmatmul.mubr.msk.bf16.vlgmr.msra.gmra.mrb[0].mxu0 %vm270_vm1, %v232_v10 }
  0x30   : > { %696 = vmatpush3.bf16.msra.mxu0 %v773_v11  ;;  %703 = vmatprep.mubr.msk.bf16.mxu0 %vm837_vm0, %v836_v1 }
  0x31   : > { %697 = vmatprep.subr.bf16.mxu0 %v836_v1  ;;  %692 = vmatmul.mubr.msk.bf16.vlgmr.msra.gmra.mrb[0].mxu1 %vm270_vm1, %v620_v12 }
  0x34   : > { %698 = vmatpush3.bf16.msra.mxu0 %v775_v14 }
  0x35   : > { %699 = vmatprep.subr.bf16.mxu0 %v836_v1 }
  0x38   : > { %700 = vmatpush3.bf16.msra.mxu0 %v776_v16 }
  0x39   : > { %701 = vmatprep.subr.bf16.mxu0 %v836_v1 }
  0x3c   : > { %702 = vmatpush3.bf16.msra.mxu0 %v777_v19 }
  0x3f   : > { %704 = vmatmul.mubr.msk.bf16.vlgmr.msra.gmra.mrb[4].mxu0 %vm270_vm1, %v426_v20 }
 0x102   : > { %v308_v22 = vpop.f32.mrb[0].mxu0 }
 0x103   : > { %v314_v23 = vadd.f32 %v308_v22, %v245_v21  ;;  %v681_v24 = vpop.f32.mrb[1].mxu0 }
 0x104   : > { %v311_v25 = vpop.f32.mrb[2].mxu0  ;;  %v392_v26 = vpop.f32.mrb[0].mxu1 }
 0x105   : > { %v682_v27 = vpop.f32.mrb[3].mxu0  ;;  %v398_v28 = vadd.f32 %v392_v26, %v314_v23  ;;  %v693_v29 = vpop.f32.mrb[1].mxu1 }
 0x106   : > { %v395_v30 = vpop.f32.mrb[2].mxu1 }
 0x107   : > { %v694_v31 = vpop.f32.mrb[3].mxu1 }
 0x10f   : > { %499 = sbr.rel (%p650_p9) target bundleno = 290 (0x122), region = 40 }
 0x112   : > { %v488_v32 = vpop.f32.mrb[4].mxu0 }
 0x113   : > { %v494_v33 = vadd.f32 %v488_v32, %v398_v28  ;;  %v705_v34 = vpop.f32.mrb[5].mxu0 }
 0x114   : > { %v491_v35 = vpop.f32.mrb[6].mxu0 }
 0x115   : > { %495 = vst [vmem:[#allocation2] sm:$0xff] %v494_v33  ;;  %v706_v36 = vpop.f32.mrb[7].mxu0 }
 0x11c   : > { %v500_v37 = vld [vmem:[#allocation2] sm:$0xff] }
 0x11d   : > { %v508_v39 = vadd.f32 %v651_v38, %v500_v37 }
 0x11f   : > { %v509_v40 = vpack.c.bf16 %v508_v39, %v508_v39 }
 0x121   : > { %510 = vst [vmem:[%s906_s5] sm:$0xf] %v509_v40 }
 0x122 PF: > { %s13_s18 = sadd.s32 1, %s833_s18   ;;  %s971_s12 = smov %s821_s15 }
 0x123   : > { %p10_p10 = scmp.ge.s32.totalorder %s13_s18, 50   ;;  %s972_s13 = smov %s825_s16 }
 0x124   : > { %s973_s14 = smov %s829_s17  ;;  %s974_s15 = smov %s978_s19 }
 0x125   : > { %s975_s16 = smov %s982_s20  ;;  %s976_s17 = smov %s986_s21 }
 0x126   :  { %12 = sbr.rel (!%p10_p10) target bundleno = 4 (0x4), region = 74 }

// kernel: generator_forward.56
= control target key start
LH: loop header
LB: loop body
LE: loop exit
PB: predicated region body
PF: predicated region fallthrough
CT: control target
= control target key end

     0   :  { %s497_s6 = smov 0   ;;  %s499_s7 = smov 0   ;;  %s537_s0 = inlined_call_operand.vmem [shape: bf16[2,64,128], index: 0, kind: input, shape index: {}]   ;;  %s538_s1 = inlined_call_operand.vmem [shape: bf16[2,64,128], index: 1, kind: output, shape index: {}]  }
   0x1   :  { %s501_s8 = smov 0  }
   0x2 LB: > { %s23_s9 = sadd.s32 1, %s481_s7  ;;  %p370_p0 = scmp.ge.s32.totalorder %s485_s8, 1  ;;  %s485_s8 = sphi %s501_s8, %s11_s8   ;;  %s481_s7 = sphi %s499_s7, %s540_s7   ;;  %s477_s6 = sphi %s497_s6, %s539_s6  }
   0x3   : > { %p25_p1 = scmp.ge.s32.totalorder %s23_s9, 2  ;;  %p106_p2 = scmp.lt.s32.totalorder %s485_s8, 3 }
   0x5   : > { %s542_s9 = smov (%p25_p1, %s23_s9), 0  ;;  %p107_p3 = pnand %p370_p0, %p106_p2 }
   0x6   : > { %p132_p4 = scmp.lt.s32.totalorder (!%p107_p3), %s477_s6, 1 }
   0x7   : > { %110 = sbr.rel (%p107_p3) target bundleno = 106 (0x6a), region = 24 }
   0xe   : > { %s544_s6 = smov (!%p132_p4, %s477_s6), 1 }
   0xf   : > { %s385_s10 = sshll.u32 %s544_s6, 5 }
  0x10   : > { %s139_s13 = scalar_lea.vmem %s537_s0, %s385_s10  ;;  %s147_s16 = scalar_lea.vmem %s538_s1, %s385_s10 }
  0x11   : > { %v396_v0 = vld [vmem:[%s139_s13] sm:$0xff]   ;;  %v431_v1 = vld [vmem:[%s139_s13 + $0x8] sm:$0xff]   ;;  %v432_v5 = vld [vmem:[%s139_s13 + $0x10] sm:$0xff]  }
  0x12   : > { %v397_v2 = vunpack.c.l.bf16 %v396_v0  ;;  %v398_v3 = vunpack.c.h.bf16 %v396_v0  ;;  %v401_v4 = vunpack.c.l.bf16 %v431_v1  ;;  %v402_v6 = vunpack.c.h.bf16 %v431_v1  ;;  %v433_v10 = vld [vmem:[%s139_s13 + $0x18] sm:$0xff]  }
  0x13   : > { %v405_v8 = vunpack.c.l.bf16 %v432_v5  ;;  %v406_v11 = vunpack.c.h.bf16 %v432_v5  ;;  %v409_v13 = vunpack.c.l.bf16 %v433_v10  ;;  %v410_v15 = vunpack.c.h.bf16 %v433_v10 }
  0x14   : > { %v164_v7 = vadd.f32 %v398_v3, %v397_v2 }
  0x16   : > { %v165_v9 = vadd.f32 %v401_v4, %v164_v7 }
  0x18   : > { %v166_v12 = vadd.f32 %v402_v6, %v165_v9 }
  0x1a   : > { %v167_v14 = vadd.f32 %v405_v8, %v166_v12 }
  0x1c   : > { %v168_v16 = vadd.f32 %v406_v11, %v167_v14 }
  0x1e   : > { %v169_v17 = vadd.f32 %v409_v13, %v168_v16 }
  0x20   : > { %v170_v18 = vadd.f32 %v410_v15, %v169_v17 }
  0x22   : > { %v171_v19 = vrot.slane %v170_v18, 4 }
  0x24   : > { %v172_v20 = vadd.f32 %v171_v19, %v170_v18 }
  0x26   : > { %v173_v21 = vrot.slane %v172_v20, 2 }
  0x28   : > { %v174_v22 = vadd.f32 %v173_v21, %v172_v20 }
  0x2a   : > { %v175_v23 = vrot.slane %v174_v22, 1 }
  0x2c   : > { %v176_v24 = vadd.f32 %v175_v23, %v174_v22 }
  0x2e   : > { %v178_v25 = vmul.f32 0.015625, %v176_v24 }
  0x30   : > { %v179_v26 = vsub.f32 %v397_v2, %v178_v25  ;;  %v180_v27 = vsub.f32 %v398_v3, %v178_v25  ;;  %v181_v28 = vsub.f32 %v401_v4, %v178_v25  ;;  %v182_v29 = vsub.f32 %v402_v6, %v178_v25 }
  0x31   : > { %v183_v30 = vsub.f32 %v405_v8, %v178_v25  ;;  %v184_v34 = vsub.f32 %v406_v11, %v178_v25  ;;  %v185_v37 = vsub.f32 %v409_v13, %v178_v25  ;;  %v186_v40 = vsub.f32 %v410_v15, %v178_v25 }
  0x32   : > { %v187_v31 = vmul.f32 %v179_v26, %v179_v26  ;;  %v188_v32 = vmul.f32 %v180_v27, %v180_v27  ;;  %v189_v33 = vmul.f32 %v181_v28, %v181_v28  ;;  %v190_v35 = vmul.f32 %v182_v29, %v182_v29 }
  0x33   : > { %v191_v38 = vmul.f32 %v183_v30, %v183_v30  ;;  %v192_v41 = vmul.f32 %v184_v34, %v184_v34  ;;  %v193_v43 = vmul.f32 %v185_v37, %v185_v37  ;;  %v194_v45 = vmul.f32 %v186_v40, %v186_v40 }
  0x34   : > { %v195_v36 = vadd.f32 %v188_v32, %v187_v31 }
  0x36   : > { %v196_v39 = vadd.f32 %v195_v36, %v189_v33 }
  0x38   : > { %v197_v42 = vadd.f32 %v196_v39, %v190_v35 }
  0x3a   : > { %v198_v44 = vadd.f32 %v197_v42, %v191_v38 }
  0x3c   : > { %v199_v46 = vadd.f32 %v198_v44, %v192_v41 }
  0x3e   : > { %v200_v47 = vadd.f32 %v199_v46, %v193_v43 }
  0x40   : > { %v201_v48 = vadd.f32 %v200_v47, %v194_v45 }
  0x42   : > { %v202_v49 = vrot.slane %v201_v48, 4 }
  0x44   : > { %v203_v50 = vadd.f32 %v202_v49, %v201_v48 }
  0x46   : > { %v204_v51 = vrot.slane %v203_v50, 2 }
  0x48   : > { %v205_v52 = vadd.f32 %v204_v51, %v203_v50 }
  0x4a   : > { %v206_v53 = vrot.slane %v205_v52, 1 }
  0x4c   : > { %v207_v54 = vadd.f32 %v206_v53, %v205_v52 }
  0x4e   : > { %v208_v55 = vmul.f32 0.015625, %v207_v54 }
  0x50   : > { %v209_v56 = vadd.f32 1e-05, %v208_v55 }
  0x52   : > { %461 = vrsqrt.f32 %v209_v56 }
  0x5c   : > { %v462_v57 = vpop.eup %461 }
  0x5d   : > { %v211_v58 = vmul.f32 %v462_v57, %v179_v26  ;;  %v212_v59 = vmul.f32 %v462_v57, %v180_v27  ;;  %v213_v60 = vmul.f32 %v462_v57, %v181_v28  ;;  %v214_v61 = vmul.f32 %v462_v57, %v182_v29 }
  0x5e   : > { %v215_v62 = vmul.f32 %v462_v57, %v183_v30  ;;  %v216_v63 = vmul.f32 %v462_v57, %v184_v34  ;;  %v217_v0 = vmul.f32 %v462_v57, %v185_v37  ;;  %v218_v1 = vmul.f32 %v462_v57, %v186_v40 }
  0x5f   : > { %vm219_vm0 = vcmp.ge.f32.partialorder %v211_v58, 0.0  ;;  %vm220_vm1 = vcmp.ge.f32.partialorder %v212_v59, 0.0  ;;  %v227_v2 = vmul.f32 0.2, %v211_v58  ;;  %v228_v3 = vmul.f32 0.2, %v212_v59 }
  0x60   : > { %vm221_vm2 = vcmp.ge.f32.partialorder %v213_v60, 0.0  ;;  %vm222_vm3 = vcmp.ge.f32.partialorder %v214_v61, 0.0  ;;  %v229_v4 = vmul.f32 0.2, %v213_v60  ;;  %v230_v5 = vmul.f32 0.2, %v214_v61 }
  0x61   : > { %v235_v6 = vsel %vm219_vm0, %v211_v58, %v227_v2  ;;  %v236_v7 = vsel %vm220_vm1, %v212_v59, %v228_v3  ;;  %vm223_vm4 = vcmp.ge.f32.partialorder %v215_v62, 0.0  ;;  %vm224_vm5 = vcmp.ge.f32.partialorder %v216_v63, 0.0 }
  0x62   : > { %v414_v8 = vpack.c.bf16 %v236_v7, %v235_v6  ;;  %v237_v9 = vsel %vm221_vm2, %v213_v60, %v229_v4  ;;  %v238_v10 = vsel %vm222_vm3, %v214_v61, %v230_v5  ;;  %v231_v11 = vmul.f32 0.2, %v215_v62 }
  0x63   : > { %v419_v12 = vpack.c.bf16 %v238_v10, %v237_v9  ;;  %v232_v13 = vmul.f32 0.2, %v216_v63  ;;  %vm225_vm6 = vcmp.ge.f32.partialorder %v217_v0, 0.0  ;;  %vm226_vm7 = vcmp.ge.f32.partialorder %v218_v1, 0.0 }
  0x64   : > { %415 = vst [vmem:[%s147_s16] sm:$0xff] %v414_v8   ;;  %v239_v14 = vsel %vm223_vm4, %v215_v62, %v231_v11  ;;  %v233_v15 = vmul.f32 0.2, %v217_v0  ;;  %v234_v16 = vmul.f32 0.2, %v218_v1 }
  0x65   : > { %434 = vst [vmem:[%s147_s16 + $0x8] sm:$0xff] %v419_v12   ;;  %v240_v17 = vsel %vm224_vm5, %v216_v63, %v232_v13 }
  0x66   : > { %v424_v18 = vpack.c.bf16 %v240_v17, %v239_v14  ;;  %v241_v19 = vsel %vm225_vm6, %v217_v0, %v233_v15  ;;  %v242_v20 = vsel %vm226_vm7, %v218_v1, %v234_v16 }
  0x67   : > { %v429_v21 = vpack.c.bf16 %v242_v20, %v241_v19 }
  0x68   : > { %435 = vst [vmem:[%s147_s16 + $0x10] sm:$0xff] %v424_v18  }
  0x69   : > { %436 = vst [vmem:[%s147_s16 + $0x18] sm:$0xff] %v429_v21  }
  0x6a PF: > { %s11_s8 = sadd.s32 1, %s485_s8   ;;  %s539_s6 = smov %s481_s7 }
  0x6b   : > { %p8_p5 = scmp.ge.s32.totalorder %s11_s8, 4   ;;  %s540_s7 = smov %s542_s9 }
  0x6d   :  { %10 = sbr.rel (!%p8_p5) target bundleno = 2 (0x2), region = 54 }

// kernel: generator_forward.58
= control target key start
LH: loop header
LB: loop body
LE: loop exit
PB: predicated region body
PF: predicated region fallthrough
CT: control target
= control target key end

     0   :  { %s497_s6 = smov 0   ;;  %s499_s7 = smov 0   ;;  %s597_s0 = inlined_call_operand.vmem [shape: bf16[2,16,256], index: 0, kind: input, shape index: {}]   ;;  %s598_s1 = inlined_call_operand.vmem [shape: bf16[2,16,256], index: 1, kind: output, shape index: {}]  }
   0x1   :  { %s501_s8 = smov 0   ;;  %s503_s9 = smov 0  }
   0x2   :  { %s505_s10 = smov 0   ;;  %s507_s11 = smov 0  }
   0x3   :  { %s509_s12 = smov 0  }
   0x4 LB: > { %s20_s13 = sadd.s32 1, %s477_s10  ;;  %s23_s14 = sadd.s32 1, %s481_s11  ;;  %s485_s12 = sphi %s509_s12, %s11_s12   ;;  %s481_s11 = sphi %s507_s11, %s605_s11   ;;  %s477_s10 = sphi %s505_s10, %s604_s10   ;;  %s473_s9 = sphi %s503_s9, %s603_s9   ;;  %s469_s8 = sphi %s501_s8, %s602_s8   ;;  %s465_s7 = sphi %s499_s7, %s601_s7   ;;  %s461_s6 = sphi %s497_s6, %s600_s6  }
   0x5   : > { %p21_p0 = scmp.ge.s32.totalorder %s20_s13, 2  ;;  %s345_s15 = sadd.s32 4294967295, %s485_s12  }
   0x6   : > { %p39_p1 = scmp.ne.s32.totalorder %s465_s7, %s461_s6  ;;  %p40_p2 = scmp.eq.s32.totalorder %s485_s12, 0 }
   0x7   : > { %s607_s13 = smov (%p21_p0, %s20_s13), 0  ;;  %s609_s14 = smov (!%p21_p0, %s23_s14), %s481_s11 }
   0x8   : > { %p25_p3 = scmp.ge.s32.totalorder %s609_s14, 2  ;;  %p71_p4 = scmp.eq.s32.totalorder %s345_s15, 3 }
   0x9   : > { %s28_s16 = ssub.s32 %s477_s10, %s607_s13  ;;  %p41_p5 = por %p40_p2, %p39_p1 }
   0xa   : > { %s611_s14 = smov (%p25_p3, %s609_s14), 0  ;;  %p545_p6 = por %p71_p4, %p39_p1 }
   0xb   : > { %s27_s18 = ssub.s32 %s481_s11, %s611_s14  ;;  %s32_s20 = sadd.s32 1, %s465_s7 }
   0xc   : > { %s29_s19 = sor.u32 %s28_s16, %s27_s18  ;;  %p348_p8 = scmp.ge.s32.totalorder %s485_s12, 4 }
   0xd   : > { %p30_p7 = scmp.eq.s32.totalorder %s29_s19, 0 }
   0xe   : > { %93 = sbr.rel (%p348_p8) target bundleno = 28 (0x1c), region = 16 }
   0xf   : > { %s553_s21 = scalar_select %p30_p7, %s465_s7, %s32_s20  }
  0x15   : > { %96 = sbr.rel (!%p41_p5) target bundleno = 28 (0x1c), region = 20  ;;  %s98_s22 = sand.u32 (%p41_p5), 1, %s465_s7  }
  0x16   : > { %s350_s23 = sshll.u32 (%p41_p5), %s481_s11, 2  ;;  %s349_s24 = sshll.u32 (%p41_p5), %s98_s22, 3 }
  0x17   : > { %s102_s25 = sadd.s32 (%p41_p5), %s477_s10, %s350_s23  ;;  %s100_s30 = scalar_lea.vmem (%p41_p5), [#allocation2], %s349_s24 }
  0x18   : > { %s351_s26 = sshll.u32 (%p41_p5), %s102_s25, 2 }
  0x19   : > { %s104_s29 = scalar_lea.vmem (%p41_p5), %s597_s0, %s351_s26 }
  0x1a   : > { %v120_v0 = vld [vmem:[%s104_s29] sm:$0xf] (%p41_p5)  ;;  %v122_v1 = vld [vmem:[%s104_s29 + $0x8] sm:$0xf] (%p41_p5) }
  0x1b   : > { %121 = vst [vmem:[%s100_s30] sm:$0xf] (%p41_p5), %v120_v0  ;;  %123 = vst [vmem:[%s100_s30 + $0x4] sm:$0xf] (%p41_p5), %v122_v1 }
  0x1c PF: > { %p352_p9 = scmp.ge.s32.totalorder %s485_s12, 1  ;;  %p149_p10 = scmp.lt.s32.totalorder %s485_s12, 5 }
  0x1e   : > { %p150_p11 = pnand %p352_p9, %p149_p10 }
  0x1f   : > { %s156_s2 = sand.u32 (!%p150_p11), 1, %s461_s6  }
  0x20   : > { %153 = sbr.rel (%p150_p11) target bundleno = 102 (0x66), region = 61  ;;  %s565_s3 = sshll.u32 (!%p150_p11), %s156_s2, 3 }
  0x21   : > { %s158_s4 = scalar_lea.vmem (!%p150_p11), [#allocation2], %s565_s3  ;;  %s173_s5 = scalar_lea.vmem (!%p150_p11), [#allocation3], %s565_s3 }
  0x22   : > { %v365_v2 = vld [vmem:[%s158_s4] sm:$0xff] (!%p150_p11)  }
  0x23   : > { %v366_v3 = vunpack.c.l.bf16 (!%p150_p11), %v365_v2  ;;  %v367_v4 = vunpack.c.h.bf16 (!%p150_p11), %v365_v2 }
  0x25   : > { %v178_v5 = vadd.f32 (!%p150_p11), %v367_v4, %v366_v3 }
  0x27   : > { %v179_v6 = vrot.slane %v178_v5, 4  ;;  %s358_s6 = sshll.u32 (%p545_p6), %s473_s9, 2 }
  0x28   : > { %s227_s15 = sadd.s32 (%p545_p6), %s469_s8, %s358_s6 }
  0x29   : > { %v180_v7 = vadd.f32 %v179_v6, %v178_v5  ;;  %s359_s16 = sshll.u32 (%p545_p6), %s227_s15, 2 }
  0x2a   : > { %s229_s20 = scalar_lea.vmem (%p545_p6), %s598_s1, %s359_s16 }
  0x2b   : > { %v181_v8 = vrot.slane %v180_v7, 2 }
  0x2d   : > { %v182_v9 = vadd.f32 %v181_v8, %v180_v7 }
  0x2f   : > { %v183_v10 = vrot.slane %v182_v9, 1 }
  0x31   : > { %v184_v11 = vadd.f32 %v183_v10, %v182_v9 }
  0x33   : > { %v186_v12 = vmul.f32 0.0625, %v184_v11 }
  0x35   : > { %v187_v13 = vsub.f32 %v366_v3, %v186_v12  ;;  %v188_v14 = vsub.f32 %v367_v4, %v186_v12 }
  0x37   : > { %v189_v15 = vmul.f32 %v187_v13, %v187_v13  ;;  %v190_v16 = vmul.f32 %v188_v14, %v188_v14 }
  0x39   : > { %v191_v17 = vadd.f32 %v190_v16, %v189_v15 }
  0x3b   : > { %v192_v18 = vrot.slane %v191_v17, 4 }
  0x3d   : > { %v193_v19 = vadd.f32 %v192_v18, %v191_v17 }
  0x3f   : > { %v194_v20 = vrot.slane %v193_v19, 2 }
  0x41   : > { %v195_v21 = vadd.f32 %v194_v20, %v193_v19 }
  0x43   : > { %v196_v22 = vrot.slane %v195_v21, 1 }
  0x45   : > { %v197_v23 = vadd.f32 %v196_v22, %v195_v21 }
  0x47   : > { %v198_v24 = vmul.f32 0.0625, %v197_v23 }
  0x49   : > { %v199_v25 = vadd.f32 1e-05, %v198_v24 }
  0x4b   : > { %429 = vrsqrt.f32 %v199_v25 }
  0x55   : > { %v430_v26 = vpop.eup %429 }
  0x56   : > { %v201_v27 = vmul.f32 %v430_v26, %v187_v13  ;;  %v202_v28 = vmul.f32 %v430_v26, %v188_v14 }
  0x57   : > { %225 = sbr.rel (!%p545_p6) target bundleno = 102 (0x66), region = 69 }
  0x58   : > { %vm203_vm0 = vcmp.ge.f32.partialorder %v201_v27, 0.0  ;;  %vm204_vm1 = vcmp.ge.f32.partialorder %v202_v28, 0.0  ;;  %v205_v29 = vmul.f32 0.2, %v201_v27  ;;  %v206_v30 = vmul.f32 0.2, %v202_v28 }
  0x5a   : > { %v207_v31 = vsel %vm203_vm0, %v201_v27, %v205_v29  ;;  %v208_v32 = vsel %vm204_vm1, %v202_v28, %v206_v30 }
  0x5b   : > { %v371_v33 = vpack.c.bf16 %v208_v32, %v207_v31 }
  0x5d   : > { %372 = vst [vmem:[%s173_s5] sm:$0xff] %v371_v33  }
  0x64   : > { %v245_v34 = vld [vmem:[%s173_s5] sm:$0xf]  ;;  %v247_v35 = vld [vmem:[%s173_s5 + $0x4] sm:$0xf] }
  0x65   : > { %246 = vst [vmem:[%s229_s20] sm:$0xf] %v245_v34  ;;  %248 = vst [vmem:[%s229_s20 + $0x8] sm:$0xf] %v247_v35 }
  0x66 PF: > { %s11_s12 = sadd.s32 1, %s485_s12   ;;  %s600_s6 = smov %s465_s7 }
  0x67   : > { %p8_p12 = scmp.ge.s32.totalorder %s11_s12, 6   ;;  %s601_s7 = smov %s553_s21 }
  0x68   : > { %s602_s8 = smov %s477_s10  ;;  %s603_s9 = smov %s481_s11 }
  0x69   : > { %s604_s10 = smov %s607_s13  ;;  %s605_s11 = smov %s611_s14 }
  0x6a   :  { %10 = sbr.rel (!%p8_p12) target bundleno = 4 (0x4), region = 141 }

// kernel: generator_forward.57
= control target key start
LH: loop header
LB: loop body
LE: loop exit
PB: predicated region body
PF: predicated region fallthrough
CT: control target
= control target key end

     0   :  { %s1136_s12 = smov 0   ;;  %s1138_s13 = smov 0   ;;  %s1278_s0 = inlined_call_operand.vmem [shape: bf16[20,2,5,128], index: 0, kind: input, shape index: {}]   ;;  %s1279_s1 = inlined_call_operand.vmem [shape: bf16[9,128,256], index: 1, kind: input, shape index: {}]   ;;  %s1280_s2 = inlined_call_operand.vmem [shape: f32[1,256], index: 2, kind: input, shape index: {}]   ;;  %s1281_s3 = inlined_call_operand.vmem [shape: bf16[8,4,256], index: 3, kind: output, shape index: {}]  }
   0x1   :  { %s1140_s14 = smov 0   ;;  %s1142_s15 = smov 0  }
   0x2   :  { %s1144_s16 = smov 0   ;;  %s1146_s17 = smov 0  }
   0x3   :  { %s1148_s18 = smov 0  }
   0x4 LB: > { %s25_s19 = sadd.s32 1, %s1100_s15  ;;  %s28_s20 = sadd.s32 1, %s1104_s16  ;;  %s1112_s18 = sphi %s1148_s18, %s13_s18   ;;  %s1108_s17 = sphi %s1146_s17, %s1287_s17   ;;  %s1104_s16 = sphi %s1144_s16, %s1286_s16   ;;  %s1100_s15 = sphi %s1142_s15, %s1285_s15   ;;  %s1096_s14 = sphi %s1140_s14, %s1284_s14   ;;  %s1092_s13 = sphi %s1138_s13, %s1283_s13   ;;  %s1088_s12 = sphi %s1136_s12, %s1282_s12  }
   0x5   : > { %p26_p0 = scmp.ge.s32.totalorder %s25_s19, 3  ;;  %p825_p1 = scmp.ge.s32.totalorder %s1112_s18, 1 }
   0x6   : > { %p176_p2 = scmp.lt.s32.totalorder %s1112_s18, 25  ;;  %s32_s21 = sadd.s32 1, %s1108_s17 }
   0x7   : > { %s1289_s19 = smov (%p26_p0, %s25_s19), 0  ;;  %s1291_s20 = smov (!%p26_p0, %s28_s20), %s1104_s16 }
   0x8   : > { %p177_p3 = pnand %p825_p1, %p176_p2  ;;  %p30_p4 = scmp.ge.s32.totalorder %s1291_s20, 4 }
   0x9   : > { %s206_s22 = smul.u32 (!%p177_p3), 10, %s1096_s14  ;;  %s826_s23 = sshll.u32 (!%p177_p3), %s1092_s13, 1 }
   0xa   : > { %s1293_s20 = smov (%p30_p4, %s1291_s20), 0  ;;  %s1295_s21 = smov (!%p30_p4, %s32_s21), %s1108_s17 }
   0xb   : > { %p34_p5 = scmp.ge.s32.totalorder %s1295_s21, 2  ;;  %180 = sbr.rel (%p177_p3) target bundleno = 328 (0x148), region = 32 }
   0xc   : > { %s829_s24 = sshll.u32 (!%p177_p3), %s1096_s14, 2  ;;  %s208_s25 = sadd.s32 (!%p177_p3), %s826_s23, %s206_s22 }
   0xd   : > { %s1297_s21 = smov (%p34_p5, %s1295_s21), 0  ;;  %s220_s26 = sadd.s32 (!%p177_p3), %s1092_s13, %s829_s24 }
   0xe   : > { %s209_s27 = sadd.s32 (!%p177_p3), %s1088_s12, %s208_s25  ;;  %p221_p6 = scmp.lt.s32.totalorder (!%p177_p3), %s220_s26, 7 }
   0xf   : > { %p210_p7 = scmp.lt.s32.totalorder (!%p177_p3), %s209_s27, 19  ;;  %p832_p8 = scmp.ne.s32.totalorder (!%p177_p3), %s1088_s12, 0 }
  0x12   : > { %s1299_s26 = smov (!%p221_p6, %s220_s26), 7  ;;  %s1301_s27 = smov (!%p210_p7, %s209_s27), 19 }
  0x13   : > { %s925_s28 = sshll.u32 %s1299_s26, 2  ;;  %s924_s29 = sshll.u32 %s1301_s27, 3  ;;  %v1114_v0 = vmov (!%p832_p8), 0.0  }
  0x14   : > { %s1184_s5 = scalar_lea.vmem %s1281_s3, %s925_s28  ;;  %s1189_s8 = scalar_lea.vmem %s1278_s0, %s924_s29  ;;  %233 = vst [vmem:[#allocation2] sm:$0xff] (!%p832_p8), %v1114_v0 }
  0x15   : > { %232 = sbr.rel (%p832_p8) target bundleno = 28 (0x1c), region = 36 }
  0x1c PF: > { %s926_s9 = smul.u32 384, %s1088_s12  ;;  %v1115_v1 = vmov 0   ;;  %v234_v34 = vld [vmem:[%s1189_s8] sm:$0x3]  ;;  %v851_v39 = vld [vmem:[%s1189_s8 + $0x4] sm:$0x3] }
  0x1d   : > { %368 = vmatprep.mubr.bf16.mxu0 %v1115_v1  ;;  %518 = vmatprep.mubr.bf16.mxu1 %v1115_v1  ;;  %v1057_v47 = vld [vmem:[%s1189_s8] ss:$0 sps:$4 sm:$0x77]   ;;  %p919_p9 = scmp.ne.s32.totalorder %s1088_s12, 2 }
  0x1e   : > { %s1198_s13 = scalar_lea.vmem %s1279_s1, %s926_s9  ;;  %v561_v50 = vshll.u32 %v1057_v47, 16  ;;  %v559_v53 = vshrl.u32 %v1057_v47, 16  ;;  %v255_v58 = vld [vmem:[#allocation2] sm:$0xff] }
  0x1f   : > { %v985_v2 = vld [vmem:[%s1198_s13 + $0x4] ss:$8 sps:$4 sm:$0xff]   ;;  %v987_v3 = vld [vmem:[%s1198_s13] ss:$8 sps:$4 sm:$0xff]   ;;  %v988_v4 = vld [vmem:[%s1198_s13 + $0x14] ss:$8 sps:$4 sm:$0xff]  }
  0x20   : > { %336 = vmatprep.subr.bf16.mxu0 %v985_v2  ;;  %v990_v5 = vld [vmem:[%s1198_s13 + $0x10] ss:$8 sps:$4 sm:$0xff]   ;;  %v991_v6 = vld [vmem:[%s1198_s13 + $0x24] ss:$8 sps:$4 sm:$0xff]   ;;  %v996_v8 = vld [vmem:[%s1198_s13 + $0x80] ss:$8 sps:$4 sm:$0xff]  }
  0x21   : > { %337 = vmatpush1.bf16.msra.mxu0 %v987_v3  ;;  %v994_v7 = vld [vmem:[%s1198_s13 + $0x84] ss:$8 sps:$4 sm:$0xff]   ;;  %v993_v9 = vld [vmem:[%s1198_s13 + $0x20] ss:$8 sps:$4 sm:$0xff]   ;;  %v1000_v10 = vld [vmem:[%s1198_s13 + $0x94] ss:$8 sps:$4 sm:$0xff]  }
  0x22   : > { %338 = vmatprep.subr.bf16.mxu0 %v988_v4  ;;  %486 = vmatprep.subr.bf16.mxu1 %v994_v7  ;;  %v1002_v11 = vld [vmem:[%s1198_s13 + $0x90] ss:$8 sps:$4 sm:$0xff]   ;;  %v997_v12 = vld [vmem:[%s1198_s13 + $0x34] ss:$8 sps:$4 sm:$0xff]   ;;  %v1006_v14 = vld [vmem:[%s1198_s13 + $0xa4] ss:$8 sps:$4 sm:$0xff]  }
  0x23   : > { %487 = vmatpush1.bf16.msra.mxu1 %v996_v8  ;;  %v999_v13 = vld [vmem:[%s1198_s13 + $0x30] ss:$8 sps:$4 sm:$0xff]   ;;  %v1003_v15 = vld [vmem:[%s1198_s13 + $0x44] ss:$8 sps:$4 sm:$0xff]   ;;  %v1008_v16 = vld [vmem:[%s1198_s13 + $0xa0] ss:$8 sps:$4 sm:$0xff]  }
  0x24   : > { %488 = vmatprep.subr.bf16.mxu1 %v1000_v10  ;;  %v1012_v17 = vld [vmem:[%s1198_s13 + $0xb4] ss:$8 sps:$4 sm:$0xff]   ;;  %v1005_v18 = vld [vmem:[%s1198_s13 + $0x40] ss:$8 sps:$4 sm:$0xff]   ;;  %v1014_v20 = vld [vmem:[%s1198_s13 + $0xb0] ss:$8 sps:$4 sm:$0xff]  }
  0x25   : > { %339 = vmatpush1.bf16.msra.mxu0 %v990_v5  ;;  %v1009_v19 = vld [vmem:[%s1198_s13 + $0x54] ss:$8 sps:$4 sm:$0xff]   ;;  %v1018_v21 = vld [vmem:[%s1198_s13 + $0xc4] ss:$8 sps:$4 sm:$0xff]   ;;  %v1011_v22 = vld [vmem:[%s1198_s13 + $0x50] ss:$8 sps:$4 sm:$0xff]  }
  0x26   : > { %340 = vmatprep.subr.bf16.mxu0 %v991_v6  ;;  %v1015_v23 = vld [vmem:[%s1198_s13 + $0x64] ss:$8 sps:$4 sm:$0xff]   ;;  %v1020_v24 = vld [vmem:[%s1198_s13 + $0xc0] ss:$8 sps:$4 sm:$0xff]   ;;  %v1024_v25 = vld [vmem:[%s1198_s13 + $0xd4] ss:$8 sps:$4 sm:$0xff]  }
  0x27   : > { %489 = vmatpush1.bf16.msra.mxu1 %v1002_v11  ;;  %v1017_v26 = vld [vmem:[%s1198_s13 + $0x60] ss:$8 sps:$4 sm:$0xff]   ;;  %v1021_v27 = vld [vmem:[%s1198_s13 + $0x74] ss:$8 sps:$4 sm:$0xff]   ;;  %v1026_v28 = vld [vmem:[%s1198_s13 + $0xd0] ss:$8 sps:$4 sm:$0xff]  }
  0x28   : > { %490 = vmatprep.subr.bf16.mxu1 %v1006_v14  ;;  %v1030_v29 = vld [vmem:[%s1198_s13 + $0xe4] ss:$8 sps:$4 sm:$0xff]   ;;  %v1023_v30 = vld [vmem:[%s1198_s13 + $0x70] ss:$8 sps:$4 sm:$0xff]   ;;  %v1032_v32 = vld [vmem:[%s1198_s13 + $0xe0] ss:$8 sps:$4 sm:$0xff]  }
  0x29   : > { %341 = vmatpush1.bf16.msra.mxu0 %v993_v9  ;;  %v1029_v31 = vld [vmem:[%s1198_s13 + $0x104] ss:$8 sps:$4 sm:$0xff]   ;;  %v1036_v33 = vld [vmem:[%s1198_s13 + $0xf4] ss:$8 sps:$4 sm:$0xff]   ;;  %v1027_v35 = vld [vmem:[%s1198_s13 + $0x100] ss:$8 sps:$4 sm:$0xff]  }
  0x2a   : > { %342 = vmatprep.subr.bf16.mxu0 %v997_v12  ;;  %v1038_v36 = vld [vmem:[%s1198_s13 + $0xf0] ss:$8 sps:$4 sm:$0xff]   ;;  %v1035_v37 = vld [vmem:[%s1198_s13 + $0x114] ss:$8 sps:$4 sm:$0xff]   ;;  %v1041_v40 = vld [vmem:[%s1198_s13 + $0x124] ss:$8 sps:$4 sm:$0xff]   ;;  %v700_v12 = vlaneseq (!%p919_p9) }
  0x2b   : > { %491 = vmatpush1.bf16.msra.mxu1 %v1008_v16  ;;  %v1033_v38 = vld [vmem:[%s1198_s13 + $0x110] ss:$8 sps:$4 sm:$0xff]   ;;  %v1039_v41 = vld [vmem:[%s1198_s13 + $0x120] ss:$8 sps:$4 sm:$0xff]   ;;  %v1044_v42 = vld [vmem:[%s1198_s13 + $0x134] ss:$8 sps:$4 sm:$0xff]  }
  0x2c   : > { %492 = vmatprep.subr.bf16.mxu1 %v1012_v17  ;;  %v1042_v43 = vld [vmem:[%s1198_s13 + $0x130] ss:$8 sps:$4 sm:$0xff]   ;;  %v1047_v44 = vld [vmem:[%s1198_s13 + $0x144] ss:$8 sps:$4 sm:$0xff]   ;;  %v1045_v45 = vld [vmem:[%s1198_s13 + $0x140] ss:$8 sps:$4 sm:$0xff]  }
  0x2d   : > { %343 = vmatpush1.bf16.msra.mxu0 %v999_v13  ;;  %v1050_v46 = vld [vmem:[%s1198_s13 + $0x154] ss:$8 sps:$4 sm:$0xff]   ;;  %v1048_v48 = vld [vmem:[%s1198_s13 + $0x150] ss:$8 sps:$4 sm:$0xff]   ;;  %v1053_v49 = vld [vmem:[%s1198_s13 + $0x164] ss:$8 sps:$4 sm:$0xff]  }
  0x2e   : > { %344 = vmatprep.subr.bf16.mxu0 %v1003_v15  ;;  %v1051_v51 = vld [vmem:[%s1198_s13 + $0x160] ss:$8 sps:$4 sm:$0xff]   ;;  %v1056_v52 = vld [vmem:[%s1198_s13 + $0x174] ss:$8 sps:$4 sm:$0xff]   ;;  %v563_v54 = vrot.slane %v561_v50, 1  ;;  %v701_v13 = vshrl.u32 (!%p919_p9), %v700_v12, 7 }
  0x2f   : > { %493 = vmatpush1.bf16.msra.mxu1 %v1014_v20  ;;  %v1054_v55 = vld [vmem:[%s1198_s13 + $0x170] ss:$8 sps:$4 sm:$0xff]   ;;  %v698_v14 = vld [vmem:[%s1280_s2] sm:$0x3] (!%p919_p9) }
  0x30   : > { %494 = vmatprep.subr.bf16.mxu1 %v1018_v21  ;;  %v564_v56 = vor.u32 %v563_v54, %v559_v53  ;;  %v702_v15 = vsub.s32 (!%p919_p9), 0, %v701_v13  ;;  %v706_v16 = vsub.s32 (!%p919_p9), 1, %v701_v13 }
  0x31   : > { %345 = vmatpush1.bf16.msra.mxu0 %v1005_v18 }
  0x32   : > { %346 = vmatprep.subr.bf16.mxu0 %v1009_v19  ;;  %v703_v17 = vrot.slane (!%p919_p9), %v698_v14, %v702_v15  ;;  %v707_v18 = vrot.slane (!%p919_p9), %v698_v14, %v706_v16 }
  0x33   : > { %495 = vmatpush1.bf16.msra.mxu1 %v1020_v24 }
  0x34   : > { %496 = vmatprep.subr.bf16.mxu1 %v1024_v25  ;;  %v708_v20 = vcombine.low (!%p919_p9), %v703_v17, %v707_v18 }
  0x35   : > { %347 = vmatpush1.bf16.msra.mxu0 %v1011_v22 }
  0x36   : > { %348 = vmatprep.subr.bf16.mxu0 %v1015_v23 }
  0x37   : > { %497 = vmatpush1.bf16.msra.mxu1 %v1026_v28 }
  0x38   : > { %498 = vmatprep.subr.bf16.mxu1 %v1030_v29 }
  0x39   : > { %349 = vmatpush1.bf16.msra.mxu0 %v1017_v26 }
  0x3a   : > { %350 = vmatprep.subr.bf16.mxu0 %v1021_v27 }
  0x3b   : > { %499 = vmatpush1.bf16.msra.mxu1 %v1032_v32 }
  0x3c   : > { %500 = vmatprep.subr.bf16.mxu1 %v1036_v33 }
  0x3d   : > { %351 = vmatpush1.bf16.msra.mxu0 %v1023_v30 }
  0x3e   : > { %646 = vmatprep.subr.bf16.mxu0 %v1029_v31 }
  0x3f   : > { %501 = vmatpush1.bf16.msra.mxu1 %v1038_v36 }
  0x40   : > { %369 = vmatmul.mubr.bf16.vlgmr.msra.gmra.mrb[0].mxu0 %v234_v34 }
  0x41   : > { %647 = vmatpush1.bf16.msra.mxu0 %v1027_v35  ;;  %678 = vmatprep.mubr.bf16.mxu0 %v1115_v1 }
  0x42   : > { %648 = vmatprep.subr.bf16.mxu0 %v1035_v37  ;;  %519 = vmatmul.mubr.bf16.vlgmr.msra.gmra.mrb[0].mxu1 %v851_v39 }
  0x45   : > { %649 = vmatpush1.bf16.msra.mxu0 %v1033_v38 }
  0x46   : > { %650 = vmatprep.subr.bf16.mxu0 %v1041_v40 }
  0x49   : > { %651 = vmatpush1.bf16.msra.mxu0 %v1039_v41 }
  0x4a   : > { %652 = vmatprep.subr.bf16.mxu0 %v1044_v42 }
  0x4d   : > { %653 = vmatpush1.bf16.msra.mxu0 %v1042_v43 }
  0x4e   : > { %654 = vmatprep.subr.bf16.mxu0 %v1047_v44 }
  0x51   : > { %655 = vmatpush1.bf16.msra.mxu0 %v1045_v45 }
  0x52   : > { %656 = vmatprep.subr.bf16.mxu0 %v1050_v46 }
  0x55   : > { %657 = vmatpush1.bf16.msra.mxu0 %v1048_v48 }
  0x56   : > { %658 = vmatprep.subr.bf16.mxu0 %v1053_v49 }
  0x59   : > { %659 = vmatpush1.bf16.msra.mxu0 %v1051_v51 }
  0x5a   : > { %660 = vmatprep.subr.bf16.mxu0 %v1056_v52 }
  0x5d   : > { %661 = vmatpush1.bf16.msra.mxu0 %v1054_v55 }
  0x60   : > { %679 = vmatmul.mubr.bf16.vlgmr.msra.gmra.mrb[4].mxu0 %v564_v56 }
 0x113   : > { %v370_v57 = vpop.f32.mrb[0].mxu0 }
 0x114   : > { %v372_v59 = vpop.f32.mrb[1].mxu0 }
 0x115   : > { %v379_v60 = vcombine.low %v370_v57, %v372_v59  ;;  %v374_v61 = vpop.f32.mrb[2].mxu0  ;;  %v520_v0 = vpop.f32.mrb[0].mxu1 }
 0x116   : > { %v375_v62 = vpop.f32.mrb[3].mxu0  ;;  %v522_v1 = vpop.f32.mrb[1].mxu1 }
 0x117   : > { %v381_v63 = vadd.f32 %v379_v60, %v255_v58  ;;  %v529_v2 = vcombine.low %v520_v0, %v522_v1  ;;  %v524_v3 = vpop.f32.mrb[2].mxu1 }
 0x118   : > { %v525_v4 = vpop.f32.mrb[3].mxu1 }
 0x119   : > { %v531_v5 = vadd.f32 %v529_v2, %v381_v63 }
 0x133   : > { %v680_v6 = vpop.f32.mrb[4].mxu0  ;;  %696 = sbr.rel (%p919_p9) target bundleno = 328 (0x148), region = 40 }
 0x134   : > { %v682_v7 = vpop.f32.mrb[5].mxu0 }
 0x135   : > { %v689_v8 = vcombine.low %v680_v6, %v682_v7  ;;  %v684_v9 = vpop.f32.mrb[6].mxu0 }
 0x136   : > { %v685_v10 = vpop.f32.mrb[7].mxu0 }
 0x137   : > { %v691_v11 = vadd.f32 %v689_v8, %v531_v5 }
 0x139   : > { %692 = vst [vmem:[#allocation2] sm:$0xff] %v691_v11 }
 0x140   : > { %v697_v19 = vld [vmem:[#allocation2] sm:$0xff] }
 0x141   : > { %v710_v21 = vadd.f32 %v708_v20, %v697_v19 }
 0x143   : > { %v712_v22 = vcombine.high %v710_v21, %v710_v21 }
 0x145   : > { %v920_v23 = vpack.c.bf16 %v712_v22, %v710_v21 }
 0x147   : > { %921 = vst.sshfl [vmem:[%s1184_s5] sm:$0x33 pattern:$0x76325410] %v920_v23 }
 0x148 PF: > { %s13_s18 = sadd.s32 1, %s1112_s18   ;;  %s1282_s12 = smov %s1100_s15 }
 0x149   : > { %p10_p10 = scmp.ge.s32.totalorder %s13_s18, 26   ;;  %s1283_s13 = smov %s1104_s16 }
 0x14a   : > { %s1284_s14 = smov %s1108_s17  ;;  %s1285_s15 = smov %s1289_s19 }
 0x14b   : > { %s1286_s16 = smov %s1293_s20  ;;  %s1287_s17 = smov %s1297_s21 }
 0x14c   :  { %12 = sbr.rel (!%p10_p10) target bundleno = 4 (0x4), region = 74 }

// kernel: generator_forward.62
= control target key start
LH: loop header
LB: loop body
LE: loop exit
PB: predicated region body
PF: predicated region fallthrough
CT: control target
= control target key end

     0   :  { %s626_s9 = smov 0   ;;  %s628_s10 = smov 0   ;;  %s741_s0 = inlined_call_operand.vmem [shape: bf16[2,16,256], index: 0, kind: input, shape index: {}]   ;;  %s742_s1 = inlined_call_operand.vmem [shape: bf16[2,16,256], index: 1, kind: input, shape index: {}]   ;;  %s743_s2 = inlined_call_operand.vmem [shape: bf16[2,16,256], index: 2, kind: output, shape index: {}]  }
   0x1   :  { %s630_s11 = smov 0   ;;  %s632_s12 = smov 0  }
   0x2   :  { %s634_s13 = smov 0   ;;  %s636_s14 = smov 0  }
   0x3   :  { %s638_s15 = smov 0  }
   0x4 LB: > { %s21_s16 = sadd.s32 1, %s601_s13  ;;  %s24_s17 = sadd.s32 1, %s605_s14  ;;  %s609_s15 = sphi %s638_s15, %s12_s15   ;;  %s605_s14 = sphi %s636_s14, %s751_s14   ;;  %s601_s13 = sphi %s634_s13, %s750_s13   ;;  %s597_s12 = sphi %s632_s12, %s749_s12   ;;  %s593_s11 = sphi %s630_s11, %s748_s11   ;;  %s589_s10 = sphi %s628_s10, %s747_s10   ;;  %s585_s9 = sphi %s626_s9, %s746_s9  }
   0x5   : > { %p22_p0 = scmp.ge.s32.totalorder %s21_s16, 2  ;;  %s461_s18 = sadd.s32 4294967295, %s609_s15  }
   0x6   : > { %p40_p1 = scmp.ne.s32.totalorder %s589_s10, %s585_s9  ;;  %p41_p2 = scmp.eq.s32.totalorder %s609_s15, 0 }
   0x7   : > { %s753_s16 = smov (%p22_p0, %s21_s16), 0  ;;  %s755_s17 = smov (!%p22_p0, %s24_s17), %s605_s14 }
   0x8   : > { %p26_p3 = scmp.ge.s32.totalorder %s755_s17, 2  ;;  %p100_p4 = scmp.eq.s32.totalorder %s461_s18, 3 }
   0x9   : > { %s29_s19 = ssub.s32 %s601_s13, %s753_s16  ;;  %p672_p5 = por %p41_p2, %p40_p1 }
   0xa   : > { %s757_s17 = smov (%p26_p3, %s755_s17), 0  ;;  %p678_p6 = por %p100_p4, %p40_p1 }
   0xb   : > { %s28_s22 = ssub.s32 %s605_s14, %s757_s17  ;;  %s33_s24 = sadd.s32 1, %s589_s10 }
   0xc   : > { %s30_s23 = sor.u32 %s29_s19, %s28_s22  ;;  %p464_p8 = scmp.ge.s32.totalorder %s609_s15, 4 }
   0xd   : > { %p31_p7 = scmp.eq.s32.totalorder %s30_s23, 0 }
   0xe   : > { %122 = sbr.rel (%p464_p8) target bundleno = 35 (0x23), region = 16 }
   0xf   : > { %s686_s25 = scalar_select %p31_p7, %s589_s10, %s33_s24  }
  0x15   : > { %125 = sbr.rel (!%p672_p5) target bundleno = 28 (0x1c), region = 20  ;;  %s127_s26 = sand.u32 (%p672_p5), 1, %s589_s10  }
  0x16   : > { %s466_s27 = sshll.u32 (%p672_p5), %s605_s14, 2  ;;  %s465_s28 = sshll.u32 (%p672_p5), %s127_s26, 3 }
  0x17   : > { %s131_s29 = sadd.s32 (%p672_p5), %s601_s13, %s466_s27  ;;  %s129_s6 = scalar_lea.vmem (%p672_p5), [#allocation2], %s465_s28 }
  0x18   : > { %s467_s30 = sshll.u32 (%p672_p5), %s131_s29, 2 }
  0x19   : > { %s133_s5 = scalar_lea.vmem (%p672_p5), %s741_s0, %s467_s30 }
  0x1a   : > { %v149_v0 = vld [vmem:[%s133_s5] sm:$0xf] (%p672_p5)  ;;  %v151_v1 = vld [vmem:[%s133_s5 + $0x8] sm:$0xf] (%p672_p5) }
  0x1b   : > { %150 = vst [vmem:[%s129_s6] sm:$0xf] (%p672_p5), %v149_v0  ;;  %152 = vst [vmem:[%s129_s6 + $0x4] sm:$0xf] (%p672_p5), %v151_v1 }
  0x1c PF: > { %179 = sbr.rel (!%p672_p5) target bundleno = 35 (0x23), region = 61  ;;  %s181_s7 = sand.u32 (%p672_p5), 1, %s589_s10  }
  0x1d   : > { %s469_s8 = sshll.u32 (%p672_p5), %s605_s14, 2  ;;  %s468_s18 = sshll.u32 (%p672_p5), %s181_s7, 3 }
  0x1e   : > { %s185_s19 = sadd.s32 (%p672_p5), %s601_s13, %s469_s8  ;;  %s183_s27 = scalar_lea.vmem (%p672_p5), [#allocation3], %s468_s18 }
  0x1f   : > { %s470_s22 = sshll.u32 (%p672_p5), %s185_s19, 2 }
  0x20   : > { %s187_s26 = scalar_lea.vmem (%p672_p5), %s742_s1, %s470_s22 }
  0x21   : > { %v203_v2 = vld [vmem:[%s187_s26] sm:$0xf] (%p672_p5)  ;;  %v205_v3 = vld [vmem:[%s187_s26 + $0x8] sm:$0xf] (%p672_p5) }
  0x22   : > { %204 = vst [vmem:[%s183_s27] sm:$0xf] (%p672_p5), %v203_v2  ;;  %206 = vst [vmem:[%s183_s27 + $0x4] sm:$0xf] (%p672_p5), %v205_v3 }
  0x23 PF: > { %p471_p9 = scmp.ge.s32.totalorder %s609_s15, 1  ;;  %p232_p10 = scmp.lt.s32.totalorder %s609_s15, 5 }
  0x25   : > { %p233_p11 = pnand %p471_p9, %p232_p10 }
  0x26   : > { %s239_s20 = sand.u32 (!%p233_p11), 1, %s585_s9  }
  0x27   : > { %236 = sbr.rel (%p233_p11) target bundleno = 108 (0x6c), region = 102  ;;  %s708_s28 = sshll.u32 (!%p233_p11), %s239_s20, 3 }
  0x28   : > { %s241_s29 = scalar_lea.vmem (!%p233_p11), [#allocation2], %s708_s28  ;;  %s248_s9 = scalar_lea.vmem (!%p233_p11), [#allocation3], %s708_s28 }
  0x29   : > { %v485_v4 = vld [vmem:[%s241_s29] sm:$0xff] (!%p233_p11)   ;;  %v489_v28 = vld [vmem:[%s248_s9] sm:$0xff] (!%p233_p11)   ;;  %s269_s30 = scalar_lea.vmem (!%p233_p11), [#allocation4], %s708_s28 }
  0x2a   : > { %v486_v5 = vunpack.c.l.bf16 (!%p233_p11), %v485_v4  ;;  %v487_v6 = vunpack.c.h.bf16 (!%p233_p11), %v485_v4  ;;  %v490_v29 = vunpack.c.l.bf16 (!%p233_p11), %v489_v28  ;;  %v491_v30 = vunpack.c.h.bf16 (!%p233_p11), %v489_v28 }
  0x2c   : > { %v274_v7 = vadd.f32 (!%p233_p11), %v487_v6, %v486_v5 }
  0x2e   : > { %v275_v8 = vrot.slane %v274_v7, 4  ;;  %s478_s3 = sshll.u32 (%p678_p6), %s597_s12, 2 }
  0x2f   : > { %s323_s4 = sadd.s32 (%p678_p6), %s593_s11, %s478_s3 }
  0x30   : > { %v276_v9 = vadd.f32 %v275_v8, %v274_v7  ;;  %s479_s5 = sshll.u32 (%p678_p6), %s323_s4, 2 }
  0x31   : > { %s325_s8 = scalar_lea.vmem (%p678_p6), %s743_s2, %s479_s5 }
  0x32   : > { %v277_v10 = vrot.slane %v276_v9, 2 }
  0x34   : > { %v278_v11 = vadd.f32 %v277_v10, %v276_v9 }
  0x36   : > { %v279_v12 = vrot.slane %v278_v11, 1 }
  0x38   : > { %v280_v13 = vadd.f32 %v279_v12, %v278_v11 }
  0x3a   : > { %v282_v14 = vmul.f32 0.0625, %v280_v13 }
  0x3c   : > { %v283_v15 = vsub.f32 %v486_v5, %v282_v14  ;;  %v284_v16 = vsub.f32 %v487_v6, %v282_v14 }
  0x3e   : > { %v285_v17 = vmul.f32 %v283_v15, %v283_v15  ;;  %v286_v18 = vmul.f32 %v284_v16, %v284_v16 }
  0x40   : > { %v287_v19 = vadd.f32 %v286_v18, %v285_v17 }
  0x42   : > { %v288_v20 = vrot.slane %v287_v19, 4 }
  0x44   : > { %v289_v21 = vadd.f32 %v288_v20, %v287_v19 }
  0x46   : > { %v290_v22 = vrot.slane %v289_v21, 2 }
  0x48   : > { %v291_v23 = vadd.f32 %v290_v22, %v289_v21 }
  0x4a   : > { %v292_v24 = vrot.slane %v291_v23, 1 }
  0x4c   : > { %v293_v25 = vadd.f32 %v292_v24, %v291_v23 }
  0x4e   : > { %v294_v26 = vmul.f32 0.0625, %v293_v25 }
  0x50   : > { %v295_v27 = vadd.f32 1e-05, %v294_v26 }
  0x52   : > { %553 = vrsqrt.f32 %v295_v27 }
  0x5c   : > { %v554_v31 = vpop.eup %553 }
  0x5d   : > { %v297_v32 = vmul.f32 %v554_v31, %v283_v15  ;;  %v298_v33 = vmul.f32 %v554_v31, %v284_v16  ;;  %321 = sbr.rel (!%p678_p6) target bundleno = 108 (0x6c), region = 114 }
  0x5f   : > { %v303_v34 = vadd.f32 %v490_v29, %v297_v32  ;;  %v304_v35 = vadd.f32 %v491_v30, %v298_v33 }
  0x61   : > { %v495_v36 = vpack.c.bf16 %v304_v35, %v303_v34 }
  0x63   : > { %496 = vst [vmem:[%s269_s30] sm:$0xff] %v495_v36  }
  0x6a   : > { %v341_v37 = vld [vmem:[%s269_s30] sm:$0xf]  ;;  %v343_v38 = vld [vmem:[%s269_s30 + $0x4] sm:$0xf] }
  0x6b   : > { %342 = vst [vmem:[%s325_s8] sm:$0xf] %v341_v37  ;;  %344 = vst [vmem:[%s325_s8 + $0x8] sm:$0xf] %v343_v38 }
  0x6c PF: > { %s12_s15 = sadd.s32 1, %s609_s15   ;;  %s746_s9 = smov %s589_s10 }
  0x6d   : > { %p9_p12 = scmp.ge.s32.totalorder %s12_s15, 6   ;;  %s747_s10 = smov %s686_s25 }
  0x6e   : > { %s748_s11 = smov %s601_s13  ;;  %s749_s12 = smov %s605_s14 }
  0x6f   : > { %s750_s13 = smov %s753_s16  ;;  %s751_s14 = smov %s757_s17 }
  0x70   :  { %11 = sbr.rel (!%p9_p12) target bundleno = 4 (0x4), region = 194 }

// kernel: generator_forward.59
= control target key start
LH: loop header
LB: loop body
LE: loop exit
PB: predicated region body
PF: predicated region fallthrough
CT: control target
= control target key end

     0   :  { %s1597_s12 = smov 0   ;;  %s1599_s13 = smov 0   ;;  %s1802_s0 = inlined_call_operand.vmem [shape: bf16[12,1,6,256], index: 0, kind: input, shape index: {}]   ;;  %s1803_s1 = inlined_call_operand.vmem [shape: bf16[9,256,256], index: 1, kind: input, shape index: {}]   ;;  %s1804_s2 = inlined_call_operand.vmem [shape: f32[1,256], index: 2, kind: input, shape index: {}]   ;;  %s1805_s3 = inlined_call_operand.vmem [shape: bf16[8,4,256], index: 3, kind: output, shape index: {}]  }
   0x1   :  { %s1601_s14 = smov 0   ;;  %s1603_s15 = smov 0  }
   0x2   :  { %s1605_s16 = smov 0   ;;  %s1607_s17 = smov 0  }
   0x3   :  { %s1609_s18 = smov 0  }
   0x4 LB: > { %s25_s19 = sadd.s32 1, %s1562_s15  ;;  %s28_s20 = sadd.s32 1, %s1566_s16  ;;  %s1574_s18 = sphi %s1609_s18, %s13_s18   ;;  %s1570_s17 = sphi %s1607_s17, %s1811_s17   ;;  %s1566_s16 = sphi %s1605_s16, %s1810_s16   ;;  %s1562_s15 = sphi %s1603_s15, %s1809_s15   ;;  %s1558_s14 = sphi %s1601_s14, %s1808_s14   ;;  %s1554_s13 = sphi %s1599_s13, %s1807_s13   ;;  %s1550_s12 = sphi %s1597_s12, %s1806_s12  }
   0x5   : > { %p26_p0 = scmp.ge.s32.totalorder %s25_s19, 3  ;;  %p1128_p1 = scmp.ge.s32.totalorder %s1574_s18, 1 }
   0x6   : > { %p172_p2 = scmp.lt.s32.totalorder %s1574_s18, 25  ;;  %s32_s21 = sadd.s32 1, %s1570_s17 }
   0x7   : > { %s1813_s19 = smov (%p26_p0, %s25_s19), 0  ;;  %s1815_s20 = smov (!%p26_p0, %s28_s20), %s1566_s16 }
   0x8   : > { %p173_p3 = pnand %p1128_p1, %p172_p2  ;;  %p30_p4 = scmp.ge.s32.totalorder %s1815_s20, 4 }
   0x9   : > { %s201_s22 = smul.u32 (!%p173_p3), 6, %s1558_s14  ;;  %s1131_s23 = sshll.u32 (!%p173_p3), %s1558_s14, 2 }
   0xa   : > { %s1817_s20 = smov (%p30_p4, %s1815_s20), 0  ;;  %s1819_s21 = smov (!%p30_p4, %s32_s21), %s1570_s17 }
   0xb   : > { %p34_p5 = scmp.ge.s32.totalorder %s1819_s21, 2  ;;  %176 = sbr.rel (%p173_p3) target bundleno = 392 (0x188), region = 32 }
   0xc   : > { %s213_s24 = sadd.s32 (!%p173_p3), %s1554_s13, %s1131_s23  ;;  %s202_s25 = sadd.s32 (!%p173_p3), %s1554_s13, %s201_s22 }
   0xd   : > { %s1821_s21 = smov (%p34_p5, %s1819_s21), 0  ;;  %p214_p6 = scmp.lt.s32.totalorder (!%p173_p3), %s213_s24, 7 }
   0xe   : > { %s203_s26 = sadd.s32 (!%p173_p3), %s1550_s12, %s202_s25  ;;  %p1134_p8 = scmp.ne.s32.totalorder (!%p173_p3), %s1550_s12, 0 }
   0xf   : > { %p204_p7 = scmp.lt.s32.totalorder (!%p173_p3), %s203_s26, 11 }
  0x12   : > { %s1823_s24 = smov (!%p214_p6, %s213_s24), 7  ;;  %s1825_s26 = smov (!%p204_p7, %s203_s26), 11 }
  0x13   : > { %s1311_s27 = sshll.u32 %s1823_s24, 2  ;;  %s1310_s28 = sshll.u32 %s1825_s26, 3  ;;  %v1576_v0 = vmov (!%p1134_p8), 0.0  }
  0x14   : > { %s1645_s4 = scalar_lea.vmem %s1805_s3, %s1311_s27  ;;  %s1650_s7 = scalar_lea.vmem %s1802_s0, %s1310_s28  ;;  %225 = vst [vmem:[#allocation2] sm:$0xff] (!%p1134_p8), %v1576_v0 }
  0x15   : > { %224 = sbr.rel (%p1134_p8) target bundleno = 28 (0x1c), region = 36 }
  0x1c PF: > { %s1312_s8 = smul.u32 768, %s1550_s12  ;;  %v1655_v1 = vld [vmem:[%s1650_s7] sm:$0x33]  ;;  %p1305_p9 = scmp.ne.s32.totalorder %s1550_s12, 2 }
  0x1d   : > { %v1658_v2 = vld [vmem:[%s1650_s7] sm:$0x77]  ;;  %v1138_v3 = vcombine.high %v1655_v1, %v1655_v1 }
  0x1e   : > { %v1205_v4 = vcombine.high %v1658_v2, %v1658_v2  ;;  %s1667_s11 = scalar_lea.vmem %s1803_s1, %s1312_s8 }
  0x1f   : > { %v1370_v5 = vld [vmem:[%s1667_s11 + $0x4] ss:$8 sps:$4 sm:$0xff]   ;;  %463 = vmatprep.mubr.bf16.mxu0 %v1138_v3  ;;  %v1372_v8 = vld [vmem:[%s1667_s11] ss:$8 sps:$4 sm:$0xff]   ;;  %v1373_v9 = vld [vmem:[%s1667_s11 + $0x14] ss:$8 sps:$4 sm:$0xff]  }
  0x20   : > { %v529_v6 = vshrl.u32 %v1205_v4, 16  ;;  %v531_v7 = vshll.u32 %v1205_v4, 16  ;;  %431 = vmatprep.subr.bf16.mxu0 %v1370_v5  ;;  %v1375_v11 = vld [vmem:[%s1667_s11 + $0x10] ss:$8 sps:$4 sm:$0xff]   ;;  %v1376_v12 = vld [vmem:[%s1667_s11 + $0x24] ss:$8 sps:$4 sm:$0xff]   ;;  %v1204_v4 = vcombine.low %v1658_v2, %v1658_v2 }
  0x21   : > { %432 = vmatpush1.bf16.msra.mxu0 %v1372_v8  ;;  %v1379_v13 = vld [vmem:[%s1667_s11 + $0x104] ss:$8 sps:$4 sm:$0xff]   ;;  %v1381_v15 = vld [vmem:[%s1667_s11 + $0x100] ss:$8 sps:$4 sm:$0xff]   ;;  %v1385_v17 = vld [vmem:[%s1667_s11 + $0x114] ss:$8 sps:$4 sm:$0xff]  }
  0x22   : > { %v533_v10 = vrot.slane %v531_v7, 1  ;;  %433 = vmatprep.subr.bf16.mxu0 %v1373_v9  ;;  %v1378_v16 = vld [vmem:[%s1667_s11 + $0x20] ss:$8 sps:$4 sm:$0xff]   ;;  %697 = vmatprep.subr.bf16.mxu1 %v1379_v13  ;;  %v1387_v18 = vld [vmem:[%s1667_s11 + $0x110] ss:$8 sps:$4 sm:$0xff]  }
  0x23   : > { %698 = vmatpush1.bf16.msra.mxu1 %v1381_v15  ;;  %v1382_v19 = vld [vmem:[%s1667_s11 + $0x34] ss:$8 sps:$4 sm:$0xff]   ;;  %v1384_v20 = vld [vmem:[%s1667_s11 + $0x30] ss:$8 sps:$4 sm:$0xff]   ;;  %v1391_v21 = vld [vmem:[%s1667_s11 + $0x124] ss:$8 sps:$4 sm:$0xff]  }
  0x24   : > { %v534_v14 = vor.u32 %v533_v10, %v529_v6  ;;  %699 = vmatprep.subr.bf16.mxu1 %v1385_v17  ;;  %v1388_v22 = vld [vmem:[%s1667_s11 + $0x44] ss:$8 sps:$4 sm:$0xff]   ;;  %v1393_v23 = vld [vmem:[%s1667_s11 + $0x120] ss:$8 sps:$4 sm:$0xff]   ;;  %v1397_v24 = vld [vmem:[%s1667_s11 + $0x134] ss:$8 sps:$4 sm:$0xff]  }
  0x25   : > { %434 = vmatpush1.bf16.msra.mxu0 %v1375_v11  ;;  %v1390_v25 = vld [vmem:[%s1667_s11 + $0x40] ss:$8 sps:$4 sm:$0xff]   ;;  %v1394_v26 = vld [vmem:[%s1667_s11 + $0x54] ss:$8 sps:$4 sm:$0xff]   ;;  %v1399_v27 = vld [vmem:[%s1667_s11 + $0x130] ss:$8 sps:$4 sm:$0xff]  }
  0x26   : > { %729 = vmatprep.mubr.bf16.mxu1 %v534_v14  ;;  %435 = vmatprep.subr.bf16.mxu0 %v1376_v12  ;;  %v1403_v28 = vld [vmem:[%s1667_s11 + $0x144] ss:$8 sps:$4 sm:$0xff]   ;;  %v1396_v29 = vld [vmem:[%s1667_s11 + $0x50] ss:$8 sps:$4 sm:$0xff]   ;;  %v1405_v31 = vld [vmem:[%s1667_s11 + $0x140] ss:$8 sps:$4 sm:$0xff]   ;;  %v1137_v14 = vcombine.low %v1655_v1, %v1655_v1 }
  0x27   : > { %700 = vmatpush1.bf16.msra.mxu1 %v1387_v18  ;;  %v1400_v30 = vld [vmem:[%s1667_s11 + $0x64] ss:$8 sps:$4 sm:$0xff]   ;;  %v1409_v32 = vld [vmem:[%s1667_s11 + $0x154] ss:$8 sps:$4 sm:$0xff]   ;;  %v1402_v33 = vld [vmem:[%s1667_s11 + $0x60] ss:$8 sps:$4 sm:$0xff]  }
  0x28   : > { %701 = vmatprep.subr.bf16.mxu1 %v1391_v21  ;;  %v1406_v34 = vld [vmem:[%s1667_s11 + $0x74] ss:$8 sps:$4 sm:$0xff]   ;;  %v1411_v35 = vld [vmem:[%s1667_s11 + $0x150] ss:$8 sps:$4 sm:$0xff]   ;;  %v1415_v36 = vld [vmem:[%s1667_s11 + $0x164] ss:$8 sps:$4 sm:$0xff]  }
  0x29   : > { %436 = vmatpush1.bf16.msra.mxu0 %v1378_v16  ;;  %v1408_v37 = vld [vmem:[%s1667_s11 + $0x70] ss:$8 sps:$4 sm:$0xff]   ;;  %v1412_v38 = vld [vmem:[%s1667_s11 + $0x84] ss:$8 sps:$4 sm:$0xff]   ;;  %v1417_v39 = vld [vmem:[%s1667_s11 + $0x160] ss:$8 sps:$4 sm:$0xff]  }
  0x2a   : > { %437 = vmatprep.subr.bf16.mxu0 %v1382_v19  ;;  %v1421_v40 = vld [vmem:[%s1667_s11 + $0x174] ss:$8 sps:$4 sm:$0xff]   ;;  %v1414_v41 = vld [vmem:[%s1667_s11 + $0x80] ss:$8 sps:$4 sm:$0xff]   ;;  %v1423_v43 = vld [vmem:[%s1667_s11 + $0x170] ss:$8 sps:$4 sm:$0xff]  }
  0x2b   : > { %702 = vmatpush1.bf16.msra.mxu1 %v1393_v23  ;;  %v1418_v42 = vld [vmem:[%s1667_s11 + $0x94] ss:$8 sps:$4 sm:$0xff]   ;;  %v1427_v44 = vld [vmem:[%s1667_s11 + $0x184] ss:$8 sps:$4 sm:$0xff]   ;;  %v1420_v45 = vld [vmem:[%s1667_s11 + $0x90] ss:$8 sps:$4 sm:$0xff]  }
  0x2c   : > { %703 = vmatprep.subr.bf16.mxu1 %v1397_v24  ;;  %v1424_v46 = vld [vmem:[%s1667_s11 + $0xa4] ss:$8 sps:$4 sm:$0xff]   ;;  %v1429_v47 = vld [vmem:[%s1667_s11 + $0x180] ss:$8 sps:$4 sm:$0xff]   ;;  %v1433_v48 = vld [vmem:[%s1667_s11 + $0x194] ss:$8 sps:$4 sm:$0xff]  }
  0x2d   : > { %438 = vmatpush1.bf16.msra.mxu0 %v1384_v20  ;;  %v1426_v49 = vld [vmem:[%s1667_s11 + $0xa0] ss:$8 sps:$4 sm:$0xff]   ;;  %v1430_v50 = vld [vmem:[%s1667_s11 + $0xb4] ss:$8 sps:$4 sm:$0xff]   ;;  %v1435_v51 = vld [vmem:[%s1667_s11 + $0x190] ss:$8 sps:$4 sm:$0xff]  }
  0x2e   : > { %439 = vmatprep.subr.bf16.mxu0 %v1388_v22  ;;  %v1439_v52 = vld [vmem:[%s1667_s11 + $0x1a4] ss:$8 sps:$4 sm:$0xff]   ;;  %v1432_v53 = vld [vmem:[%s1667_s11 + $0xb0] ss:$8 sps:$4 sm:$0xff]   ;;  %v1441_v55 = vld [vmem:[%s1667_s11 + $0x1a0] ss:$8 sps:$4 sm:$0xff]  }
  0x2f   : > { %704 = vmatpush1.bf16.msra.mxu1 %v1399_v27  ;;  %v1436_v54 = vld [vmem:[%s1667_s11 + $0xc4] ss:$8 sps:$4 sm:$0xff]   ;;  %v1445_v56 = vld [vmem:[%s1667_s11 + $0x1b4] ss:$8 sps:$4 sm:$0xff]   ;;  %v1438_v57 = vld [vmem:[%s1667_s11 + $0xc0] ss:$8 sps:$4 sm:$0xff]  }
  0x30   : > { %705 = vmatprep.subr.bf16.mxu1 %v1403_v28  ;;  %v1442_v58 = vld [vmem:[%s1667_s11 + $0xd4] ss:$8 sps:$4 sm:$0xff]   ;;  %v1447_v59 = vld [vmem:[%s1667_s11 + $0x1b0] ss:$8 sps:$4 sm:$0xff]   ;;  %v1451_v60 = vld [vmem:[%s1667_s11 + $0x1c4] ss:$8 sps:$4 sm:$0xff]  }
  0x31   : > { %440 = vmatpush1.bf16.msra.mxu0 %v1390_v25  ;;  %v1444_v61 = vld [vmem:[%s1667_s11 + $0xd0] ss:$8 sps:$4 sm:$0xff]   ;;  %v1448_v62 = vld [vmem:[%s1667_s11 + $0xe4] ss:$8 sps:$4 sm:$0xff]   ;;  %v1453_v63 = vld [vmem:[%s1667_s11 + $0x1c0] ss:$8 sps:$4 sm:$0xff]  }
  0x32   : > { %441 = vmatprep.subr.bf16.mxu0 %v1394_v26  ;;  %v1457_v0 = vld [vmem:[%s1667_s11 + $0x1d4] ss:$8 sps:$4 sm:$0xff]   ;;  %v1450_v3 = vld [vmem:[%s1667_s11 + $0xe0] ss:$8 sps:$4 sm:$0xff]   ;;  %v1461_v6 = vld [vmem:[%s1667_s11 + $0x1d0] ss:$8 sps:$4 sm:$0xff]  }
  0x33   : > { %706 = vmatpush1.bf16.msra.mxu1 %v1405_v31  ;;  %v1454_v5 = vld [vmem:[%s1667_s11 + $0xf4] ss:$8 sps:$4 sm:$0xff]   ;;  %v1465_v7 = vld [vmem:[%s1667_s11 + $0x1e4] ss:$8 sps:$4 sm:$0xff]   ;;  %v1456_v9 = vld [vmem:[%s1667_s11 + $0xf0] ss:$8 sps:$4 sm:$0xff]  }
  0x34   : > { %707 = vmatprep.subr.bf16.mxu1 %v1409_v32  ;;  %v1732_v8 = vld [vmem:[%s1650_s7] sm:$0x66]  ;;  %v524_v10 = vshll.u32 %v1204_v4, 16  ;;  %v1471_v2 = vld [vmem:[%s1667_s11 + $0x1f4] ss:$8 sps:$4 sm:$0xff]   ;;  %v522_v15 = vshrl.u32 %v1204_v4, 16 }
  0x35   : > { %442 = vmatpush1.bf16.msra.mxu0 %v1396_v29  ;;  %v1464_v11 = vld [vmem:[%s1667_s11 + $0x204] ss:$8 sps:$4 sm:$0xff]   ;;  %v1467_v12 = vld [vmem:[%s1667_s11 + $0x1e0] ss:$8 sps:$4 sm:$0xff]   ;;  %v1272_v13 = vcombine.high %v1732_v8, %v1732_v8  ;;  %v1473_v18 = vld [vmem:[%s1667_s11 + $0x1f0] ss:$8 sps:$4 sm:$0xff]  }
  0x36   : > { %443 = vmatprep.subr.bf16.mxu0 %v1400_v30  ;;  %v526_v16 = vrot.slane %v524_v10, 1  ;;  %v1462_v17 = vld [vmem:[%s1667_s11 + $0x200] ss:$8 sps:$4 sm:$0xff]   ;;  %v1470_v19 = vld [vmem:[%s1667_s11 + $0x214] ss:$8 sps:$4 sm:$0xff]  }
  0x37   : > { %708 = vmatpush1.bf16.msra.mxu1 %v1411_v35  ;;  %v788_v20 = vrot.slane %v1272_v13, 1  ;;  %v1468_v1 = vld [vmem:[%s1667_s11 + $0x210] ss:$8 sps:$4 sm:$0xff]   ;;  %v1476_v22 = vld [vmem:[%s1667_s11 + $0x224] ss:$8 sps:$4 sm:$0xff]  }
  0x38   : > { %709 = vmatprep.subr.bf16.mxu1 %v1415_v36  ;;  %v527_v21 = vor.u32 %v526_v16, %v522_v15  ;;  %v1474_v23 = vld [vmem:[%s1667_s11 + $0x220] ss:$8 sps:$4 sm:$0xff]   ;;  %v1481_v24 = vld [vmem:[%s1667_s11 + $0x234] ss:$8 sps:$4 sm:$0xff]   ;;  %v1479_v25 = vld [vmem:[%s1667_s11 + $0x230] ss:$8 sps:$4 sm:$0xff]  }
  0x39   : > { %444 = vmatpush1.bf16.msra.mxu0 %v1402_v33  ;;  %v1484_v26 = vld [vmem:[%s1667_s11 + $0x244] ss:$8 sps:$4 sm:$0xff]   ;;  %v1482_v27 = vld [vmem:[%s1667_s11 + $0x240] ss:$8 sps:$4 sm:$0xff]   ;;  %v1487_v28 = vld [vmem:[%s1667_s11 + $0x254] ss:$8 sps:$4 sm:$0xff]  }
  0x3a   : > { %445 = vmatprep.subr.bf16.mxu0 %v1406_v34  ;;  %v1485_v29 = vld [vmem:[%s1667_s11 + $0x250] ss:$8 sps:$4 sm:$0xff]   ;;  %v1490_v30 = vld [vmem:[%s1667_s11 + $0x264] ss:$8 sps:$4 sm:$0xff]   ;;  %v1488_v31 = vld [vmem:[%s1667_s11 + $0x260] ss:$8 sps:$4 sm:$0xff]  }
  0x3b   : > { %710 = vmatpush1.bf16.msra.mxu1 %v1417_v39  ;;  %v1493_v32 = vld [vmem:[%s1667_s11 + $0x274] ss:$8 sps:$4 sm:$0xff]   ;;  %v1491_v33 = vld [vmem:[%s1667_s11 + $0x270] ss:$8 sps:$4 sm:$0xff]   ;;  %v1496_v34 = vld [vmem:[%s1667_s11 + $0x284] ss:$8 sps:$4 sm:$0xff]  }
  0x3c   : > { %711 = vmatprep.subr.bf16.mxu1 %v1421_v40  ;;  %v1494_v35 = vld [vmem:[%s1667_s11 + $0x280] ss:$8 sps:$4 sm:$0xff]   ;;  %v1499_v36 = vld [vmem:[%s1667_s11 + $0x294] ss:$8 sps:$4 sm:$0xff]  }
  0x3d   : > { %446 = vmatpush1.bf16.msra.mxu0 %v1408_v37  ;;  %v1497_v37 = vld [vmem:[%s1667_s11 + $0x290] ss:$8 sps:$4 sm:$0xff]   ;;  %v1500_v39 = vld [vmem:[%s1667_s11 + $0x2a0] ss:$8 sps:$4 sm:$0xff]   ;;  %v1505_v40 = vld [vmem:[%s1667_s11 + $0x2b4] ss:$8 sps:$4 sm:$0xff]  }
  0x3e   : > { %447 = vmatprep.subr.bf16.mxu0 %v1412_v38  ;;  %v1502_v38 = vld [vmem:[%s1667_s11 + $0x2a4] ss:$8 sps:$4 sm:$0xff]  }
  0x3f   : > { %712 = vmatpush1.bf16.msra.mxu1 %v1423_v43  ;;  %v1506_v43 = vld [vmem:[%s1667_s11 + $0x2c0] ss:$8 sps:$4 sm:$0xff]  }
  0x40   : > { %713 = vmatprep.subr.bf16.mxu1 %v1427_v44  ;;  %v1511_v44 = vld [vmem:[%s1667_s11 + $0x2d4] ss:$8 sps:$4 sm:$0xff]  }
  0x41   : > { %448 = vmatpush1.bf16.msra.mxu0 %v1414_v41  ;;  %v1503_v41 = vld [vmem:[%s1667_s11 + $0x2b0] ss:$8 sps:$4 sm:$0xff]  }
  0x42   : > { %449 = vmatprep.subr.bf16.mxu0 %v1418_v42  ;;  %v1508_v42 = vld [vmem:[%s1667_s11 + $0x2c4] ss:$8 sps:$4 sm:$0xff]  }
  0x43   : > { %714 = vmatpush1.bf16.msra.mxu1 %v1429_v47  ;;  %v1512_v47 = vld [vmem:[%s1667_s11 + $0x2e0] ss:$8 sps:$4 sm:$0xff]  }
  0x44   : > { %715 = vmatprep.subr.bf16.mxu1 %v1433_v48  ;;  %v1517_v48 = vld [vmem:[%s1667_s11 + $0x2f4] ss:$8 sps:$4 sm:$0xff]  }
  0x45   : > { %450 = vmatpush1.bf16.msra.mxu0 %v1420_v45  ;;  %v1509_v45 = vld [vmem:[%s1667_s11 + $0x2d0] ss:$8 sps:$4 sm:$0xff]  }
  0x46   : > { %451 = vmatprep.subr.bf16.mxu0 %v1424_v46  ;;  %v1514_v46 = vld [vmem:[%s1667_s11 + $0x2e4] ss:$8 sps:$4 sm:$0xff]  }
  0x47   : > { %716 = vmatpush1.bf16.msra.mxu1 %v1435_v51 }
  0x48   : > { %717 = vmatprep.subr.bf16.mxu1 %v1439_v52 }
  0x49   : > { %452 = vmatpush1.bf16.msra.mxu0 %v1426_v49  ;;  %v1271_v49 = vcombine.low %v1732_v8, %v1732_v8 }
  0x4a   : > { %453 = vmatprep.subr.bf16.mxu0 %v1430_v50  ;;  %v1515_v50 = vld [vmem:[%s1667_s11 + $0x2f0] ss:$8 sps:$4 sm:$0xff]  }
  0x4b   : > { %718 = vmatpush1.bf16.msra.mxu1 %v1441_v55  ;;  %v787_v51 = vrot.slane %v1271_v49, 1 }
  0x4c   : > { %719 = vmatprep.subr.bf16.mxu1 %v1445_v56 }
  0x4d   : > { %454 = vmatpush1.bf16.msra.mxu0 %v1432_v53  ;;  %v263_v53 = vld [vmem:[#allocation2] sm:$0xff] }
  0x4e   : > { %455 = vmatprep.subr.bf16.mxu0 %v1436_v54 }
  0x4f   : > { %720 = vmatpush1.bf16.msra.mxu1 %v1447_v59 }
  0x50   : > { %721 = vmatprep.subr.bf16.mxu1 %v1451_v60 }
  0x51   : > { %456 = vmatpush1.bf16.msra.mxu0 %v1438_v57 }
  0x52   : > { %457 = vmatprep.subr.bf16.mxu0 %v1442_v58 }
  0x53   : > { %722 = vmatpush1.bf16.msra.mxu1 %v1453_v63 }
  0x54   : > { %723 = vmatprep.subr.bf16.mxu1 %v1457_v0 }
  0x55   : > { %458 = vmatpush1.bf16.msra.mxu0 %v1444_v61 }
  0x56   : > { %459 = vmatprep.subr.bf16.mxu0 %v1448_v62 }
  0x57   : > { %724 = vmatpush1.bf16.msra.mxu1 %v1461_v6 }
  0x58   : > { %725 = vmatprep.subr.bf16.mxu1 %v1465_v7 }
  0x59   : > { %460 = vmatpush1.bf16.msra.mxu0 %v1450_v3 }
  0x5a   : > { %461 = vmatprep.subr.bf16.mxu0 %v1454_v5 }
  0x5b   : > { %726 = vmatpush1.bf16.msra.mxu1 %v1467_v12 }
  0x5c   : > { %727 = vmatprep.subr.bf16.mxu1 %v1471_v2 }
  0x5d   : > { %462 = vmatpush1.bf16.msra.mxu0 %v1456_v9  ;;  %v1005_v9 = vlaneseq (!%p1305_p9) }
  0x5e   : > { %951 = vmatprep.subr.bf16.mxu0 %v1464_v11  ;;  %v1003_v11 = vld [vmem:[%s1804_s2] sm:$0x3] (!%p1305_p9) }
  0x5f   : > { %728 = vmatpush1.bf16.msra.mxu1 %v1473_v18  ;;  %v1006_v10 = vshrl.u32 (!%p1305_p9), %v1005_v9, 7 }
  0x60   : > { %464 = vmatmul.mubr.bf16.vlgmr.msra.gmra.mrb[0].mxu0 %v1137_v14 }
  0x61   : > { %952 = vmatpush1.bf16.msra.mxu0 %v1462_v17  ;;  %983 = vmatprep.mubr.bf16.mxu0 %v788_v20  ;;  %v1007_v12 = vsub.s32 (!%p1305_p9), 0, %v1006_v10  ;;  %v1011_v2 = vsub.s32 (!%p1305_p9), 1, %v1006_v10 }
  0x62   : > { %953 = vmatprep.subr.bf16.mxu0 %v1470_v19  ;;  %730 = vmatmul.mubr.bf16.vlgmr.msra.gmra.mrb[0].mxu1 %v527_v21 }
  0x63   : > { %v1008_v13 = vrot.slane (!%p1305_p9), %v1003_v11, %v1007_v12  ;;  %v1012_v14 = vrot.slane (!%p1305_p9), %v1003_v11, %v1011_v2 }
  0x65   : > { %954 = vmatpush1.bf16.msra.mxu0 %v1468_v1  ;;  %v1013_v16 = vcombine.low (!%p1305_p9), %v1008_v13, %v1012_v14 }
  0x66   : > { %955 = vmatprep.subr.bf16.mxu0 %v1476_v22 }
  0x69   : > { %956 = vmatpush1.bf16.msra.mxu0 %v1474_v23 }
  0x6a   : > { %957 = vmatprep.subr.bf16.mxu0 %v1481_v24 }
  0x6d   : > { %958 = vmatpush1.bf16.msra.mxu0 %v1479_v25 }
  0x6e   : > { %959 = vmatprep.subr.bf16.mxu0 %v1484_v26 }
  0x71   : > { %960 = vmatpush1.bf16.msra.mxu0 %v1482_v27 }
  0x72   : > { %961 = vmatprep.subr.bf16.mxu0 %v1487_v28 }
  0x75   : > { %962 = vmatpush1.bf16.msra.mxu0 %v1485_v29 }
  0x76   : > { %963 = vmatprep.subr.bf16.mxu0 %v1490_v30 }
  0x79   : > { %964 = vmatpush1.bf16.msra.mxu0 %v1488_v31 }
  0x7a   : > { %965 = vmatprep.subr.bf16.mxu0 %v1493_v32 }
  0x7d   : > { %966 = vmatpush1.bf16.msra.mxu0 %v1491_v33 }
  0x7e   : > { %967 = vmatprep.subr.bf16.mxu0 %v1496_v34 }
  0x81   : > { %968 = vmatpush1.bf16.msra.mxu0 %v1494_v35 }
  0x82   : > { %969 = vmatprep.subr.bf16.mxu0 %v1499_v36 }
  0x85   : > { %970 = vmatpush1.bf16.msra.mxu0 %v1497_v37 }
  0x86   : > { %971 = vmatprep.subr.bf16.mxu0 %v1502_v38 }
  0x89   : > { %972 = vmatpush1.bf16.msra.mxu0 %v1500_v39 }
  0x8a   : > { %973 = vmatprep.subr.bf16.mxu0 %v1505_v40 }
  0x8d   : > { %974 = vmatpush1.bf16.msra.mxu0 %v1503_v41 }
  0x8e   : > { %975 = vmatprep.subr.bf16.mxu0 %v1508_v42 }
  0x91   : > { %976 = vmatpush1.bf16.msra.mxu0 %v1506_v43 }
  0x92   : > { %977 = vmatprep.subr.bf16.mxu0 %v1511_v44 }
  0x95   : > { %978 = vmatpush1.bf16.msra.mxu0 %v1509_v45 }
  0x96   : > { %979 = vmatprep.subr.bf16.mxu0 %v1514_v46 }
  0x99   : > { %980 = vmatpush1.bf16.msra.mxu0 %v1512_v47 }
  0x9a   : > { %981 = vmatprep.subr.bf16.mxu0 %v1517_v48 }
  0x9d   : > { %982 = vmatpush1.bf16.msra.mxu0 %v1515_v50 }
  0xa0   : > { %984 = vmatmul.mubr.bf16.vlgmr.msra.gmra.mrb[4].mxu0 %v787_v51 }
 0x133   : > { %v465_v52 = vpop.f32.mrb[0].mxu0 }
 0x134   : > { %v467_v54 = vpop.f32.mrb[1].mxu0 }
 0x135   : > { %v474_v55 = vcombine.low %v465_v52, %v467_v54  ;;  %v469_v56 = vpop.f32.mrb[2].mxu0  ;;  %v731_v59 = vpop.f32.mrb[0].mxu1 }
 0x136   : > { %v470_v57 = vpop.f32.mrb[3].mxu0  ;;  %v733_v60 = vpop.f32.mrb[1].mxu1 }
 0x137   : > { %v476_v58 = vadd.f32 %v474_v55, %v263_v53  ;;  %v740_v61 = vcombine.low %v731_v59, %v733_v60  ;;  %v735_v62 = vpop.f32.mrb[2].mxu1 }
 0x138   : > { %v736_v63 = vpop.f32.mrb[3].mxu1 }
 0x139   : > { %v742_v0 = vadd.f32 %v740_v61, %v476_v58 }
 0x173   : > { %v985_v3 = vpop.f32.mrb[4].mxu0  ;;  %1001 = sbr.rel (%p1305_p9) target bundleno = 392 (0x188), region = 40 }
 0x174   : > { %v987_v4 = vpop.f32.mrb[5].mxu0 }
 0x175   : > { %v994_v5 = vcombine.low %v985_v3, %v987_v4  ;;  %v989_v6 = vpop.f32.mrb[6].mxu0 }
 0x176   : > { %v990_v7 = vpop.f32.mrb[7].mxu0 }
 0x177   : > { %v996_v8 = vadd.f32 %v994_v5, %v742_v0 }
 0x179   : > { %997 = vst [vmem:[#allocation2] sm:$0xff] %v996_v8 }
 0x180   : > { %v1002_v15 = vld [vmem:[#allocation2] sm:$0xff] }
 0x181   : > { %v1015_v17 = vadd.f32 %v1013_v16, %v1002_v15 }
 0x183   : > { %v1017_v18 = vcombine.high %v1015_v17, %v1015_v17 }
 0x185   : > { %v1306_v19 = vpack.c.bf16 %v1017_v18, %v1015_v17 }
 0x187   : > { %1307 = vst.sshfl [vmem:[%s1645_s4] sm:$0x33 pattern:$0x76325410] %v1306_v19 }
 0x188 PF: > { %s13_s18 = sadd.s32 1, %s1574_s18   ;;  %s1806_s12 = smov %s1562_s15 }
 0x189   : > { %p10_p10 = scmp.ge.s32.totalorder %s13_s18, 26   ;;  %s1807_s13 = smov %s1566_s16 }
 0x18a   : > { %s1808_s14 = smov %s1570_s17  ;;  %s1809_s15 = smov %s1813_s19 }
 0x18b   : > { %s1810_s16 = smov %s1817_s20  ;;  %s1811_s17 = smov %s1821_s21 }
 0x18c   :  { %12 = sbr.rel (!%p10_p10) target bundleno = 4 (0x4), region = 73 }

// kernel: generator_forward.98
= control target key start
LH: loop header
LB: loop body
LE: loop exit
PB: predicated region body
PF: predicated region fallthrough
CT: control target
= control target key end

     0   :  { %s1010_s12 = smov 0   ;;  %s1012_s13 = smov 0   ;;  %s1134_s0 = inlined_call_operand.vmem [shape: bf16[10,1,5,256], index: 0, kind: input, shape index: {}]   ;;  %s1135_s1 = inlined_call_operand.vmem [shape: bf16[4,256,128], index: 1, kind: input, shape index: {}]   ;;  %s1136_s2 = inlined_call_operand.vmem [shape: f32[1,128], index: 2, kind: input, shape index: {}]   ;;  %s1137_s3 = inlined_call_operand.vmem [shape: bf16[8,4,128], index: 3, kind: output, shape index: {}]  }
   0x1   :  { %s1014_s14 = smov 0   ;;  %s1016_s15 = smov 0  }
   0x2   :  { %s1018_s16 = smov 0   ;;  %s1020_s17 = smov 0  }
   0x3   :  { %s1022_s18 = smov 0  }
   0x4 LB: > { %s25_s19 = sadd.s32 1, %s975_s15  ;;  %s28_s20 = sadd.s32 1, %s979_s16  ;;  %s987_s18 = sphi %s1022_s18, %s13_s18   ;;  %s983_s17 = sphi %s1020_s17, %s1143_s17   ;;  %s979_s16 = sphi %s1018_s16, %s1142_s16   ;;  %s975_s15 = sphi %s1016_s15, %s1141_s15   ;;  %s971_s14 = sphi %s1014_s14, %s1140_s14   ;;  %s967_s13 = sphi %s1012_s13, %s1139_s13   ;;  %s963_s12 = sphi %s1010_s12, %s1138_s12  }
   0x5   : > { %p26_p0 = scmp.ge.s32.totalorder %s25_s19, 2  ;;  %p709_p1 = scmp.ge.s32.totalorder %s987_s18, 1 }
   0x6   : > { %p172_p2 = scmp.lt.s32.totalorder %s987_s18, 17  ;;  %s32_s21 = sadd.s32 1, %s983_s17 }
   0x7   : > { %s1145_s19 = smov (%p26_p0, %s25_s19), 0  ;;  %s1147_s20 = smov (!%p26_p0, %s28_s20), %s979_s16 }
   0x8   : > { %p173_p3 = pnand %p709_p1, %p172_p2  ;;  %p30_p4 = scmp.ge.s32.totalorder %s1147_s20, 4 }
   0x9   : > { %s200_s22 = smul.u32 (!%p173_p3), 5, %s971_s14  ;;  %s712_s23 = sshll.u32 (!%p173_p3), %s971_s14, 2 }
   0xa   : > { %s1149_s20 = smov (%p30_p4, %s1147_s20), 0  ;;  %s1151_s21 = smov (!%p30_p4, %s32_s21), %s983_s17 }
   0xb   : > { %p34_p5 = scmp.ge.s32.totalorder %s1151_s21, 2  ;;  %176 = sbr.rel (%p173_p3) target bundleno = 303 (0x12f), region = 32 }
   0xc   : > { %s212_s24 = sadd.s32 (!%p173_p3), %s967_s13, %s712_s23  ;;  %s201_s25 = sadd.s32 (!%p173_p3), %s967_s13, %s200_s22 }
   0xd   : > { %s1153_s21 = smov (%p34_p5, %s1151_s21), 0  ;;  %p213_p6 = scmp.lt.s32.totalorder (!%p173_p3), %s212_s24, 7 }
   0xe   : > { %s202_s26 = sadd.s32 (!%p173_p3), %s963_s12, %s201_s25  ;;  %p714_p8 = scmp.ne.s32.totalorder (!%p173_p3), %s963_s12, 0 }
   0xf   : > { %p203_p7 = scmp.lt.s32.totalorder (!%p173_p3), %s202_s26, 9 }
  0x12   : > { %s1155_s24 = smov (!%p213_p6, %s212_s24), 7  ;;  %s1157_s26 = smov (!%p203_p7, %s202_s26), 9 }
  0x13   : > { %s713_s27 = sshll.u32 %s1155_s24, 1  ;;  %s792_s28 = sshll.u32 %s1157_s26, 3  ;;  %v989_v0 = vmov (!%p714_p8), 0.0  }
  0x14   : > { %s1058_s4 = scalar_lea.vmem %s1137_s3, %s713_s27  ;;  %s207_s7 = scalar_lea.vmem %s1134_s0, %s792_s28  ;;  %224 = vst [vmem:[#allocation2] sm:$0xf] (!%p714_p8), %v989_v0 }
  0x15   : > { %223 = sbr.rel (%p714_p8) target bundleno = 28 (0x1c), region = 36 }
  0x1c PF: > { %s794_s8 = sshll.u32 %s963_s12, 8  ;;  %v1065_v1 = vld [vmem:[%s207_s7] sm:$0x33]  ;;  %p788_p9 = scmp.ne.s32.totalorder %s963_s12, 1 }
  0x1d   : > { %v408_v2 = vld [vmem:[%s207_s7] sm:$0x77]  ;;  %s1070_s11 = scalar_lea.vmem %s1135_s1, %s794_s8  ;;  %v719_v3 = vcombine.high %v1065_v1, %v1065_v1  ;;  %v718_v41 = vcombine.low %v1065_v1, %v1065_v1 }
  0x1e   : > { %v771_v4 = vcombine.high %v408_v2, %v408_v2  ;;  %v897_v5 = vld [vmem:[%s1070_s11 + $0x40] sm:$0xff]   ;;  %v899_v8 = vld [vmem:[%s1070_s11 + $0x48] sm:$0xff]   ;;  %v902_v13 = vld [vmem:[%s1070_s11 + $0x50] sm:$0xff]   ;;  %v770_v33 = vcombine.low %v408_v2, %v408_v2 }
  0x1f   : > { %v898_v6 = vld [vmem:[%s1070_s11] sm:$0xff]   ;;  %398 = vmatprep.mubr.bf16.mxu0 %v719_v3  ;;  %796 = vmatprep.subr.bf16.mxu0 %v897_v5  ;;  %v900_v10 = vld [vmem:[%s1070_s11 + $0x8] sm:$0xff]   ;;  %v904_v16 = vld [vmem:[%s1070_s11 + $0x10] sm:$0xff]  }
  0x20   : > { %v459_v7 = vshrl.u32 %v771_v4, 16  ;;  %v461_v9 = vshll.u32 %v771_v4, 16  ;;  %797 = vmatpush3.bf16.msra.mxu0 %v898_v6  ;;  %v901_v11 = vld [vmem:[%s1070_s11 + $0xc0] sm:$0xff]   ;;  %v905_v17 = vld [vmem:[%s1070_s11 + $0xc8] sm:$0xff]   ;;  %v906_v18 = vld [vmem:[%s1070_s11 + $0x58] sm:$0xff]   ;;  %v454_v38 = vshll.u32 %v770_v33, 16 }
  0x21   : > { %798 = vmatprep.subr.bf16.mxu0 %v899_v8  ;;  %818 = vmatprep.subr.bf16.mxu1 %v901_v11  ;;  %v903_v14 = vld [vmem:[%s1070_s11 + $0x80] sm:$0xff]   ;;  %v907_v19 = vld [vmem:[%s1070_s11 + $0x88] sm:$0xff]   ;;  %v908_v20 = vld [vmem:[%s1070_s11 + $0x18] sm:$0xff]   ;;  %v452_v43 = vshrl.u32 %v770_v33, 16 }
  0x22   : > { %v463_v12 = vrot.slane %v461_v9, 1  ;;  %819 = vmatpush3.bf16.msra.mxu1 %v903_v14  ;;  %v909_v21 = vld [vmem:[%s1070_s11 + $0xd0] sm:$0xff]   ;;  %v910_v22 = vld [vmem:[%s1070_s11 + $0x60] sm:$0xff]   ;;  %v913_v25 = vld [vmem:[%s1070_s11 + $0xd8] sm:$0xff]   ;;  %v456_v44 = vrot.slane %v454_v38, 1 }
  0x23   : > { %820 = vmatprep.subr.bf16.mxu1 %v905_v17  ;;  %v911_v23 = vld [vmem:[%s1070_s11 + $0x90] sm:$0xff]   ;;  %v912_v24 = vld [vmem:[%s1070_s11 + $0x20] sm:$0xff]   ;;  %v914_v26 = vld [vmem:[%s1070_s11 + $0x68] sm:$0xff]  }
  0x24   : > { %v464_v15 = vor.u32 %v463_v12, %v459_v7  ;;  %799 = vmatpush3.bf16.msra.mxu0 %v900_v10  ;;  %v915_v27 = vld [vmem:[%s1070_s11 + $0x98] sm:$0xff]   ;;  %v916_v28 = vld [vmem:[%s1070_s11 + $0x28] sm:$0xff]   ;;  %v917_v29 = vld [vmem:[%s1070_s11 + $0xe0] sm:$0xff]   ;;  %v457_v46 = vor.u32 %v456_v44, %v452_v43 }
  0x25   : > { %800 = vmatprep.subr.bf16.mxu0 %v902_v13  ;;  %v918_v30 = vld [vmem:[%s1070_s11 + $0x70] sm:$0xff]   ;;  %v919_v31 = vld [vmem:[%s1070_s11 + $0xa0] sm:$0xff]   ;;  %v921_v34 = vld [vmem:[%s1070_s11 + $0xe8] sm:$0xff]  }
  0x26   : > { %595 = vmatprep.mubr.bf16.mxu1 %v464_v15  ;;  %821 = vmatpush3.bf16.msra.mxu1 %v907_v19  ;;  %v920_v32 = vld [vmem:[%s1070_s11 + $0x30] sm:$0xff]   ;;  %v922_v35 = vld [vmem:[%s1070_s11 + $0x78] sm:$0xff]   ;;  %v923_v36 = vld [vmem:[%s1070_s11 + $0xa8] sm:$0xff]  }
  0x27   : > { %822 = vmatprep.subr.bf16.mxu1 %v909_v21  ;;  %v924_v37 = vld [vmem:[%s1070_s11 + $0x38] sm:$0xff]   ;;  %v927_v39 = vld [vmem:[%s1070_s11 + $0xf0] sm:$0xff]   ;;  %v262_v48 = vld [vmem:[#allocation2] sm:$0xf] }
  0x28   : > { %801 = vmatpush3.bf16.msra.mxu0 %v904_v16  ;;  %v928_v40 = vld [vmem:[%s1070_s11 + $0xb0] sm:$0xff]   ;;  %v929_v42 = vld [vmem:[%s1070_s11 + $0xf8] sm:$0xff]   ;;  %v789_v62 = vld [vmem:[%s1136_s2] ss:$0 sm:$0xff] (!%p788_p9) }
  0x29   : > { %802 = vmatprep.subr.bf16.mxu0 %v906_v18  ;;  %v930_v45 = vld [vmem:[%s1070_s11 + $0xb8] sm:$0xff]  }
  0x2a   : > { %823 = vmatpush3.bf16.msra.mxu1 %v911_v23 }
  0x2b   : > { %824 = vmatprep.subr.bf16.mxu1 %v913_v25 }
  0x2c   : > { %803 = vmatpush3.bf16.msra.mxu0 %v908_v20 }
  0x2d   : > { %804 = vmatprep.subr.bf16.mxu0 %v910_v22 }
  0x2e   : > { %825 = vmatpush3.bf16.msra.mxu1 %v915_v27 }
  0x2f   : > { %826 = vmatprep.subr.bf16.mxu1 %v917_v29 }
  0x30   : > { %805 = vmatpush3.bf16.msra.mxu0 %v912_v24 }
  0x31   : > { %806 = vmatprep.subr.bf16.mxu0 %v914_v26 }
  0x32   : > { %827 = vmatpush3.bf16.msra.mxu1 %v919_v31 }
  0x33   : > { %828 = vmatprep.subr.bf16.mxu1 %v921_v34 }
  0x34   : > { %807 = vmatpush3.bf16.msra.mxu0 %v916_v28 }
  0x35   : > { %808 = vmatprep.subr.bf16.mxu0 %v918_v30 }
  0x36   : > { %829 = vmatpush3.bf16.msra.mxu1 %v923_v36 }
  0x37   : > { %830 = vmatprep.subr.bf16.mxu1 %v927_v39 }
  0x38   : > { %809 = vmatpush3.bf16.msra.mxu0 %v920_v32 }
  0x39   : > { %810 = vmatprep.subr.bf16.mxu0 %v922_v35 }
  0x3a   : > { %831 = vmatpush3.bf16.msra.mxu1 %v928_v40 }
  0x3b   : > { %832 = vmatprep.subr.bf16.mxu1 %v929_v42 }
  0x3c   : > { %811 = vmatpush3.bf16.msra.mxu0 %v924_v37 }
  0x3e   : > { %833 = vmatpush3.bf16.msra.mxu1 %v930_v45 }
  0x3f   : > { %399 = vmatmul.mubr.bf16.vlgmr.msra.gmra.mrb[0].mxu0 %v718_v41 }
  0x41   : > { %596 = vmatmul.mubr.bf16.vlgmr.msra.gmra.mrb[0].mxu1 %v457_v46 }
 0x112   : > { %v812_v47 = vpop.f32.mrb[0].mxu0 }
 0x113   : > { %v813_v49 = vpop.f32.mrb[1].mxu0 }
 0x114   : > { %v814_v50 = vadd.f32 %v813_v49, %v812_v47  ;;  %v815_v51 = vpop.f32.mrb[2].mxu0  ;;  %v834_v54 = vpop.f32.mrb[0].mxu1 }
 0x115   : > { %v816_v52 = vpop.f32.mrb[3].mxu0  ;;  %v835_v55 = vpop.f32.mrb[1].mxu1 }
 0x116   : > { %v406_v53 = vadd.f32 %v814_v50, %v262_v48  ;;  %v836_v56 = vadd.f32 %v835_v55, %v834_v54  ;;  %v837_v57 = vpop.f32.mrb[2].mxu1 }
 0x117   : > { %v838_v58 = vpop.f32.mrb[3].mxu1 }
 0x118   : > { %407 = vst [vmem:[#allocation2] sm:$0xf] %v406_v53 }
 0x11c   : > { %608 = sbr.rel (%p788_p9) target bundleno = 303 (0x12f), region = 40 }
 0x11f   : > { %v445_v59 = vld [vmem:[#allocation2] sm:$0xf] }
 0x120   : > { %v603_v60 = vadd.f32 %v836_v56, %v445_v59 }
 0x122   : > { %604 = vst [vmem:[#allocation2] sm:$0xf] %v603_v60 }
 0x129   : > { %v609_v61 = vld [vmem:[#allocation2] sm:$0xf] }
 0x12a   : > { %v617_v63 = vadd.f32 %v789_v62, %v609_v61 }
 0x12c   : > { %v618_v0 = vpack.c.bf16 %v617_v63, %v617_v63 }
 0x12e   : > { %619 = vst [vmem:[%s1058_s4] sm:$0x3] %v618_v0 }
 0x12f PF: > { %s13_s18 = sadd.s32 1, %s987_s18   ;;  %s1138_s12 = smov %s975_s15 }
 0x130   : > { %p10_p10 = scmp.ge.s32.totalorder %s13_s18, 18   ;;  %s1139_s13 = smov %s979_s16 }
 0x131   : > { %s1140_s14 = smov %s983_s17  ;;  %s1141_s15 = smov %s1145_s19 }
 0x132   : > { %s1142_s16 = smov %s1149_s20  ;;  %s1143_s17 = smov %s1153_s21 }
 0x133   :  { %12 = sbr.rel (!%p10_p10) target bundleno = 4 (0x4), region = 72 }

// kernel: generator_forward.97
= control target key start
LH: loop header
LB: loop body
LE: loop exit
PB: predicated region body
PF: predicated region fallthrough
CT: control target
= control target key end

     0   :  { %s713_s12 = smov 0   ;;  %s715_s13 = smov 0   ;;  %s815_s0 = inlined_call_operand.vmem [shape: bf16[10,1,5,256], index: 0, kind: input, shape index: {}]   ;;  %s816_s1 = inlined_call_operand.vmem [shape: bf16[2,256,128], index: 1, kind: input, shape index: {}]   ;;  %s817_s2 = inlined_call_operand.vmem [shape: f32[1,128], index: 2, kind: input, shape index: {}]   ;;  %s818_s3 = inlined_call_operand.vmem [shape: bf16[8,4,128], index: 3, kind: output, shape index: {}]  }
   0x1   :  { %s717_s14 = smov 0   ;;  %s719_s15 = smov 0  }
   0x2   :  { %s721_s16 = smov 0   ;;  %s723_s17 = smov 0  }
   0x3   :  { %s725_s18 = smov 0  }
   0x4 LB: > { %s25_s19 = sadd.s32 1, %s678_s15  ;;  %s28_s20 = sadd.s32 1, %s682_s16  ;;  %s690_s18 = sphi %s725_s18, %s13_s18   ;;  %s686_s17 = sphi %s723_s17, %s824_s17   ;;  %s682_s16 = sphi %s721_s16, %s823_s16   ;;  %s678_s15 = sphi %s719_s15, %s822_s15   ;;  %s674_s14 = sphi %s717_s14, %s821_s14   ;;  %s670_s13 = sphi %s715_s13, %s820_s13   ;;  %s666_s12 = sphi %s713_s12, %s819_s12  }
   0x5   : > { %p26_p0 = scmp.ge.s32.totalorder %s25_s19, 2  ;;  %p507_p1 = scmp.ge.s32.totalorder %s690_s18, 1 }
   0x6   : > { %p172_p2 = scmp.lt.s32.totalorder %s690_s18, 17  ;;  %s32_s21 = sadd.s32 1, %s686_s17 }
   0x7   : > { %s826_s19 = smov (%p26_p0, %s25_s19), 0  ;;  %s828_s20 = smov (!%p26_p0, %s28_s20), %s682_s16 }
   0x8   : > { %p173_p3 = pnand %p507_p1, %p172_p2  ;;  %p30_p4 = scmp.ge.s32.totalorder %s828_s20, 4 }
   0x9   : > { %s200_s22 = smul.u32 (!%p173_p3), 5, %s674_s14  ;;  %s510_s23 = sshll.u32 (!%p173_p3), %s674_s14, 2 }
   0xa   : > { %s830_s20 = smov (%p30_p4, %s828_s20), 0  ;;  %s832_s21 = smov (!%p30_p4, %s32_s21), %s686_s17 }
   0xb   : > { %p34_p5 = scmp.ge.s32.totalorder %s832_s21, 2  ;;  %176 = sbr.rel (%p173_p3) target bundleno = 293 (0x125), region = 32 }
   0xc   : > { %s212_s24 = sadd.s32 (!%p173_p3), %s670_s13, %s510_s23  ;;  %s201_s25 = sadd.s32 (!%p173_p3), %s670_s13, %s200_s22 }
   0xd   : > { %s834_s21 = smov (%p34_p5, %s832_s21), 0  ;;  %p213_p6 = scmp.lt.s32.totalorder (!%p173_p3), %s212_s24, 7 }
   0xe   : > { %s202_s26 = sadd.s32 (!%p173_p3), %s666_s12, %s201_s25  ;;  %p512_p8 = scmp.ne.s32.totalorder (!%p173_p3), %s666_s12, 0 }
   0xf   : > { %p203_p7 = scmp.lt.s32.totalorder (!%p173_p3), %s202_s26, 9 }
  0x12   : > { %s836_s24 = smov (!%p213_p6, %s212_s24), 7  ;;  %s838_s26 = smov (!%p203_p7, %s202_s26), 9 }
  0x13   : > { %s511_s27 = sshll.u32 %s836_s24, 1  ;;  %s537_s28 = sshll.u32 %s838_s26, 3  ;;  %v692_v0 = vmov (!%p512_p8), 0.0  }
  0x14   : > { %s761_s4 = scalar_lea.vmem %s818_s3, %s511_s27  ;;  %s207_s7 = scalar_lea.vmem %s815_s0, %s537_s28  ;;  %224 = vst [vmem:[#allocation2] sm:$0xf] (!%p512_p8), %v692_v0 }
  0x15   : > { %223 = sbr.rel (%p512_p8) target bundleno = 28 (0x1c), region = 36 }
  0x1c PF: > { %s538_s8 = sshll.u32 %s666_s12, 7  ;;  %v225_v1 = vld [vmem:[%s207_s7] sm:$0x33]  ;;  %p533_p9 = scmp.ne.s32.totalorder %s666_s12, 1 }
  0x1d   : > { %s771_s11 = scalar_lea.vmem %s816_s1, %s538_s8  ;;  %v516_v2 = vcombine.high %v225_v1, %v225_v1  ;;  %v515_v19 = vcombine.low %v225_v1, %v225_v1  ;;  %v261_v21 = vld [vmem:[#allocation2] sm:$0xf] }
  0x1e   : > { %v618_v3 = vld [vmem:[%s771_s11 + $0x40] sm:$0xff]   ;;  %v620_v5 = vld [vmem:[%s771_s11 + $0x48] sm:$0xff]   ;;  %v622_v7 = vld [vmem:[%s771_s11 + $0x50] sm:$0xff]  }
  0x1f   : > { %v619_v4 = vld [vmem:[%s771_s11] sm:$0xff]   ;;  %397 = vmatprep.mubr.bf16.mxu0 %v516_v2  ;;  %539 = vmatprep.subr.bf16.mxu0 %v618_v3  ;;  %v621_v6 = vld [vmem:[%s771_s11 + $0x8] sm:$0xff]   ;;  %v623_v8 = vld [vmem:[%s771_s11 + $0x10] sm:$0xff]  }
  0x20   : > { %540 = vmatpush3.bf16.msra.mxu0 %v619_v4  ;;  %v624_v9 = vld [vmem:[%s771_s11 + $0x58] sm:$0xff]   ;;  %v626_v11 = vld [vmem:[%s771_s11 + $0x60] sm:$0xff]   ;;  %v628_v13 = vld [vmem:[%s771_s11 + $0x68] sm:$0xff]  }
  0x21   : > { %541 = vmatprep.subr.bf16.mxu0 %v620_v5  ;;  %v625_v10 = vld [vmem:[%s771_s11 + $0x18] sm:$0xff]   ;;  %v627_v12 = vld [vmem:[%s771_s11 + $0x20] sm:$0xff]   ;;  %v629_v14 = vld [vmem:[%s771_s11 + $0x28] sm:$0xff]  }
  0x22   : > { %v630_v15 = vld [vmem:[%s771_s11 + $0x70] sm:$0xff]   ;;  %v632_v17 = vld [vmem:[%s771_s11 + $0x78] sm:$0xff]   ;;  %v534_v28 = vld [vmem:[%s817_s2] ss:$0 sm:$0xff] (!%p533_p9) }
  0x23   : > { %v631_v16 = vld [vmem:[%s771_s11 + $0x30] sm:$0xff]   ;;  %v633_v18 = vld [vmem:[%s771_s11 + $0x38] sm:$0xff]  }
  0x24   : > { %542 = vmatpush3.bf16.msra.mxu0 %v621_v6 }
  0x25   : > { %543 = vmatprep.subr.bf16.mxu0 %v622_v7 }
  0x28   : > { %544 = vmatpush3.bf16.msra.mxu0 %v623_v8 }
  0x29   : > { %545 = vmatprep.subr.bf16.mxu0 %v624_v9 }
  0x2c   : > { %546 = vmatpush3.bf16.msra.mxu0 %v625_v10 }
  0x2d   : > { %547 = vmatprep.subr.bf16.mxu0 %v626_v11 }
  0x30   : > { %548 = vmatpush3.bf16.msra.mxu0 %v627_v12 }
  0x31   : > { %549 = vmatprep.subr.bf16.mxu0 %v628_v13 }
  0x34   : > { %550 = vmatpush3.bf16.msra.mxu0 %v629_v14 }
  0x35   : > { %551 = vmatprep.subr.bf16.mxu0 %v630_v15 }
  0x38   : > { %552 = vmatpush3.bf16.msra.mxu0 %v631_v16 }
  0x39   : > { %553 = vmatprep.subr.bf16.mxu0 %v632_v17 }
  0x3c   : > { %554 = vmatpush3.bf16.msra.mxu0 %v633_v18 }
  0x3f   : > { %398 = vmatmul.mubr.bf16.vlgmr.msra.gmra.mrb[0].mxu0 %v515_v19 }
 0x112   : > { %v555_v20 = vpop.f32.mrb[0].mxu0  ;;  %410 = sbr.rel (%p533_p9) target bundleno = 293 (0x125), region = 40 }
 0x113   : > { %v556_v22 = vpop.f32.mrb[1].mxu0 }
 0x114   : > { %v557_v23 = vadd.f32 %v556_v22, %v555_v20  ;;  %v558_v24 = vpop.f32.mrb[2].mxu0 }
 0x115   : > { %v559_v25 = vpop.f32.mrb[3].mxu0 }
 0x116   : > { %v405_v26 = vadd.f32 %v557_v23, %v261_v21 }
 0x118   : > { %406 = vst [vmem:[#allocation2] sm:$0xf] %v405_v26 }
 0x11f   : > { %v411_v27 = vld [vmem:[#allocation2] sm:$0xf] }
 0x120   : > { %v419_v29 = vadd.f32 %v534_v28, %v411_v27 }
 0x122   : > { %v420_v30 = vpack.c.bf16 %v419_v29, %v419_v29 }
 0x124   : > { %421 = vst [vmem:[%s761_s4] sm:$0x3] %v420_v30 }
 0x125 PF: > { %s13_s18 = sadd.s32 1, %s690_s18   ;;  %s819_s12 = smov %s678_s15 }
 0x126   : > { %p10_p10 = scmp.ge.s32.totalorder %s13_s18, 18   ;;  %s820_s13 = smov %s682_s16 }
 0x127   : > { %s821_s14 = smov %s686_s17  ;;  %s822_s15 = smov %s826_s19 }
 0x128   : > { %s823_s16 = smov %s830_s20  ;;  %s824_s17 = smov %s834_s21 }
 0x129   :  { %12 = sbr.rel (!%p10_p10) target bundleno = 4 (0x4), region = 71 }

// kernel: generator_forward.96
= control target key start
LH: loop header
LB: loop body
LE: loop exit
PB: predicated region body
PF: predicated region fallthrough
CT: control target
= control target key end

     0   :  { %s964_s12 = smov 0   ;;  %s966_s13 = smov 0   ;;  %s1122_s0 = inlined_call_operand.vmem [shape: bf16[10,1,5,256], index: 0, kind: input, shape index: {}]   ;;  %s1123_s1 = inlined_call_operand.vmem [shape: bf16[2,256,128], index: 1, kind: input, shape index: {}]   ;;  %s1124_s2 = inlined_call_operand.vmem [shape: f32[1,128], index: 2, kind: input, shape index: {}]   ;;  %s1125_s3 = inlined_call_operand.vmem [shape: bf16[8,4,128], index: 3, kind: output, shape index: {}]  }
   0x1   :  { %s968_s14 = smov 0   ;;  %s970_s15 = smov 0  }
   0x2   :  { %s972_s16 = smov 0  }
   0x3 LB: > { %s28_s17 = sadd.s32 1, %s933_s14  ;;  %s32_s18 = sadd.s32 1, %s937_s15  ;;  %s941_s16 = sphi %s972_s16, %s13_s16   ;;  %s937_s15 = sphi %s970_s15, %s1129_s15   ;;  %s933_s14 = sphi %s968_s14, %s1128_s14   ;;  %s929_s13 = sphi %s966_s13, %s1127_s13   ;;  %s925_s12 = sphi %s964_s12, %s1126_s12  }
   0x4   : > { %p30_p0 = scmp.ge.s32.totalorder %s28_s17, 4  ;;  %p705_p1 = scmp.ge.s32.totalorder %s941_s16, 1 }
   0x5   : > { %p172_p2 = scmp.lt.s32.totalorder %s941_s16, 9 }
   0x6   : > { %s1131_s17 = smov (%p30_p0, %s28_s17), 0  ;;  %s1133_s18 = smov (!%p30_p0, %s32_s18), %s937_s15 }
   0x7   : > { %p173_p3 = pnand %p705_p1, %p172_p2  ;;  %p34_p4 = scmp.ge.s32.totalorder %s1133_s18, 2 }
   0x8   : > { %v867_v0 = vld [vmem:[%s1123_s1 + $0x40] sm:$0xff] (!%p173_p3)   ;;  %v869_v2 = vld [vmem:[%s1123_s1 + $0x48] sm:$0xff] (!%p173_p3)   ;;  %v872_v5 = vld [vmem:[%s1123_s1 + $0x50] sm:$0xff] (!%p173_p3)   ;;  %s200_s8 = smul.u32 (!%p173_p3), 5, %s929_s13  ;;  %v943_v46 = vmov (!%p173_p3), 0.0   ;;  %s708_s30 = sshll.u32 (!%p173_p3), %s929_s13, 2 }
   0x9   : > { %s1135_s18 = smov (%p34_p4, %s1133_s18), 0  ;;  %176 = sbr.rel (%p173_p3) target bundleno = 282 (0x11a), region = 32 }
   0xa   : > { %v868_v1 = vld [vmem:[%s1123_s1] sm:$0xff] (!%p173_p3)   ;;  %782 = vmatprep.subr.bf16.mxu0 (!%p173_p3), %v867_v0  ;;  %v870_v3 = vld [vmem:[%s1123_s1 + $0x8] sm:$0xff] (!%p173_p3)   ;;  %v874_v7 = vld [vmem:[%s1123_s1 + $0x10] sm:$0xff] (!%p173_p3)   ;;  %s201_s24 = sadd.s32 (!%p173_p3), %s925_s12, %s200_s8  ;;  %224 = vst [vmem:[#allocation2] sm:$0xf] (!%p173_p3), %v943_v46  ;;  %s212_s4 = sadd.s32 (!%p173_p3), %s925_s12, %s708_s30 }
   0xb   : > { %783 = vmatpush3.bf16.msra.mxu0 (!%p173_p3), %v868_v1  ;;  %v871_v4 = vld [vmem:[%s1123_s1 + $0xc0] sm:$0xff] (!%p173_p3)   ;;  %v875_v8 = vld [vmem:[%s1123_s1 + $0xc8] sm:$0xff] (!%p173_p3)   ;;  %v876_v9 = vld [vmem:[%s1123_s1 + $0x58] sm:$0xff] (!%p173_p3)   ;;  %p203_p5 = scmp.lt.s32.totalorder (!%p173_p3), %s201_s24, 9  ;;  %p213_p6 = scmp.lt.s32.totalorder (!%p173_p3), %s212_s4, 7 }
   0xc   : > { %784 = vmatprep.subr.bf16.mxu0 (!%p173_p3), %v869_v2  ;;  %804 = vmatprep.subr.bf16.mxu1 (!%p173_p3), %v871_v4  ;;  %v873_v6 = vld [vmem:[%s1123_s1 + $0x80] sm:$0xff] (!%p173_p3)   ;;  %v877_v10 = vld [vmem:[%s1123_s1 + $0x88] sm:$0xff] (!%p173_p3)   ;;  %v878_v11 = vld [vmem:[%s1123_s1 + $0x18] sm:$0xff] (!%p173_p3)  }
   0xd   : > { %805 = vmatpush3.bf16.msra.mxu1 (!%p173_p3), %v873_v6  ;;  %v879_v12 = vld [vmem:[%s1123_s1 + $0xd0] sm:$0xff] (!%p173_p3)   ;;  %v880_v13 = vld [vmem:[%s1123_s1 + $0x60] sm:$0xff] (!%p173_p3)   ;;  %v883_v16 = vld [vmem:[%s1123_s1 + $0xd8] sm:$0xff] (!%p173_p3)  }
   0xe   : > { %806 = vmatprep.subr.bf16.mxu1 (!%p173_p3), %v875_v8  ;;  %v881_v14 = vld [vmem:[%s1123_s1 + $0x90] sm:$0xff] (!%p173_p3)   ;;  %v882_v15 = vld [vmem:[%s1123_s1 + $0x20] sm:$0xff] (!%p173_p3)   ;;  %v884_v17 = vld [vmem:[%s1123_s1 + $0x68] sm:$0xff] (!%p173_p3)  }
   0xf   : > { %785 = vmatpush3.bf16.msra.mxu0 (!%p173_p3), %v870_v3  ;;  %v885_v18 = vld [vmem:[%s1123_s1 + $0x98] sm:$0xff] (!%p173_p3)   ;;  %v886_v19 = vld [vmem:[%s1123_s1 + $0x28] sm:$0xff] (!%p173_p3)   ;;  %v887_v20 = vld [vmem:[%s1123_s1 + $0xe0] sm:$0xff] (!%p173_p3)  }
  0x10   : > { %786 = vmatprep.subr.bf16.mxu0 %v872_v5  ;;  %s1137_s24 = smov (!%p203_p5, %s201_s24), 9  ;;  %v888_v21 = vld [vmem:[%s1123_s1 + $0x70] sm:$0xff]   ;;  %v889_v22 = vld [vmem:[%s1123_s1 + $0xa0] sm:$0xff]   ;;  %v891_v24 = vld [vmem:[%s1123_s1 + $0xe8] sm:$0xff]   ;;  %s1139_s4 = smov (!%p213_p6, %s212_s4), 7 }
  0x11   : > { %807 = vmatpush3.bf16.msra.mxu1 %v877_v10  ;;  %s781_s28 = sshll.u32 %s1137_s24, 3  ;;  %v890_v23 = vld [vmem:[%s1123_s1 + $0x30] sm:$0xff]   ;;  %v892_v25 = vld [vmem:[%s1123_s1 + $0x78] sm:$0xff]   ;;  %v893_v26 = vld [vmem:[%s1123_s1 + $0xa8] sm:$0xff]   ;;  %s709_s7 = sshll.u32 %s1139_s4, 1 }
  0x12   : > { %808 = vmatprep.subr.bf16.mxu1 %v879_v12  ;;  %s207_s10 = scalar_lea.vmem %s1122_s0, %s781_s28  ;;  %v894_v27 = vld [vmem:[%s1123_s1 + $0x38] sm:$0xff]   ;;  %v898_v32 = vld [vmem:[%s1123_s1 + $0xf0] sm:$0xff]   ;;  %v262_v48 = vld [vmem:[#allocation2] sm:$0xf]  ;;  %s216_s13 = scalar_lea.vmem %s1125_s3, %s709_s7 }
  0x13   : > { %787 = vmatpush3.bf16.msra.mxu0 %v874_v7  ;;  %v225_v28 = vld [vmem:[%s207_s10] sm:$0x33]  ;;  %v899_v35 = vld [vmem:[%s1123_s1 + $0xb0] sm:$0xff]   ;;  %v900_v37 = vld [vmem:[%s1123_s1 + $0xf8] sm:$0xff]  }
  0x14   : > { %788 = vmatprep.subr.bf16.mxu0 %v876_v9  ;;  %v408_v29 = vld [vmem:[%s207_s10] sm:$0x77]  ;;  %v711_v30 = vcombine.high %v225_v28, %v225_v28  ;;  %v710_v34 = vcombine.low %v225_v28, %v225_v28  ;;  %v901_v41 = vld [vmem:[%s1123_s1 + $0xb8] sm:$0xff]  }
  0x15   : > { %809 = vmatpush3.bf16.msra.mxu1 %v881_v14  ;;  %v760_v31 = vcombine.low %v408_v29, %v408_v29  ;;  %v761_v33 = vcombine.high %v408_v29, %v408_v29  ;;  %v778_v61 = vld [vmem:[%s1124_s2] ss:$0 sm:$0xff] }
  0x16   : > { %810 = vmatprep.subr.bf16.mxu1 %v883_v16  ;;  %398 = vmatprep.mubr.bf16.mxu0 %v711_v30 }
  0x17   : > { %789 = vmatpush3.bf16.msra.mxu0 %v878_v11  ;;  %v454_v36 = vshll.u32 %v760_v31, 16  ;;  %v459_v38 = vshrl.u32 %v761_v33, 16  ;;  %v461_v39 = vshll.u32 %v761_v33, 16  ;;  %v452_v40 = vshrl.u32 %v760_v31, 16 }
  0x18   : > { %790 = vmatprep.subr.bf16.mxu0 %v880_v13 }
  0x19   : > { %811 = vmatpush3.bf16.msra.mxu1 %v885_v18  ;;  %v456_v42 = vrot.slane %v454_v36, 1  ;;  %v463_v43 = vrot.slane %v461_v39, 1 }
  0x1a   : > { %812 = vmatprep.subr.bf16.mxu1 %v887_v20 }
  0x1b   : > { %791 = vmatpush3.bf16.msra.mxu0 %v882_v15  ;;  %v464_v44 = vor.u32 %v463_v43, %v459_v38  ;;  %v457_v45 = vor.u32 %v456_v42, %v452_v40 }
  0x1c   : > { %792 = vmatprep.subr.bf16.mxu0 %v884_v17 }
  0x1d   : > { %813 = vmatpush3.bf16.msra.mxu1 %v889_v22  ;;  %595 = vmatprep.mubr.bf16.mxu1 %v464_v44 }
  0x1e   : > { %814 = vmatprep.subr.bf16.mxu1 %v891_v24 }
  0x1f   : > { %793 = vmatpush3.bf16.msra.mxu0 %v886_v19 }
  0x20   : > { %794 = vmatprep.subr.bf16.mxu0 %v888_v21 }
  0x21   : > { %815 = vmatpush3.bf16.msra.mxu1 %v893_v26 }
  0x22   : > { %816 = vmatprep.subr.bf16.mxu1 %v898_v32 }
  0x23   : > { %795 = vmatpush3.bf16.msra.mxu0 %v890_v23 }
  0x24   : > { %796 = vmatprep.subr.bf16.mxu0 %v892_v25 }
  0x25   : > { %817 = vmatpush3.bf16.msra.mxu1 %v899_v35 }
  0x26   : > { %818 = vmatprep.subr.bf16.mxu1 %v900_v37 }
  0x27   : > { %797 = vmatpush3.bf16.msra.mxu0 %v894_v27 }
  0x29   : > { %819 = vmatpush3.bf16.msra.mxu1 %v901_v41 }
  0x2a   : > { %399 = vmatmul.mubr.bf16.vlgmr.msra.gmra.mrb[0].mxu0 %v710_v34 }
  0x2c   : > { %596 = vmatmul.mubr.bf16.vlgmr.msra.gmra.mrb[0].mxu1 %v457_v45 }
  0xfd   : > { %v798_v47 = vpop.f32.mrb[0].mxu0 }
  0xfe   : > { %v799_v49 = vpop.f32.mrb[1].mxu0 }
  0xff   : > { %v800_v50 = vadd.f32 %v799_v49, %v798_v47  ;;  %v801_v51 = vpop.f32.mrb[2].mxu0  ;;  %v820_v54 = vpop.f32.mrb[0].mxu1 }
 0x100   : > { %v802_v52 = vpop.f32.mrb[3].mxu0  ;;  %v821_v55 = vpop.f32.mrb[1].mxu1 }
 0x101   : > { %v406_v53 = vadd.f32 %v800_v50, %v262_v48  ;;  %v822_v56 = vadd.f32 %v821_v55, %v820_v54  ;;  %v823_v57 = vpop.f32.mrb[2].mxu1 }
 0x102   : > { %v824_v58 = vpop.f32.mrb[3].mxu1 }
 0x103   : > { %407 = vst [vmem:[#allocation2] sm:$0xf] %v406_v53 }
 0x10a   : > { %v445_v59 = vld [vmem:[#allocation2] sm:$0xf] }
 0x10b   : > { %v603_v60 = vadd.f32 %v822_v56, %v445_v59 }
 0x10d   : > { %604 = vst [vmem:[#allocation2] sm:$0xf] %v603_v60 }
 0x114   : > { %v608_v62 = vld [vmem:[#allocation2] sm:$0xf] }
 0x115   : > { %v616_v63 = vadd.f32 %v778_v61, %v608_v62 }
 0x117   : > { %v617_v0 = vpack.c.bf16 %v616_v63, %v616_v63 }
 0x119   : > { %618 = vst [vmem:[%s216_s13] sm:$0x3] %v617_v0 }
 0x11a PF: > { %s13_s16 = sadd.s32 1, %s941_s16   ;;  %s1126_s12 = smov %s933_s14 }
 0x11b   : > { %p10_p7 = scmp.ge.s32.totalorder %s13_s16, 10   ;;  %s1127_s13 = smov %s937_s15 }
 0x11c   : > { %s1128_s14 = smov %s1131_s17  ;;  %s1129_s15 = smov %s1135_s18 }
 0x11d   :  { %12 = sbr.rel (!%p10_p7) target bundleno = 3 (0x3), region = 72 }

// kernel: generator_forward.95
= control target key start
LH: loop header
LB: loop body
LE: loop exit
PB: predicated region body
PF: predicated region fallthrough
CT: control target
= control target key end

     0   :  { %s672_s12 = smov 0   ;;  %s674_s13 = smov 0   ;;  %s782_s0 = inlined_call_operand.vmem [shape: bf16[10,1,5,256], index: 0, kind: input, shape index: {}]   ;;  %s783_s1 = inlined_call_operand.vmem [shape: bf16[1,256,128], index: 1, kind: input, shape index: {}]   ;;  %s784_s2 = inlined_call_operand.vmem [shape: f32[1,128], index: 2, kind: input, shape index: {}]   ;;  %s785_s3 = inlined_call_operand.vmem [shape: bf16[8,4,128], index: 3, kind: output, shape index: {}]  }
   0x1   :  { %s676_s14 = smov 0   ;;  %s678_s15 = smov 0  }
   0x2   :  { %s680_s16 = smov 0  }
   0x3 LB: > { %s28_s17 = sadd.s32 1, %s641_s14  ;;  %s32_s18 = sadd.s32 1, %s645_s15  ;;  %s649_s16 = sphi %s680_s16, %s13_s16   ;;  %s645_s15 = sphi %s678_s15, %s789_s15   ;;  %s641_s14 = sphi %s676_s14, %s788_s14   ;;  %s637_s13 = sphi %s674_s13, %s787_s13   ;;  %s633_s12 = sphi %s672_s12, %s786_s12  }
   0x4   : > { %p30_p0 = scmp.ge.s32.totalorder %s28_s17, 4  ;;  %p503_p1 = scmp.ge.s32.totalorder %s649_s16, 1 }
   0x5   : > { %p172_p2 = scmp.lt.s32.totalorder %s649_s16, 9 }
   0x6   : > { %s791_s17 = smov (%p30_p0, %s28_s17), 0  ;;  %s793_s18 = smov (!%p30_p0, %s32_s18), %s645_s15 }
   0x7   : > { %p173_p3 = pnand %p503_p1, %p172_p2  ;;  %p34_p4 = scmp.ge.s32.totalorder %s793_s18, 2 }
   0x8   : > { %v593_v0 = vld [vmem:[%s783_s1 + $0x40] sm:$0xff] (!%p173_p3)   ;;  %s200_s21 = smul.u32 (!%p173_p3), 5, %s637_s13  ;;  %v595_v2 = vld [vmem:[%s783_s1 + $0x48] sm:$0xff] (!%p173_p3)   ;;  %v597_v4 = vld [vmem:[%s783_s1 + $0x50] sm:$0xff] (!%p173_p3)   ;;  %v651_v19 = vmov (!%p173_p3), 0.0   ;;  %s506_s10 = sshll.u32 (!%p173_p3), %s637_s13, 2 }
   0x9   : > { %s795_s18 = smov (%p34_p4, %s793_s18), 0  ;;  %176 = sbr.rel (%p173_p3) target bundleno = 272 (0x110), region = 32 }
   0xa   : > { %v594_v1 = vld [vmem:[%s783_s1] sm:$0xff] (!%p173_p3)   ;;  %530 = vmatprep.subr.bf16.mxu0 (!%p173_p3), %v593_v0  ;;  %s201_s26 = sadd.s32 (!%p173_p3), %s633_s12, %s200_s21  ;;  %v596_v3 = vld [vmem:[%s783_s1 + $0x8] sm:$0xff] (!%p173_p3)   ;;  %v598_v5 = vld [vmem:[%s783_s1 + $0x10] sm:$0xff] (!%p173_p3)   ;;  %224 = vst [vmem:[#allocation2] sm:$0xf] (!%p173_p3), %v651_v19  ;;  %s212_s11 = sadd.s32 (!%p173_p3), %s633_s12, %s506_s10 }
   0xb   : > { %531 = vmatpush3.bf16.msra.mxu0 (!%p173_p3), %v594_v1  ;;  %p203_p5 = scmp.lt.s32.totalorder (!%p173_p3), %s201_s26, 9  ;;  %v599_v6 = vld [vmem:[%s783_s1 + $0x58] sm:$0xff] (!%p173_p3)   ;;  %v601_v8 = vld [vmem:[%s783_s1 + $0x60] sm:$0xff] (!%p173_p3)   ;;  %v603_v10 = vld [vmem:[%s783_s1 + $0x68] sm:$0xff] (!%p173_p3)   ;;  %p213_p6 = scmp.lt.s32.totalorder (!%p173_p3), %s212_s11, 7 }
   0xc   : > { %532 = vmatprep.subr.bf16.mxu0 (!%p173_p3), %v595_v2  ;;  %v600_v7 = vld [vmem:[%s783_s1 + $0x18] sm:$0xff] (!%p173_p3)   ;;  %v602_v9 = vld [vmem:[%s783_s1 + $0x20] sm:$0xff] (!%p173_p3)   ;;  %v604_v13 = vld [vmem:[%s783_s1 + $0x28] sm:$0xff] (!%p173_p3)  }
   0xd   : > { %v605_v14 = vld [vmem:[%s783_s1 + $0x70] sm:$0xff] (!%p173_p3)   ;;  %v607_v16 = vld [vmem:[%s783_s1 + $0x78] sm:$0xff] (!%p173_p3)   ;;  %v526_v27 = vld [vmem:[%s784_s2] ss:$0 sm:$0xff] (!%p173_p3) }
   0xe   : > { %v606_v15 = vld [vmem:[%s783_s1 + $0x30] sm:$0xff] (!%p173_p3)   ;;  %v608_v17 = vld [vmem:[%s783_s1 + $0x38] sm:$0xff] (!%p173_p3)  }
   0xf   : > { %533 = vmatpush3.bf16.msra.mxu0 (!%p173_p3), %v596_v3 }
  0x10   : > { %s797_s26 = smov (!%p203_p5, %s201_s26), 9  ;;  %534 = vmatprep.subr.bf16.mxu0 %v597_v4  ;;  %s799_s11 = smov (!%p213_p6, %s212_s11), 7 }
  0x11   : > { %s529_s8 = sshll.u32 %s797_s26, 3  ;;  %v261_v21 = vld [vmem:[#allocation2] sm:$0xf]  ;;  %s507_s21 = sshll.u32 %s799_s11, 1 }
  0x12   : > { %s207_s22 = scalar_lea.vmem %s782_s0, %s529_s8  ;;  %s216_s12 = scalar_lea.vmem %s785_s3, %s507_s21 }
  0x13   : > { %535 = vmatpush3.bf16.msra.mxu0 %v598_v5  ;;  %v225_v11 = vld [vmem:[%s207_s22] sm:$0x33] }
  0x14   : > { %536 = vmatprep.subr.bf16.mxu0 %v599_v6  ;;  %v509_v12 = vcombine.high %v225_v11, %v225_v11  ;;  %v508_v18 = vcombine.low %v225_v11, %v225_v11 }
  0x16   : > { %397 = vmatprep.mubr.bf16.mxu0 %v509_v12 }
  0x17   : > { %537 = vmatpush3.bf16.msra.mxu0 %v600_v7 }
  0x18   : > { %538 = vmatprep.subr.bf16.mxu0 %v601_v8 }
  0x1b   : > { %539 = vmatpush3.bf16.msra.mxu0 %v602_v9 }
  0x1c   : > { %540 = vmatprep.subr.bf16.mxu0 %v603_v10 }
  0x1f   : > { %541 = vmatpush3.bf16.msra.mxu0 %v604_v13 }
  0x20   : > { %542 = vmatprep.subr.bf16.mxu0 %v605_v14 }
  0x23   : > { %543 = vmatpush3.bf16.msra.mxu0 %v606_v15 }
  0x24   : > { %544 = vmatprep.subr.bf16.mxu0 %v607_v16 }
  0x27   : > { %545 = vmatpush3.bf16.msra.mxu0 %v608_v17 }
  0x2a   : > { %398 = vmatmul.mubr.bf16.vlgmr.msra.gmra.mrb[0].mxu0 %v508_v18 }
  0xfd   : > { %v546_v20 = vpop.f32.mrb[0].mxu0 }
  0xfe   : > { %v547_v22 = vpop.f32.mrb[1].mxu0 }
  0xff   : > { %v548_v23 = vadd.f32 %v547_v22, %v546_v20  ;;  %v549_v24 = vpop.f32.mrb[2].mxu0 }
 0x100   : > { %v550_v25 = vpop.f32.mrb[3].mxu0 }
 0x101   : > { %v405_v26 = vadd.f32 %v548_v23, %v261_v21 }
 0x103   : > { %406 = vst [vmem:[#allocation2] sm:$0xf] %v405_v26 }
 0x10a   : > { %v410_v28 = vld [vmem:[#allocation2] sm:$0xf] }
 0x10b   : > { %v418_v29 = vadd.f32 %v526_v27, %v410_v28 }
 0x10d   : > { %v419_v30 = vpack.c.bf16 %v418_v29, %v418_v29 }
 0x10f   : > { %420 = vst [vmem:[%s216_s12] sm:$0x3] %v419_v30 }
 0x110 PF: > { %s13_s16 = sadd.s32 1, %s649_s16   ;;  %s786_s12 = smov %s641_s14 }
 0x111   : > { %p10_p7 = scmp.ge.s32.totalorder %s13_s16, 10   ;;  %s787_s13 = smov %s645_s15 }
 0x112   : > { %s788_s14 = smov %s791_s17  ;;  %s789_s15 = smov %s795_s18 }
 0x113   :  { %12 = sbr.rel (!%p10_p7) target bundleno = 3 (0x3), region = 71 }

// kernel: generator_forward.100
= control target key start
LH: loop header
LB: loop body
LE: loop exit
PB: predicated region body
PF: predicated region fallthrough
CT: control target
= control target key end

     0   :  { %s593_s12 = smov 0   ;;  %s595_s13 = smov 0   ;;  %s681_s0 = inlined_call_operand.vmem [shape: bf16[18,1,9,128], index: 0, kind: input, shape index: {}]   ;;  %s682_s1 = inlined_call_operand.vmem [shape: bf16[1,128,64], index: 1, kind: input, shape index: {}]   ;;  %s683_s2 = inlined_call_operand.vmem [shape: f32[1,64], index: 2, kind: input, shape index: {}]   ;;  %s684_s3 = inlined_call_operand.vmem [shape: bf16[16,8,64], index: 3, kind: output, shape index: {}]  }
   0x1   :  { %s597_s14 = smov 0   ;;  %s599_s15 = smov 0  }
   0x2   :  { %s601_s16 = smov 0  }
   0x3 LB: > { %s28_s17 = sadd.s32 1, %s561_s14  ;;  %s32_s18 = sadd.s32 1, %s565_s15  ;;  %s569_s16 = sphi %s601_s16, %s13_s16   ;;  %s565_s15 = sphi %s599_s15, %s688_s15   ;;  %s561_s14 = sphi %s597_s14, %s687_s14   ;;  %s557_s13 = sphi %s595_s13, %s686_s13   ;;  %s553_s12 = sphi %s593_s12, %s685_s12  }
   0x4   : > { %p30_p0 = scmp.ge.s32.totalorder %s28_s17, 8  ;;  %p435_p1 = scmp.ge.s32.totalorder %s569_s16, 1 }
   0x5   : > { %p172_p2 = scmp.lt.s32.totalorder %s569_s16, 17 }
   0x6   : > { %s690_s17 = smov (%p30_p0, %s28_s17), 0  ;;  %s692_s18 = smov (!%p30_p0, %s32_s18), %s565_s15 }
   0x7   : > { %p173_p3 = pnand %p435_p1, %p172_p2  ;;  %p34_p4 = scmp.ge.s32.totalorder %s692_s18, 2 }
   0x8   : > { %v523_v0 = vld [vmem:[%s682_s1] sm:$0xff] (!%p173_p3)   ;;  %v571_v1 = vmov (!%p173_p3), 0.0   ;;  %v524_v2 = vld [vmem:[%s682_s1 + $0x8] sm:$0xff] (!%p173_p3)   ;;  %vm572_vm0 = vmmov (!%p173_p3), 0   ;;  %vm224_vm1 = vcmask (!%p173_p3), 523264   ;;  %v525_v3 = vld [vmem:[%s682_s1 + $0x10] sm:$0xff] (!%p173_p3)  }
   0x9   : > { %s694_s18 = smov (%p34_p4, %s692_s18), 0  ;;  %176 = sbr.rel (%p173_p3) target bundleno = 269 (0x10d), region = 32 }
   0xa   : > { %461 = vmatprep.subr.bf16.mxu0 (!%p173_p3), %v571_v1  ;;  %477 = vmatprep.mubr.msk.bf16.mxu0 (!%p173_p3), %vm572_vm0, %v571_v1  ;;  %225 = vst.msk [vmem:[#allocation2] sm:$0xff] (!%p173_p3), %vm224_vm1, %v571_v1  ;;  %s200_s25 = smul.u32 (!%p173_p3), 9, %s557_s13  ;;  %v526_v4 = vld [vmem:[%s682_s1 + $0x18] sm:$0xff] (!%p173_p3)   ;;  %v527_v5 = vld [vmem:[%s682_s1 + $0x20] sm:$0xff] (!%p173_p3)   ;;  %v528_v6 = vld [vmem:[%s682_s1 + $0x28] sm:$0xff] (!%p173_p3)   ;;  %s438_s21 = sshll.u32 (!%p173_p3), %s557_s13, 3 }
   0xb   : > { %462 = vmatpush3.bf16.msra.mxu0 (!%p173_p3), %v523_v0  ;;  %v529_v7 = vld [vmem:[%s682_s1 + $0x30] sm:$0xff] (!%p173_p3)   ;;  %v530_v8 = vld [vmem:[%s682_s1 + $0x38] sm:$0xff] (!%p173_p3)   ;;  %s212_s22 = sadd.s32 (!%p173_p3), %s553_s12, %s438_s21  ;;  %v448_v16 = vld [vmem:[%s683_s2] ss:$0 sm:$0xff] (!%p173_p3)  ;;  %vm351_vm2 = vcmask (!%p173_p3), 519168  }
   0xc   : > { %463 = vmatprep.subr.bf16.mxu0 (!%p173_p3), %v571_v1  ;;  %s201_s28 = sadd.s32 (!%p173_p3), %s553_s12, %s200_s25  ;;  %p213_p6 = scmp.lt.s32.totalorder (!%p173_p3), %s212_s22, 15 }
   0xd   : > { %p203_p5 = scmp.lt.s32.totalorder (!%p173_p3), %s201_s28, 17 }
   0xf   : > { %464 = vmatpush3.bf16.msra.mxu0 (!%p173_p3), %v524_v2 }
  0x10   : > { %465 = vmatprep.subr.bf16.mxu0 %v571_v1  ;;  %s696_s28 = smov (!%p203_p5, %s201_s28), 17  ;;  %s698_s22 = smov (!%p213_p6, %s212_s22), 15 }
  0x11   : > { %s451_s8 = sshll.u32 %s696_s28, 3  ;;  %v246_v10 = vld [vmem:[#allocation2] sm:$0xff]  ;;  %s439_s25 = sshll.u32 %s698_s22, 2 }
  0x12   : > { %s207_s20 = scalar_lea.vmem %s681_s0, %s451_s8  ;;  %s216_s12 = scalar_lea.vmem %s684_s3, %s439_s25 }
  0x13   : > { %466 = vmatpush3.bf16.msra.mxu0 %v525_v3  ;;  %v226_v9 = vld [vmem:[%s207_s20] sm:$0xf] }
  0x14   : > { %467 = vmatprep.subr.bf16.mxu0 %v571_v1 }
  0x17   : > { %468 = vmatpush3.bf16.msra.mxu0 %v526_v4 }
  0x18   : > { %469 = vmatprep.subr.bf16.mxu0 %v571_v1 }
  0x1b   : > { %470 = vmatpush3.bf16.msra.mxu0 %v527_v5 }
  0x1c   : > { %471 = vmatprep.subr.bf16.mxu0 %v571_v1 }
  0x1f   : > { %472 = vmatpush3.bf16.msra.mxu0 %v528_v6 }
  0x20   : > { %473 = vmatprep.subr.bf16.mxu0 %v571_v1 }
  0x23   : > { %474 = vmatpush3.bf16.msra.mxu0 %v529_v7 }
  0x24   : > { %475 = vmatprep.subr.bf16.mxu0 %v571_v1 }
  0x27   : > { %476 = vmatpush3.bf16.msra.mxu0 %v530_v8 }
  0x2a   : > { %478 = vmatmul.mubr.bf16.vlgmr.msra.gmra.mrb[0].mxu0 %v226_v9 }
  0xfd   : > { %v329_v11 = vpop.f32.mrb[0].mxu0 }
  0xfe   : > { %v335_v12 = vadd.f32 %v329_v11, %v246_v10  ;;  %v479_v13 = vpop.f32.mrb[1].mxu0 }
  0xff   : > { %v332_v14 = vpop.f32.mrb[2].mxu0 }
 0x100   : > { %337 = vst.msk [vmem:[#allocation2] sm:$0xff] %vm224_vm1, %v335_v12  ;;  %v480_v15 = vpop.f32.mrb[3].mxu0 }
 0x107   : > { %v341_v17 = vld [vmem:[#allocation2] sm:$0xff] }
 0x108   : > { %v349_v18 = vadd.f32 %v448_v16, %v341_v17 }
 0x10a   : > { %v350_v19 = vpack.c.bf16 %v349_v18, %v349_v18 }
 0x10c   : > { %352 = vst.msk [vmem:[%s216_s12] sm:$0xf] %vm351_vm2, %v350_v19 }
 0x10d PF: > { %s13_s16 = sadd.s32 1, %s569_s16   ;;  %s685_s12 = smov %s561_s14 }
 0x10e   : > { %p10_p7 = scmp.ge.s32.totalorder %s13_s16, 18   ;;  %s686_s13 = smov %s565_s15 }
 0x10f   : > { %s687_s14 = smov %s690_s17  ;;  %s688_s15 = smov %s694_s18 }
 0x110   :  { %12 = sbr.rel (!%p10_p7) target bundleno = 3 (0x3), region = 71 }

// kernel: generator_forward.102
= control target key start
LH: loop header
LB: loop body
LE: loop exit
PB: predicated region body
PF: predicated region fallthrough
CT: control target
= control target key end

     0   :  { %s636_s12 = smov 0   ;;  %s638_s13 = smov 0   ;;  %s723_s0 = inlined_call_operand.vmem [shape: bf16[18,1,9,128], index: 0, kind: input, shape index: {}]   ;;  %s724_s1 = inlined_call_operand.vmem [shape: bf16[2,128,64], index: 1, kind: input, shape index: {}]   ;;  %s725_s2 = inlined_call_operand.vmem [shape: f32[1,64], index: 2, kind: input, shape index: {}]   ;;  %s726_s3 = inlined_call_operand.vmem [shape: bf16[16,8,64], index: 3, kind: output, shape index: {}]  }
   0x1   :  { %s640_s14 = smov 0   ;;  %s642_s15 = smov 0  }
   0x2   :  { %s644_s16 = smov 0   ;;  %s646_s17 = smov 0  }
   0x3   :  { %s648_s18 = smov 0  }
   0x4 LB: > { %s25_s19 = sadd.s32 1, %s599_s15  ;;  %s28_s20 = sadd.s32 1, %s603_s16  ;;  %s611_s18 = sphi %s648_s18, %s13_s18   ;;  %s607_s17 = sphi %s646_s17, %s732_s17   ;;  %s603_s16 = sphi %s644_s16, %s731_s16   ;;  %s599_s15 = sphi %s642_s15, %s730_s15   ;;  %s595_s14 = sphi %s640_s14, %s729_s14   ;;  %s591_s13 = sphi %s638_s13, %s728_s13   ;;  %s587_s12 = sphi %s636_s12, %s727_s12  }
   0x5   : > { %p26_p0 = scmp.ge.s32.totalorder %s25_s19, 2  ;;  %p439_p1 = scmp.ge.s32.totalorder %s611_s18, 1 }
   0x6   : > { %p172_p2 = scmp.lt.s32.totalorder %s611_s18, 33  ;;  %s32_s21 = sadd.s32 1, %s607_s17 }
   0x7   : > { %s734_s19 = smov (%p26_p0, %s25_s19), 0  ;;  %s736_s20 = smov (!%p26_p0, %s28_s20), %s603_s16 }
   0x8   : > { %p173_p3 = pnand %p439_p1, %p172_p2  ;;  %p30_p4 = scmp.ge.s32.totalorder %s736_s20, 8 }
   0x9   : > { %s200_s22 = smul.u32 (!%p173_p3), 9, %s595_s14  ;;  %s442_s23 = sshll.u32 (!%p173_p3), %s595_s14, 3 }
   0xa   : > { %s738_s20 = smov (%p30_p4, %s736_s20), 0  ;;  %s740_s21 = smov (!%p30_p4, %s32_s21), %s607_s17 }
   0xb   : > { %p34_p5 = scmp.ge.s32.totalorder %s740_s21, 2  ;;  %176 = sbr.rel (%p173_p3) target bundleno = 289 (0x121), region = 32 }
   0xc   : > { %s212_s24 = sadd.s32 (!%p173_p3), %s591_s13, %s442_s23  ;;  %s201_s25 = sadd.s32 (!%p173_p3), %s591_s13, %s200_s22 }
   0xd   : > { %s742_s21 = smov (%p34_p5, %s740_s21), 0  ;;  %p213_p6 = scmp.lt.s32.totalorder (!%p173_p3), %s212_s24, 15 }
   0xe   : > { %s202_s26 = sadd.s32 (!%p173_p3), %s587_s12, %s201_s25  ;;  %p444_p8 = scmp.ne.s32.totalorder (!%p173_p3), %s587_s12, 0 }
   0xf   : > { %p203_p7 = scmp.lt.s32.totalorder (!%p173_p3), %s202_s26, 17 }
  0x12   : > { %s744_s24 = smov (!%p213_p6, %s212_s24), 15  ;;  %s746_s26 = smov (!%p203_p7, %s202_s26), 17 }
  0x13   : > { %s443_s27 = sshll.u32 %s744_s24, 2  ;;  %s459_s28 = sshll.u32 %s746_s26, 3  ;;  %vm224_vm0 = vcmask (!%p444_p8), 523264   ;;  %v613_v0 = vmov (!%p444_p8), 0.0  }
  0x14   : > { %s684_s4 = scalar_lea.vmem %s726_s3, %s443_s27  ;;  %s689_s7 = scalar_lea.vmem %s723_s0, %s459_s28  ;;  %225 = vst.msk [vmem:[#allocation2] sm:$0xff] (!%p444_p8), %vm224_vm0, %v613_v0 }
  0x15   : > { %223 = sbr.rel (%p444_p8) target bundleno = 28 (0x1c), region = 36 }
  0x1c PF: > { %s460_s8 = sshll.u32 %s587_s12, 6  ;;  %v614_v1 = vmov 0.0   ;;  %vm615_vm1 = vmmov 0   ;;  %v226_v10 = vld [vmem:[%s689_s7] sm:$0xf]  ;;  %vm336_vm2 = vcmask 523264  }
  0x1d   : > { %470 = vmatprep.subr.bf16.mxu0 %v614_v1  ;;  %s229_s11 = scalar_lea.vmem %s724_s1, %s460_s8  ;;  %486 = vmatprep.mubr.msk.bf16.mxu0 %vm615_vm1, %v614_v1  ;;  %v246_v11 = vld [vmem:[#allocation2] sm:$0xff]  ;;  %p455_p9 = scmp.ne.s32.totalorder %s587_s12, 1 }
  0x1e   : > { %v549_v2 = vld [vmem:[%s229_s11] sm:$0xff]   ;;  %v550_v3 = vld [vmem:[%s229_s11 + $0x8] sm:$0xff]   ;;  %v551_v4 = vld [vmem:[%s229_s11 + $0x10] sm:$0xff]   ;;  %vm352_vm3 = vcmask (!%p455_p9), 519168  }
  0x1f   : > { %471 = vmatpush3.bf16.msra.mxu0 %v549_v2  ;;  %v552_v5 = vld [vmem:[%s229_s11 + $0x18] sm:$0xff]   ;;  %v553_v6 = vld [vmem:[%s229_s11 + $0x20] sm:$0xff]   ;;  %v554_v7 = vld [vmem:[%s229_s11 + $0x28] sm:$0xff]  }
  0x20   : > { %472 = vmatprep.subr.bf16.mxu0 %v614_v1  ;;  %v555_v8 = vld [vmem:[%s229_s11 + $0x30] sm:$0xff]   ;;  %v556_v9 = vld [vmem:[%s229_s11 + $0x38] sm:$0xff]   ;;  %v456_v18 = vld [vmem:[%s725_s2] ss:$0 sm:$0xff] (!%p455_p9) }
  0x23   : > { %473 = vmatpush3.bf16.msra.mxu0 %v550_v3 }
  0x24   : > { %474 = vmatprep.subr.bf16.mxu0 %v614_v1 }
  0x27   : > { %475 = vmatpush3.bf16.msra.mxu0 %v551_v4 }
  0x28   : > { %476 = vmatprep.subr.bf16.mxu0 %v614_v1 }
  0x2b   : > { %477 = vmatpush3.bf16.msra.mxu0 %v552_v5 }
  0x2c   : > { %478 = vmatprep.subr.bf16.mxu0 %v614_v1 }
  0x2f   : > { %479 = vmatpush3.bf16.msra.mxu0 %v553_v6 }
  0x30   : > { %480 = vmatprep.subr.bf16.mxu0 %v614_v1 }
  0x33   : > { %481 = vmatpush3.bf16.msra.mxu0 %v554_v7 }
  0x34   : > { %482 = vmatprep.subr.bf16.mxu0 %v614_v1 }
  0x37   : > { %483 = vmatpush3.bf16.msra.mxu0 %v555_v8 }
  0x38   : > { %484 = vmatprep.subr.bf16.mxu0 %v614_v1 }
  0x3b   : > { %485 = vmatpush3.bf16.msra.mxu0 %v556_v9 }
  0x3e   : > { %487 = vmatmul.mubr.bf16.vlgmr.msra.gmra.mrb[0].mxu0 %v226_v10 }
 0x10e   : > { %341 = sbr.rel (%p455_p9) target bundleno = 289 (0x121), region = 40 }
 0x111   : > { %v329_v12 = vpop.f32.mrb[0].mxu0 }
 0x112   : > { %v335_v13 = vadd.f32 %v329_v12, %v246_v11  ;;  %v488_v14 = vpop.f32.mrb[1].mxu0 }
 0x113   : > { %v332_v15 = vpop.f32.mrb[2].mxu0 }
 0x114   : > { %337 = vst.msk [vmem:[#allocation2] sm:$0xff] %vm336_vm2, %v335_v13  ;;  %v489_v16 = vpop.f32.mrb[3].mxu0 }
 0x11b   : > { %v342_v17 = vld [vmem:[#allocation2] sm:$0xff] }
 0x11c   : > { %v350_v19 = vadd.f32 %v456_v18, %v342_v17 }
 0x11e   : > { %v351_v20 = vpack.c.bf16 %v350_v19, %v350_v19 }
 0x120   : > { %353 = vst.msk [vmem:[%s684_s4] sm:$0xf] %vm352_vm3, %v351_v20 }
 0x121 PF: > { %s13_s18 = sadd.s32 1, %s611_s18   ;;  %s727_s12 = smov %s599_s15 }
 0x122   : > { %p10_p10 = scmp.ge.s32.totalorder %s13_s18, 34   ;;  %s728_s13 = smov %s603_s16 }
 0x123   : > { %s729_s14 = smov %s607_s17  ;;  %s730_s15 = smov %s734_s19 }
 0x124   : > { %s731_s16 = smov %s738_s20  ;;  %s732_s17 = smov %s742_s21 }
 0x125   :  { %12 = sbr.rel (!%p10_p10) target bundleno = 4 (0x4), region = 71 }

// kernel: generator_forward.103
= control target key start
LH: loop header
LB: loop body
LE: loop exit
PB: predicated region body
PF: predicated region fallthrough
CT: control target
= control target key end

     0   :  { %s835_s12 = smov 0   ;;  %s837_s13 = smov 0   ;;  %s941_s0 = inlined_call_operand.vmem [shape: bf16[18,1,9,128], index: 0, kind: input, shape index: {}]   ;;  %s942_s1 = inlined_call_operand.vmem [shape: bf16[4,128,64], index: 1, kind: input, shape index: {}]   ;;  %s943_s2 = inlined_call_operand.vmem [shape: f32[1,64], index: 2, kind: input, shape index: {}]   ;;  %s944_s3 = inlined_call_operand.vmem [shape: bf16[16,8,64], index: 3, kind: output, shape index: {}]  }
   0x1   :  { %s839_s14 = smov 0   ;;  %s841_s15 = smov 0  }
   0x2   :  { %s843_s16 = smov 0   ;;  %s845_s17 = smov 0  }
   0x3   :  { %s847_s18 = smov 0  }
   0x4 LB: > { %s25_s19 = sadd.s32 1, %s798_s15  ;;  %s28_s20 = sadd.s32 1, %s802_s16  ;;  %s810_s18 = sphi %s847_s18, %s13_s18   ;;  %s806_s17 = sphi %s845_s17, %s950_s17   ;;  %s802_s16 = sphi %s843_s16, %s949_s16   ;;  %s798_s15 = sphi %s841_s15, %s948_s15   ;;  %s794_s14 = sphi %s839_s14, %s947_s14   ;;  %s790_s13 = sphi %s837_s13, %s946_s13   ;;  %s786_s12 = sphi %s835_s12, %s945_s12  }
   0x5   : > { %p26_p0 = scmp.ge.s32.totalorder %s25_s19, 2  ;;  %p570_p1 = scmp.ge.s32.totalorder %s810_s18, 1 }
   0x6   : > { %p172_p2 = scmp.lt.s32.totalorder %s810_s18, 33  ;;  %s32_s21 = sadd.s32 1, %s806_s17 }
   0x7   : > { %s952_s19 = smov (%p26_p0, %s25_s19), 0  ;;  %s954_s20 = smov (!%p26_p0, %s28_s20), %s802_s16 }
   0x8   : > { %p173_p3 = pnand %p570_p1, %p172_p2  ;;  %p30_p4 = scmp.ge.s32.totalorder %s954_s20, 8 }
   0x9   : > { %s200_s22 = smul.u32 (!%p173_p3), 9, %s794_s14  ;;  %s573_s23 = sshll.u32 (!%p173_p3), %s794_s14, 3 }
   0xa   : > { %s956_s20 = smov (%p30_p4, %s954_s20), 0  ;;  %s958_s21 = smov (!%p30_p4, %s32_s21), %s806_s17 }
   0xb   : > { %p34_p5 = scmp.ge.s32.totalorder %s958_s21, 2  ;;  %176 = sbr.rel (%p173_p3) target bundleno = 299 (0x12b), region = 32 }
   0xc   : > { %s212_s24 = sadd.s32 (!%p173_p3), %s790_s13, %s573_s23  ;;  %s201_s25 = sadd.s32 (!%p173_p3), %s790_s13, %s200_s22 }
   0xd   : > { %s960_s21 = smov (%p34_p5, %s958_s21), 0  ;;  %p213_p6 = scmp.lt.s32.totalorder (!%p173_p3), %s212_s24, 15 }
   0xe   : > { %s202_s26 = sadd.s32 (!%p173_p3), %s786_s12, %s201_s25  ;;  %p575_p8 = scmp.ne.s32.totalorder (!%p173_p3), %s786_s12, 0 }
   0xf   : > { %p203_p7 = scmp.lt.s32.totalorder (!%p173_p3), %s202_s26, 17 }
  0x12   : > { %s962_s24 = smov (!%p213_p6, %s212_s24), 15  ;;  %s964_s26 = smov (!%p203_p7, %s202_s26), 17 }
  0x13   : > { %s574_s27 = sshll.u32 %s962_s24, 2  ;;  %s618_s28 = sshll.u32 %s964_s26, 3  ;;  %vm224_vm0 = vcmask (!%p575_p8), 523264   ;;  %v812_v0 = vmov (!%p575_p8), 0.0  }
  0x14   : > { %s883_s4 = scalar_lea.vmem %s944_s3, %s574_s27  ;;  %s888_s7 = scalar_lea.vmem %s941_s0, %s618_s28  ;;  %225 = vst.msk [vmem:[#allocation2] sm:$0xff] (!%p575_p8), %vm224_vm0, %v812_v0 }
  0x15   : > { %223 = sbr.rel (%p575_p8) target bundleno = 28 (0x1c), region = 36 }
  0x1c PF: > { %s620_s8 = sshll.u32 %s786_s12, 7  ;;  %v813_v1 = vmov 0.0   ;;  %vm814_vm1 = vmmov 0   ;;  %v755_v13 = vld [vmem:[%s888_s7] sm:$0x1f]   ;;  %vm337_vm2 = vcmask 523264  }
  0x1d   : > { %640 = vmatprep.subr.bf16.mxu0 %v813_v1  ;;  %s895_s11 = scalar_lea.vmem %s942_s1, %s620_s8  ;;  %660 = vmatprep.subr.bf16.mxu1 %v813_v1  ;;  %v370_v16 = vshll.u32 %v755_v13, 16  ;;  %v368_v19 = vshrl.u32 %v755_v13, 16  ;;  %v226_v22 = vld [vmem:[%s888_s7] sm:$0xf]  ;;  %p614_p9 = scmp.ne.s32.totalorder %s786_s12, 1 }
  0x1e   : > { %v739_v2 = vld [vmem:[%s895_s11] sm:$0xff]   ;;  %656 = vmatprep.mubr.msk.bf16.mxu0 %vm814_vm1, %v813_v1  ;;  %676 = vmatprep.mubr.msk.bf16.mxu1 %vm814_vm1, %v813_v1  ;;  %v740_v3 = vld [vmem:[%s895_s11 + $0x8] sm:$0xff]   ;;  %v742_v6 = vld [vmem:[%s895_s11 + $0x10] sm:$0xff]   ;;  %vm479_vm3 = vcmask (!%p614_p9), 519168  }
  0x1f   : > { %641 = vmatpush3.bf16.msra.mxu0 %v739_v2  ;;  %v741_v4 = vld [vmem:[%s895_s11 + $0x40] sm:$0xff]   ;;  %v743_v5 = vld [vmem:[%s895_s11 + $0x48] sm:$0xff]   ;;  %v745_v7 = vld [vmem:[%s895_s11 + $0x50] sm:$0xff]   ;;  %v372_v20 = vrot.slane %v370_v16, 1 }
  0x20   : > { %642 = vmatprep.subr.bf16.mxu0 %v813_v1  ;;  %661 = vmatpush3.bf16.msra.mxu1 %v741_v4  ;;  %v744_v8 = vld [vmem:[%s895_s11 + $0x18] sm:$0xff]   ;;  %v746_v10 = vld [vmem:[%s895_s11 + $0x20] sm:$0xff]   ;;  %v748_v12 = vld [vmem:[%s895_s11 + $0x28] sm:$0xff]  }
  0x21   : > { %662 = vmatprep.subr.bf16.mxu1 %v813_v1  ;;  %v747_v9 = vld [vmem:[%s895_s11 + $0x58] sm:$0xff]   ;;  %v749_v11 = vld [vmem:[%s895_s11 + $0x60] sm:$0xff]   ;;  %v751_v14 = vld [vmem:[%s895_s11 + $0x68] sm:$0xff]   ;;  %v373_v23 = vor.u32 %v372_v20, %v368_v19 }
  0x22   : > { %v750_v15 = vld [vmem:[%s895_s11 + $0x30] sm:$0xff]   ;;  %v752_v18 = vld [vmem:[%s895_s11 + $0x38] sm:$0xff]   ;;  %v247_v24 = vld [vmem:[#allocation2] sm:$0xff] }
  0x23   : > { %643 = vmatpush3.bf16.msra.mxu0 %v740_v3  ;;  %v753_v17 = vld [vmem:[%s895_s11 + $0x70] sm:$0xff]   ;;  %v754_v21 = vld [vmem:[%s895_s11 + $0x78] sm:$0xff]   ;;  %v615_v37 = vld [vmem:[%s943_s2] ss:$0 sm:$0xff] (!%p614_p9) }
  0x24   : > { %644 = vmatprep.subr.bf16.mxu0 %v813_v1  ;;  %663 = vmatpush3.bf16.msra.mxu1 %v743_v5 }
  0x25   : > { %664 = vmatprep.subr.bf16.mxu1 %v813_v1 }
  0x27   : > { %645 = vmatpush3.bf16.msra.mxu0 %v742_v6 }
  0x28   : > { %646 = vmatprep.subr.bf16.mxu0 %v813_v1  ;;  %665 = vmatpush3.bf16.msra.mxu1 %v745_v7 }
  0x29   : > { %666 = vmatprep.subr.bf16.mxu1 %v813_v1 }
  0x2b   : > { %647 = vmatpush3.bf16.msra.mxu0 %v744_v8 }
  0x2c   : > { %648 = vmatprep.subr.bf16.mxu0 %v813_v1  ;;  %667 = vmatpush3.bf16.msra.mxu1 %v747_v9 }
  0x2d   : > { %668 = vmatprep.subr.bf16.mxu1 %v813_v1 }
  0x2f   : > { %649 = vmatpush3.bf16.msra.mxu0 %v746_v10 }
  0x30   : > { %650 = vmatprep.subr.bf16.mxu0 %v813_v1  ;;  %669 = vmatpush3.bf16.msra.mxu1 %v749_v11 }
  0x31   : > { %670 = vmatprep.subr.bf16.mxu1 %v813_v1 }
  0x33   : > { %651 = vmatpush3.bf16.msra.mxu0 %v748_v12 }
  0x34   : > { %652 = vmatprep.subr.bf16.mxu0 %v813_v1  ;;  %671 = vmatpush3.bf16.msra.mxu1 %v751_v14 }
  0x35   : > { %672 = vmatprep.subr.bf16.mxu1 %v813_v1 }
  0x37   : > { %653 = vmatpush3.bf16.msra.mxu0 %v750_v15 }
  0x38   : > { %654 = vmatprep.subr.bf16.mxu0 %v813_v1  ;;  %673 = vmatpush3.bf16.msra.mxu1 %v753_v17 }
  0x39   : > { %674 = vmatprep.subr.bf16.mxu1 %v813_v1 }
  0x3b   : > { %655 = vmatpush3.bf16.msra.mxu0 %v752_v18 }
  0x3c   : > { %675 = vmatpush3.bf16.msra.mxu1 %v754_v21 }
  0x3e   : > { %657 = vmatmul.mubr.bf16.vlgmr.msra.gmra.mrb[0].mxu0 %v226_v22 }
  0x3f   : > { %677 = vmatmul.mubr.bf16.vlgmr.msra.gmra.mrb[0].mxu1 %v373_v23 }
 0x111   : > { %v330_v25 = vpop.f32.mrb[0].mxu0 }
 0x112   : > { %v336_v26 = vadd.f32 %v330_v25, %v247_v24  ;;  %v658_v27 = vpop.f32.mrb[1].mxu0  ;;  %v457_v29 = vpop.f32.mrb[0].mxu1 }
 0x113   : > { %v333_v28 = vpop.f32.mrb[2].mxu0  ;;  %v678_v31 = vpop.f32.mrb[1].mxu1 }
 0x114   : > { %338 = vst.msk [vmem:[#allocation2] sm:$0xff] %vm337_vm2, %v336_v26  ;;  %v659_v30 = vpop.f32.mrb[3].mxu0  ;;  %v460_v32 = vpop.f32.mrb[2].mxu1 }
 0x115   : > { %v679_v33 = vpop.f32.mrb[3].mxu1 }
 0x118   : > { %468 = sbr.rel (%p614_p9) target bundleno = 299 (0x12b), region = 40 }
 0x11b   : > { %v361_v34 = vld [vmem:[#allocation2] sm:$0xff] }
 0x11c   : > { %v463_v35 = vadd.f32 %v457_v29, %v361_v34 }
 0x11e   : > { %464 = vst.msk [vmem:[#allocation2] sm:$0xff] %vm337_vm2, %v463_v35 }
 0x125   : > { %v469_v36 = vld [vmem:[#allocation2] sm:$0xff] }
 0x126   : > { %v477_v38 = vadd.f32 %v615_v37, %v469_v36 }
 0x128   : > { %v478_v39 = vpack.c.bf16 %v477_v38, %v477_v38 }
 0x12a   : > { %480 = vst.msk [vmem:[%s883_s4] sm:$0xf] %vm479_vm3, %v478_v39 }
 0x12b PF: > { %s13_s18 = sadd.s32 1, %s810_s18   ;;  %s945_s12 = smov %s798_s15 }
 0x12c   : > { %p10_p10 = scmp.ge.s32.totalorder %s13_s18, 34   ;;  %s946_s13 = smov %s802_s16 }
 0x12d   : > { %s947_s14 = smov %s806_s17  ;;  %s948_s15 = smov %s952_s19 }
 0x12e   : > { %s949_s16 = smov %s956_s20  ;;  %s950_s17 = smov %s960_s21 }
 0x12f   :  { %12 = sbr.rel (!%p10_p10) target bundleno = 4 (0x4), region = 72 }

// kernel: generator_forward.101
= control target key start
LH: loop header
LB: loop body
LE: loop exit
PB: predicated region body
PF: predicated region fallthrough
CT: control target
= control target key end

     0   :  { %s787_s12 = smov 0   ;;  %s789_s13 = smov 0   ;;  %s900_s0 = inlined_call_operand.vmem [shape: bf16[18,1,9,128], index: 0, kind: input, shape index: {}]   ;;  %s901_s1 = inlined_call_operand.vmem [shape: bf16[2,128,64], index: 1, kind: input, shape index: {}]   ;;  %s902_s2 = inlined_call_operand.vmem [shape: f32[1,64], index: 2, kind: input, shape index: {}]   ;;  %s903_s3 = inlined_call_operand.vmem [shape: bf16[16,8,64], index: 3, kind: output, shape index: {}]  }
   0x1   :  { %s791_s14 = smov 0   ;;  %s793_s15 = smov 0  }
   0x2   :  { %s795_s16 = smov 0  }
   0x3 LB: > { %s28_s17 = sadd.s32 1, %s755_s14  ;;  %s32_s18 = sadd.s32 1, %s759_s15  ;;  %s763_s16 = sphi %s795_s16, %s13_s16   ;;  %s759_s15 = sphi %s793_s15, %s907_s15   ;;  %s755_s14 = sphi %s791_s14, %s906_s14   ;;  %s751_s13 = sphi %s789_s13, %s905_s13   ;;  %s747_s12 = sphi %s787_s12, %s904_s12  }
   0x4   : > { %p30_p0 = scmp.ge.s32.totalorder %s28_s17, 8  ;;  %p566_p1 = scmp.ge.s32.totalorder %s763_s16, 1 }
   0x5   : > { %p172_p2 = scmp.lt.s32.totalorder %s763_s16, 17 }
   0x6   : > { %s909_s17 = smov (%p30_p0, %s28_s17), 0  ;;  %s911_s18 = smov (!%p30_p0, %s32_s18), %s759_s15 }
   0x7   : > { %p173_p3 = pnand %p566_p1, %p172_p2  ;;  %p34_p4 = scmp.ge.s32.totalorder %s911_s18, 2 }
   0x8   : > { %v708_v0 = vld [vmem:[%s901_s1] sm:$0xff] (!%p173_p3)   ;;  %v765_v1 = vmov (!%p173_p3), 0.0   ;;  %v709_v2 = vld [vmem:[%s901_s1 + $0x8] sm:$0xff] (!%p173_p3)   ;;  %vm766_vm0 = vmmov (!%p173_p3), 0   ;;  %s200_s25 = smul.u32 (!%p173_p3), 9, %s751_s13  ;;  %vm224_vm1 = vcmask (!%p173_p3), 523264  }
   0x9   : > { %s913_s18 = smov (%p34_p4, %s911_s18), 0  ;;  %176 = sbr.rel (%p173_p3) target bundleno = 279 (0x117), region = 32 }
   0xa   : > { %626 = vmatprep.subr.bf16.mxu0 (!%p173_p3), %v765_v1  ;;  %646 = vmatprep.subr.bf16.mxu1 (!%p173_p3), %v765_v1  ;;  %v710_v3 = vld [vmem:[%s901_s1 + $0x40] sm:$0xff] (!%p173_p3)   ;;  %v712_v4 = vld [vmem:[%s901_s1 + $0x48] sm:$0xff] (!%p173_p3)   ;;  %s201_s28 = sadd.s32 (!%p173_p3), %s747_s12, %s200_s25  ;;  %225 = vst.msk [vmem:[#allocation2] sm:$0xff] (!%p173_p3), %vm224_vm1, %v765_v1  ;;  %v711_v5 = vld [vmem:[%s901_s1 + $0x10] sm:$0xff] (!%p173_p3)   ;;  %s569_s10 = sshll.u32 (!%p173_p3), %s751_s13, 3  ;;  %vm478_vm2 = vcmask (!%p173_p3), 519168  }
   0xb   : > { %627 = vmatpush3.bf16.msra.mxu0 (!%p173_p3), %v708_v0  ;;  %642 = vmatprep.mubr.msk.bf16.mxu0 (!%p173_p3), %vm766_vm0, %v765_v1  ;;  %p203_p5 = scmp.lt.s32.totalorder (!%p173_p3), %s201_s28, 17  ;;  %v714_v6 = vld [vmem:[%s901_s1 + $0x50] sm:$0xff] (!%p173_p3)   ;;  %v713_v7 = vld [vmem:[%s901_s1 + $0x18] sm:$0xff] (!%p173_p3)   ;;  %v715_v9 = vld [vmem:[%s901_s1 + $0x20] sm:$0xff] (!%p173_p3)   ;;  %s212_s11 = sadd.s32 (!%p173_p3), %s747_s12, %s569_s10 }
   0xc   : > { %628 = vmatprep.subr.bf16.mxu0 (!%p173_p3), %v765_v1  ;;  %662 = vmatprep.mubr.msk.bf16.mxu1 (!%p173_p3), %vm766_vm0, %v765_v1  ;;  %v716_v8 = vld [vmem:[%s901_s1 + $0x58] sm:$0xff] (!%p173_p3)   ;;  %v718_v10 = vld [vmem:[%s901_s1 + $0x60] sm:$0xff] (!%p173_p3)   ;;  %v717_v11 = vld [vmem:[%s901_s1 + $0x28] sm:$0xff] (!%p173_p3)   ;;  %p213_p6 = scmp.lt.s32.totalorder (!%p173_p3), %s212_s11, 15 }
   0xd   : > { %647 = vmatpush3.bf16.msra.mxu1 (!%p173_p3), %v710_v3  ;;  %v720_v13 = vld [vmem:[%s901_s1 + $0x68] sm:$0xff] (!%p173_p3)   ;;  %v719_v14 = vld [vmem:[%s901_s1 + $0x30] sm:$0xff] (!%p173_p3)   ;;  %v721_v17 = vld [vmem:[%s901_s1 + $0x38] sm:$0xff] (!%p173_p3)  }
   0xe   : > { %648 = vmatprep.subr.bf16.mxu1 (!%p173_p3), %v765_v1  ;;  %v723_v16 = vld [vmem:[%s901_s1 + $0x70] sm:$0xff] (!%p173_p3)   ;;  %v724_v20 = vld [vmem:[%s901_s1 + $0x78] sm:$0xff] (!%p173_p3)   ;;  %v604_v35 = vld [vmem:[%s902_s2] ss:$0 sm:$0xff] (!%p173_p3) }
   0xf   : > { %629 = vmatpush3.bf16.msra.mxu0 (!%p173_p3), %v709_v2 }
  0x10   : > { %630 = vmatprep.subr.bf16.mxu0 %v765_v1  ;;  %s915_s28 = smov (!%p203_p5, %s201_s28), 17  ;;  %s917_s11 = smov (!%p213_p6, %s212_s11), 15 }
  0x11   : > { %649 = vmatpush3.bf16.msra.mxu1 %v712_v4  ;;  %s607_s8 = sshll.u32 %s915_s28, 3  ;;  %v247_v23 = vld [vmem:[#allocation2] sm:$0xff]  ;;  %s570_s21 = sshll.u32 %s917_s11, 2 }
  0x12   : > { %650 = vmatprep.subr.bf16.mxu1 %v765_v1  ;;  %s207_s20 = scalar_lea.vmem %s900_s0, %s607_s8  ;;  %s216_s24 = scalar_lea.vmem %s903_s3, %s570_s21 }
  0x13   : > { %631 = vmatpush3.bf16.msra.mxu0 %v711_v5  ;;  %v722_v12 = vld [vmem:[%s207_s20] sm:$0x1f]  }
  0x14   : > { %632 = vmatprep.subr.bf16.mxu0 %v765_v1  ;;  %v370_v15 = vshll.u32 %v722_v12, 16  ;;  %v368_v18 = vshrl.u32 %v722_v12, 16  ;;  %v226_v21 = vld [vmem:[%s207_s20] sm:$0xf] }
  0x15   : > { %651 = vmatpush3.bf16.msra.mxu1 %v714_v6 }
  0x16   : > { %652 = vmatprep.subr.bf16.mxu1 %v765_v1  ;;  %v372_v19 = vrot.slane %v370_v15, 1 }
  0x17   : > { %633 = vmatpush3.bf16.msra.mxu0 %v713_v7 }
  0x18   : > { %634 = vmatprep.subr.bf16.mxu0 %v765_v1  ;;  %v373_v22 = vor.u32 %v372_v19, %v368_v18 }
  0x19   : > { %653 = vmatpush3.bf16.msra.mxu1 %v716_v8 }
  0x1a   : > { %654 = vmatprep.subr.bf16.mxu1 %v765_v1 }
  0x1b   : > { %635 = vmatpush3.bf16.msra.mxu0 %v715_v9 }
  0x1c   : > { %636 = vmatprep.subr.bf16.mxu0 %v765_v1 }
  0x1d   : > { %655 = vmatpush3.bf16.msra.mxu1 %v718_v10 }
  0x1e   : > { %656 = vmatprep.subr.bf16.mxu1 %v765_v1 }
  0x1f   : > { %637 = vmatpush3.bf16.msra.mxu0 %v717_v11 }
  0x20   : > { %638 = vmatprep.subr.bf16.mxu0 %v765_v1 }
  0x21   : > { %657 = vmatpush3.bf16.msra.mxu1 %v720_v13 }
  0x22   : > { %658 = vmatprep.subr.bf16.mxu1 %v765_v1 }
  0x23   : > { %639 = vmatpush3.bf16.msra.mxu0 %v719_v14 }
  0x24   : > { %640 = vmatprep.subr.bf16.mxu0 %v765_v1 }
  0x25   : > { %659 = vmatpush3.bf16.msra.mxu1 %v723_v16 }
  0x26   : > { %660 = vmatprep.subr.bf16.mxu1 %v765_v1 }
  0x27   : > { %641 = vmatpush3.bf16.msra.mxu0 %v721_v17 }
  0x29   : > { %661 = vmatpush3.bf16.msra.mxu1 %v724_v20 }
  0x2a   : > { %643 = vmatmul.mubr.bf16.vlgmr.msra.gmra.mrb[0].mxu0 %v226_v21 }
  0x2c   : > { %663 = vmatmul.mubr.bf16.vlgmr.msra.gmra.mrb[0].mxu1 %v373_v22 }
  0xfd   : > { %v330_v24 = vpop.f32.mrb[0].mxu0 }
  0xfe   : > { %v336_v25 = vadd.f32 %v330_v24, %v247_v23  ;;  %v644_v26 = vpop.f32.mrb[1].mxu0 }
  0xff   : > { %v333_v27 = vpop.f32.mrb[2].mxu0  ;;  %v457_v28 = vpop.f32.mrb[0].mxu1 }
 0x100   : > { %338 = vst.msk [vmem:[#allocation2] sm:$0xff] %vm224_vm1, %v336_v25  ;;  %v645_v29 = vpop.f32.mrb[3].mxu0  ;;  %v664_v30 = vpop.f32.mrb[1].mxu1 }
 0x101   : > { %v460_v31 = vpop.f32.mrb[2].mxu1 }
 0x102   : > { %v665_v32 = vpop.f32.mrb[3].mxu1 }
 0x107   : > { %v361_v33 = vld [vmem:[#allocation2] sm:$0xff] }
 0x108   : > { %v463_v34 = vadd.f32 %v457_v28, %v361_v33 }
 0x10a   : > { %464 = vst.msk [vmem:[#allocation2] sm:$0xff] %vm224_vm1, %v463_v34 }
 0x111   : > { %v468_v36 = vld [vmem:[#allocation2] sm:$0xff] }
 0x112   : > { %v476_v37 = vadd.f32 %v604_v35, %v468_v36 }
 0x114   : > { %v477_v38 = vpack.c.bf16 %v476_v37, %v476_v37 }
 0x116   : > { %479 = vst.msk [vmem:[%s216_s24] sm:$0xf] %vm478_vm2, %v477_v38 }
 0x117 PF: > { %s13_s16 = sadd.s32 1, %s763_s16   ;;  %s904_s12 = smov %s755_s14 }
 0x118   : > { %p10_p7 = scmp.ge.s32.totalorder %s13_s16, 18   ;;  %s905_s13 = smov %s759_s15 }
 0x119   : > { %s906_s14 = smov %s909_s17  ;;  %s907_s15 = smov %s913_s18 }
 0x11a   :  { %12 = sbr.rel (!%p10_p7) target bundleno = 3 (0x3), region = 72 }

// kernel: generator_forward.105
= control target key start
LH: loop header
LB: loop body
LE: loop exit
PB: predicated region body
PF: predicated region fallthrough
CT: control target
= control target key end

     0   :  { %s1516_s12 = smov 0   ;;  %s1518_s13 = smov 0   ;;  %s1711_s0 = inlined_call_operand.vmem [shape: bf16[44,1,22,64], index: 0, kind: input, shape index: {}]   ;;  %s1712_s1 = inlined_call_operand.vmem [shape: bf16[49,64,3], index: 1, kind: input, shape index: {}]   ;;  %s1713_s2 = inlined_call_operand.vmem [shape: f32[1,3], index: 2, kind: input, shape index: {}]   ;;  %s1714_s3 = inlined_call_operand.vmem [shape: f32[32,16,3], index: 3, kind: output, shape index: {}]  }
   0x1   :  { %s1520_s14 = smov 0   ;;  %s1522_s15 = smov 0  }
   0x2   :  { %s1524_s16 = smov 0   ;;  %s1526_s17 = smov 0  }
   0x3   :  { %s1528_s18 = smov 0  }
   0x4 LB: > { %s25_s19 = sadd.s32 1, %s1479_s15  ;;  %s28_s20 = sadd.s32 1, %s1483_s16  ;;  %s1491_s18 = sphi %s1528_s18, %s13_s18   ;;  %s1487_s17 = sphi %s1526_s17, %s1720_s17   ;;  %s1483_s16 = sphi %s1524_s16, %s1719_s16   ;;  %s1479_s15 = sphi %s1522_s15, %s1718_s15   ;;  %s1475_s14 = sphi %s1520_s14, %s1717_s14   ;;  %s1471_s13 = sphi %s1518_s13, %s1716_s13   ;;  %s1467_s12 = sphi %s1516_s12, %s1715_s12  }
   0x5   : > { %p26_p0 = scmp.ge.s32.totalorder %s25_s19, 7  ;;  %p1097_p1 = scmp.ge.s32.totalorder %s1491_s18, 1 }
   0x6   : > { %p172_p2 = scmp.lt.s32.totalorder %s1491_s18, 225  ;;  %s32_s21 = sadd.s32 1, %s1487_s17 }
   0x7   : > { %s1722_s19 = smov (%p26_p0, %s25_s19), 0  ;;  %s1724_s20 = smov (!%p26_p0, %s28_s20), %s1483_s16 }
   0x8   : > { %p173_p3 = pnand %p1097_p1, %p172_p2  ;;  %p30_p4 = scmp.ge.s32.totalorder %s1724_s20, 16 }
   0x9   : > { %s201_s22 = smul.u32 (!%p173_p3), 22, %s1475_s14  ;;  %s1099_s23 = sshll.u32 (!%p173_p3), %s1475_s14, 4 }
   0xa   : > { %s1726_s20 = smov (%p30_p4, %s1724_s20), 0  ;;  %s1728_s21 = smov (!%p30_p4, %s32_s21), %s1487_s17 }
   0xb   : > { %p34_p5 = scmp.ge.s32.totalorder %s1728_s21, 2  ;;  %176 = sbr.rel (%p173_p3) target bundleno = 344 (0x158), region = 32 }
   0xc   : > { %s213_s24 = sadd.s32 (!%p173_p3), %s1471_s13, %s1099_s23  ;;  %s202_s25 = sadd.s32 (!%p173_p3), %s1471_s13, %s201_s22 }
   0xd   : > { %s1730_s21 = smov (%p34_p5, %s1728_s21), 0  ;;  %p214_p6 = scmp.lt.s32.totalorder (!%p173_p3), %s213_s24, 31 }
   0xe   : > { %s203_s26 = sadd.s32 (!%p173_p3), %s1467_s12, %s202_s25  ;;  %p1102_p8 = scmp.ne.s32.totalorder (!%p173_p3), %s1467_s12, 0 }
   0xf   : > { %p204_p7 = scmp.lt.s32.totalorder (!%p173_p3), %s203_s26, 43 }
  0x12   : > { %s1732_s24 = smov (!%p214_p6, %s213_s24), 31  ;;  %s1734_s26 = smov (!%p204_p7, %s203_s26), 43 }
  0x13   : > { %s1211_s27 = sshll.u32 %s1732_s24, 4  ;;  %s1332_s28 = smul.u32 12, %s1734_s26  ;;  %vm226_vm0 = vcmask (!%p1102_p8), 23552   ;;  %v1493_v0 = vmov (!%p1102_p8), 0.0  }
  0x14   : > { %s1564_s4 = scalar_lea.vmem %s1714_s3, %s1211_s27  ;;  %225 = sbr.rel (%p1102_p8) target bundleno = 27 (0x1b), region = 36  ;;  %227 = vst.msk [vmem:[#allocation2] sm:$0xff] (!%p1102_p8), %vm226_vm0, %v1493_v0  ;;  %228 = vst.msk [vmem:[#allocation2 + $0x8] sm:$0xff] (!%p1102_p8), %vm226_vm0, %v1493_v0 }
  0x15   : > { %s1569_s7 = scalar_lea.vmem %s1711_s0, %s1332_s28 }
  0x1b PF: > { %s1212_s8 = smul.u32 224, %s1467_s12  ;;  %v1494_v1 = vmov 0.0   ;;  %vm1495_vm1 = vmmov 0   ;;  %v1403_v2 = vld [vmem:[%s1569_s7] sm:$0xff]   ;;  %vm274_vm2 = vcmask 523264   ;;  %vm459_vm4 = vcmask 1046528  }
  0x1c   : > { %1248 = vmatprep.subr.bf16.mxu0 %v1494_v1  ;;  %1260 = vmatprep.subr.bf16.mxu1 %v1494_v1  ;;  %v353_v7 = vshll.u32 %v1403_v2, 16  ;;  %v351_v9 = vshrl.u32 %v1403_v2, 16  ;;  %v1404_v13 = vld [vmem:[%s1569_s7 + $0x8] ss:$0 sps:$4 sm:$0x11]   ;;  %v1398_v14 = vld [vmem:[%s1569_s7] sm:$0xff]  }
  0x1d   : > { %s1578_s11 = scalar_lea.vmem %s1712_s1, %s1212_s8  ;;  %1256 = vmatprep.mubr.msk.bf16.mxu0 %vm1495_vm1, %v1494_v1  ;;  %1268 = vmatprep.mubr.msk.bf16.mxu1 %vm1495_vm1, %v1494_v1  ;;  %v358_v17 = vshll.u32 %v1404_v13, 16  ;;  %vm349_vm3 = vsmask.f32 7424  ;;  %v1410_v24 = vld [vmem:[%s1569_s7 + $0x8] ss:$0 sps:$4 sm:$0x11]  }
  0x1e   : > { %v1392_v3 = vld [vmem:[%s1578_s11] sm:$0xff]   ;;  %v1393_v4 = vld [vmem:[%s1578_s11 + $0x8] sm:$0xff]   ;;  %v1395_v8 = vld [vmem:[%s1578_s11 + $0x10] sm:$0xff]   ;;  %v355_v11 = vrot.slane %v353_v7, 1  ;;  %v461_v40 = vrot.slane %v1410_v24, 1  ;;  %vm675_vm6 = vcmask 1045504  }
  0x1f   : > { %1249 = vmatpush3.bf16.msra.mxu0 %v1392_v3  ;;  %v1394_v5 = vld [vmem:[%s1578_s11 + $0x20] sm:$0xff]   ;;  %v1396_v6 = vld [vmem:[%s1578_s11 + $0x28] sm:$0xff]   ;;  %v1399_v10 = vld [vmem:[%s1578_s11 + $0x30] sm:$0xff]   ;;  %v360_v19 = vrot.slane %v358_v17, 1  ;;  %vm560_vm5 = vsmask.f32 6400 }
  0x20   : > { %1250 = vmatprep.subr.bf16.mxu0 %v1494_v1  ;;  %1261 = vmatpush3.bf16.msra.mxu1 %v1394_v5  ;;  %v1397_v12 = vld [vmem:[%s1578_s11 + $0x18] sm:$0xff]   ;;  %v356_v16 = vor.u32 %v355_v11, %v351_v9  ;;  %v1400_v18 = vld [vmem:[%s1578_s11 + $0x40] sm:$0xff]   ;;  %v1402_v22 = vld [vmem:[%s1578_s11 + $0x48] sm:$0xff]   ;;  %vm776_vm7 = vsmask.f32 5376  ;;  %vm891_vm8 = vcmask 1044480  }
  0x21   : > { %1262 = vmatprep.subr.bf16.mxu1 %v1494_v1  ;;  %v1401_v15 = vld [vmem:[%s1578_s11 + $0x38] sm:$0xff]   ;;  %v1406_v21 = vld [vmem:[%s1578_s11 + $0x60] sm:$0xff]   ;;  %v1408_v23 = vld [vmem:[%s1578_s11 + $0x68] sm:$0xff]   ;;  %vm321_vm9 = vcmask 23552   ;;  %p1207_p9 = scmp.ne.s32.totalorder %s1467_s12, 6 }
  0x22   : > { %v361_v20 = vsel %vm349_vm3, %v356_v16, %v360_v19  ;;  %v1405_v25 = vld [vmem:[%s1578_s11 + $0x50] sm:$0xff]   ;;  %v1415_v26 = vld [vmem:[%s1569_s7] sm:$0xfe]   ;;  %v1416_v27 = vld [vmem:[%s1569_s7 + $0x8] ss:$0 sps:$4 sm:$0x33]  }
  0x23   : > { %1251 = vmatpush3.bf16.msra.mxu0 %v1393_v4  ;;  %v1409_v28 = vld [vmem:[%s1569_s7] sm:$0xfe]   ;;  %v562_v29 = vshrl.u32 %v1415_v26, 16  ;;  %v565_v30 = vshll.u32 %v1415_v26, 16  ;;  %v570_v31 = vshrl.u32 %v1416_v27, 16  ;;  %v573_v32 = vshll.u32 %v1416_v27, 16 }
  0x24   : > { %1252 = vmatprep.subr.bf16.mxu0 %v1494_v1  ;;  %1263 = vmatpush3.bf16.msra.mxu1 %v1396_v6  ;;  %v1407_v33 = vld [vmem:[%s1578_s11 + $0x58] sm:$0xff]   ;;  %v1411_v34 = vld [vmem:[%s1578_s11 + $0x70] sm:$0xff]   ;;  %v460_v39 = vrot.slane %v1409_v28, 1  ;;  %v1412_v45 = vld [vmem:[%s1578_s11 + $0x80] sm:$0xff]  }
  0x25   : > { %1264 = vmatprep.subr.bf16.mxu1 %v1494_v1  ;;  %v564_v35 = vrot.slane %v562_v29, 1  ;;  %v567_v36 = vrot.slane %v565_v30, 2  ;;  %v572_v37 = vrot.slane %v570_v31, 1  ;;  %v575_v38 = vrot.slane %v573_v32, 2  ;;  %v1413_v41 = vld [vmem:[%s1578_s11 + $0x78] sm:$0xff]   ;;  %v1418_v47 = vld [vmem:[%s1578_s11 + $0xa0] sm:$0xff]  }
  0x26   : > { %v462_v44 = vsel %vm459_vm4, %v460_v39, %v461_v40  ;;  %v1414_v48 = vld [vmem:[%s1578_s11 + $0x88] sm:$0xff]   ;;  %v1427_v49 = vld [vmem:[%s1569_s7] sm:$0xfc]   ;;  %v1417_v57 = vld [vmem:[%s1578_s11 + $0x90] sm:$0xff]  }
  0x27   : > { %1253 = vmatpush3.bf16.msra.mxu0 %v1395_v8  ;;  %v568_v42 = vor.u32 %v567_v36, %v564_v35  ;;  %v576_v43 = vor.u32 %v575_v38, %v572_v37  ;;  %v1428_v50 = vld [vmem:[%s1569_s7 + $0x8] ss:$0 sps:$4 sm:$0x77]   ;;  %v778_v52 = vshrl.u32 %v1427_v49, 16  ;;  %v781_v53 = vshll.u32 %v1427_v49, 16  ;;  %v1423_v59 = vld [vmem:[%s1578_s11 + $0xb0] sm:$0xff]  }
  0x28   : > { %1254 = vmatprep.subr.bf16.mxu0 %v1494_v1  ;;  %1265 = vmatpush3.bf16.msra.mxu1 %v1399_v10  ;;  %v1420_v51 = vld [vmem:[%s1578_s11 + $0xa8] sm:$0xff]   ;;  %v786_v54 = vshrl.u32 %v1428_v50, 16  ;;  %v789_v55 = vshll.u32 %v1428_v50, 16  ;;  %v1421_v56 = vld [vmem:[%s1569_s7] sm:$0xfc]   ;;  %v1419_v0 = vld [vmem:[%s1578_s11 + $0x98] sm:$0xff]  }
  0x29   : > { %1266 = vmatprep.subr.bf16.mxu1 %v1494_v1  ;;  %v577_v46 = vsel %vm560_vm5, %v568_v42, %v576_v43  ;;  %v1422_v58 = vld [vmem:[%s1569_s7 + $0x8] ss:$0 sps:$4 sm:$0x33]   ;;  %v780_v60 = vrot.slane %v778_v52, 2  ;;  %v783_v61 = vrot.slane %v781_v53, 3  ;;  %v676_v2 = vrot.slane %v1421_v56, 2 }
  0x2a   : > { %v788_v62 = vrot.slane %v786_v54, 2  ;;  %v791_v63 = vrot.slane %v789_v55, 3  ;;  %v677_v3 = vrot.slane %v1422_v58, 2  ;;  %v1425_v4 = vld [vmem:[%s1578_s11 + $0xb8] sm:$0xff]   ;;  %v1424_v8 = vld [vmem:[%s1578_s11 + $0xc0] sm:$0xff]   ;;  %v1426_v10 = vld [vmem:[%s1578_s11 + $0xc8] sm:$0xff]  }
  0x2b   : > { %1255 = vmatpush3.bf16.msra.mxu0 %v1397_v12  ;;  %v784_v5 = vor.u32 %v783_v61, %v780_v60  ;;  %v1429_v11 = vld [vmem:[%s1578_s11 + $0xd0] sm:$0xff]   ;;  %v1431_v12 = vld [vmem:[%s1569_s7] sm:$0xf8]   ;;  %v1432_v13 = vld [vmem:[%s1569_s7 + $0x8] ss:$0 sps:$4 sm:$0x77]  }
  0x2c   : > { %1272 = vmatprep.subr.bf16.mxu0 %v1494_v1  ;;  %1267 = vmatpush3.bf16.msra.mxu1 %v1401_v15  ;;  %v792_v6 = vor.u32 %v791_v63, %v788_v62  ;;  %v678_v7 = vsel %vm675_vm6, %v676_v2, %v677_v3  ;;  %v892_v15 = vrot.slane %v1431_v12, 3  ;;  %v893_v16 = vrot.slane %v1432_v13, 3 }
  0x2d   : > { %1284 = vmatprep.subr.bf16.mxu1 %v1494_v1 }
  0x2e   : > { %1257 = vmatmul.mubr.msk.bf16.vlgmr.msra.gmra.mrb[0].mxu0 %vm274_vm2, %v1398_v14  ;;  %v793_v9 = vsel %vm776_vm7, %v784_v5, %v792_v6  ;;  %v1430_v14 = vld [vmem:[%s1578_s11 + $0xd8] sm:$0xff]   ;;  %v894_v17 = vsel %vm891_vm8, %v892_v15, %v893_v16 }
  0x2f   : > { %1273 = vmatpush3.bf16.msra.mxu0 %v1400_v18  ;;  %1280 = vmatprep.mubr.msk.bf16.mxu0 %vm1495_vm1, %v1494_v1  ;;  %v243_v18 = vld [vmem:[#allocation2] sm:$0xff] }
  0x30   : > { %1274 = vmatprep.subr.bf16.mxu0 %v1494_v1  ;;  %1269 = vmatmul.mubr.msk.bf16.vlgmr.msra.gmra.mrb[0].mxu1 %vm274_vm2, %v361_v20  ;;  %v244_v20 = vld [vmem:[#allocation2 + $0x8] sm:$0xff] }
  0x31   : > { %1285 = vmatpush3.bf16.msra.mxu1 %v1406_v21  ;;  %1292 = vmatprep.mubr.msk.bf16.mxu1 %vm1495_vm1, %v1494_v1 }
  0x32   : > { %1286 = vmatprep.subr.bf16.mxu1 %v1494_v1 }
  0x33   : > { %1275 = vmatpush3.bf16.msra.mxu0 %v1402_v22 }
  0x34   : > { %1276 = vmatprep.subr.bf16.mxu0 %v1494_v1 }
  0x35   : > { %1287 = vmatpush3.bf16.msra.mxu1 %v1408_v23 }
  0x36   : > { %1288 = vmatprep.subr.bf16.mxu1 %v1494_v1 }
  0x37   : > { %1277 = vmatpush3.bf16.msra.mxu0 %v1405_v25 }
  0x38   : > { %1278 = vmatprep.subr.bf16.mxu0 %v1494_v1 }
  0x39   : > { %1289 = vmatpush3.bf16.msra.mxu1 %v1411_v34 }
  0x3a   : > { %1290 = vmatprep.subr.bf16.mxu1 %v1494_v1 }
  0x3b   : > { %1279 = vmatpush3.bf16.msra.mxu0 %v1407_v33 }
  0x3c   : > { %1296 = vmatprep.subr.bf16.mxu0 %v1494_v1 }
  0x3d   : > { %1291 = vmatpush3.bf16.msra.mxu1 %v1413_v41 }
  0x3e   : > { %1281 = vmatmul.mubr.msk.bf16.vlgmr.msra.gmra.mrb[4].mxu0 %vm274_vm2, %v462_v44  ;;  %1308 = vmatprep.subr.bf16.mxu1 %v1494_v1 }
  0x3f   : > { %1297 = vmatpush3.bf16.msra.mxu0 %v1412_v45  ;;  %1304 = vmatprep.mubr.msk.bf16.mxu0 %vm1495_vm1, %v1494_v1 }
  0x40   : > { %1298 = vmatprep.subr.bf16.mxu0 %v1494_v1  ;;  %1293 = vmatmul.mubr.msk.bf16.vlgmr.msra.gmra.mrb[4].mxu1 %vm274_vm2, %v577_v46 }
  0x41   : > { %1309 = vmatpush3.bf16.msra.mxu1 %v1418_v47  ;;  %1316 = vmatprep.mubr.msk.bf16.mxu1 %vm1495_vm1, %v1494_v1 }
  0x42   : > { %1310 = vmatprep.subr.bf16.mxu1 %v1494_v1 }
  0x43   : > { %1299 = vmatpush3.bf16.msra.mxu0 %v1414_v48 }
  0x44   : > { %1300 = vmatprep.subr.bf16.mxu0 %v1494_v1 }
  0x45   : > { %1311 = vmatpush3.bf16.msra.mxu1 %v1420_v51 }
  0x46   : > { %1312 = vmatprep.subr.bf16.mxu1 %v1494_v1 }
  0x47   : > { %1301 = vmatpush3.bf16.msra.mxu0 %v1417_v57 }
  0x48   : > { %1302 = vmatprep.subr.bf16.mxu0 %v1494_v1 }
  0x49   : > { %1313 = vmatpush3.bf16.msra.mxu1 %v1423_v59 }
  0x4a   : > { %1314 = vmatprep.subr.bf16.mxu1 %v1494_v1 }
  0x4b   : > { %1303 = vmatpush3.bf16.msra.mxu0 %v1419_v0 }
  0x4c   : > { %1320 = vmatprep.subr.bf16.mxu0 %v1494_v1 }
  0x4d   : > { %1315 = vmatpush3.bf16.msra.mxu1 %v1425_v4 }
  0x4e   : > { %1305 = vmatmul.mubr.msk.bf16.vlgmr.msra.gmra.mrb[8].mxu0 %vm274_vm2, %v678_v7 }
  0x4f   : > { %1321 = vmatpush3.bf16.msra.mxu0 %v1424_v8  ;;  %1328 = vmatprep.mubr.msk.bf16.mxu0 %vm1495_vm1, %v1494_v1 }
  0x50   : > { %1322 = vmatprep.subr.bf16.mxu0 %v1494_v1  ;;  %1317 = vmatmul.mubr.msk.bf16.vlgmr.msra.gmra.mrb[8].mxu1 %vm274_vm2, %v793_v9 }
  0x53   : > { %1323 = vmatpush3.bf16.msra.mxu0 %v1426_v10 }
  0x54   : > { %1324 = vmatprep.subr.bf16.mxu0 %v1494_v1 }
  0x57   : > { %1325 = vmatpush3.bf16.msra.mxu0 %v1429_v11  ;;  %v1208_v11 = vld [vmem:[%s1713_s2] ss:$0 sm:$0xff] (!%p1207_p9) }
  0x58   : > { %1326 = vmatprep.subr.bf16.mxu0 %v1494_v1 }
  0x5b   : > { %1327 = vmatpush3.bf16.msra.mxu0 %v1430_v14 }
  0x5e   : > { %1329 = vmatmul.mubr.msk.bf16.vlgmr.msra.gmra.mrb[12].mxu0 %vm274_vm2, %v894_v17 }
 0x101   : > { %v312_v19 = vpop.f32.mrb[0].mxu0 }
 0x102   : > { %v319_v21 = vadd.f32 %v312_v19, %v243_v18  ;;  %v1258_v22 = vpop.f32.mrb[1].mxu0 }
 0x103   : > { %v315_v23 = vpop.f32.mrb[2].mxu0  ;;  %v423_v24 = vpop.f32.mrb[0].mxu1 }
 0x104   : > { %322 = vst.msk [vmem:[#allocation2] sm:$0xff] %vm321_vm9, %v319_v21  ;;  %v320_v25 = vadd.f32 %v315_v23, %v244_v20  ;;  %v1259_v26 = vpop.f32.mrb[3].mxu0  ;;  %v1270_v27 = vpop.f32.mrb[1].mxu1 }
 0x105   : > { %v426_v28 = vpop.f32.mrb[2].mxu1 }
 0x106   : > { %323 = vst.msk [vmem:[#allocation2 + $0x8] sm:$0xff] %vm321_vm9, %v320_v25  ;;  %v1271_v1 = vpop.f32.mrb[3].mxu1 }
 0x10b   : > { %v339_v29 = vld [vmem:[#allocation2] sm:$0xff] }
 0x10c   : > { %v430_v30 = vadd.f32 %v423_v24, %v339_v29 }
 0x10d   : > { %v340_v31 = vld [vmem:[#allocation2 + $0x8] sm:$0xff] }
 0x10e   : > { %432 = vst.msk [vmem:[#allocation2] sm:$0xff] %vm321_vm9, %v430_v30  ;;  %v431_v32 = vadd.f32 %v426_v28, %v340_v31 }
 0x110   : > { %433 = vst.msk [vmem:[#allocation2 + $0x8] sm:$0xff] %vm321_vm9, %v431_v32 }
 0x111   : > { %v524_v33 = vpop.f32.mrb[4].mxu0 }
 0x112   : > { %v1282_v34 = vpop.f32.mrb[5].mxu0 }
 0x113   : > { %v527_v35 = vpop.f32.mrb[6].mxu0  ;;  %v639_v36 = vpop.f32.mrb[4].mxu1 }
 0x114   : > { %v1283_v37 = vpop.f32.mrb[7].mxu0  ;;  %v1294_v38 = vpop.f32.mrb[5].mxu1 }
 0x115   : > { %v449_v39 = vld [vmem:[#allocation2] sm:$0xff]  ;;  %v642_v40 = vpop.f32.mrb[6].mxu1 }
 0x116   : > { %v531_v41 = vadd.f32 %v524_v33, %v449_v39  ;;  %v1295_v42 = vpop.f32.mrb[7].mxu1 }
 0x117   : > { %v450_v43 = vld [vmem:[#allocation2 + $0x8] sm:$0xff] }
 0x118   : > { %533 = vst.msk [vmem:[#allocation2] sm:$0xff] %vm321_vm9, %v531_v41  ;;  %v532_v44 = vadd.f32 %v527_v35, %v450_v43 }
 0x11a   : > { %534 = vst.msk [vmem:[#allocation2 + $0x8] sm:$0xff] %vm321_vm9, %v532_v44 }
 0x11f   : > { %v550_v45 = vld [vmem:[#allocation2] sm:$0xff] }
 0x120   : > { %v646_v46 = vadd.f32 %v639_v36, %v550_v45 }
 0x121   : > { %v551_v47 = vld [vmem:[#allocation2 + $0x8] sm:$0xff]  ;;  %v740_v48 = vpop.f32.mrb[8].mxu0 }
 0x122   : > { %648 = vst.msk [vmem:[#allocation2] sm:$0xff] %vm321_vm9, %v646_v46  ;;  %v647_v49 = vadd.f32 %v642_v40, %v551_v47  ;;  %v1306_v50 = vpop.f32.mrb[9].mxu0 }
 0x123   : > { %v743_v51 = vpop.f32.mrb[10].mxu0  ;;  %v855_v52 = vpop.f32.mrb[8].mxu1 }
 0x124   : > { %649 = vst.msk [vmem:[#allocation2 + $0x8] sm:$0xff] %vm321_vm9, %v647_v49  ;;  %v1307_v53 = vpop.f32.mrb[11].mxu0  ;;  %v1318_v54 = vpop.f32.mrb[9].mxu1 }
 0x125   : > { %v858_v55 = vpop.f32.mrb[10].mxu1 }
 0x126   : > { %v1319_v56 = vpop.f32.mrb[11].mxu1 }
 0x129   : > { %v665_v57 = vld [vmem:[#allocation2] sm:$0xff] }
 0x12a   : > { %v747_v58 = vadd.f32 %v740_v48, %v665_v57 }
 0x12b   : > { %v666_v59 = vld [vmem:[#allocation2 + $0x8] sm:$0xff] }
 0x12c   : > { %749 = vst.msk [vmem:[#allocation2] sm:$0xff] %vm321_vm9, %v747_v58  ;;  %v748_v60 = vadd.f32 %v743_v51, %v666_v59 }
 0x12e   : > { %750 = vst.msk [vmem:[#allocation2 + $0x8] sm:$0xff] %vm321_vm9, %v748_v60 }
 0x131   : > { %v956_v61 = vpop.f32.mrb[12].mxu0 }
 0x132   : > { %v1330_v62 = vpop.f32.mrb[13].mxu0 }
 0x133   : > { %v766_v63 = vld [vmem:[#allocation2] sm:$0xff]  ;;  %v959_v0 = vpop.f32.mrb[14].mxu0 }
 0x134   : > { %v862_v2 = vadd.f32 %v855_v52, %v766_v63  ;;  %v1331_v3 = vpop.f32.mrb[15].mxu0 }
 0x135   : > { %v767_v4 = vld [vmem:[#allocation2 + $0x8] sm:$0xff] }
 0x136   : > { %864 = vst.msk [vmem:[#allocation2] sm:$0xff] %vm321_vm9, %v862_v2  ;;  %v863_v5 = vadd.f32 %v858_v55, %v767_v4 }
 0x138   : > { %865 = vst.msk [vmem:[#allocation2 + $0x8] sm:$0xff] %vm321_vm9, %v863_v5 }
 0x13c   : > { %970 = sbr.rel (%p1207_p9) target bundleno = 344 (0x158), region = 40 }
 0x13d   : > { %v881_v6 = vld [vmem:[#allocation2] sm:$0xff] }
 0x13e   : > { %v963_v7 = vadd.f32 %v956_v61, %v881_v6 }
 0x13f   : > { %v882_v8 = vld [vmem:[#allocation2 + $0x8] sm:$0xff] }
 0x140   : > { %965 = vst.msk [vmem:[#allocation2] sm:$0xff] %vm321_vm9, %v963_v7  ;;  %v964_v9 = vadd.f32 %v959_v0, %v882_v8 }
 0x142   : > { %966 = vst.msk [vmem:[#allocation2 + $0x8] sm:$0xff] %vm321_vm9, %v964_v9 }
 0x147   : > { %v971_v10 = vld [vmem:[#allocation2] sm:$0xff] }
 0x148   : > { %v980_v13 = vadd.f32 %v1208_v11, %v971_v10 }
 0x149   : > { %v972_v12 = vld [vmem:[#allocation2 + $0x8] sm:$0xff] }
 0x14a   : > { %v981_v14 = vadd.f32 %v1208_v11, %v972_v12  ;;  %1433 = vtanh.f32 %v980_v13 }
 0x14c   : > { %1435 = vtanh.f32 %v981_v14 }
 0x154   : > { %v1434_v15 = vpop.eup %1433 }
 0x155   : > { %984 = vst.msk [vmem:[%s1564_s4] sm:$0xff] %vm321_vm9, %v1434_v15 }
 0x156   : > { %v1436_v16 = vpop.eup %1435 }
 0x157   : > { %985 = vst.msk [vmem:[%s1564_s4 + $0x8] sm:$0xff] %vm321_vm9, %v1436_v16 }
 0x158 PF: > { %s13_s18 = sadd.s32 1, %s1491_s18   ;;  %s1715_s12 = smov %s1479_s15 }
 0x159   : > { %p10_p10 = scmp.ge.s32.totalorder %s13_s18, 226   ;;  %s1716_s13 = smov %s1483_s16 }
 0x15a   : > { %s1717_s14 = smov %s1487_s17  ;;  %s1718_s15 = smov %s1722_s19 }
 0x15b   : > { %s1719_s16 = smov %s1726_s20  ;;  %s1720_s17 = smov %s1730_s21 }
 0x15c   :  { %12 = sbr.rel (!%p10_p10) target bundleno = 4 (0x4), region = 77 }

</bundles_post_ra>
